<compile_context>
chip_gen: v6e
topology: v6e:2x2x1
jax: 0.10.0
libtpu: 0.0.40
codegen_flags: <defaults>
</compile_context>

<pallas_src>
import jax
import jax.numpy as jnp
from jax.experimental import pallas as pl
from jax.experimental.pallas import tpu as pltpu


def _regression_head_kernel(x_ref, wct_ref, hbias_ref, wl_ref, bl_ref, out_ref, acc_ref):
    # x_ref:     [1, C1, TP]   spatial tile, native layout (channels=sublanes, spatial=lanes)
    # wct_ref:   [Cm, C1]      1x1-conv weight with BN scale folded, output channels as rows
    # hbias_ref: [Cm, 1]       0.5 * folded BN additive bias (broadcast over lanes)
    # wl_ref:    [Cm, 1]       linear weight pre-scaled by 1/(H*W)
    # bl_ref:    [1, 1]        linear bias (incl. exact spatial-padding correction)
    # out_ref:   [1, 1, 1]
    # acc_ref:   [Cm, TP] f32  lane-dense per-channel partial spatial sums (persistent)
    p = pl.program_id(1)

    @pl.when(p == 0)
    def _():
        acc_ref[...] = jnp.zeros_like(acc_ref)

    # Conv1x1 for this spatial tile: [Cm, C1] @ [C1, TP] -> [Cm, TP] on the MXU, f32 acc.
    y = jnp.dot(wct_ref[...], x_ref[0], preferred_element_type=jnp.float32)

    # Folded BN bias + SiLU, fused tanh form: silu(v) = h*(tanh(h)+1) with h = 0.5*v.
    # Accumulation into acc_ref is one extra (lane-dense) VPU add per element.
    # TODO(synk): a bf16 elementwise path here would roughly halve VPU/EUP work on
    # v6e/v7x, but is kept f32 so the same kernel also lowers on v5e.
    h = 0.5 * y + hbias_ref[...]
    acc_ref[...] += h * (jnp.tanh(h) + 1.0)

    @pl.when(p == pl.num_programs(1) - 1)
    def _():
        # Linear(Cm -> 1): weight the per-channel spatial sums (1/P already folded into
        # wl) and reduce to a scalar on VPU/XLU — no wasteful 1-column MXU pass.
        val = jnp.sum(acc_ref[...] * wl_ref[...]) + bl_ref[...]
        out_ref[...] = val.reshape(1, 1, 1).astype(out_ref.dtype)


def regression_head_forward(x_nchw, conv_w, bn_gamma, bn_beta, bn_mean, bn_var,
                            lin_w, lin_b, eps=1e-5, compute_dtype=jnp.float32):
    """x_nchw: [N, C1, H, W] (native PyTorch layout). Returns [N, 1] float32."""
    N, C1, H, W = x_nchw.shape
    Cm = conv_w.shape[0]          # 1280
    P = H * W

    # ---- Parameter folding (once, on tiny arrays, in plain XLA) --------------------
    scale = (bn_gamma / jnp.sqrt(bn_var + eps)).astype(jnp.float32)             # [Cm]
    wct = conv_w.reshape(Cm, C1).astype(jnp.float32) * scale[:, None]           # [Cm, C1]
    bias = (bn_beta - bn_mean * scale).astype(jnp.float32)                      # [Cm]
    hbias = (0.5 * bias).reshape(Cm, 1)                                         # [Cm, 1]
    wl = (lin_w.reshape(Cm).astype(jnp.float32) / float(P)).reshape(Cm, 1)      # [Cm, 1]

    # ---- x stays in native [N, C1, P] order: free reshape, no HBM transpose pass ---
    x = x_nchw.reshape(N, C1, P)

    # Spatial tile: lane axis, multiple of 128, capped at 512 so the live [Cm, TP] f32
    # activation + the accumulator stay ~2.5 MiB each on every TPU generation.
    P_pad = ((P + 127) // 128) * 128
    TP = next(t for t in (512, 384, 256, 128) if P_pad % t == 0)
    P_pad = ((P + TP - 1) // TP) * TP
    n_pad = P_pad - P
    if n_pad:
        x = jnp.pad(x, ((0, 0), (0, 0), (0, n_pad)))   # extra pass only for awkward H*W

    # Each zero-padded spatial column contributes exactly silu(bias) per channel to the
    # accumulated sum; fold the exact correction into the linear bias.
    silu_bias = 0.5 * bias * (jnp.tanh(0.5 * bias) + 1.0)
    corr = float(n_pad) * jnp.sum(silu_bias * wl.reshape(Cm))
    bl = lin_b.reshape(1, 1).astype(jnp.float32) - corr                          # [1, 1]

    # Operand dtype: bf16 halves x/weight DMA + VMEM (MXU-native on v5e/v6e/v7x);
    # in production the upstream layer should emit bf16 directly to avoid this cast.
    x = x.astype(compute_dtype)
    wct = wct.astype(compute_dtype)

    # Batch tile = 1: "parallel" axis has N steps (>= 2 keeps both v7x cores busy).
    grid = (N, P_pad // TP)

    itemsize = jnp.dtype(compute_dtype).itemsize
    vmem_bytes = (
        2 * C1 * TP * itemsize                 # x tile (double-buffered)
        + 2 * Cm * max(C1, 128) * itemsize     # wct, lane-padded (double-buffered)
        + 4 * Cm * 128 * 4                     # hbias/wl columns, lane-padded (2 bufs each)
        + 5 * Cm * TP * 4                      # f32 accumulator + matmul/SiLU temporaries
        + (4 << 20)                            # Mosaic-internal scratch slack
    )
    vmem_bytes = int(min(max(vmem_bytes, 16 << 20), 48 << 20))

    # NOTE: pl.Buffered(1) on the constant-index weight specs would drop their second
    # VMEM buffer (a few MiB at large C1); skipped here for maximum compile portability.
    out3 = pl.pallas_call(
        _regression_head_kernel,
        out_shape=jax.ShapeDtypeStruct((N, 1, 1), jnp.float32),
        grid_spec=pltpu.PrefetchScalarGridSpec(
            num_scalar_prefetch=0,
            grid=grid,
            in_specs=[
                pl.BlockSpec((1, C1, TP), lambda b, p: (b, 0, p)),   # x tile (lane-dense spatial)
                pl.BlockSpec((Cm, C1), lambda b, p: (0, 0)),         # folded conv weight (resident)
                pl.BlockSpec((Cm, 1), lambda b, p: (0, 0)),          # 0.5 * BN bias column
                pl.BlockSpec((Cm, 1), lambda b, p: (0, 0)),          # linear weight / P column
                pl.BlockSpec((1, 1), lambda b, p: (0, 0)),           # linear bias (+ pad corr.)
            ],
            out_specs=pl.BlockSpec((1, 1, 1), lambda b, p: (b, 0, 0)),
            scratch_shapes=[pltpu.VMEM((Cm, TP), jnp.float32)],
        ),
        compiler_params=pltpu.CompilerParams(
            dimension_semantics=("parallel", "arbitrary"),
            vmem_limit_bytes=vmem_bytes),
    )(x, wct, hbias, wl, bl)
    return out3.reshape(N, 1)


def _reference(x_nchw, conv_w, bn_gamma, bn_beta, bn_mean, bn_var, lin_w, lin_b, eps=1e-5):
    """Pure-JAX reference matching the PyTorch eval-mode forward."""
    N, C1, H, W = x_nchw.shape
    Cm = conv_w.shape[0]
    x = jnp.transpose(x_nchw, (0, 2, 3, 1)).reshape(N, H * W, C1)
    y = jnp.einsum("npc,dc->npd", x, conv_w.reshape(Cm, C1))
    scale = bn_gamma / jnp.sqrt(bn_var + eps)
    y = y * scale + (bn_beta - bn_mean * scale)
    y = y * jax.nn.sigmoid(y)
    feat = jnp.mean(y, axis=1)
    return feat @ lin_w.reshape(1, Cm).T + lin_b


if __name__ == "__main__":
    key = jax.random.PRNGKey(0)
    ks = jax.random.split(key, 8)

    # Small shapes consistent with the module: batch=2, c1=4, spatial=16x16, c_=1280.
    N, C1, H, W = 2, 4, 16, 16
    Cm = 1280

    x = jax.random.normal(ks[0], (N, C1, H, W), dtype=jnp.float32)

    # Deterministic synthetic parameters (not a checkpoint load).
    conv_w = jax.random.normal(ks[1], (Cm, C1, 1, 1), dtype=jnp.float32) * 0.1
    bn_gamma = 1.0 + 0.01 * jax.random.normal(ks[2], (Cm,), dtype=jnp.float32)
    bn_beta = 0.01 * jax.random.normal(ks[3], (Cm,), dtype=jnp.float32)
    bn_mean = 0.05 * jax.random.normal(ks[4], (Cm,), dtype=jnp.float32)
    bn_var = jnp.abs(1.0 + 0.05 * jax.random.normal(ks[5], (Cm,), dtype=jnp.float32))
    lin_w = jax.random.normal(ks[6], (1, Cm), dtype=jnp.float32) * (1.0 / jnp.sqrt(Cm))
    lin_b = 0.01 * jax.random.normal(ks[7], (1,), dtype=jnp.float32)

    ref = _reference(x, conv_w, bn_gamma, bn_beta, bn_mean, bn_var, lin_w, lin_b)

    # f32 operand path (tight tolerance vs. reference).
    out = regression_head_forward(x, conv_w, bn_gamma, bn_beta, bn_mean, bn_var, lin_w, lin_b)
    out = jax.block_until_ready(out)
    assert out.shape == (N, 1)
    assert jnp.allclose(out, ref, atol=1e-3, rtol=1e-3), (out, ref)

    # bf16 operand path (halves x/weight DMA + VMEM; f32 accumulate & elementwise math).
    out_bf16 = regression_head_forward(x, conv_w, bn_gamma, bn_beta, bn_mean, bn_var,
                                       lin_w, lin_b, compute_dtype=jnp.bfloat16)
    out_bf16 = jax.block_until_ready(out_bf16)
    assert jnp.allclose(out_bf16, ref, atol=5e-2, rtol=5e-2), (out_bf16, ref)

    # TODO(synk): list-input branch (F.interpolate bilinear resize + concat) is not
    # implemented; kernel covers the single-tensor forward path only.
    print("KERNEL_OK")
</pallas_src>

<mosaic_0001>
module attributes {stable_mosaic.version = 11 : i64} {
  func.func @_regression_head_kernel(%arg0: i32, %arg1: i32, %arg2: memref<1x4x256xf32, #tpu.memory_space<vmem>>, %arg3: memref<1280x4xf32, #tpu.memory_space<vmem>>, %arg4: memref<1280x1xf32, #tpu.memory_space<vmem>>, %arg5: memref<1280x1xf32, #tpu.memory_space<vmem>>, %arg6: memref<1x1xf32, #tpu.memory_space<vmem>>, %arg7: memref<1x1x1xf32, #tpu.memory_space<vmem>>, %arg8: memref<1280x256xf32, #tpu.memory_space<vmem>>) attributes {dimension_semantics = [#tpu.dimension_semantics<parallel>, #tpu.dimension_semantics<arbitrary>], iteration_bounds = array<i64: 2, 1>, scalar_prefetch = 0 : i64, scratch_operands = 1 : i64, tpu.core_type = #tpu.core_type<tc>, window_params = [{transform_indices = @transform_0, window_bounds = array<i64: 1, 4, 256>}, {pipeline_mode = #tpu.pipeline_mode<synchronous>, transform_indices = @transform_1, window_bounds = array<i64: 1280, 4>}, {pipeline_mode = #tpu.pipeline_mode<synchronous>, transform_indices = @transform_2, window_bounds = array<i64: 1280, 1>}, {pipeline_mode = #tpu.pipeline_mode<synchronous>, transform_indices = @transform_3, window_bounds = array<i64: 1280, 1>}, {pipeline_mode = #tpu.pipeline_mode<synchronous>, transform_indices = @transform_4, window_bounds = array<i64: 1, 1>}, {transform_indices = @transform_5, window_bounds = array<i64: 1, 1, 1>}]} {
    %c0_i32 = arith.constant 0 : i32
    %0 = arith.cmpi eq, %arg1, %c0_i32 : i32
    %1 = arith.extui %0 : i1 to i32
    %c0_i32_0 = arith.constant 0 : i32
    %2 = arith.cmpi ne, %1, %c0_i32_0 : i32
    scf.if %2 {
      %cst_15 = arith.constant 0.000000e+00 : f32
      %22 = vector.broadcast %cst_15 : f32 to vector<1280x256xf32>
      %c0_16 = arith.constant 0 : index
      %c0_17 = arith.constant 0 : index
      %23 = vector.load %arg8[%c0_16, %c0_17] : memref<1280x256xf32, #tpu.memory_space<vmem>>, vector<1280x256xf32>
      tpu.vector_store %arg8[%c0_16, %c0_17], %22 {strides = array<i32>} : memref<1280x256xf32, #tpu.memory_space<vmem>>, vector<1280x256xf32>,
    } else {
    }
    %c0 = arith.constant 0 : index
    %c0_1 = arith.constant 0 : index
    %3 = vector.load %arg3[%c0, %c0_1] : memref<1280x4xf32, #tpu.memory_space<vmem>>, vector<1280x4xf32>
    %c0_2 = arith.constant 0 : index
    %c0_3 = arith.constant 0 : index
    %c0_4 = arith.constant 0 : index
    %4 = vector.load %arg2[%c0_2, %c0_3, %c0_4] : memref<1x4x256xf32, #tpu.memory_space<vmem>>, vector<1x4x256xf32>
    %5 = vector.shape_cast %4 : vector<1x4x256xf32> to vector<4x256xf32>
    %cst = arith.constant dense<0.000000e+00> : vector<1280x256xf32>
    %6 = tpu.matmul %3, %5, %cst {dimension_numbers = #tpu.dot_dimension_numbers<[1], [0], [0], [1], [0, 0, 1, 1], [], []>} : vector<1280x4xf32>, vector<4x256xf32>, vector<1280x256xf32> -> vector<1280x256xf32>
    %cst_5 = arith.constant 5.000000e-01 : f32
    %7 = vector.broadcast %cst_5 : f32 to vector<1280x256xf32>
    %8 = arith.mulf %7, %6 : vector<1280x256xf32>
    %c0_6 = arith.constant 0 : index
    %c0_7 = arith.constant 0 : index
    %9 = vector.load %arg4[%c0_6, %c0_7] : memref<1280x1xf32, #tpu.memory_space<vmem>>, vector<1280x1xf32>
    %10 = vector.broadcast %9 : vector<1280x1xf32> to vector<1280x256xf32>
    %11 = arith.addf %8, %10 : vector<1280x256xf32>
    %c0_8 = arith.constant 0 : index
    %c0_9 = arith.constant 0 : index
    %12 = vector.load %arg8[%c0_8, %c0_9] : memref<1280x256xf32, #tpu.memory_space<vmem>>, vector<1280x256xf32>
    %13 = math.tanh %11 : vector<1280x256xf32>
    %cst_10 = arith.constant 1.000000e+00 : f32
    %14 = vector.broadcast %cst_10 : f32 to vector<1280x256xf32>
    %15 = arith.addf %13, %14 : vector<1280x256xf32>
    %16 = arith.mulf %11, %15 : vector<1280x256xf32>
    %17 = arith.addf %12, %16 : vector<1280x256xf32>
    %c0_11 = arith.constant 0 : index
    %c0_12 = arith.constant 0 : index
    %18 = vector.load %arg8[%c0_11, %c0_12] : memref<1280x256xf32, #tpu.memory_space<vmem>>, vector<1280x256xf32>
    tpu.vector_store %arg8[%c0_11, %c0_12], %17 {strides = array<i32>} : memref<1280x256xf32, #tpu.memory_space<vmem>>, vector<1280x256xf32>,
    %c0_i32_13 = arith.constant 0 : i32
    %19 = arith.cmpi eq, %arg1, %c0_i32_13 : i32
    %20 = arith.extui %19 : i1 to i32
    %c0_i32_14 = arith.constant 0 : i32
    %21 = arith.cmpi ne, %20, %c0_i32_14 : i32
    scf.if %21 {
      %c0_15 = arith.constant 0 : index
      %c0_16 = arith.constant 0 : index
      %22 = vector.load %arg8[%c0_15, %c0_16] : memref<1280x256xf32, #tpu.memory_space<vmem>>, vector<1280x256xf32>
      %c0_17 = arith.constant 0 : index
      %c0_18 = arith.constant 0 : index
      %23 = vector.load %arg5[%c0_17, %c0_18] : memref<1280x1xf32, #tpu.memory_space<vmem>>, vector<1280x1xf32>
      %24 = vector.broadcast %23 : vector<1280x1xf32> to vector<1280x256xf32>
      %25 = arith.mulf %22, %24 : vector<1280x256xf32>
      %26 = vector.shape_cast %25 : vector<1280x256xf32> to vector<1x1280x256xf32>
      %cst_19 = arith.constant dense<0.000000e+00> : vector<1xf32>
      %27 = vector.multi_reduction <add>, %26, %cst_19 [1, 2] : vector<1x1280x256xf32> to vector<1xf32>
      %28 = vector.shape_cast %27 : vector<1xf32> to vector<1x1x1xf32>
      %29 = vector.extract %28[0, 0, 0] : f32 from vector<1x1x1xf32>
      %c0_20 = arith.constant 0 : index
      %c0_21 = arith.constant 0 : index
      %30 = vector.load %arg6[%c0_20, %c0_21] : memref<1x1xf32, #tpu.memory_space<vmem>>, vector<1x1xf32>
      %31 = vector.broadcast %29 : f32 to vector<1x1xf32>
      %32 = arith.addf %31, %30 : vector<1x1xf32>
      %33 = vector.shape_cast %32 : vector<1x1xf32> to vector<1x1x1xf32>
      %c0_22 = arith.constant 0 : index
      %c0_23 = arith.constant 0 : index
      %c0_24 = arith.constant 0 : index
      %34 = vector.load %arg7[%c0_22, %c0_23, %c0_24] : memref<1x1x1xf32, #tpu.memory_space<vmem>>, vector<1x1x1xf32>
      tpu.vector_store %arg7[%c0_22, %c0_23, %c0_24], %33 {strides = array<i32>} : memref<1x1x1xf32, #tpu.memory_space<vmem>>, vector<1x1x1xf32>,
    } else {
    }
    return
  }
  func.func @transform_0(%arg0: i32, %arg1: i32) -> (i32, i32, i32) {
    %c0_i32 = arith.constant 0 : i32
    %c0_i32_0 = arith.constant 0 : i32
    return %arg0, %c0_i32, %arg1 : i32, i32, i32
  }
  func.func @transform_1(%arg0: i32, %arg1: i32) -> (i32, i32) {
    %c0_i32 = arith.constant 0 : i32
    %c0_i32_0 = arith.constant 0 : i32
    %c0_i32_1 = arith.constant 0 : i32
    return %c0_i32, %c0_i32_0 : i32, i32
  }
  func.func @transform_2(%arg0: i32, %arg1: i32) -> (i32, i32) {
    %c0_i32 = arith.constant 0 : i32
    %c0_i32_0 = arith.constant 0 : i32
    %c0_i32_1 = arith.constant 0 : i32
    return %c0_i32, %c0_i32_0 : i32, i32
  }
  func.func @transform_3(%arg0: i32, %arg1: i32) -> (i32, i32) {
    %c0_i32 = arith.constant 0 : i32
    %c0_i32_0 = arith.constant 0 : i32
    %c0_i32_1 = arith.constant 0 : i32
    return %c0_i32, %c0_i32_0 : i32, i32
  }
  func.func @transform_4(%arg0: i32, %arg1: i32) -> (i32, i32) {
    %c0_i32 = arith.constant 0 : i32
    %c0_i32_0 = arith.constant 0 : i32
    %c0_i32_1 = arith.constant 0 : i32
    return %c0_i32, %c0_i32_0 : i32, i32
  }
  func.func @transform_5(%arg0: i32, %arg1: i32) -> (i32, i32, i32) {
    %c0_i32 = arith.constant 0 : i32
    %c0_i32_0 = arith.constant 0 : i32
    %c0_i32_1 = arith.constant 0 : i32
    return %arg0, %c0_i32, %c0_i32_0 : i32, i32, i32
  }
}

</mosaic_0001>

<bundles_post_ra>
// kernel: tpu_custom_call.1
= control target key start
LH: loop header
LB: loop body
LE: loop exit
PB: predicated region body
PF: predicated region fallthrough
CT: control target
= control target key end

     0   :  { %s8670_s20 = smov 0   ;;  %s8672_s21 = smov 0   ;;  %s13824_s0 = inlined_call_operand.vmem [shape: f32[2,4,256], index: 0, kind: input, shape index: {}]   ;;  %s13825_s1 = inlined_call_operand.vmem [shape: f32[1280,4], index: 1, kind: input, shape index: {}]   ;;  %s13826_s2 = inlined_call_operand.vmem [shape: f32[1280,1], index: 2, kind: input, shape index: {}]   ;;  %s13827_s3 = inlined_call_operand.vmem [shape: f32[1280,1], index: 3, kind: input, shape index: {}]   ;;  %s13828_s4 = inlined_call_operand.<no memory space> [shape: f32[1,1], index: 4, kind: input, shape index: {}]   ;;  %s13829_s5 = inlined_call_operand.vmem [shape: f32[2,1,1], index: 5, kind: output, shape index: {}]  }
   0x1   :  { %v10_v0 = vstv %s13828_s4  ;;  %s8674_s22 = smov 0  }
   0x2   :  { %11 = vst [vmem:[#allocation3] sm:$0x1] %v10_v0 }
   0x3 LB: > { %s29_s4 = sadd.s32 1, %s8629_s21  ;;  %p7770_p0 = scmp.ge.s32.totalorder %s8633_s22, 1  ;;  %s8633_s22 = sphi %s8674_s22, %s17_s22   ;;  %s8629_s21 = sphi %s8672_s21, %s14546_s21   ;;  %s8625_s20 = sphi %s8670_s20, %s14545_s20  }
   0x4   : > { %p31_p1 = scmp.ge.s32.totalorder %s29_s4, 2  ;;  %p208_p2 = scmp.lt.s32.totalorder %s8633_s22, 3 }
   0x6   : > { %s14548_s4 = smov (%p31_p1, %s29_s4), 0  ;;  %p209_p3 = pnand %p7770_p0, %p208_p2 }
   0x8   : > { %212 = sbr.rel (%p209_p3) target bundleno = 1213 (0x4bd), region = 40 }
   0xd   : > { %v2571_v1 = vld [vmem:[%s13826_s2 + $0x10] sm:$0xff]  ;;  %v2569_v2 = vld [vmem:[%s13826_s2] sm:$0xff]  ;;  %p239_p4 = scmp.lt.s32.totalorder %s8625_s20, 1  ;;  %v8635_v3 = vmov 0   ;;  %v2572_v4 = vld [vmem:[%s13826_s2 + $0x18] sm:$0xff]  ;;  %v13830_v6 = vmov 0.0  }
   0xe   : > { %7969 = vset.pattern.permute.xlu1 %v8635_v3  ;;  %7968 = vset.pattern.permute.xlu0 %v8635_v3  ;;  %v2570_v5 = vld [vmem:[%s13826_s2 + $0x8] sm:$0xff]  ;;  %vm1219_vm0 = vcmask 1043456   ;;  %v2573_v10 = vld [vmem:[%s13826_s2 + $0x20] sm:$0xff]  ;;  %vm738_vm1 = vcmask 31744   ;;  %v2576_v13 = vld [vmem:[%s13826_s2 + $0x38] sm:$0xff]  ;;  %vm7703_vm2 = vcmask 0  }
   0xf   : > { %2741 = vperm.xlu1 %7969, %v2571_v1   ;;  %2731 = vperm.xlu0 %7968, %v2569_v2   ;;  %s14550_s20 = smov (!%p239_p4, %s8625_s20), 1  ;;  %v2574_v9 = vld [vmem:[%s13826_s2 + $0x28] sm:$0xff]  ;;  %v575_v11 = vld [vmem:[%s13825_s1] sm:$0xff]  ;;  %v2575_v14 = vld [vmem:[%s13826_s2 + $0x30] sm:$0xff] }
  0x10   : > { %1288 = vmatprep.mubr.f32.mxu0 %v13830_v6  ;;  %1768 = vmatprep.mubr.f32.mxu1 %v13830_v6  ;;  %s7937_s6 = sshll.u32 %s14550_s20, 3  ;;  %v655_v12 = vld [vmem:[%s13825_s1 + $0x280] sm:$0xff]  ;;  %v576_v15 = vld [vmem:[%s13825_s1 + $0x8] sm:$0xff]  ;;  %v577_v19 = vld [vmem:[%s13825_s1 + $0x10] sm:$0xff]  ;;  %s250_s19 = scalar_lea.vmem %s13829_s5, %s14550_s20 }
  0x11   : > { %s246_s9 = scalar_lea.vmem %s13824_s0, %s7937_s6  ;;  %v656_v16 = vld [vmem:[%s13825_s1 + $0x288] sm:$0xff]  ;;  %v2577_v18 = vld [vmem:[%s13826_s2 + $0x40] sm:$0xff]  ;;  %v657_v20 = vld [vmem:[%s13825_s1 + $0x290] sm:$0xff] }
  0x12   : > { %v735_v7 = vld [vmem:[%s246_s9] sm:$0xff]  ;;  %v2578_v17 = vld [vmem:[%s13826_s2 + $0x48] sm:$0xff]  ;;  %v2580_v21 = vld [vmem:[%s13826_s2 + $0x58] sm:$0xff] }
  0x13   : > { %2746 = vperm.xlu1 %7969, %v2572_v4   ;;  %2736 = vperm.xlu0 %7968, %v2570_v5   ;;  %v737_v8 = vcombine.high %v735_v7, %v735_v7  ;;  %v2579_v22 = vld [vmem:[%s13826_s2 + $0x50] sm:$0xff]  ;;  %v578_v23 = vld [vmem:[%s13825_s1 + $0x18] sm:$0xff]  ;;  %v2582_v25 = vld [vmem:[%s13826_s2 + $0x68] sm:$0xff] }
  0x14   : > { %v658_v24 = vld [vmem:[%s13825_s1 + $0x298] sm:$0xff]  ;;  %v2581_v26 = vld [vmem:[%s13826_s2 + $0x60] sm:$0xff]  ;;  %v2583_v30 = vld [vmem:[%s13826_s2 + $0x70] sm:$0xff] }
  0x15   : > { %7773 = vmatprep.subr.msk.mxu0 %vm1219_vm0, %v737_v8  ;;  %7938 = vmatprep.subr.msk.mxu1 %vm1219_vm0, %v737_v8  ;;  %v579_v27 = vld [vmem:[%s13825_s1 + $0x20] sm:$0xff]  ;;  %v2584_v29 = vld [vmem:[%s13826_s2 + $0x78] sm:$0xff]  ;;  %v580_v31 = vld [vmem:[%s13825_s1 + $0x28] sm:$0xff] }
  0x16   : > { %7774 = vmatpush1.msk.msra.mxu0 %vm1219_vm0, %v735_v7  ;;  %7939 = vmatpush1.msk.msra.mxu1 %vm1219_vm0, %v735_v7  ;;  %v659_v28 = vld [vmem:[%s13825_s1 + $0x2a0] sm:$0xff]  ;;  %v660_v32 = vld [vmem:[%s13825_s1 + $0x2a8] sm:$0xff]  ;;  %v581_v35 = vld [vmem:[%s13825_s1 + $0x30] sm:$0xff] }
  0x17   : > { %2756 = vperm.xlu1 %7969, %v2574_v9   ;;  %2751 = vperm.xlu0 %7968, %v2573_v10   ;;  %v2586_v33 = vld [vmem:[%s13826_s2 + $0x88] sm:$0xff]  ;;  %v2585_v34 = vld [vmem:[%s13826_s2 + $0x80] sm:$0xff]  ;;  %v661_v36 = vld [vmem:[%s13825_s1 + $0x2b0] sm:$0xff] }
  0x18   : > { %7775 = vmatmul.mubr.msk.f32.vlgmr.msra.gmra.mxu0 %vm738_vm1, %v575_v11  ;;  %7855 = vmatmul.mubr.msk.f32.vlgmr.msra.gmra.mxu1 %vm738_vm1, %v655_v12  ;;  %v2588_v37 = vld [vmem:[%s13826_s2 + $0x98] sm:$0xff]  ;;  %v2587_v38 = vld [vmem:[%s13826_s2 + $0x90] sm:$0xff]  ;;  %v2590_v41 = vld [vmem:[%s13826_s2 + $0xa8] sm:$0xff] }
  0x19   : > { %1294 = vmatprep.mubr.f32.mxu0 %v13830_v6  ;;  %1774 = vmatprep.mubr.f32.mxu1 %v13830_v6  ;;  %v582_v39 = vld [vmem:[%s13825_s1 + $0x38] sm:$0xff]  ;;  %v2589_v42 = vld [vmem:[%s13826_s2 + $0xa0] sm:$0xff]  ;;  %v2591_v46 = vld [vmem:[%s13826_s2 + $0xb0] sm:$0xff] }
  0x1a   : > { %v662_v40 = vld [vmem:[%s13825_s1 + $0x2b8] sm:$0xff]  ;;  %v583_v43 = vld [vmem:[%s13825_s1 + $0x40] sm:$0xff]  ;;  %v584_v47 = vld [vmem:[%s13825_s1 + $0x48] sm:$0xff] }
  0x1b   : > { %2766 = vperm.xlu1 %7969, %v2576_v13   ;;  %2761 = vperm.xlu0 %7968, %v2575_v14   ;;  %v663_v44 = vld [vmem:[%s13825_s1 + $0x2c0] sm:$0xff]  ;;  %v2592_v45 = vld [vmem:[%s13826_s2 + $0xb8] sm:$0xff]  ;;  %v664_v48 = vld [vmem:[%s13825_s1 + $0x2c8] sm:$0xff] }
  0x1c   : > { %7776 = vmatmul.mubr.msk.f32.gmra.mxu0 %vm738_vm1, %v576_v15  ;;  %7856 = vmatmul.mubr.msk.f32.gmra.mxu1 %vm738_vm1, %v656_v16  ;;  %v2594_v49 = vld [vmem:[%s13826_s2 + $0xc8] sm:$0xff]  ;;  %v2593_v50 = vld [vmem:[%s13826_s2 + $0xc0] sm:$0xff]  ;;  %v585_v51 = vld [vmem:[%s13825_s1 + $0x50] sm:$0xff] }
  0x1d   : > { %1300 = vmatprep.mubr.f32.mxu0 %v13830_v6  ;;  %1780 = vmatprep.mubr.f32.mxu1 %v13830_v6  ;;  %v665_v52 = vld [vmem:[%s13825_s1 + $0x2d0] sm:$0xff]  ;;  %v2596_v53 = vld [vmem:[%s13826_s2 + $0xd8] sm:$0xff]  ;;  %v2598_v57 = vld [vmem:[%s13826_s2 + $0xe8] sm:$0xff] }
  0x1e   : > { %v2595_v54 = vld [vmem:[%s13826_s2 + $0xd0] sm:$0xff]  ;;  %v586_v55 = vld [vmem:[%s13825_s1 + $0x58] sm:$0xff]  ;;  %v2597_v58 = vld [vmem:[%s13826_s2 + $0xe0] sm:$0xff] }
  0x1f   : > { %2776 = vperm.xlu1 %7969, %v2578_v17   ;;  %2771 = vperm.xlu0 %7968, %v2577_v18   ;;  %v666_v56 = vld [vmem:[%s13825_s1 + $0x2d8] sm:$0xff]  ;;  %v587_v59 = vld [vmem:[%s13825_s1 + $0x60] sm:$0xff]  ;;  %v2599_v62 = vld [vmem:[%s13826_s2 + $0xf0] sm:$0xff] }
  0x20   : > { %7777 = vmatmul.mubr.msk.f32.gmra.mxu0 %vm738_vm1, %v577_v19  ;;  %7857 = vmatmul.mubr.msk.f32.gmra.mxu1 %vm738_vm1, %v657_v20  ;;  %v667_v60 = vld [vmem:[%s13825_s1 + $0x2e0] sm:$0xff]  ;;  %v2600_v61 = vld [vmem:[%s13826_s2 + $0xf8] sm:$0xff]  ;;  %v588_v63 = vld [vmem:[%s13825_s1 + $0x68] sm:$0xff] }
  0x21   : > { %1306 = vmatprep.mubr.f32.mxu0 %v13830_v6  ;;  %1786 = vmatprep.mubr.f32.mxu1 %v13830_v6  ;;  %v668_v0 = vld [vmem:[%s13825_s1 + $0x2e8] sm:$0xff]  ;;  %v2601_v2 = vld [vmem:[%s13826_s2 + $0x100] sm:$0xff]  ;;  %v589_v3 = vld [vmem:[%s13825_s1 + $0x70] sm:$0xff] }
  0x22   : > { %v2602_v1 = vld [vmem:[%s13826_s2 + $0x108] sm:$0xff]  ;;  %v669_v4 = vld [vmem:[%s13825_s1 + $0x2f0] sm:$0xff]  ;;  %v2604_v5 = vld [vmem:[%s13826_s2 + $0x118] sm:$0xff] }
  0x23   : > { %2786 = vperm.xlu1 %7969, %v2580_v21   ;;  %2781 = vperm.xlu0 %7968, %v2579_v22   ;;  %v2603_v7 = vld [vmem:[%s13826_s2 + $0x110] sm:$0xff]  ;;  %v590_v8 = vld [vmem:[%s13825_s1 + $0x78] sm:$0xff]  ;;  %v2606_v10 = vld [vmem:[%s13826_s2 + $0x128] sm:$0xff] }
  0x24   : > { %7778 = vmatmul.mubr.msk.f32.gmra.mxu0 %vm738_vm1, %v578_v23  ;;  %7858 = vmatmul.mubr.msk.f32.gmra.mxu1 %vm738_vm1, %v658_v24  ;;  %v670_v9 = vld [vmem:[%s13825_s1 + $0x2f8] sm:$0xff]  ;;  %v2605_v11 = vld [vmem:[%s13826_s2 + $0x120] sm:$0xff]  ;;  %v2607_v15 = vld [vmem:[%s13826_s2 + $0x130] sm:$0xff] }
  0x25   : > { %1312 = vmatprep.mubr.f32.mxu0 %v13830_v6  ;;  %1792 = vmatprep.mubr.f32.mxu1 %v13830_v6  ;;  %v591_v12 = vld [vmem:[%s13825_s1 + $0x80] sm:$0xff]  ;;  %v2608_v14 = vld [vmem:[%s13826_s2 + $0x138] sm:$0xff]  ;;  %v592_v16 = vld [vmem:[%s13825_s1 + $0x88] sm:$0xff] }
  0x26   : > { %v671_v13 = vld [vmem:[%s13825_s1 + $0x300] sm:$0xff]  ;;  %v672_v17 = vld [vmem:[%s13825_s1 + $0x308] sm:$0xff]  ;;  %v593_v20 = vld [vmem:[%s13825_s1 + $0x90] sm:$0xff] }
  0x27   : > { %2796 = vperm.xlu1 %7969, %v2582_v25   ;;  %2791 = vperm.xlu0 %7968, %v2581_v26   ;;  %v2610_v18 = vld [vmem:[%s13826_s2 + $0x148] sm:$0xff]  ;;  %v2609_v19 = vld [vmem:[%s13826_s2 + $0x140] sm:$0xff]  ;;  %v673_v21 = vld [vmem:[%s13825_s1 + $0x310] sm:$0xff] }
  0x28   : > { %7779 = vmatmul.mubr.msk.f32.gmra.mxu0 %vm738_vm1, %v579_v27  ;;  %7859 = vmatmul.mubr.msk.f32.gmra.mxu1 %vm738_vm1, %v659_v28  ;;  %v2612_v22 = vld [vmem:[%s13826_s2 + $0x158] sm:$0xff]  ;;  %v2611_v23 = vld [vmem:[%s13826_s2 + $0x150] sm:$0xff]  ;;  %v2614_v26 = vld [vmem:[%s13826_s2 + $0x168] sm:$0xff] }
  0x29   : > { %1318 = vmatprep.mubr.f32.mxu0 %v13830_v6  ;;  %1798 = vmatprep.mubr.f32.mxu1 %v13830_v6  ;;  %v594_v24 = vld [vmem:[%s13825_s1 + $0x98] sm:$0xff]  ;;  %v2613_v27 = vld [vmem:[%s13826_s2 + $0x160] sm:$0xff] }
  0x2a   : > { %v674_v25 = vld [vmem:[%s13825_s1 + $0x318] sm:$0xff]  ;;  %v595_v28 = vld [vmem:[%s13825_s1 + $0xa0] sm:$0xff] }
  0x2b   : > { %2806 = vperm.xlu1 %7969, %v2584_v29   ;;  %2801 = vperm.xlu0 %7968, %v2583_v30   ;;  %v675_v29 = vld [vmem:[%s13825_s1 + $0x320] sm:$0xff]  ;;  %v2616_v30 = vld [vmem:[%s13826_s2 + $0x178] sm:$0xff] }
  0x2c   : > { %7780 = vmatmul.mubr.msk.f32.gmra.mxu0 %vm738_vm1, %v580_v31  ;;  %7860 = vmatmul.mubr.msk.f32.gmra.mxu1 %vm738_vm1, %v660_v32  ;;  %v2615_v31 = vld [vmem:[%s13826_s2 + $0x170] sm:$0xff]  ;;  %v596_v32 = vld [vmem:[%s13825_s1 + $0xa8] sm:$0xff] }
  0x2d   : > { %1324 = vmatprep.mubr.f32.mxu0 %v13830_v6  ;;  %1804 = vmatprep.mubr.f32.mxu1 %v13830_v6 }
  0x2f   : > { %2816 = vperm.xlu1 %7969, %v2586_v33   ;;  %2811 = vperm.xlu0 %7968, %v2585_v34   ;;  %v676_v33 = vld [vmem:[%s13825_s1 + $0x328] sm:$0xff] }
  0x30   : > { %7781 = vmatmul.mubr.msk.f32.gmra.mxu0 %vm738_vm1, %v581_v35  ;;  %7861 = vmatmul.mubr.msk.f32.gmra.mxu1 %vm738_vm1, %v661_v36  ;;  %v2618_v34 = vld [vmem:[%s13826_s2 + $0x188] sm:$0xff]  ;;  %v2617_v35 = vld [vmem:[%s13826_s2 + $0x180] sm:$0xff]  ;;  %v597_v36 = vld [vmem:[%s13825_s1 + $0xb0] sm:$0xff] }
  0x31   : > { %1330 = vmatprep.mubr.f32.mxu0 %v13830_v6  ;;  %1810 = vmatprep.mubr.f32.mxu1 %v13830_v6 }
  0x33   : > { %2826 = vperm.xlu1 %7969, %v2588_v37   ;;  %2821 = vperm.xlu0 %7968, %v2587_v38   ;;  %v677_v37 = vld [vmem:[%s13825_s1 + $0x330] sm:$0xff]  ;;  %v2620_v38 = vld [vmem:[%s13826_s2 + $0x198] sm:$0xff] }
  0x34   : > { %7782 = vmatmul.mubr.msk.f32.gmra.mxu0 %vm738_vm1, %v582_v39  ;;  %7862 = vmatmul.mubr.msk.f32.gmra.mxu1 %vm738_vm1, %v662_v40  ;;  %v2619_v39 = vld [vmem:[%s13826_s2 + $0x190] sm:$0xff]  ;;  %v598_v40 = vld [vmem:[%s13825_s1 + $0xb8] sm:$0xff] }
  0x35   : > { %1336 = vmatprep.mubr.f32.mxu0 %v13830_v6  ;;  %1816 = vmatprep.mubr.f32.mxu1 %v13830_v6 }
  0x37   : > { %2836 = vperm.xlu1 %7969, %v2590_v41   ;;  %2831 = vperm.xlu0 %7968, %v2589_v42   ;;  %v678_v41 = vld [vmem:[%s13825_s1 + $0x338] sm:$0xff]  ;;  %v2622_v42 = vld [vmem:[%s13826_s2 + $0x1a8] sm:$0xff] }
  0x38   : > { %7783 = vmatmul.mubr.msk.f32.gmra.mxu0 %vm738_vm1, %v583_v43  ;;  %7863 = vmatmul.mubr.msk.f32.gmra.mxu1 %vm738_vm1, %v663_v44  ;;  %v2621_v43 = vld [vmem:[%s13826_s2 + $0x1a0] sm:$0xff] }
  0x39   : > { %1342 = vmatprep.mubr.f32.mxu0 %v13830_v6  ;;  %1822 = vmatprep.mubr.f32.mxu1 %v13830_v6  ;;  %v599_v44 = vld [vmem:[%s13825_s1 + $0xc0] sm:$0xff] }
  0x3b   : > { %2846 = vperm.xlu1 %7969, %v2592_v45   ;;  %2841 = vperm.xlu0 %7968, %v2591_v46   ;;  %v679_v45 = vld [vmem:[%s13825_s1 + $0x340] sm:$0xff]  ;;  %v2624_v46 = vld [vmem:[%s13826_s2 + $0x1b8] sm:$0xff] }
  0x3c   : > { %7784 = vmatmul.mubr.msk.f32.gmra.mxu0 %vm738_vm1, %v584_v47  ;;  %7864 = vmatmul.mubr.msk.f32.gmra.mxu1 %vm738_vm1, %v664_v48  ;;  %v2623_v47 = vld [vmem:[%s13826_s2 + $0x1b0] sm:$0xff]  ;;  %v600_v48 = vld [vmem:[%s13825_s1 + $0xc8] sm:$0xff] }
  0x3d   : > { %1348 = vmatprep.mubr.f32.mxu0 %v13830_v6  ;;  %1828 = vmatprep.mubr.f32.mxu1 %v13830_v6 }
  0x3f   : > { %2856 = vperm.xlu1 %7969, %v2594_v49   ;;  %2851 = vperm.xlu0 %7968, %v2593_v50   ;;  %v680_v49 = vld [vmem:[%s13825_s1 + $0x348] sm:$0xff] }
  0x40   : > { %7785 = vmatmul.mubr.msk.f32.gmra.mxu0 %vm738_vm1, %v585_v51  ;;  %7865 = vmatmul.mubr.msk.f32.gmra.mxu1 %vm738_vm1, %v665_v52  ;;  %v2626_v50 = vld [vmem:[%s13826_s2 + $0x1c8] sm:$0xff]  ;;  %v2625_v51 = vld [vmem:[%s13826_s2 + $0x1c0] sm:$0xff]  ;;  %v601_v52 = vld [vmem:[%s13825_s1 + $0xd0] sm:$0xff] }
  0x41   : > { %1354 = vmatprep.mubr.f32.mxu0 %v13830_v6  ;;  %1834 = vmatprep.mubr.f32.mxu1 %v13830_v6 }
  0x43   : > { %2866 = vperm.xlu1 %7969, %v2596_v53   ;;  %2861 = vperm.xlu0 %7968, %v2595_v54   ;;  %v681_v53 = vld [vmem:[%s13825_s1 + $0x350] sm:$0xff]  ;;  %v2628_v54 = vld [vmem:[%s13826_s2 + $0x1d8] sm:$0xff] }
  0x44   : > { %7786 = vmatmul.mubr.msk.f32.gmra.mxu0 %vm738_vm1, %v586_v55  ;;  %7866 = vmatmul.mubr.msk.f32.gmra.mxu1 %vm738_vm1, %v666_v56  ;;  %v2627_v55 = vld [vmem:[%s13826_s2 + $0x1d0] sm:$0xff]  ;;  %v602_v56 = vld [vmem:[%s13825_s1 + $0xd8] sm:$0xff] }
  0x45   : > { %1360 = vmatprep.mubr.f32.mxu0 %v13830_v6  ;;  %1840 = vmatprep.mubr.f32.mxu1 %v13830_v6 }
  0x47   : > { %2876 = vperm.xlu1 %7969, %v2598_v57   ;;  %2871 = vperm.xlu0 %7968, %v2597_v58   ;;  %v682_v57 = vld [vmem:[%s13825_s1 + $0x358] sm:$0xff]  ;;  %v2630_v58 = vld [vmem:[%s13826_s2 + $0x1e8] sm:$0xff] }
  0x48   : > { %7787 = vmatmul.mubr.msk.f32.gmra.mxu0 %vm738_vm1, %v587_v59  ;;  %7867 = vmatmul.mubr.msk.f32.gmra.mxu1 %vm738_vm1, %v667_v60  ;;  %v2629_v59 = vld [vmem:[%s13826_s2 + $0x1e0] sm:$0xff] }
  0x49   : > { %1366 = vmatprep.mubr.f32.mxu0 %v13830_v6  ;;  %1846 = vmatprep.mubr.f32.mxu1 %v13830_v6  ;;  %v603_v60 = vld [vmem:[%s13825_s1 + $0xe0] sm:$0xff] }
  0x4b   : > { %2886 = vperm.xlu1 %7969, %v2600_v61   ;;  %2881 = vperm.xlu0 %7968, %v2599_v62   ;;  %v683_v61 = vld [vmem:[%s13825_s1 + $0x360] sm:$0xff]  ;;  %v2632_v62 = vld [vmem:[%s13826_s2 + $0x1f8] sm:$0xff] }
  0x4c   : > { %7788 = vmatmul.mubr.msk.f32.gmra.mxu0 %vm738_vm1, %v588_v63  ;;  %7868 = vmatmul.mubr.msk.f32.gmra.mxu1 %vm738_vm1, %v668_v0  ;;  %v2631_v63 = vld [vmem:[%s13826_s2 + $0x1f0] sm:$0xff] }
  0x4d   : > { %1372 = vmatprep.mubr.f32.mxu0 %v13830_v6  ;;  %1852 = vmatprep.mubr.f32.mxu1 %v13830_v6 }
  0x4f   : > { %2896 = vperm.xlu1 %7969, %v2602_v1   ;;  %2891 = vperm.xlu0 %7968, %v2601_v2   ;;  %v604_v2 = vld [vmem:[%s13825_s1 + $0xe8] sm:$0xff] }
  0x50   : > { %7789 = vmatmul.mubr.msk.f32.gmra.mxu0 %vm738_vm1, %v589_v3  ;;  %7869 = vmatmul.mubr.msk.f32.gmra.mxu1 %vm738_vm1, %v669_v4  ;;  %v684_v3 = vld [vmem:[%s13825_s1 + $0x368] sm:$0xff] }
  0x51   : > { %1378 = vmatprep.mubr.f32.mxu0 %v13830_v6  ;;  %1858 = vmatprep.mubr.f32.mxu1 %v13830_v6  ;;  %v2634_v4 = vld [vmem:[%s13826_s2 + $0x208] sm:$0xff] }
  0x53   : > { %2906 = vperm.xlu1 %7969, %v2604_v5   ;;  %2901 = vperm.xlu0 %7968, %v2603_v7   ;;  %v2633_v5 = vld [vmem:[%s13826_s2 + $0x200] sm:$0xff] }
  0x54   : > { %7790 = vmatmul.mubr.msk.f32.gmra.mxu0 %vm738_vm1, %v590_v8  ;;  %7870 = vmatmul.mubr.msk.f32.gmra.mxu1 %vm738_vm1, %v670_v9  ;;  %v605_v9 = vld [vmem:[%s13825_s1 + $0xf0] sm:$0xff] }
  0x55   : > { %1384 = vmatprep.mubr.f32.mxu0 %v13830_v6  ;;  %1864 = vmatprep.mubr.f32.mxu1 %v13830_v6 }
  0x57   : > { %2916 = vperm.xlu1 %7969, %v2606_v10   ;;  %2911 = vperm.xlu0 %7968, %v2605_v11   ;;  %v685_v10 = vld [vmem:[%s13825_s1 + $0x370] sm:$0xff]  ;;  %v2636_v11 = vld [vmem:[%s13826_s2 + $0x218] sm:$0xff] }
  0x58   : > { %7791 = vmatmul.mubr.msk.f32.gmra.mxu0 %vm738_vm1, %v591_v12  ;;  %7871 = vmatmul.mubr.msk.f32.gmra.mxu1 %vm738_vm1, %v671_v13  ;;  %v2635_v12 = vld [vmem:[%s13826_s2 + $0x210] sm:$0xff] }
  0x59   : > { %1390 = vmatprep.mubr.f32.mxu0 %v13830_v6  ;;  %1870 = vmatprep.mubr.f32.mxu1 %v13830_v6 }
  0x5b   : > { %2926 = vperm.xlu1 %7969, %v2608_v14   ;;  %2921 = vperm.xlu0 %7968, %v2607_v15   ;;  %v606_v15 = vld [vmem:[%s13825_s1 + $0xf8] sm:$0xff] }
  0x5c   : > { %7792 = vmatmul.mubr.msk.f32.gmra.mxu0 %vm738_vm1, %v592_v16  ;;  %7872 = vmatmul.mubr.msk.f32.gmra.mxu1 %vm738_vm1, %v672_v17  ;;  %v686_v16 = vld [vmem:[%s13825_s1 + $0x378] sm:$0xff]  ;;  %v2638_v17 = vld [vmem:[%s13826_s2 + $0x228] sm:$0xff] }
  0x5d   : > { %1396 = vmatprep.mubr.f32.mxu0 %v13830_v6  ;;  %1876 = vmatprep.mubr.f32.mxu1 %v13830_v6 }
  0x5f   : > { %2936 = vperm.xlu1 %7969, %v2610_v18   ;;  %2931 = vperm.xlu0 %7968, %v2609_v19   ;;  %v2637_v18 = vld [vmem:[%s13826_s2 + $0x220] sm:$0xff] }
  0x60   : > { %7793 = vmatmul.mubr.msk.f32.gmra.mxu0 %vm738_vm1, %v593_v20  ;;  %7873 = vmatmul.mubr.msk.f32.gmra.mxu1 %vm738_vm1, %v673_v21  ;;  %v607_v21 = vld [vmem:[%s13825_s1 + $0x100] sm:$0xff] }
  0x61   : > { %1402 = vmatprep.mubr.f32.mxu0 %v13830_v6  ;;  %1882 = vmatprep.mubr.f32.mxu1 %v13830_v6 }
  0x63   : > { %2946 = vperm.xlu1 %7969, %v2612_v22   ;;  %2941 = vperm.xlu0 %7968, %v2611_v23   ;;  %v687_v22 = vld [vmem:[%s13825_s1 + $0x380] sm:$0xff]  ;;  %v2640_v23 = vld [vmem:[%s13826_s2 + $0x238] sm:$0xff] }
  0x64   : > { %7794 = vmatmul.mubr.msk.f32.gmra.mxu0 %vm738_vm1, %v594_v24  ;;  %7874 = vmatmul.mubr.msk.f32.gmra.mxu1 %vm738_vm1, %v674_v25  ;;  %v2639_v24 = vld [vmem:[%s13826_s2 + $0x230] sm:$0xff] }
  0x65   : > { %1408 = vmatprep.mubr.f32.mxu0 %v13830_v6  ;;  %1888 = vmatprep.mubr.f32.mxu1 %v13830_v6 }
  0x67   : > { %2956 = vperm.xlu1 %7969, %v2614_v26   ;;  %2951 = vperm.xlu0 %7968, %v2613_v27   ;;  %v608_v27 = vld [vmem:[%s13825_s1 + $0x108] sm:$0xff] }
  0x68   : > { %7795 = vmatmul.mubr.msk.f32.gmra.mxu0 %vm738_vm1, %v595_v28  ;;  %7875 = vmatmul.mubr.msk.f32.gmra.mxu1 %vm738_vm1, %v675_v29  ;;  %v688_v28 = vld [vmem:[%s13825_s1 + $0x388] sm:$0xff] }
  0x69   : > { %1414 = vmatprep.mubr.f32.mxu0 %v13830_v6  ;;  %1894 = vmatprep.mubr.f32.mxu1 %v13830_v6  ;;  %v2642_v29 = vld [vmem:[%s13826_s2 + $0x248] sm:$0xff] }
  0x6b   : > { %2966 = vperm.xlu1 %7969, %v2616_v30   ;;  %2961 = vperm.xlu0 %7968, %v2615_v31   ;;  %v2641_v30 = vld [vmem:[%s13826_s2 + $0x240] sm:$0xff] }
  0x6c   : > { %7796 = vmatmul.mubr.msk.f32.gmra.mxu0 %vm738_vm1, %v596_v32  ;;  %7876 = vmatmul.mubr.msk.f32.gmra.mxu1 %vm738_vm1, %v676_v33  ;;  %v609_v33 = vld [vmem:[%s13825_s1 + $0x110] sm:$0xff] }
  0x6d   : > { %1420 = vmatprep.mubr.f32.mxu0 %v13830_v6  ;;  %1900 = vmatprep.mubr.f32.mxu1 %v13830_v6 }
  0x6f   : > { %2976 = vperm.xlu1 %7969, %v2618_v34   ;;  %2971 = vperm.xlu0 %7968, %v2617_v35   ;;  %v689_v34 = vld [vmem:[%s13825_s1 + $0x390] sm:$0xff]  ;;  %v2644_v35 = vld [vmem:[%s13826_s2 + $0x258] sm:$0xff] }
  0x70   : > { %7797 = vmatmul.mubr.msk.f32.gmra.mxu0 %vm738_vm1, %v597_v36  ;;  %7877 = vmatmul.mubr.msk.f32.gmra.mxu1 %vm738_vm1, %v677_v37  ;;  %v2643_v36 = vld [vmem:[%s13826_s2 + $0x250] sm:$0xff] }
  0x71   : > { %1426 = vmatprep.mubr.f32.mxu0 %v13830_v6  ;;  %1906 = vmatprep.mubr.f32.mxu1 %v13830_v6 }
  0x73   : > { %2986 = vperm.xlu1 %7969, %v2620_v38   ;;  %2981 = vperm.xlu0 %7968, %v2619_v39   ;;  %v610_v39 = vld [vmem:[%s13825_s1 + $0x118] sm:$0xff] }
  0x74   : > { %7798 = vmatmul.mubr.msk.f32.gmra.mxu0 %vm738_vm1, %v598_v40  ;;  %7878 = vmatmul.mubr.msk.f32.gmra.mxu1 %vm738_vm1, %v678_v41  ;;  %v2646_v40 = vld [vmem:[%s13826_s2 + $0x268] sm:$0xff]  ;;  %v2645_v41 = vld [vmem:[%s13826_s2 + $0x260] sm:$0xff] }
  0x75   : > { %1432 = vmatprep.mubr.f32.mxu0 %v13830_v6  ;;  %1912 = vmatprep.mubr.f32.mxu1 %v13830_v6 }
  0x77   : > { %2996 = vperm.xlu1 %7969, %v2622_v42   ;;  %2991 = vperm.xlu0 %7968, %v2621_v43  }
  0x78   : > { %7799 = vmatmul.mubr.msk.f32.gmra.mxu0 %vm738_vm1, %v599_v44  ;;  %7879 = vmatmul.mubr.msk.f32.gmra.mxu1 %vm738_vm1, %v679_v45  ;;  %v611_v44 = vld [vmem:[%s13825_s1 + $0x120] sm:$0xff]  ;;  %v2648_v45 = vld [vmem:[%s13826_s2 + $0x278] sm:$0xff] }
  0x79   : > { %1438 = vmatprep.mubr.f32.mxu0 %v13830_v6  ;;  %1918 = vmatprep.mubr.f32.mxu1 %v13830_v6 }
  0x7b   : > { %3006 = vperm.xlu1 %7969, %v2624_v46   ;;  %3001 = vperm.xlu0 %7968, %v2623_v47   ;;  %v2647_v46 = vld [vmem:[%s13826_s2 + $0x270] sm:$0xff] }
  0x7c   : > { %7800 = vmatmul.mubr.msk.f32.gmra.mxu0 %vm738_vm1, %v600_v48  ;;  %7880 = vmatmul.mubr.msk.f32.gmra.mxu1 %vm738_vm1, %v680_v49  ;;  %v612_v49 = vld [vmem:[%s13825_s1 + $0x128] sm:$0xff] }
  0x7d   : > { %1444 = vmatprep.mubr.f32.mxu0 %v13830_v6  ;;  %1924 = vmatprep.mubr.f32.mxu1 %v13830_v6 }
  0x7f   : > { %3016 = vperm.xlu1 %7969, %v2626_v50   ;;  %3011 = vperm.xlu0 %7968, %v2625_v51   ;;  %v2650_v50 = vld [vmem:[%s13826_s2 + $0x288] sm:$0xff]  ;;  %v2649_v51 = vld [vmem:[%s13826_s2 + $0x280] sm:$0xff] }
  0x80   : > { %7801 = vmatmul.mubr.msk.f32.gmra.mxu0 %vm738_vm1, %v601_v52  ;;  %7881 = vmatmul.mubr.msk.f32.gmra.mxu1 %vm738_vm1, %v681_v53 }
  0x81   : > { %1450 = vmatprep.mubr.f32.mxu0 %v13830_v6  ;;  %1930 = vmatprep.mubr.f32.mxu1 %v13830_v6 }
  0x83   : > { %3026 = vperm.xlu1 %7969, %v2628_v54   ;;  %3021 = vperm.xlu0 %7968, %v2627_v55   ;;  %v613_v54 = vld [vmem:[%s13825_s1 + $0x130] sm:$0xff]  ;;  %v2652_v55 = vld [vmem:[%s13826_s2 + $0x298] sm:$0xff] }
  0x84   : > { %7802 = vmatmul.mubr.msk.f32.gmra.mxu0 %vm738_vm1, %v602_v56  ;;  %7882 = vmatmul.mubr.msk.f32.gmra.mxu1 %vm738_vm1, %v682_v57  ;;  %v2651_v56 = vld [vmem:[%s13826_s2 + $0x290] sm:$0xff] }
  0x85   : > { %1456 = vmatprep.mubr.f32.mxu0 %v13830_v6  ;;  %1936 = vmatprep.mubr.f32.mxu1 %v13830_v6 }
  0x87   : > { %3036 = vperm.xlu1 %7969, %v2630_v58   ;;  %3031 = vperm.xlu0 %7968, %v2629_v59   ;;  %v614_v59 = vld [vmem:[%s13825_s1 + $0x138] sm:$0xff] }
  0x88   : > { %7803 = vmatmul.mubr.msk.f32.gmra.mxu0 %vm738_vm1, %v603_v60  ;;  %7883 = vmatmul.mubr.msk.f32.gmra.mxu1 %vm738_vm1, %v683_v61  ;;  %v2654_v60 = vld [vmem:[%s13826_s2 + $0x2a8] sm:$0xff]  ;;  %v2653_v61 = vld [vmem:[%s13826_s2 + $0x2a0] sm:$0xff] }
  0x89   : > { %1462 = vmatprep.mubr.f32.mxu0 %v13830_v6  ;;  %1942 = vmatprep.mubr.f32.mxu1 %v13830_v6 }
  0x8a   : > { %v9176_v0 = vpop.permute.xlu1 %2741  ;;  %v9178_v1 = vpop.permute.xlu0 %2731 }
  0x8b   : > { %3046 = vperm.xlu1 %7969, %v2632_v62   ;;  %3041 = vperm.xlu0 %7968, %v2631_v63  }
  0x8c   : > { %7804 = vmatmul.mubr.msk.f32.gmra.mxu0 %vm738_vm1, %v604_v2  ;;  %7884 = vmatmul.mubr.msk.f32.gmra.mxu1 %vm738_vm1, %v684_v3  ;;  %v615_v2 = vld [vmem:[%s13825_s1 + $0x140] sm:$0xff]  ;;  %v2656_v3 = vld [vmem:[%s13826_s2 + $0x2b8] sm:$0xff] }
  0x8d   : > { %1468 = vmatprep.mubr.f32.mxu0 %v13830_v6  ;;  %1948 = vmatprep.mubr.f32.mxu1 %v13830_v6 }
  0x8e   : > { %v9196_v7 = vpop.permute.xlu1 %2746  ;;  %v9198_v8 = vpop.permute.xlu0 %2736 }
  0x8f   : > { %3056 = vperm.xlu1 %7969, %v2634_v4   ;;  %3051 = vperm.xlu0 %7968, %v2633_v5   ;;  %v2655_v4 = vld [vmem:[%s13826_s2 + $0x2b0] sm:$0xff] }
  0x90   : > { %7805 = vmatmul.mubr.msk.f32.gmra.mxu0 %vm738_vm1, %v605_v9  ;;  %7885 = vmatmul.mubr.msk.f32.gmra.mxu1 %vm738_vm1, %v685_v10  ;;  %v616_v10 = vld [vmem:[%s13825_s1 + $0x148] sm:$0xff] }
  0x91   : > { %1474 = vmatprep.mubr.f32.mxu0 %v13830_v6  ;;  %1954 = vmatprep.mubr.f32.mxu1 %v13830_v6 }
  0x92   : > { %v9216_v13 = vpop.permute.xlu1 %2756  ;;  %v9218_v14 = vpop.permute.xlu0 %2751 }
  0x93   : > { %3066 = vperm.xlu1 %7969, %v2636_v11   ;;  %3061 = vperm.xlu0 %7968, %v2635_v12   ;;  %v2658_v11 = vld [vmem:[%s13826_s2 + $0x2c8] sm:$0xff]  ;;  %v2657_v12 = vld [vmem:[%s13826_s2 + $0x2c0] sm:$0xff] }
  0x94   : > { %7806 = vmatmul.mubr.msk.f32.gmra.mxu0 %vm738_vm1, %v606_v15  ;;  %7886 = vmatmul.mubr.msk.f32.gmra.mxu1 %vm738_vm1, %v686_v16 }
  0x95   : > { %1480 = vmatprep.mubr.f32.mxu0 %v13830_v6  ;;  %1960 = vmatprep.mubr.f32.mxu1 %v13830_v6 }
  0x96   : > { %v9236_v19 = vpop.permute.xlu1 %2766  ;;  %v9238_v20 = vpop.permute.xlu0 %2761 }
  0x97   : > { %3076 = vperm.xlu1 %7969, %v2638_v17   ;;  %3071 = vperm.xlu0 %7968, %v2637_v18   ;;  %v617_v17 = vld [vmem:[%s13825_s1 + $0x150] sm:$0xff]  ;;  %v2660_v18 = vld [vmem:[%s13826_s2 + $0x2d8] sm:$0xff] }
  0x98   : > { %7807 = vmatmul.mubr.msk.f32.gmra.mxu0 %vm738_vm1, %v607_v21  ;;  %7887 = vmatmul.mubr.msk.f32.gmra.mxu1 %vm738_vm1, %v687_v22  ;;  %v2659_v21 = vld [vmem:[%s13826_s2 + $0x2d0] sm:$0xff] }
  0x99   : > { %1486 = vmatprep.mubr.f32.mxu0 %v13830_v6  ;;  %1966 = vmatprep.mubr.f32.mxu1 %v13830_v6 }
  0x9a   : > { %v9256_v25 = vpop.permute.xlu1 %2776  ;;  %v9258_v26 = vpop.permute.xlu0 %2771 }
  0x9b   : > { %3086 = vperm.xlu1 %7969, %v2640_v23   ;;  %3081 = vperm.xlu0 %7968, %v2639_v24   ;;  %v618_v24 = vld [vmem:[%s13825_s1 + $0x158] sm:$0xff] }
  0x9c   : > { %7808 = vmatmul.mubr.msk.f32.gmra.mxu0 %vm738_vm1, %v608_v27  ;;  %7888 = vmatmul.mubr.msk.f32.gmra.mxu1 %vm738_vm1, %v688_v28  ;;  %v2662_v27 = vld [vmem:[%s13826_s2 + $0x2e8] sm:$0xff]  ;;  %v2661_v28 = vld [vmem:[%s13826_s2 + $0x2e0] sm:$0xff] }
  0x9d   : > { %1492 = vmatprep.mubr.f32.mxu0 %v13830_v6  ;;  %1972 = vmatprep.mubr.f32.mxu1 %v13830_v6 }
  0x9e   : > { %v9276_v31 = vpop.permute.xlu1 %2786  ;;  %v9278_v32 = vpop.permute.xlu0 %2781 }
  0x9f   : > { %3096 = vperm.xlu1 %7969, %v2642_v29   ;;  %3091 = vperm.xlu0 %7968, %v2641_v30  }
  0xa0   : > { %7809 = vmatmul.mubr.msk.f32.gmra.mxu0 %vm738_vm1, %v609_v33  ;;  %7889 = vmatmul.mubr.msk.f32.gmra.mxu1 %vm738_vm1, %v689_v34  ;;  %v619_v33 = vld [vmem:[%s13825_s1 + $0x160] sm:$0xff]  ;;  %v2664_v34 = vld [vmem:[%s13826_s2 + $0x2f8] sm:$0xff] }
  0xa1   : > { %1498 = vmatprep.mubr.f32.mxu0 %v13830_v6  ;;  %1978 = vmatprep.mubr.f32.mxu1 %v13830_v6 }
  0xa2   : > { %v9296_v37 = vpop.permute.xlu1 %2796  ;;  %v9298_v38 = vpop.permute.xlu0 %2791 }
  0xa3   : > { %3106 = vperm.xlu1 %7969, %v2644_v35   ;;  %3101 = vperm.xlu0 %7968, %v2643_v36   ;;  %v2663_v35 = vld [vmem:[%s13826_s2 + $0x2f0] sm:$0xff] }
  0xa4   : > { %7810 = vmatmul.mubr.msk.f32.gmra.mxu0 %vm738_vm1, %v610_v39 }
  0xa5   : > { %1504 = vmatprep.mubr.f32.mxu0 %v13830_v6 }
  0xa6   : > { %v9312_v42 = vpop.permute.xlu1 %2806  ;;  %v9314_v43 = vpop.permute.xlu0 %2801 }
  0xa7   : > { %3116 = vperm.xlu1 %7969, %v2646_v40   ;;  %3111 = vperm.xlu0 %7968, %v2645_v41   ;;  %v620_v40 = vld [vmem:[%s13825_s1 + $0x168] sm:$0xff] }
  0xa8   : > { %7811 = vmatmul.mubr.msk.f32.gmra.mxu0 %vm738_vm1, %v611_v44  ;;  %v2666_v41 = vld [vmem:[%s13826_s2 + $0x308] sm:$0xff]  ;;  %v2665_v44 = vld [vmem:[%s13826_s2 + $0x300] sm:$0xff] }
  0xa9   : > { %1510 = vmatprep.mubr.f32.mxu0 %v13830_v6 }
  0xaa   : > { %v9327_v47 = vpop.permute.xlu1 %2816  ;;  %v9329_v48 = vpop.permute.xlu0 %2811 }
  0xab   : > { %13944 = vst [vmem:[#allocation4_spill] sm:$0xff] %v9327_v47  ;;  %3126 = vperm.xlu1 %7969, %v2648_v45   ;;  %3121 = vperm.xlu0 %7968, %v2647_v46  }
  0xac   : > { %7812 = vmatmul.mubr.msk.f32.gmra.mxu0 %vm738_vm1, %v612_v49  ;;  %v621_v49 = vld [vmem:[%s13825_s1 + $0x170] sm:$0xff] }
  0xad   : > { %1516 = vmatprep.mubr.f32.mxu0 %v13830_v6 }
  0xae   : > { %v9342_v52 = vpop.permute.xlu1 %2826  ;;  %v9344_v53 = vpop.permute.xlu0 %2821 }
  0xaf   : > { %13945 = vst [vmem:[#allocation5_spill] sm:$0xff] %v9342_v52  ;;  %13946 = vst [vmem:[#allocation6_spill] sm:$0xff] %v9344_v53  ;;  %3136 = vperm.xlu1 %7969, %v2650_v50   ;;  %3131 = vperm.xlu0 %7968, %v2649_v51   ;;  %v2668_v50 = vld [vmem:[%s13826_s2 + $0x318] sm:$0xff]  ;;  %v2667_v51 = vld [vmem:[%s13826_s2 + $0x310] sm:$0xff] }
  0xb0   : > { %7813 = vmatmul.mubr.msk.f32.gmra.mxu0 %vm738_vm1, %v613_v54  ;;  %v6118_v53 = vld [vmem:[%s13827_s3 + $0xd0] sm:$0xff] }
  0xb1   : > { %1522 = vmatprep.mubr.f32.mxu0 %v13830_v6 }
  0xb2   : > { %v9357_v57 = vpop.permute.xlu1 %2836  ;;  %v9359_v58 = vpop.permute.xlu0 %2831 }
  0xb3   : > { %13947 = vst [vmem:[#allocation7_spill] sm:$0xff] %v9357_v57  ;;  %13948 = vst [vmem:[#allocation8_spill] sm:$0xff] %v9359_v58  ;;  %3146 = vperm.xlu1 %7969, %v2652_v55   ;;  %3141 = vperm.xlu0 %7968, %v2651_v56   ;;  %v622_v56 = vld [vmem:[%s13825_s1 + $0x178] sm:$0xff]  ;;  %v6116_v58 = vld [vmem:[%s13827_s3 + $0xc0] sm:$0xff] }
  0xb4   : > { %7814 = vmatmul.mubr.msk.f32.gmra.mxu0 %vm738_vm1, %v614_v59  ;;  %v2670_v59 = vld [vmem:[%s13826_s2 + $0x328] sm:$0xff] }
  0xb5   : > { %1528 = vmatprep.mubr.f32.mxu0 %v13830_v6 }
  0xb6   : > { %v9372_v62 = vpop.permute.xlu1 %2846  ;;  %v9374_v63 = vpop.permute.xlu0 %2841 }
  0xb7   : > { %13949 = vst [vmem:[#allocation9_spill] sm:$0xff] %v9372_v62  ;;  %13950 = vst [vmem:[#allocation10_spill] sm:$0xff] %v9374_v63  ;;  %3156 = vperm.xlu1 %7969, %v2654_v60   ;;  %3151 = vperm.xlu0 %7968, %v2653_v61   ;;  %v2669_v60 = vld [vmem:[%s13826_s2 + $0x320] sm:$0xff]  ;;  %v6114_v63 = vld [vmem:[%s13827_s3 + $0xb0] sm:$0xff] }
  0xb8   : > { %7815 = vmatmul.mubr.msk.f32.gmra.mxu0 %vm738_vm1, %v615_v2 }
  0xb9   : > { %1534 = vmatprep.mubr.f32.mxu0 %v13830_v6 }
  0xba   : > { %v9387_v5 = vpop.permute.xlu1 %2856  ;;  %v9389_v9 = vpop.permute.xlu0 %2851 }
  0xbb   : > { %13951 = vst [vmem:[#allocation11_spill] sm:$0xff] %v9387_v5  ;;  %13952 = vst [vmem:[#allocation12_spill] sm:$0xff] %v9389_v9  ;;  %3166 = vperm.xlu1 %7969, %v2656_v3   ;;  %3161 = vperm.xlu0 %7968, %v2655_v4   ;;  %v623_v3 = vld [vmem:[%s13825_s1 + $0x180] sm:$0xff]  ;;  %v2672_v4 = vld [vmem:[%s13826_s2 + $0x338] sm:$0xff] }
  0xbc   : > { %7816 = vmatmul.mubr.msk.f32.gmra.mxu0 %vm738_vm1, %v616_v10  ;;  %v2671_v10 = vld [vmem:[%s13826_s2 + $0x330] sm:$0xff]  ;;  %v6112_v9 = vld [vmem:[%s13827_s3 + $0xa0] sm:$0xff] }
  0xbd   : > { %1540 = vmatprep.mubr.f32.mxu0 %v13830_v6 }
  0xbe   : > { %v9402_v15 = vpop.permute.xlu1 %2866  ;;  %v9404_v16 = vpop.permute.xlu0 %2861 }
  0xbf   : > { %13953 = vst [vmem:[#allocation13_spill] sm:$0xff] %v9402_v15  ;;  %13954 = vst [vmem:[#allocation14_spill] sm:$0xff] %v9404_v16  ;;  %3176 = vperm.xlu1 %7969, %v2658_v11   ;;  %3171 = vperm.xlu0 %7968, %v2657_v12   ;;  %v6110_v16 = vld [vmem:[%s13827_s3 + $0x90] sm:$0xff] }
  0xc0   : > { %7817 = vmatmul.mubr.msk.f32.gmra.mxu0 %vm738_vm1, %v617_v17 }
  0xc1   : > { %1546 = vmatprep.mubr.f32.mxu0 %v13830_v6 }
  0xc2   : > { %v9417_v22 = vpop.permute.xlu1 %2876  ;;  %v9419_v23 = vpop.permute.xlu0 %2871 }
  0xc3   : > { %13955 = vst [vmem:[#allocation15_spill] sm:$0xff] %v9417_v22  ;;  %13956 = vst [vmem:[#allocation16_spill] sm:$0xff] %v9419_v23  ;;  %3186 = vperm.xlu1 %7969, %v2660_v18   ;;  %3181 = vperm.xlu0 %7968, %v2659_v21   ;;  %v624_v18 = vld [vmem:[%s13825_s1 + $0x188] sm:$0xff]  ;;  %v6108_v23 = vld [vmem:[%s13827_s3 + $0x80] sm:$0xff] }
  0xc4   : > { %7818 = vmatmul.mubr.msk.f32.gmra.mxu0 %vm738_vm1, %v618_v24  ;;  %v2674_v24 = vld [vmem:[%s13826_s2 + $0x348] sm:$0xff] }
  0xc5   : > { %1552 = vmatprep.mubr.f32.mxu0 %v13830_v6 }
  0xc6   : > { %v9432_v29 = vpop.permute.xlu1 %2886  ;;  %v9434_v30 = vpop.permute.xlu0 %2881 }
  0xc7   : > { %13957 = vst [vmem:[#allocation17_spill] sm:$0xff] %v9432_v29  ;;  %13958 = vst [vmem:[#allocation18_spill] sm:$0xff] %v9434_v30  ;;  %3196 = vperm.xlu1 %7969, %v2662_v27   ;;  %3191 = vperm.xlu0 %7968, %v2661_v28   ;;  %v2673_v27 = vld [vmem:[%s13826_s2 + $0x340] sm:$0xff]  ;;  %v6106_v30 = vld [vmem:[%s13827_s3 + $0x70] sm:$0xff] }
  0xc8   : > { %7819 = vmatmul.mubr.msk.f32.gmra.mxu0 %vm738_vm1, %v619_v33 }
  0xc9   : > { %1558 = vmatprep.mubr.f32.mxu0 %v13830_v6 }
  0xca   : > { %v9447_v36 = vpop.permute.xlu1 %2896  ;;  %v9449_v39 = vpop.permute.xlu0 %2891 }
  0xcb   : > { %13959 = vst [vmem:[#allocation19_spill] sm:$0xff] %v9447_v36  ;;  %13960 = vst [vmem:[#allocation20_spill] sm:$0xff] %v9449_v39  ;;  %3206 = vperm.xlu1 %7969, %v2664_v34   ;;  %3201 = vperm.xlu0 %7968, %v2663_v35   ;;  %v625_v35 = vld [vmem:[%s13825_s1 + $0x190] sm:$0xff]  ;;  %v6104_v39 = vld [vmem:[%s13827_s3 + $0x60] sm:$0xff] }
  0xcc   : > { %7820 = vmatmul.mubr.msk.f32.gmra.mxu0 %vm738_vm1, %v620_v40 }
  0xcd   : > { %1564 = vmatprep.mubr.f32.mxu0 %v13830_v6 }
  0xce   : > { %v9462_v45 = vpop.permute.xlu1 %2906  ;;  %v9464_v46 = vpop.permute.xlu0 %2901 }
  0xcf   : > { %13961 = vst [vmem:[#allocation21_spill] sm:$0xff] %v9462_v45  ;;  %13962 = vst [vmem:[#allocation22_spill] sm:$0xff] %v9464_v46  ;;  %3216 = vperm.xlu1 %7969, %v2666_v41   ;;  %3211 = vperm.xlu0 %7968, %v2665_v44   ;;  %v2676_v41 = vld [vmem:[%s13826_s2 + $0x358] sm:$0xff]  ;;  %v2675_v44 = vld [vmem:[%s13826_s2 + $0x350] sm:$0xff] }
  0xd0   : > { %7821 = vmatmul.mubr.msk.f32.gmra.mxu0 %vm738_vm1, %v621_v49  ;;  %v6102_v46 = vld [vmem:[%s13827_s3 + $0x50] sm:$0xff] }
  0xd1   : > { %1570 = vmatprep.mubr.f32.mxu0 %v13830_v6 }
  0xd2   : > { %v9477_v54 = vpop.permute.xlu1 %2916  ;;  %v9479_v55 = vpop.permute.xlu0 %2911 }
  0xd3   : > { %13963 = vst [vmem:[#allocation23_spill] sm:$0xff] %v9477_v54  ;;  %13964 = vst [vmem:[#allocation24_spill] sm:$0xff] %v9479_v55  ;;  %3226 = vperm.xlu1 %7969, %v2668_v50   ;;  %3221 = vperm.xlu0 %7968, %v2667_v51   ;;  %v6100_v55 = vld [vmem:[%s13827_s3 + $0x40] sm:$0xff] }
  0xd4   : > { %7822 = vmatmul.mubr.msk.f32.gmra.mxu0 %vm738_vm1, %v622_v56  ;;  %v626_v56 = vld [vmem:[%s13825_s1 + $0x198] sm:$0xff] }
  0xd5   : > { %1576 = vmatprep.mubr.f32.mxu0 %v13830_v6 }
  0xd6   : > { %v9492_v61 = vpop.permute.xlu1 %2926  ;;  %v9494_v2 = vpop.permute.xlu0 %2921 }
  0xd7   : > { %13965 = vst [vmem:[#allocation25_spill] sm:$0xff] %v9492_v61  ;;  %13966 = vst [vmem:[#allocation26_spill] sm:$0xff] %v9494_v2  ;;  %3236 = vperm.xlu1 %7969, %v2670_v59   ;;  %3231 = vperm.xlu0 %7968, %v2669_v60   ;;  %v2678_v60 = vld [vmem:[%s13826_s2 + $0x368] sm:$0xff]  ;;  %v6098_v2 = vld [vmem:[%s13827_s3 + $0x30] sm:$0xff] }
  0xd8   : > { %v9506_v11 = vpop.f32.mrf.mxu0  ;;  %7823 = vmatmul.mubr.msk.f32.gmra.mxu0 %vm738_vm1, %v623_v3  ;;  %v2677_v3 = vld [vmem:[%s13826_s2 + $0x360] sm:$0xff] }
  0xd9   : > { %1582 = vmatprep.mubr.f32.mxu0 %v13830_v6 }
  0xda   : > { %v9509_v12 = vpop.permute.xlu1 %2936  ;;  %v9511_v17 = vpop.permute.xlu0 %2931 }
  0xdb   : > { %13967 = vst [vmem:[#allocation27_spill] sm:$0xff] %v9509_v12  ;;  %13968 = vst [vmem:[#allocation28_spill] sm:$0xff] %v9511_v17  ;;  %v9517_v21 = vpop.f32.mrf.mxu0  ;;  %3246 = vperm.xlu1 %7969, %v2672_v4   ;;  %3241 = vperm.xlu0 %7968, %v2671_v10   ;;  %v6096_v17 = vld [vmem:[%s13827_s3 + $0x20] sm:$0xff] }
  0xdc   : > { %7824 = vmatmul.mubr.msk.f32.gmra.mxu0 %vm738_vm1, %v624_v18 }
  0xdd   : > { %v9525_v28 = vpop.f32.mrf.mxu0  ;;  %1588 = vmatprep.mubr.f32.mxu0 %v13830_v6 }
  0xde   : > { %v9528_v33 = vpop.permute.xlu1 %2946  ;;  %v9530_v34 = vpop.permute.xlu0 %2941 }
  0xdf   : > { %13969 = vst [vmem:[#allocation29_spill] sm:$0xff] %v9528_v33  ;;  %13970 = vst [vmem:[#allocation30_spill] sm:$0xff] %v9530_v34  ;;  %v9536_v40 = vpop.f32.mrf.mxu0  ;;  %3256 = vperm.xlu1 %7969, %v2674_v24   ;;  %3251 = vperm.xlu0 %7968, %v2673_v27   ;;  %v627_v24 = vld [vmem:[%s13825_s1 + $0x1a0] sm:$0xff]  ;;  %v6094_v34 = vld [vmem:[%s13827_s3 + $0x10] sm:$0xff] }
  0xe0   : > { %7825 = vmatmul.mubr.msk.f32.gmra.mxu0 %vm738_vm1, %v625_v35  ;;  %v2680_v35 = vld [vmem:[%s13826_s2 + $0x378] sm:$0xff] }
  0xe1   : > { %v9544_v49 = vpop.f32.mrf.mxu0  ;;  %1594 = vmatprep.mubr.f32.mxu0 %v13830_v6 }
  0xe2   : > { %v9547_v50 = vpop.permute.xlu1 %2956  ;;  %v9549_v51 = vpop.permute.xlu0 %2951 }
  0xe3   : > { %13971 = vst [vmem:[#allocation31_spill] sm:$0xff] %v9547_v50  ;;  %13972 = vst [vmem:[#allocation32_spill] sm:$0xff] %v9549_v51  ;;  %v9555_v59 = vpop.f32.mrf.mxu0  ;;  %3266 = vperm.xlu1 %7969, %v2676_v41   ;;  %3261 = vperm.xlu0 %7968, %v2675_v44   ;;  %v2679_v41 = vld [vmem:[%s13826_s2 + $0x370] sm:$0xff]  ;;  %v6092_v51 = vld [vmem:[%s13827_s3] sm:$0xff] }
  0xe4   : > { %7826 = vmatmul.mubr.msk.f32.gmra.mxu0 %vm738_vm1, %v626_v56 }
  0xe5   : > { %v9563_v4 = vpop.f32.mrf.mxu0  ;;  %1600 = vmatprep.mubr.f32.mxu0 %v13830_v6 }
  0xe6   : > { %v9566_v10 = vpop.permute.xlu1 %2966  ;;  %v9568_v18 = vpop.permute.xlu0 %2961 }
  0xe7   : > { %13973 = vst [vmem:[#allocation33_spill] sm:$0xff] %v9566_v10  ;;  %13974 = vst [vmem:[#allocation34_spill] sm:$0xff] %v9568_v18  ;;  %v9574_v27 = vpop.f32.mrf.mxu0  ;;  %3276 = vperm.xlu1 %7969, %v2678_v60   ;;  %3271 = vperm.xlu0 %7968, %v2677_v3   ;;  %v13977_v10 = vmov 0.0   ;;  %v628_v60 = vld [vmem:[%s13825_s1 + $0x1a8] sm:$0xff] }
  0xe8   : > { %7827 = vmatmul.mubr.msk.f32.gmra.mxu0 %vm738_vm1, %v627_v24  ;;  %v2682_v18 = vld [vmem:[%s13826_s2 + $0x388] sm:$0xff]  ;;  %v2681_v24 = vld [vmem:[%s13826_s2 + $0x380] sm:$0xff] }
  0xe9   : > { %v9582_v44 = vpop.f32.mrf.mxu0  ;;  %1606 = vmatprep.mubr.f32.mxu0 %v13977_v10 }
  0xea   : > { %v9585_v56 = vpop.permute.xlu1 %2976  ;;  %v9587_v6 = vpop.permute.xlu0 %2971 }
  0xeb   : > { %13975 = vst [vmem:[#allocation35_spill] sm:$0xff] %v9585_v56  ;;  %13976 = vst [vmem:[#allocation36_spill] sm:$0xff] %v9587_v6  ;;  %v9593_v3 = vpop.f32.mrf.mxu0  ;;  %3286 = vperm.xlu1 %7969, %v2680_v35   ;;  %3281 = vperm.xlu0 %7968, %v2679_v41   ;;  %v629_v35 = vld [vmem:[%s13825_s1 + $0x1b0] sm:$0xff] }
  0xec   : > { %7828 = vmatmul.mubr.msk.f32.gmra.mxu0 %vm738_vm1, %v628_v60  ;;  %v2683_v60 = vld [vmem:[%s13826_s2 + $0x390] sm:$0xff] }
  0xed   : > { %v9601_v56 = vpop.f32.mrf.mxu0  ;;  %1612 = vmatprep.mubr.f32.mxu0 %v13977_v10 }
  0xee   : > { %v9604_v6 = vpop.permute.xlu1 %2986  ;;  %v9606_v50 = vpop.permute.xlu0 %2981 }
  0xef   : > { %13978 = vst [vmem:[#allocation37_spill] sm:$0xff] %v9604_v6  ;;  %13979 = vst [vmem:[#allocation38_spill] sm:$0xff] %v9606_v50  ;;  %v9612_v41 = vpop.f32.mrf.mxu0  ;;  %3296 = vperm.xlu1 %7969, %v2682_v18   ;;  %3291 = vperm.xlu0 %7968, %v2681_v24   ;;  %v630_v18 = vld [vmem:[%s13825_s1 + $0x1b8] sm:$0xff] }
  0xf0   : > { %7829 = vmatmul.mubr.msk.f32.gmra.mxu0 %vm738_vm1, %v629_v35  ;;  %v6093_v35 = vld [vmem:[%s13827_s3 + $0x8] sm:$0xff] }
  0xf1   : > { %v9620_v6 = vpop.f32.mrf.mxu0  ;;  %1618 = vmatprep.mubr.f32.mxu0 %v13977_v10 }
  0xf2   : > { %v9623_v50 = vpop.permute.xlu1 %2996  ;;  %v9625_v33 = vpop.permute.xlu0 %2991 }
  0xf3   : > { %13980 = vst [vmem:[#allocation39_spill] sm:$0xff] %v9623_v50  ;;  %13981 = vst [vmem:[#allocation40_spill] sm:$0xff] %v9625_v33  ;;  %v9631_v24 = vpop.f32.mrf.mxu0  ;;  %6254 = vperm.xlu1 %7969, %v6092_v51   ;;  %3301 = vperm.xlu0 %7968, %v2683_v60   ;;  %v631_v51 = vld [vmem:[%s13825_s1 + $0x1c0] sm:$0xff] }
  0xf4   : > { %7830 = vmatmul.mubr.msk.f32.gmra.mxu0 %vm738_vm1, %v630_v18  ;;  %v6095_v18 = vld [vmem:[%s13827_s3 + $0x18] sm:$0xff] }
  0xf5   : > { %v9639_v50 = vpop.f32.mrf.mxu0  ;;  %1624 = vmatprep.mubr.f32.mxu0 %v13977_v10 }
  0xf6   : > { %v9642_v33 = vpop.permute.xlu1 %3006  ;;  %v9644_v12 = vpop.permute.xlu0 %3001 }
  0xf7   : > { %13982 = vst [vmem:[#allocation41_spill] sm:$0xff] %v9642_v33  ;;  %13983 = vst [vmem:[#allocation42_spill] sm:$0xff] %v9644_v12  ;;  %v9650_v60 = vpop.f32.mrf.mxu0  ;;  %6264 = vperm.xlu1 %7969, %v6094_v34   ;;  %6259 = vperm.xlu0 %7968, %v6093_v35   ;;  %v632_v34 = vld [vmem:[%s13825_s1 + $0x1c8] sm:$0xff] }
  0xf8   : > { %7831 = vmatmul.mubr.msk.f32.gmra.mxu0 %vm738_vm1, %v631_v51  ;;  %v6097_v51 = vld [vmem:[%s13827_s3 + $0x28] sm:$0xff] }
  0xf9   : > { %v9658_v33 = vpop.f32.mrf.mxu0  ;;  %1630 = vmatprep.mubr.f32.mxu0 %v13977_v10 }
  0xfa   : > { %v9661_v12 = vpop.permute.xlu1 %3016  ;;  %v9663_v61 = vpop.permute.xlu0 %3011 }
  0xfb   : > { %13984 = vst [vmem:[#allocation43_spill] sm:$0xff] %v9661_v12  ;;  %13985 = vst [vmem:[#allocation44_spill] sm:$0xff] %v9663_v61  ;;  %v9669_v35 = vpop.f32.mrf.mxu0  ;;  %6274 = vperm.xlu1 %7969, %v6096_v17   ;;  %6269 = vperm.xlu0 %7968, %v6095_v18   ;;  %v633_v17 = vld [vmem:[%s13825_s1 + $0x1d0] sm:$0xff] }
  0xfc   : > { %7832 = vmatmul.mubr.msk.f32.gmra.mxu0 %vm738_vm1, %v632_v34  ;;  %v6099_v34 = vld [vmem:[%s13827_s3 + $0x38] sm:$0xff] }
  0xfd   : > { %v9677_v12 = vpop.f32.mrf.mxu0  ;;  %1636 = vmatprep.mubr.f32.mxu0 %v13977_v10 }
  0xfe   : > { %v9680_v61 = vpop.permute.xlu1 %3026  ;;  %v9682_v54 = vpop.permute.xlu0 %3021 }
  0xff   : > { %13986 = vst [vmem:[#allocation45_spill] sm:$0xff] %v9680_v61  ;;  %13987 = vst [vmem:[#allocation46_spill] sm:$0xff] %v9682_v54  ;;  %v9688_v18 = vpop.f32.mrf.mxu0  ;;  %6284 = vperm.xlu1 %7969, %v6098_v2   ;;  %6279 = vperm.xlu0 %7968, %v6097_v51   ;;  %v634_v2 = vld [vmem:[%s13825_s1 + $0x1d8] sm:$0xff] }
 0x100   : > { %7833 = vmatmul.mubr.msk.f32.gmra.mxu0 %vm738_vm1, %v633_v17  ;;  %v6101_v17 = vld [vmem:[%s13827_s3 + $0x48] sm:$0xff] }
 0x101   : > { %v9696_v61 = vpop.f32.mrf.mxu0  ;;  %1642 = vmatprep.mubr.f32.mxu0 %v13977_v10 }
 0x102   : > { %v9699_v54 = vpop.permute.xlu1 %3036  ;;  %v9701_v45 = vpop.permute.xlu0 %3031 }
 0x103   : > { %13988 = vst [vmem:[#allocation47_spill] sm:$0xff] %v9699_v54  ;;  %13989 = vst [vmem:[#allocation48_spill] sm:$0xff] %v9701_v45  ;;  %v9707_v51 = vpop.f32.mrf.mxu0  ;;  %6294 = vperm.xlu1 %7969, %v6100_v55   ;;  %6289 = vperm.xlu0 %7968, %v6099_v34   ;;  %v635_v55 = vld [vmem:[%s13825_s1 + $0x1e0] sm:$0xff] }
 0x104   : > { %7834 = vmatmul.mubr.msk.f32.gmra.mxu0 %vm738_vm1, %v634_v2  ;;  %v6103_v2 = vld [vmem:[%s13827_s3 + $0x58] sm:$0xff] }
 0x105   : > { %v9715_v54 = vpop.f32.mrf.mxu0  ;;  %1648 = vmatprep.mubr.f32.mxu0 %v13977_v10 }
 0x106   : > { %v9718_v45 = vpop.permute.xlu1 %3046  ;;  %v9720_v36 = vpop.permute.xlu0 %3041 }
 0x107   : > { %13990 = vst [vmem:[#allocation49_spill] sm:$0xff] %v9718_v45  ;;  %13991 = vst [vmem:[#allocation50_spill] sm:$0xff] %v9720_v36  ;;  %v9726_v34 = vpop.f32.mrf.mxu0  ;;  %6304 = vperm.xlu1 %7969, %v6102_v46   ;;  %6299 = vperm.xlu0 %7968, %v6101_v17   ;;  %v636_v46 = vld [vmem:[%s13825_s1 + $0x1e8] sm:$0xff] }
 0x108   : > { %7835 = vmatmul.mubr.msk.f32.gmra.mxu0 %vm738_vm1, %v635_v55  ;;  %v6105_v55 = vld [vmem:[%s13827_s3 + $0x68] sm:$0xff] }
 0x109   : > { %v9734_v45 = vpop.f32.mrf.mxu0  ;;  %1654 = vmatprep.mubr.f32.mxu0 %v13977_v10 }
 0x10a   : > { %v9737_v36 = vpop.permute.xlu1 %3056  ;;  %v9739_v29 = vpop.permute.xlu0 %3051 }
 0x10b   : > { %13992 = vst [vmem:[#allocation51_spill] sm:$0xff] %v9737_v36  ;;  %13993 = vst [vmem:[#allocation52_spill] sm:$0xff] %v9739_v29  ;;  %v9745_v17 = vpop.f32.mrf.mxu0  ;;  %6314 = vperm.xlu1 %7969, %v6104_v39   ;;  %6309 = vperm.xlu0 %7968, %v6103_v2   ;;  %v637_v39 = vld [vmem:[%s13825_s1 + $0x1f0] sm:$0xff] }
 0x10c   : > { %7836 = vmatmul.mubr.msk.f32.gmra.mxu0 %vm738_vm1, %v636_v46  ;;  %v6107_v46 = vld [vmem:[%s13827_s3 + $0x78] sm:$0xff] }
 0x10d   : > { %v9753_v36 = vpop.f32.mrf.mxu0  ;;  %1660 = vmatprep.mubr.f32.mxu0 %v13977_v10 }
 0x10e   : > { %v9756_v29 = vpop.permute.xlu1 %3066  ;;  %v9758_v22 = vpop.permute.xlu0 %3061 }
 0x10f   : > { %13994 = vst [vmem:[#allocation53_spill] sm:$0xff] %v9756_v29  ;;  %13995 = vst [vmem:[#allocation54_spill] sm:$0xff] %v9758_v22  ;;  %v9764_v2 = vpop.f32.mrf.mxu0  ;;  %6324 = vperm.xlu1 %7969, %v6106_v30   ;;  %6319 = vperm.xlu0 %7968, %v6105_v55   ;;  %v638_v30 = vld [vmem:[%s13825_s1 + $0x1f8] sm:$0xff] }
 0x110   : > { %7837 = vmatmul.mubr.msk.f32.gmra.mxu0 %vm738_vm1, %v637_v39  ;;  %v6109_v39 = vld [vmem:[%s13827_s3 + $0x88] sm:$0xff] }
 0x111   : > { %v9772_v29 = vpop.f32.mrf.mxu0  ;;  %1666 = vmatprep.mubr.f32.mxu0 %v13977_v10 }
 0x112   : > { %v9775_v22 = vpop.permute.xlu1 %3076  ;;  %v9777_v15 = vpop.permute.xlu0 %3071 }
 0x113   : > { %13996 = vst [vmem:[#allocation55_spill] sm:$0xff] %v9775_v22  ;;  %13997 = vst [vmem:[#allocation56_spill] sm:$0xff] %v9777_v15  ;;  %v9783_v55 = vpop.f32.mrf.mxu0  ;;  %6334 = vperm.xlu1 %7969, %v6108_v23   ;;  %6329 = vperm.xlu0 %7968, %v6107_v46   ;;  %v639_v23 = vld [vmem:[%s13825_s1 + $0x200] sm:$0xff] }
 0x114   : > { %7838 = vmatmul.mubr.msk.f32.gmra.mxu0 %vm738_vm1, %v638_v30  ;;  %v6111_v30 = vld [vmem:[%s13827_s3 + $0x98] sm:$0xff] }
 0x115   : > { %v9791_v22 = vpop.f32.mrf.mxu0  ;;  %1672 = vmatprep.mubr.f32.mxu0 %v13977_v10 }
 0x116   : > { %v9794_v15 = vpop.permute.xlu1 %3086  ;;  %v9796_v5 = vpop.permute.xlu0 %3081 }
 0x117   : > { %13998 = vst [vmem:[#allocation57_spill] sm:$0xff] %v9794_v15  ;;  %13999 = vst [vmem:[#allocation58_spill] sm:$0xff] %v9796_v5  ;;  %v9802_v46 = vpop.f32.mrf.mxu0  ;;  %6344 = vperm.xlu1 %7969, %v6110_v16   ;;  %6339 = vperm.xlu0 %7968, %v6109_v39   ;;  %v640_v16 = vld [vmem:[%s13825_s1 + $0x208] sm:$0xff] }
 0x118   : > { %7839 = vmatmul.mubr.msk.f32.gmra.mxu0 %vm738_vm1, %v639_v23  ;;  %v6113_v23 = vld [vmem:[%s13827_s3 + $0xa8] sm:$0xff] }
 0x119   : > { %v9810_v15 = vpop.f32.mrf.mxu0  ;;  %1678 = vmatprep.mubr.f32.mxu0 %v13977_v10 }
 0x11a   : > { %v9813_v5 = vpop.permute.xlu1 %3096  ;;  %v9815_v62 = vpop.permute.xlu0 %3091 }
 0x11b   : > { %14000 = vst [vmem:[#allocation59_spill] sm:$0xff] %v9813_v5  ;;  %14001 = vst [vmem:[#allocation60_spill] sm:$0xff] %v9815_v62  ;;  %v9821_v39 = vpop.f32.mrf.mxu0  ;;  %6354 = vperm.xlu1 %7969, %v6112_v9   ;;  %6349 = vperm.xlu0 %7968, %v6111_v30   ;;  %v641_v9 = vld [vmem:[%s13825_s1 + $0x210] sm:$0xff] }
 0x11c   : > { %7840 = vmatmul.mubr.msk.f32.gmra.mxu0 %vm738_vm1, %v640_v16  ;;  %v6115_v16 = vld [vmem:[%s13827_s3 + $0xb8] sm:$0xff] }
 0x11d   : > { %v9829_v5 = vpop.f32.mrf.mxu0  ;;  %1684 = vmatprep.mubr.f32.mxu0 %v13977_v10 }
 0x11e   : > { %v9832_v62 = vpop.permute.xlu1 %3106  ;;  %v9834_v57 = vpop.permute.xlu0 %3101 }
 0x11f   : > { %14002 = vst [vmem:[#allocation61_spill] sm:$0xff] %v9832_v62  ;;  %14003 = vst [vmem:[#allocation62_spill] sm:$0xff] %v9834_v57  ;;  %v9840_v30 = vpop.f32.mrf.mxu0  ;;  %6364 = vperm.xlu1 %7969, %v6114_v63   ;;  %6359 = vperm.xlu0 %7968, %v6113_v23   ;;  %v642_v63 = vld [vmem:[%s13825_s1 + $0x218] sm:$0xff] }
 0x120   : > { %7841 = vmatmul.mubr.msk.f32.gmra.mxu0 %vm738_vm1, %v641_v9  ;;  %v6117_v9 = vld [vmem:[%s13827_s3 + $0xc8] sm:$0xff] }
 0x121   : > { %v9848_v62 = vpop.f32.mrf.mxu0  ;;  %1690 = vmatprep.mubr.f32.mxu0 %v13977_v10 }
 0x122   : > { %14004 = vst [vmem:[#allocation63_spill] sm:$0xff] %v9848_v62  ;;  %v9851_v57 = vpop.permute.xlu1 %3116  ;;  %v9853_v52 = vpop.permute.xlu0 %3111 }
 0x123   : > { %14005 = vst [vmem:[#allocation64_spill] sm:$0xff] %v9851_v57  ;;  %14006 = vst [vmem:[#allocation65_spill] sm:$0xff] %v9853_v52  ;;  %v9859_v23 = vpop.f32.mrf.mxu0  ;;  %6374 = vperm.xlu1 %7969, %v6116_v58   ;;  %6369 = vperm.xlu0 %7968, %v6115_v16   ;;  %v643_v58 = vld [vmem:[%s13825_s1 + $0x220] sm:$0xff] }
 0x124   : > { %14007 = vst [vmem:[#allocation66_spill] sm:$0xff] %v9859_v23  ;;  %7842 = vmatmul.mubr.msk.f32.gmra.mxu0 %vm738_vm1, %v642_v63  ;;  %v6119_v63 = vld [vmem:[%s13827_s3 + $0xd8] sm:$0xff] }
 0x125   : > { %v9867_v57 = vpop.f32.mrf.mxu0  ;;  %1696 = vmatprep.mubr.f32.mxu0 %v13977_v10 }
 0x126   : > { %14008 = vst [vmem:[#allocation67_spill] sm:$0xff] %v9867_v57  ;;  %v9870_v52 = vpop.permute.xlu1 %3126  ;;  %v9872_v47 = vpop.permute.xlu0 %3121  ;;  %v6120_v57 = vld [vmem:[%s13827_s3 + $0xe0] sm:$0xff] }
 0x127   : > { %14009 = vst [vmem:[#allocation68_spill] sm:$0xff] %v9870_v52  ;;  %14010 = vst [vmem:[#allocation69_spill] sm:$0xff] %v9872_v47  ;;  %v9878_v16 = vpop.f32.mrf.mxu0  ;;  %6384 = vperm.xlu1 %7969, %v6118_v53   ;;  %6379 = vperm.xlu0 %7968, %v6117_v9   ;;  %v690_v52 = vld [vmem:[%s13825_s1 + $0x398] sm:$0xff]  ;;  %v644_v9 = vld [vmem:[%s13825_s1 + $0x228] sm:$0xff] }
 0x128   : > { %14011 = vst [vmem:[#allocation70_spill] sm:$0xff] %v9878_v16  ;;  %7843 = vmatmul.mubr.msk.f32.gmra.mxu0 %vm738_vm1, %v643_v58  ;;  %7890 = vmatmul.mubr.msk.f32.gmra.mxu1 %vm738_vm1, %v690_v52  ;;  %v691_v52 = vld [vmem:[%s13825_s1 + $0x3a0] sm:$0xff] }
 0x129   : > { %v9883_v23 = vpop.f32.mrf.mxu0  ;;  %1702 = vmatprep.mubr.f32.mxu0 %v13977_v10  ;;  %1984 = vmatprep.mubr.f32.mxu1 %v13977_v10 }
 0x12a   : > { %14012 = vst [vmem:[#allocation71_spill] sm:$0xff] %v9883_v23  ;;  %v9892_v47 = vpop.permute.xlu1 %3136  ;;  %v9894_v53 = vpop.permute.xlu0 %3131  ;;  %v6122_v23 = vld [vmem:[%s13827_s3 + $0xf0] sm:$0xff] }
 0x12b   : > { %14013 = vst [vmem:[#allocation72_spill] sm:$0xff] %v9892_v47  ;;  %14014 = vst [vmem:[#allocation73_spill] sm:$0xff] %v9894_v53  ;;  %v9901_v58 = vpop.f32.mrf.mxu0  ;;  %6394 = vperm.xlu1 %7969, %v6120_v57   ;;  %6389 = vperm.xlu0 %7968, %v6119_v63   ;;  %v6121_v53 = vld [vmem:[%s13827_s3 + $0xe8] sm:$0xff] }
 0x12c   : > { %14015 = vst [vmem:[#allocation74_spill] sm:$0xff] %v9901_v58  ;;  %7844 = vmatmul.mubr.msk.f32.gmra.mxu0 %vm738_vm1, %v644_v9  ;;  %7891 = vmatmul.mubr.msk.f32.gmra.mxu1 %vm738_vm1, %v691_v52  ;;  %v692_v52 = vld [vmem:[%s13825_s1 + $0x3a8] sm:$0xff] }
 0x12d   : > { %v9907_v47 = vpop.f32.mrf.mxu0  ;;  %1708 = vmatprep.mubr.f32.mxu0 %v13977_v10  ;;  %1990 = vmatprep.mubr.f32.mxu1 %v13977_v10 }
 0x12e   : > { %14016 = vst [vmem:[#allocation75_spill] sm:$0xff] %v9907_v47  ;;  %v9916_v57 = vpop.permute.xlu1 %3146  ;;  %v9918_v63 = vpop.permute.xlu0 %3141  ;;  %v645_v47 = vld [vmem:[%s13825_s1 + $0x230] sm:$0xff] }
 0x12f   : > { %14017 = vst [vmem:[#allocation76_spill] sm:$0xff] %v9916_v57  ;;  %14018 = vst [vmem:[#allocation77_spill] sm:$0xff] %v9918_v63  ;;  %v9925_v9 = vpop.f32.mrf.mxu0  ;;  %6404 = vperm.xlu1 %7969, %v6122_v23   ;;  %6399 = vperm.xlu0 %7968, %v6121_v53   ;;  %v6124_v57 = vld [vmem:[%s13827_s3 + $0x100] sm:$0xff]  ;;  %v6123_v63 = vld [vmem:[%s13827_s3 + $0xf8] sm:$0xff] }
 0x130   : > { %14019 = vst [vmem:[#allocation78_spill] sm:$0xff] %v9925_v9  ;;  %7845 = vmatmul.mubr.msk.f32.gmra.mxu0 %vm738_vm1, %v645_v47  ;;  %v646_v53 = vld [vmem:[%s13825_s1 + $0x238] sm:$0xff]  ;;  %7892 = vmatmul.mubr.msk.f32.gmra.mxu1 %vm738_vm1, %v692_v52 }
 0x131   : > { %v9931_v58 = vpop.f32.mrf.mxu0  ;;  %1714 = vmatprep.mubr.f32.mxu0 %v13977_v10  ;;  %1996 = vmatprep.mubr.f32.mxu1 %v13977_v10 }
 0x132   : > { %14020 = vst [vmem:[#allocation79_spill] sm:$0xff] %v9931_v58  ;;  %v9940_v23 = vpop.permute.xlu1 %3156  ;;  %v9942_v9 = vpop.permute.xlu0 %3151 }
 0x133   : > { %14021 = vst [vmem:[#allocation80_spill] sm:$0xff] %v9940_v23  ;;  %14022 = vst [vmem:[#allocation81_spill] sm:$0xff] %v9942_v9  ;;  %v9949_v47 = vpop.f32.mrf.mxu0  ;;  %6414 = vperm.xlu1 %7969, %v6124_v57   ;;  %6409 = vperm.xlu0 %7968, %v6123_v63   ;;  %v6126_v23 = vld [vmem:[%s13827_s3 + $0x110] sm:$0xff]  ;;  %v6125_v9 = vld [vmem:[%s13827_s3 + $0x108] sm:$0xff] }
 0x134   : > { %14023 = vst [vmem:[#allocation82_spill] sm:$0xff] %v9949_v47  ;;  %7846 = vmatmul.mubr.msk.f32.gmra.mxu0 %vm738_vm1, %v646_v53  ;;  %v647_v57 = vld [vmem:[%s13825_s1 + $0x240] sm:$0xff] }
 0x135   : > { %v9955_v58 = vpop.f32.mrf.mxu0  ;;  %1720 = vmatprep.mubr.f32.mxu0 %v13977_v10  ;;  %v6128_v53 = vld [vmem:[%s13827_s3 + $0x120] sm:$0xff] }
 0x136   : > { %14024 = vst [vmem:[#allocation83_spill] sm:$0xff] %v9955_v58  ;;  %v9961_v16 = vpop.permute.xlu1 %3166  ;;  %v9963_v52 = vpop.permute.xlu0 %3161 }
 0x137   : > { %14025 = vst [vmem:[#allocation84_spill] sm:$0xff] %v9961_v16  ;;  %14026 = vst [vmem:[#allocation85_spill] sm:$0xff] %v9963_v52  ;;  %v9969_v63 = vpop.f32.mrf.mxu0  ;;  %6424 = vperm.xlu1 %7969, %v6126_v23   ;;  %6419 = vperm.xlu0 %7968, %v6125_v9   ;;  %v6127_v52 = vld [vmem:[%s13827_s3 + $0x118] sm:$0xff]  ;;  %v648_v9 = vld [vmem:[%s13825_s1 + $0x248] sm:$0xff] }
 0x138   : > { %14027 = vst [vmem:[#allocation86_spill] sm:$0xff] %v9969_v63  ;;  %7847 = vmatmul.mubr.msk.f32.gmra.mxu0 %vm738_vm1, %v647_v57  ;;  %v6130_v57 = vld [vmem:[%s13827_s3 + $0x130] sm:$0xff] }
 0x139   : > { %v9974_v58 = vpop.f32.mrf.mxu0  ;;  %1726 = vmatprep.mubr.f32.mxu0 %v13977_v10 }
 0x13a   : > { %14028 = vst [vmem:[#allocation87_spill] sm:$0xff] %v9974_v58  ;;  %v9980_v16 = vpop.permute.xlu1 %3176  ;;  %v9982_v47 = vpop.permute.xlu0 %3171 }
 0x13b   : > { %14029 = vst [vmem:[#allocation88_spill] sm:$0xff] %v9980_v16  ;;  %14030 = vst [vmem:[#allocation89_spill] sm:$0xff] %v9982_v47  ;;  %v9988_v23 = vpop.f32.mrf.mxu0  ;;  %6434 = vperm.xlu1 %7969, %v6128_v53   ;;  %6429 = vperm.xlu0 %7968, %v6127_v52   ;;  %v693_v16 = vld [vmem:[%s13825_s1 + $0x3b0] sm:$0xff]  ;;  %v6129_v47 = vld [vmem:[%s13827_s3 + $0x128] sm:$0xff] }
 0x13c   : > { %14031 = vst [vmem:[#allocation90_spill] sm:$0xff] %v9988_v23  ;;  %7848 = vmatmul.mubr.msk.f32.gmra.mxu0 %vm738_vm1, %v648_v9  ;;  %7893 = vmatmul.mubr.msk.f32.gmra.mxu1 %vm738_vm1, %v693_v16  ;;  %v649_v23 = vld [vmem:[%s13825_s1 + $0x250] sm:$0xff]  ;;  %v6132_v16 = vld [vmem:[%s13827_s3 + $0x140] sm:$0xff] }
 0x13d   : > { %v9996_v58 = vpop.f32.mrf.mxu0  ;;  %1732 = vmatprep.mubr.f32.mxu0 %v13977_v10  ;;  %2002 = vmatprep.mubr.f32.mxu1 %v13977_v10 }
 0x13e   : > { %14032 = vst [vmem:[#allocation91_spill] sm:$0xff] %v9996_v58  ;;  %v10003_v53 = vpop.permute.xlu1 %3186  ;;  %v10005_v52 = vpop.permute.xlu0 %3181 }
 0x13f   : > { %14033 = vst [vmem:[#allocation92_spill] sm:$0xff] %v10003_v53  ;;  %14034 = vst [vmem:[#allocation93_spill] sm:$0xff] %v10005_v52  ;;  %v10012_v58 = vpop.f32.mrf.mxu0  ;;  %6444 = vperm.xlu1 %7969, %v6130_v57   ;;  %6439 = vperm.xlu0 %7968, %v6129_v47   ;;  %v6131_v52 = vld [vmem:[%s13827_s3 + $0x138] sm:$0xff] }
 0x140   : > { %14035 = vst [vmem:[#allocation94_spill] sm:$0xff] %v10012_v58  ;;  %7849 = vmatmul.mubr.msk.f32.gmra.mxu0 %vm738_vm1, %v649_v23  ;;  %v650_v47 = vld [vmem:[%s13825_s1 + $0x258] sm:$0xff]  ;;  %v6134_v23 = vld [vmem:[%s13827_s3 + $0x150] sm:$0xff] }
 0x141   : > { %v10017_v9 = vpop.f32.mrf.mxu0  ;;  %1738 = vmatprep.mubr.f32.mxu0 %v13977_v10 }
 0x142   : > { %14036 = vst [vmem:[#allocation95_spill] sm:$0xff] %v10017_v9  ;;  %v10023_v53 = vpop.permute.xlu1 %3196  ;;  %v10025_v63 = vpop.permute.xlu0 %3191 }
 0x143   : > { %14037 = vst [vmem:[#allocation96_spill] sm:$0xff] %v10023_v53  ;;  %14038 = vst [vmem:[#allocation97_spill] sm:$0xff] %v10025_v63  ;;  %v10031_v57 = vpop.f32.mrf.mxu0  ;;  %6454 = vperm.xlu1 %7969, %v6132_v16   ;;  %6449 = vperm.xlu0 %7968, %v6131_v52   ;;  %v694_v53 = vld [vmem:[%s13825_s1 + $0x3b8] sm:$0xff]  ;;  %v6133_v63 = vld [vmem:[%s13827_s3 + $0x148] sm:$0xff] }
 0x144   : > { %14039 = vst [vmem:[#allocation98_spill] sm:$0xff] %v10031_v57  ;;  %7850 = vmatmul.mubr.msk.f32.gmra.mxu0 %vm738_vm1, %v650_v47  ;;  %7894 = vmatmul.mubr.msk.f32.gmra.mxu1 %vm738_vm1, %v694_v53  ;;  %v651_v57 = vld [vmem:[%s13825_s1 + $0x260] sm:$0xff] }
 0x145   : > { %v10039_v9 = vpop.f32.mrf.mxu0  ;;  %1744 = vmatprep.mubr.f32.mxu0 %v13977_v10  ;;  %2008 = vmatprep.mubr.f32.mxu1 %v13977_v10  ;;  %v6136_v53 = vld [vmem:[%s13827_s3 + $0x160] sm:$0xff] }
 0x146   : > { %14040 = vst [vmem:[#allocation99_spill] sm:$0xff] %v10039_v9  ;;  %v10046_v16 = vpop.permute.xlu1 %3206  ;;  %v10048_v52 = vpop.permute.xlu0 %3201 }
 0x147   : > { %14041 = vst [vmem:[#allocation100_spill] sm:$0xff] %v10046_v16  ;;  %14042 = vst [vmem:[#allocation101_spill] sm:$0xff] %v10048_v52  ;;  %v10055_v9 = vpop.f32.mrf.mxu0  ;;  %6464 = vperm.xlu1 %7969, %v6134_v23   ;;  %6459 = vperm.xlu0 %7968, %v6133_v63   ;;  %v6135_v52 = vld [vmem:[%s13827_s3 + $0x158] sm:$0xff]  ;;  %v652_v63 = vld [vmem:[%s13825_s1 + $0x268] sm:$0xff] }
 0x148   : > { %14043 = vst [vmem:[#allocation102_spill] sm:$0xff] %v10055_v9  ;;  %7851 = vmatmul.mubr.msk.f32.gmra.mxu0 %vm738_vm1, %v651_v57  ;;  %v6138_v57 = vld [vmem:[%s13827_s3 + $0x170] sm:$0xff]  ;;  %v6139_v9 = vld [vmem:[%s13827_s3 + $0x178] sm:$0xff] }
 0x149   : > { %v10060_v47 = vpop.f32.mrf.mxu0  ;;  %1750 = vmatprep.mubr.f32.mxu0 %v13977_v10 }
 0x14a   : > { %14044 = vst [vmem:[#allocation103_spill] sm:$0xff] %v10060_v47  ;;  %v10066_v16 = vpop.permute.xlu1 %3216  ;;  %v10068_v58 = vpop.permute.xlu0 %3211 }
 0x14b   : > { %14045 = vst [vmem:[#allocation104_spill] sm:$0xff] %v10066_v16  ;;  %14046 = vst [vmem:[#allocation105_spill] sm:$0xff] %v10068_v58  ;;  %v10074_v23 = vpop.f32.mrf.mxu0  ;;  %6474 = vperm.xlu1 %7969, %v6136_v53   ;;  %6469 = vperm.xlu0 %7968, %v6135_v52   ;;  %v695_v16 = vld [vmem:[%s13825_s1 + $0x3c0] sm:$0xff]  ;;  %v6137_v58 = vld [vmem:[%s13827_s3 + $0x168] sm:$0xff] }
 0x14c   : > { %14047 = vst [vmem:[#allocation106_spill] sm:$0xff] %v10074_v23  ;;  %7852 = vmatmul.mubr.msk.f32.gmra.mxu0 %vm738_vm1, %v652_v63  ;;  %7895 = vmatmul.mubr.msk.f32.gmra.mxu1 %vm738_vm1, %v695_v16  ;;  %v653_v23 = vld [vmem:[%s13825_s1 + $0x270] sm:$0xff]  ;;  %v2249_v63 = vmul.f32 0.5, %v9506_v11  ;;  %v6140_v16 = vld [vmem:[%s13827_s3 + $0x180] sm:$0xff]  ;;  %v654_v11 = vld [vmem:[%s13825_s1 + $0x278] sm:$0xff] }
 0x14d   : > { %v10082_v47 = vpop.f32.mrf.mxu0  ;;  %1756 = vmatprep.mubr.f32.mxu0 %v13977_v10  ;;  %2014 = vmatprep.mubr.f32.mxu1 %v13977_v10 }
 0x14e   : > { %14048 = vst [vmem:[#allocation107_spill] sm:$0xff] %v10082_v47  ;;  %v10089_v53 = vpop.permute.xlu1 %3226  ;;  %v10091_v52 = vpop.permute.xlu0 %3221 }
 0x14f   : > { %14049 = vst [vmem:[#allocation108_spill] sm:$0xff] %v10089_v53  ;;  %14050 = vst [vmem:[#allocation109_spill] sm:$0xff] %v10091_v52  ;;  %v10098_v47 = vpop.f32.mrf.mxu0  ;;  %6484 = vperm.xlu1 %7969, %v6138_v57   ;;  %6479 = vperm.xlu0 %7968, %v6137_v58   ;;  %v2250_v52 = vmul.f32 0.5, %v9517_v21  ;;  %v10122_v21 = vadd.f32 %v9178_v1, %v2249_v63  ;;  %v6141_v63 = vld [vmem:[%s13827_s3 + $0x188] sm:$0xff] }
 0x150   : > { %7853 = vmatmul.mubr.msk.f32.gmra.mxu0 %vm738_vm1, %v653_v23  ;;  %v6142_v23 = vld [vmem:[%s13827_s3 + $0x190] sm:$0xff] }
 0x151   : > { %v10105_v53 = vpop.f32.mrf.mxu0  ;;  %1762 = vmatprep.mubr.f32.mxu0 %v13977_v10  ;;  %7971 = vtanh.f32 %v10122_v21 }
 0x152   : > { %14051 = vst [vmem:[#allocation110_spill] sm:$0xff] %v10105_v53  ;;  %v10111_v62 = vpop.permute.xlu1 %3236  ;;  %v10113_v57 = vpop.permute.xlu0 %3231 }
 0x153   : > { %14052 = vst [vmem:[#allocation111_spill] sm:$0xff] %v10111_v62  ;;  %14053 = vst [vmem:[#allocation112_spill] sm:$0xff] %v10113_v57  ;;  %v10119_v58 = vpop.f32.mrf.mxu0  ;;  %6494 = vperm.xlu1 %7969, %v6140_v16   ;;  %6489 = vperm.xlu0 %7968, %v6139_v9   ;;  %v696_v57 = vld [vmem:[%s13825_s1 + $0x3c8] sm:$0xff]  ;;  %v10131_v62 = vadd.f32 %v9178_v1, %v2250_v52  ;;  %v2251_v9 = vmul.f32 0.5, %v9525_v28  ;;  %v2252_v1 = vmul.f32 0.5, %v9536_v40  ;;  %v2253_v28 = vmul.f32 0.5, %v9544_v49 }
 0x154   : > { %14054 = vst [vmem:[#allocation113_spill] sm:$0xff] %v10119_v58  ;;  %7854 = vmatmul.mubr.msk.f32.gmra.mxu0 %vm738_vm1, %v654_v11  ;;  %7896 = vmatmul.mubr.msk.f32.gmra.mxu1 %vm738_vm1, %v696_v57  ;;  %v6144_v57 = vld [vmem:[%s13827_s3 + $0x1a0] sm:$0xff]  ;;  %v6143_v40 = vld [vmem:[%s13827_s3 + $0x198] sm:$0xff]  ;;  %v6146_v49 = vld [vmem:[%s13827_s3 + $0x1b0] sm:$0xff] }
 0x155   : > { %v10133_v53 = vpop.f32.mrf.mxu0  ;;  %2020 = vmatprep.mubr.f32.mxu1 %v13977_v10  ;;  %7973 = vtanh.f32 %v10131_v62 }
 0x156   : > { %14055 = vst [vmem:[#allocation114_spill] sm:$0xff] %v10133_v53  ;;  %v10141_v16 = vpop.permute.xlu1 %3246  ;;  %v10143_v58 = vpop.permute.xlu0 %3241 }
 0x157   : > { %14056 = vst [vmem:[#allocation115_spill] sm:$0xff] %v10141_v16  ;;  %14057 = vst [vmem:[#allocation116_spill] sm:$0xff] %v10143_v58  ;;  %v10147_v52 = vpop.f32.mrf.mxu0  ;;  %6504 = vperm.xlu1 %7969, %v6142_v23   ;;  %6499 = vperm.xlu0 %7968, %v6141_v63   ;;  %v10161_v58 = vadd.f32 %v9198_v8, %v2251_v9  ;;  %v10168_v16 = vadd.f32 %v9198_v8, %v2252_v1  ;;  %v697_v9 = vld [vmem:[%s13825_s1 + $0x3d0] sm:$0xff]  ;;  %v2255_v8 = vmul.f32 0.5, %v9563_v4 }
 0x158   : > { %14058 = vst [vmem:[#allocation117_spill] sm:$0xff] %v10147_v52  ;;  %v2254_v52 = vmul.f32 0.5, %v9555_v59  ;;  %v6145_v59 = vld [vmem:[%s13827_s3 + $0x1a8] sm:$0xff]  ;;  %7897 = vmatmul.mubr.msk.f32.gmra.mxu1 %vm738_vm1, %v697_v9  ;;  %v6148_v9 = vld [vmem:[%s13827_s3 + $0x1c0] sm:$0xff] }
 0x159   : > { %v10155_v11 = vpop.f32.mrf.mxu0  ;;  %7975 = vtanh.f32 %v10161_v58  ;;  %2026 = vmatprep.mubr.f32.mxu1 %v13977_v10 }
 0x15a   : > { %14059 = vst [vmem:[#allocation118_spill] sm:$0xff] %v10155_v11  ;;  %v10163_v23 = vpop.permute.xlu1 %3256  ;;  %v10165_v63 = vpop.permute.xlu0 %3251  ;;  %7977 = vtanh.f32 %v10168_v16  ;;  %v10197_v4 = vadd.f32 %v9176_v0, %v2254_v52 }
 0x15b   : > { %14060 = vst [vmem:[#allocation119_spill] sm:$0xff] %v10163_v23  ;;  %14061 = vst [vmem:[#allocation120_spill] sm:$0xff] %v10165_v63  ;;  %v10171_v53 = vpop.f32.mrf.mxu0  ;;  %6514 = vperm.xlu1 %7969, %v6144_v57   ;;  %6509 = vperm.xlu0 %7968, %v6143_v40   ;;  %v10180_v23 = vadd.f32 %v9176_v0, %v2253_v28  ;;  %v2256_v28 = vmul.f32 0.5, %v9574_v27  ;;  %v6147_v0 = vld [vmem:[%s13827_s3 + $0x1b8] sm:$0xff] }
 0x15c   : > { %14062 = vst [vmem:[#allocation121_spill] sm:$0xff] %v10171_v53 }
 0x15d   : > { %v10183_v1 = vpop.f32.mrf.mxu0  ;;  %7979 = vtanh.f32 %v10180_v23 }
 0x15e   : > { %14063 = vst [vmem:[#allocation122_spill] sm:$0xff] %v10183_v1  ;;  %v10190_v57 = vpop.permute.xlu1 %3266  ;;  %v10192_v40 = vpop.permute.xlu0 %3261  ;;  %7981 = vtanh.f32 %v10197_v4 }
 0x15f   : > { %14064 = vst [vmem:[#allocation123_spill] sm:$0xff] %v10190_v57  ;;  %14065 = vst [vmem:[#allocation124_spill] sm:$0xff] %v10192_v40  ;;  %v10200_v63 = vpop.f32.mrf.mxu0  ;;  %6524 = vperm.xlu1 %7969, %v6146_v49   ;;  %6519 = vperm.xlu0 %7968, %v6145_v59   ;;  %v10207_v40 = vadd.f32 %v9196_v7, %v2255_v8  ;;  %v2257_v57 = vmul.f32 0.5, %v9582_v44  ;;  %v10221_v49 = vadd.f32 %v9196_v7, %v2256_v28  ;;  %v6150_v8 = vld [vmem:[%s13827_s3 + $0x1d0] sm:$0xff] }
 0x160   : > { %14066 = vst [vmem:[#allocation125_spill] sm:$0xff] %v10200_v63  ;;  %v2258_v44 = vmul.f32 0.5, %v9593_v3  ;;  %v6149_v3 = vld [vmem:[%s13827_s3 + $0x1c8] sm:$0xff]  ;;  %v2260_v63 = vmul.f32 0.5, %v9612_v41  ;;  %v2261_v41 = vmul.f32 0.5, %v9620_v6  ;;  %v6154_v6 = vld [vmem:[%s13827_s3 + $0x1f0] sm:$0xff] }
 0x161   : > { %v10210_v1 = vpop.f32.mrf.mxu0  ;;  %7983 = vtanh.f32 %v10207_v40  ;;  %v10234_v7 = vadd.f32 %v9218_v14, %v2257_v57 }
 0x162   : > { %14067 = vst [vmem:[#allocation126_spill] sm:$0xff] %v10210_v1  ;;  %v10215_v27 = vpop.permute.xlu1 %3276  ;;  %v10217_v52 = vpop.permute.xlu0 %3271  ;;  %7985 = vtanh.f32 %v10221_v49 }
 0x163   : > { %14068 = vst [vmem:[#allocation127_spill] sm:$0xff] %v10215_v27  ;;  %14069 = vst [vmem:[#allocation128_spill] sm:$0xff] %v10217_v52  ;;  %v10223_v59 = vpop.f32.mrf.mxu0  ;;  %6534 = vperm.xlu1 %7969, %v6148_v9   ;;  %6529 = vperm.xlu0 %7968, %v6147_v0   ;;  %v698_v27 = vld [vmem:[%s13825_s1 + $0x3d8] sm:$0xff]  ;;  %v7972_v52 = vpop.eup %7971  ;;  %v2259_v0 = vmul.f32 0.5, %v9601_v56  ;;  %v6152_v56 = vld [vmem:[%s13827_s3 + $0x1e0] sm:$0xff]  ;;  %7987 = vtanh.f32 %v10234_v7 }
 0x164   : > { %14070 = vst [vmem:[#allocation129_spill] sm:$0xff] %v10223_v59  ;;  %7898 = vmatmul.mubr.msk.f32.gmra.mxu1 %vm738_vm1, %v698_v27  ;;  %v7974_v9 = vpop.eup %7973  ;;  %v4489_v27 = vadd.f32 1.0, %v7972_v52 }
 0x165   : > { %v10236_v28 = vpop.f32.mrf.mxu0  ;;  %2032 = vmatprep.mubr.f32.mxu1 %v13977_v10 }
 0x166   : > { %14071 = vst [vmem:[#allocation130_spill] sm:$0xff] %v10236_v28  ;;  %v10243_v59 = vpop.permute.xlu1 %3286  ;;  %v10245_v1 = vpop.permute.xlu0 %3281  ;;  %v10252_v28 = vadd.f32 %v9218_v14, %v2258_v44  ;;  %v10265_v14 = vadd.f32 %v9216_v13, %v2259_v0  ;;  %v699_v0 = vld [vmem:[%s13825_s1 + $0x3e0] sm:$0xff] }
 0x167   : > { %14072 = vst [vmem:[#allocation131_spill] sm:$0xff] %v10243_v59  ;;  %14073 = vst [vmem:[#allocation132_spill] sm:$0xff] %v10245_v1  ;;  %v10249_v57 = vpop.f32.mrf.mxu0  ;;  %6544 = vperm.xlu1 %7969, %v6150_v8   ;;  %6539 = vperm.xlu0 %7968, %v6149_v3   ;;  %v6151_v59 = vld [vmem:[%s13827_s3 + $0x1d8] sm:$0xff]  ;;  %v4490_v8 = vadd.f32 1.0, %v7974_v9  ;;  %v2262_v9 = vmul.f32 0.5, %v9631_v24  ;;  %v6153_v24 = vld [vmem:[%s13827_s3 + $0x1e8] sm:$0xff] }
 0x168   : > { %14074 = vst [vmem:[#allocation133_spill] sm:$0xff] %v10249_v57  ;;  %v7976_v57 = vpop.eup %7975  ;;  %7989 = vtanh.f32 %v10252_v28  ;;  %7899 = vmatmul.mubr.msk.f32.gmra.mxu1 %vm738_vm1, %v699_v0  ;;  %v6156_v0 = vld [vmem:[%s13827_s3 + $0x200] sm:$0xff] }
 0x169   : > { %v10259_v1 = vpop.f32.mrf.mxu0  ;;  %v7978_v53 = vpop.eup %7977  ;;  %7991 = vtanh.f32 %v10265_v14  ;;  %2038 = vmatprep.mubr.f32.mxu1 %v13977_v10 }
 0x16a   : > { %14075 = vst [vmem:[#allocation134_spill] sm:$0xff] %v10259_v1  ;;  %v10268_v44 = vpop.permute.xlu1 %3296  ;;  %v10270_v3 = vpop.permute.xlu0 %3291  ;;  %v10276_v1 = vadd.f32 %v9216_v13, %v2260_v63  ;;  %v4810_v13 = vmul.f32 %v4490_v8, %v10131_v62 }
 0x16b   : > { %14076 = vst [vmem:[#allocation135_spill] sm:$0xff] %v10268_v44  ;;  %14077 = vst [vmem:[#allocation136_spill] sm:$0xff] %v10270_v3  ;;  %v10272_v52 = vpop.f32.mrf.mxu0  ;;  %6554 = vperm.xlu1 %7969, %v6152_v56   ;;  %6549 = vperm.xlu0 %7968, %v6151_v59   ;;  %v4809_v44 = vmul.f32 %v4489_v27, %v10122_v21  ;;  %v2263_v56 = vmul.f32 0.5, %v9639_v50  ;;  %v7980_v63 = vpop.eup %7979  ;;  %v4491_v59 = vadd.f32 1.0, %v7976_v57 }
 0x16c   : > { %14078 = vst [vmem:[#allocation137_spill] sm:$0xff] %v10272_v52  ;;  %v10296_v52 = vadd.f32 %v9238_v20, %v2261_v41  ;;  %v7982_v11 = vpop.eup %7981  ;;  %7993 = vtanh.f32 %v10276_v1  ;;  %v10305_v57 = vadd.f32 %v9238_v20, %v2262_v9  ;;  %v2264_v41 = vmul.f32 0.5, %v9650_v60 }
 0x16d   : > { %v10287_v3 = vpop.f32.mrf.mxu0  ;;  %v4811_v9 = vmul.f32 %v4491_v59, %v10161_v58  ;;  %v2265_v60 = vmul.f32 0.5, %v9658_v33  ;;  %v6158_v33 = vld [vmem:[%s13827_s3 + $0x210] sm:$0xff] }
 0x16e   : > { %14079 = vst [vmem:[#allocation138_spill] sm:$0xff] %v10287_v3  ;;  %v6255_v21 = vpop.permute.xlu1 %6254  ;;  %v10298_v27 = vpop.permute.xlu0 %3301  ;;  %v4492_v3 = vadd.f32 1.0, %v7978_v53  ;;  %v6155_v53 = vld [vmem:[%s13827_s3 + $0x1f8] sm:$0xff]  ;;  %7995 = vtanh.f32 %v10296_v52 }
 0x16f   : > { %14080 = vst [vmem:[#allocation139_spill] sm:$0xff] %v10298_v27  ;;  %v7052_v50 = vmul.f32 %v6255_v21, %v4809_v44  ;;  %v7053_v62 = vmul.f32 %v6255_v21, %v4810_v13  ;;  %v10301_v8 = vpop.f32.mrf.mxu0  ;;  %6564 = vperm.xlu1 %7969, %v6154_v6   ;;  %6559 = vperm.xlu0 %7968, %v6153_v24   ;;  %v4493_v27 = vadd.f32 1.0, %v7980_v63  ;;  %v7984_v20 = vpop.eup %7983  ;;  %v4494_v21 = vadd.f32 1.0, %v7982_v11 }
 0x170   : > { %14081 = vst [vmem:[#allocation140_spill] sm:$0xff] %v10301_v8  ;;  %v10312_v44 = vadd.f32 %v9236_v19, %v2263_v56  ;;  %v4812_v63 = vmul.f32 %v4492_v3, %v10168_v16  ;;  %7997 = vtanh.f32 %v10305_v57  ;;  %v700_v16 = vld [vmem:[%s13825_s1 + $0x3e8] sm:$0xff]  ;;  %v4495_v3 = vadd.f32 1.0, %v7984_v20 }
 0x171   : > { %v7372_v13 = vadd.f32 %v7053_v62, %v7052_v50  ;;  %v10314_v6 = vpop.f32.mrf.mxu0  ;;  %v7986_v50 = vpop.eup %7985  ;;  %v10327_v62 = vadd.f32 %v9236_v19, %v2264_v41  ;;  %v4813_v11 = vmul.f32 %v4493_v27, %v10180_v23  ;;  %7900 = vmatmul.mubr.msk.f32.gmra.mxu1 %vm738_vm1, %v700_v16  ;;  %v2268_v27 = vmul.f32 0.5, %v9688_v18 }
 0x172   : > { %14082 = vst [vmem:[#allocation141_spill] sm:$0xff] %v10314_v6  ;;  %v6260_v24 = vpop.permute.xlu0 %6259  ;;  %v2266_v6 = vmul.f32 0.5, %v9669_v35  ;;  %7999 = vtanh.f32 %v10312_v44  ;;  %v6265_v59 = vpop.permute.xlu1 %6264  ;;  %v6157_v35 = vld [vmem:[%s13827_s3 + $0x208] sm:$0xff]  ;;  %2044 = vmatprep.mubr.f32.mxu1 %v13977_v10  ;;  %v4814_v20 = vmul.f32 %v4494_v21, %v10197_v4  ;;  %v4815_v18 = vmul.f32 %v4495_v3, %v10207_v40 }
 0x173   : > { %v10323_v56 = vpop.f32.mrf.mxu0  ;;  %6574 = vperm.xlu1 %7969, %v6156_v0   ;;  %v7054_v58 = vmul.f32 %v6260_v24, %v4811_v9  ;;  %6569 = vperm.xlu0 %7968, %v6155_v53   ;;  %v7988_v41 = vpop.eup %7987  ;;  %v10345_v0 = vadd.f32 %v9258_v26, %v2265_v60  ;;  %v2267_v53 = vmul.f32 0.5, %v9677_v12  ;;  %v7055_v9 = vmul.f32 %v6260_v24, %v4812_v63  ;;  %v6160_v12 = vld [vmem:[%s13827_s3 + $0x220] sm:$0xff] }
 0x174   : > { %14083 = vst [vmem:[#allocation142_spill] sm:$0xff] %v10323_v56  ;;  %8001 = vtanh.f32 %v10327_v62  ;;  %v10355_v16 = vadd.f32 %v9258_v26, %v2266_v6  ;;  %v7056_v60 = vmul.f32 %v6265_v59, %v4813_v11  ;;  %v4497_v4 = vadd.f32 1.0, %v7988_v41  ;;  %v6159_v26 = vld [vmem:[%s13827_s3 + $0x218] sm:$0xff] }
 0x175   : > { %v10338_v19 = vpop.f32.mrf.mxu0  ;;  %v7373_v23 = vadd.f32 %v7372_v13, %v7054_v58  ;;  %v7990_v13 = vpop.eup %7989  ;;  %v2269_v24 = vmul.f32 0.5, %v9696_v61  ;;  %8003 = vtanh.f32 %v10345_v0  ;;  %v10369_v6 = vadd.f32 %v9256_v25, %v2267_v53 }
 0x176   : > { %14084 = vst [vmem:[#allocation143_spill] sm:$0xff] %v10338_v19  ;;  %v4496_v19 = vadd.f32 1.0, %v7986_v50  ;;  %v6270_v21 = vpop.permute.xlu0 %6269  ;;  %v7057_v50 = vmul.f32 %v6265_v59, %v4814_v20  ;;  %v10372_v40 = vadd.f32 %v9256_v25, %v2268_v27  ;;  %v2270_v61 = vmul.f32 0.5, %v9707_v51  ;;  %v701_v25 = vld [vmem:[%s13825_s1 + $0x3f0] sm:$0xff]  ;;  %v6275_v53 = vpop.permute.xlu1 %6274  ;;  %v6161_v27 = vld [vmem:[%s13827_s3 + $0x228] sm:$0xff] }
 0x177   : > { %v10351_v56 = vpop.f32.mrf.mxu0  ;;  %6584 = vperm.xlu1 %7969, %v6158_v33   ;;  %v7374_v8 = vadd.f32 %v7373_v23, %v7055_v9  ;;  %6579 = vperm.xlu0 %7968, %v6157_v35   ;;  %v7992_v33 = vpop.eup %7991  ;;  %8005 = vtanh.f32 %v10355_v16  ;;  %v4498_v41 = vadd.f32 1.0, %v7990_v13  ;;  %v7058_v9 = vmul.f32 %v6270_v21, %v4815_v18 }
 0x178   : > { %v4816_v11 = vmul.f32 %v4496_v19, %v10221_v49  ;;  %v4817_v49 = vmul.f32 %v4497_v4, %v10234_v7  ;;  %v10387_v59 = vadd.f32 %v9278_v32, %v2269_v24  ;;  %v2271_v19 = vmul.f32 0.5, %v9715_v54  ;;  %7901 = vmatmul.mubr.msk.f32.gmra.mxu1 %vm738_vm1, %v701_v25 }
 0x179   : > { %v10362_v63 = vpop.f32.mrf.mxu0  ;;  %v7375_v58 = vadd.f32 %v7374_v8, %v7056_v60  ;;  %v6162_v8 = vld [vmem:[%s13827_s3 + $0x230] sm:$0xff]  ;;  %v7994_v51 = vpop.eup %7993  ;;  %v4499_v20 = vadd.f32 1.0, %v7992_v33  ;;  %8007 = vtanh.f32 %v10369_v6  ;;  %2050 = vmatprep.mubr.f32.mxu1 %v13977_v10  ;;  %v10400_v54 = vadd.f32 %v9278_v32, %v2270_v61 }
 0x17a   : > { %v7059_v60 = vmul.f32 %v6270_v21, %v4816_v11  ;;  %8009 = vtanh.f32 %v10372_v40  ;;  %v2272_v13 = vmul.f32 0.5, %v9726_v34  ;;  %v4818_v4 = vmul.f32 %v4498_v41, %v10252_v28  ;;  %v6164_v21 = vld [vmem:[%s13827_s3 + $0x240] sm:$0xff]  ;;  %v6280_v33 = vpop.permute.xlu0 %6279  ;;  %v6163_v28 = vld [vmem:[%s13827_s3 + $0x238] sm:$0xff] }
 0x17b   : > { %v10376_v3 = vpop.f32.mrf.mxu0  ;;  %6594 = vperm.xlu1 %7969, %v6160_v12   ;;  %v7376_v35 = vadd.f32 %v7375_v58, %v7057_v50  ;;  %6589 = vperm.xlu0 %7968, %v6159_v26   ;;  %v7996_v7 = vpop.eup %7995  ;;  %v7060_v24 = vmul.f32 %v6275_v53, %v4817_v49  ;;  %v4500_v50 = vadd.f32 1.0, %v7994_v51  ;;  %8011 = vtanh.f32 %v10387_v59 }
 0x17c   : > { %v10411_v32 = vadd.f32 %v9276_v31, %v2271_v19  ;;  %v2273_v34 = vmul.f32 0.5, %v9734_v45  ;;  %v4501_v41 = vadd.f32 1.0, %v7996_v7  ;;  %8013 = vtanh.f32 %v10400_v54  ;;  %v6165_v7 = vld [vmem:[%s13827_s3 + $0x248] sm:$0xff] }
 0x17d   : > { %v10390_v23 = vpop.f32.mrf.mxu0  ;;  %v7377_v12 = vadd.f32 %v7376_v35, %v7058_v9  ;;  %v7998_v58 = vpop.eup %7997  ;;  %v4819_v35 = vmul.f32 %v4499_v20, %v10265_v14  ;;  %v7061_v9 = vmul.f32 %v6275_v53, %v4818_v4  ;;  %v10422_v25 = vadd.f32 %v9276_v31, %v2272_v13  ;;  %v6166_v14 = vld [vmem:[%s13827_s3 + $0x250] sm:$0xff]  ;;  %v702_v31 = vld [vmem:[%s13825_s1 + $0x3f8] sm:$0xff] }
 0x17e   : > { %v2274_v45 = vmul.f32 0.5, %v9745_v17  ;;  %v4502_v19 = vadd.f32 1.0, %v7998_v58  ;;  %8015 = vtanh.f32 %v10411_v32  ;;  %v10436_v17 = vadd.f32 %v9298_v38, %v2273_v34  ;;  %7902 = vmatmul.mubr.msk.f32.gmra.mxu1 %vm738_vm1, %v702_v31 }
 0x17f   : > { %v10403_v18 = vpop.f32.mrf.mxu0  ;;  %6604 = vperm.xlu1 %7969, %v6162_v8   ;;  %v7378_v26 = vadd.f32 %v7377_v12, %v7059_v60  ;;  %6599 = vperm.xlu0 %7968, %v6161_v27   ;;  %v8000_v11 = vpop.eup %7999  ;;  %v4820_v27 = vmul.f32 %v4500_v50, %v10276_v1  ;;  %v7062_v60 = vmul.f32 %v6280_v33, %v4819_v35  ;;  %v2275_v20 = vmul.f32 0.5, %v9753_v36 }
 0x180   : > { %v6285_v12 = vpop.permute.xlu1 %6284  ;;  %v4821_v13 = vmul.f32 %v4501_v41, %v10296_v52  ;;  %v4503_v4 = vadd.f32 1.0, %v8000_v11  ;;  %2056 = vmatprep.mubr.f32.mxu1 %v13977_v10  ;;  %8017 = vtanh.f32 %v10422_v25  ;;  %v10449_v36 = vadd.f32 %v9298_v38, %v2274_v45  ;;  %v6290_v41 = vpop.permute.xlu0 %6289 }
 0x181   : > { %v10414_v61 = vpop.f32.mrf.mxu0  ;;  %v7379_v8 = vadd.f32 %v7378_v26, %v7060_v24  ;;  %v8002_v53 = vpop.eup %8001  ;;  %v7063_v24 = vmul.f32 %v6280_v33, %v4820_v27  ;;  %v4822_v34 = vmul.f32 %v4502_v19, %v10305_v57  ;;  %v6168_v33 = vld [vmem:[%s13827_s3 + $0x260] sm:$0xff]  ;;  %8019 = vtanh.f32 %v10436_v17  ;;  %v6167_v57 = vld [vmem:[%s13827_s3 + $0x258] sm:$0xff] }
 0x182   : > { %v8004_v50 = vpop.eup %8003  ;;  %v4504_v11 = vadd.f32 1.0, %v8002_v53  ;;  %v10460_v38 = vadd.f32 %v9296_v37, %v2275_v20  ;;  %8021 = vtanh.f32 %v10449_v36 }
 0x183   : > { %v10425_v51 = vpop.f32.mrf.mxu0  ;;  %6614 = vperm.xlu1 %7969, %v6164_v21   ;;  %v7380_v49 = vadd.f32 %v7379_v8, %v7061_v9  ;;  %6609 = vperm.xlu0 %7968, %v6163_v28   ;;  %v2276_v21 = vmul.f32 0.5, %v9764_v2  ;;  %v7064_v28 = vmul.f32 %v6285_v12, %v4821_v13  ;;  %v2277_v2 = vmul.f32 0.5, %v9772_v29 }
 0x184   : > { %v8006_v35 = vpop.eup %8005  ;;  %v4823_v8 = vmul.f32 %v4503_v4, %v10312_v44  ;;  %v4505_v45 = vadd.f32 1.0, %v8004_v50  ;;  %v2278_v29 = vmul.f32 0.5, %v9783_v55  ;;  %8023 = vtanh.f32 %v10460_v38  ;;  %v6295_v4 = vpop.permute.xlu1 %6294 }
 0x185   : > { %v10439_v1 = vpop.f32.mrf.mxu0  ;;  %v7381_v26 = vadd.f32 %v7380_v49, %v7062_v60  ;;  %v7065_v49 = vmul.f32 %v6285_v12, %v4822_v34  ;;  %v10471_v60 = vadd.f32 %v9296_v37, %v2276_v21  ;;  %v4506_v20 = vadd.f32 1.0, %v8006_v35  ;;  %v6170_v12 = vld [vmem:[%s13827_s3 + $0x270] sm:$0xff]  ;;  %v703_v37 = vld [vmem:[%s13825_s1 + $0x400] sm:$0xff]  ;;  %v10494_v50 = vpop.f32.mrf.mxu1 }
 0x186   : > { %v8008_v27 = vpop.eup %8007  ;;  %v7066_v44 = vmul.f32 %v6290_v41, %v4823_v8  ;;  %v10485_v55 = vadd.f32 %v9314_v43, %v2277_v2  ;;  %v2279_v13 = vmul.f32 0.5, %v9791_v22  ;;  %7903 = vmatmul.mubr.msk.f32.gmra.mxu1 %vm738_vm1, %v703_v37  ;;  %14085 = vst [vmem:[#allocation144_spill] sm:$0xff] %v10494_v50  ;;  %v4825_v21 = vmul.f32 %v4505_v45, %v10345_v0 }
 0x187   : > { %v10452_v58 = vpop.f32.mrf.mxu0  ;;  %6624 = vperm.xlu1 %7969, %v6166_v14   ;;  %v7382_v52 = vadd.f32 %v7381_v26, %v7063_v24  ;;  %6619 = vperm.xlu0 %7968, %v6165_v7   ;;  %v8010_v31 = vpop.eup %8009  ;;  %v4824_v7 = vmul.f32 %v4504_v11, %v10327_v62  ;;  %v6169_v62 = vld [vmem:[%s13827_s3 + $0x268] sm:$0xff]  ;;  %v4507_v34 = vadd.f32 1.0, %v8008_v27  ;;  %8025 = vtanh.f32 %v10471_v60 }
 0x188   : > { %v8012_v26 = vpop.eup %8011  ;;  %2062 = vmatprep.mubr.f32.mxu1 %v13977_v10  ;;  %v10500_v22 = vadd.f32 %v9314_v43, %v2278_v29  ;;  %v4508_v11 = vadd.f32 1.0, %v8010_v31  ;;  %v2280_v2 = vmul.f32 0.5, %v9802_v46  ;;  %v7068_v0 = vmul.f32 %v6295_v4, %v4825_v21  ;;  %v6171_v46 = vld [vmem:[%s13827_s3 + $0x278] sm:$0xff]  ;;  %v10518_v27 = vpop.f32.mrf.mxu1 }
 0x189   : > { %v10463_v9 = vpop.f32.mrf.mxu0  ;;  %v7383_v19 = vadd.f32 %v7382_v52, %v7064_v28  ;;  %v7067_v28 = vmul.f32 %v6290_v41, %v4824_v7  ;;  %v8014_v35 = vpop.eup %8013  ;;  %v6172_v41 = vld [vmem:[%s13827_s3 + $0x280] sm:$0xff]  ;;  %v4509_v45 = vadd.f32 1.0, %v8012_v26  ;;  %8027 = vtanh.f32 %v10485_v55  ;;  %14086 = vst [vmem:[#allocation145_spill] sm:$0xff] %v10518_v27 }
 0x18a   : > { %v10511_v43 = vadd.f32 %v9312_v42, %v2279_v13  ;;  %v4827_v29 = vmul.f32 %v4507_v34, %v10369_v6  ;;  %v2281_v31 = vmul.f32 0.5, %v9810_v15  ;;  %8029 = vtanh.f32 %v10500_v22  ;;  %v6174_v15 = vld [vmem:[%s13827_s3 + $0x290] sm:$0xff] }
 0x18b   : > { %v10474_v14 = vpop.f32.mrf.mxu0  ;;  %6634 = vperm.xlu1 %7969, %v6168_v33   ;;  %v7384_v53 = vadd.f32 %v7383_v19, %v7065_v49  ;;  %6629 = vperm.xlu0 %7968, %v6167_v57   ;;  %v4826_v57 = vmul.f32 %v4506_v20, %v10355_v16  ;;  %v6300_v49 = vpop.permute.xlu0 %6299  ;;  %v4510_v7 = vadd.f32 1.0, %v8014_v35  ;;  %v10527_v13 = vadd.f32 %v9312_v42, %v2280_v2 }
 0x18c   : > { %v8016_v16 = vpop.eup %8015  ;;  %v7070_v6 = vmul.f32 %v6300_v49, %v4827_v29  ;;  %8031 = vtanh.f32 %v10511_v43  ;;  %v6305_v42 = vpop.permute.xlu1 %6304  ;;  %v14088_v29 = vld [vmem:[#allocation63_spill] sm:$0xff] }
 0x18d   : > { %v10488_v24 = vpop.f32.mrf.mxu0  ;;  %v7385_v52 = vadd.f32 %v7384_v53, %v7066_v44  ;;  %v7069_v53 = vmul.f32 %v6295_v4, %v4826_v57  ;;  %v4828_v44 = vmul.f32 %v4508_v11, %v10372_v40  ;;  %v8018_v37 = vpop.eup %8017  ;;  %v704_v40 = vld [vmem:[%s13825_s1 + $0x408] sm:$0xff]  ;;  %v4829_v4 = vmul.f32 %v4509_v45, %v10387_v59 }
 0x18e   : > { %v4511_v21 = vadd.f32 1.0, %v8016_v16  ;;  %7904 = vmatmul.mubr.msk.f32.gmra.mxu1 %vm738_vm1, %v704_v40  ;;  %v10547_v11 = vadd.f32 %v9329_v48, %v2281_v31  ;;  %v2283_v59 = vmul.f32 0.5, %v9829_v5  ;;  %v2284_v57 = vmul.f32 0.5, %v9840_v30 }
 0x18f   : > { %v10502_v33 = vpop.f32.mrf.mxu0  ;;  %6644 = vperm.xlu1 %7969, %v6170_v12   ;;  %v7386_v8 = vadd.f32 %v7385_v52, %v7067_v28  ;;  %6639 = vperm.xlu0 %7968, %v6169_v62   ;;  %v2282_v62 = vmul.f32 0.5, %v9821_v39  ;;  %v6173_v39 = vld [vmem:[%s13827_s3 + $0x288] sm:$0xff]  ;;  %v8020_v28 = vpop.eup %8019  ;;  %v7071_v35 = vmul.f32 %v6300_v49, %v4828_v44  ;;  %8033 = vtanh.f32 %v10527_v13  ;;  %v6176_v49 = vld [vmem:[%s13827_s3 + $0x2a0] sm:$0xff] }
 0x190   : > { %v10544_v52 = vpop.f32.mrf.mxu1  ;;  %2068 = vmatprep.mubr.f32.mxu1 %v13977_v10  ;;  %v8022_v45 = vpop.eup %8021  ;;  %v7072_v16 = vmul.f32 %v6305_v42, %v4829_v4  ;;  %v4831_v30 = vmul.f32 %v4511_v21, %v10411_v32  ;;  %v2285_v31 = vmul.f32 0.5, %v14088_v29  ;;  %8035 = vtanh.f32 %v10547_v11  ;;  %v14095_v29 = vld [vmem:[#allocation67_spill] sm:$0xff] }
 0x191   : > { %v10513_v19 = vpop.f32.mrf.mxu0  ;;  %v7387_v20 = vadd.f32 %v7386_v8, %v7068_v0  ;;  %14087 = vst [vmem:[#allocation146_spill] sm:$0xff] %v10544_v52  ;;  %v4830_v0 = vmul.f32 %v4510_v7, %v10400_v54  ;;  %v4512_v8 = vadd.f32 1.0, %v8018_v37  ;;  %v4513_v54 = vadd.f32 1.0, %v8020_v28  ;;  %v8024_v7 = vpop.eup %8023  ;;  %v14090_v37 = vld [vmem:[#allocation4_spill] sm:$0xff] }
 0x192   : > { %v10569_v44 = vpop.f32.mrf.mxu1 }
 0x193   : > { %v10524_v12 = vpop.f32.mrf.mxu0  ;;  %6654 = vperm.xlu1 %7969, %v6172_v41   ;;  %v7388_v26 = vadd.f32 %v7387_v20, %v7069_v53  ;;  %6649 = vperm.xlu0 %7968, %v6171_v46   ;;  %v10557_v46 = vadd.f32 %v9329_v48, %v2282_v62  ;;  %v6310_v53 = vpop.permute.xlu0 %6309  ;;  %v6175_v48 = vld [vmem:[%s13827_s3 + $0x298] sm:$0xff]  ;;  %14089 = vst [vmem:[#allocation63_spill] sm:$0xff] %v10569_v44 }
 0x194   : > { %v10573_v62 = vadd.f32 %v14090_v37, %v2283_v59  ;;  %v4832_v40 = vmul.f32 %v4512_v8, %v10422_v25  ;;  %v8026_v21 = vpop.eup %8025  ;;  %v705_v59 = vld [vmem:[%s13825_s1 + $0x410] sm:$0xff]  ;;  %v4833_v25 = vmul.f32 %v4513_v54, %v10436_v17  ;;  %v2287_v17 = vmul.f32 0.5, %v14095_v29 }
 0x195   : > { %v10538_v34 = vpop.f32.mrf.mxu0  ;;  %v7389_v2 = vadd.f32 %v7388_v26, %v7070_v6  ;;  %v7073_v26 = vmul.f32 %v6305_v42, %v4830_v0  ;;  %v10576_v6 = vadd.f32 %v14090_v37, %v2284_v57  ;;  %8037 = vtanh.f32 %v10557_v46  ;;  %v6178_v42 = vld [vmem:[%s13827_s3 + $0x2b0] sm:$0xff]  ;;  %7905 = vmatmul.mubr.msk.f32.gmra.mxu1 %vm738_vm1, %v705_v59 }
 0x196   : > { %v4515_v57 = vadd.f32 1.0, %v8024_v7  ;;  %v14092_v0 = vld [vmem:[#allocation6_spill] sm:$0xff]  ;;  %8039 = vtanh.f32 %v10573_v62  ;;  %v7075_v54 = vmul.f32 %v6310_v53, %v4832_v40  ;;  %2074 = vmatprep.mubr.f32.mxu1 %v13977_v10  ;;  %v4516_v7 = vadd.f32 1.0, %v8026_v21 }
 0x197   : > { %v10553_v41 = vpop.f32.mrf.mxu0  ;;  %6664 = vperm.xlu1 %7969, %v6174_v15   ;;  %v7390_v5 = vadd.f32 %v7389_v2, %v7071_v35  ;;  %6659 = vperm.xlu0 %7968, %v6173_v39   ;;  %v4514_v15 = vadd.f32 1.0, %v8022_v45  ;;  %v14091_v39 = vld [vmem:[#allocation66_spill] sm:$0xff]  ;;  %v7074_v2 = vmul.f32 %v6310_v53, %v4831_v30  ;;  %v10591_v8 = vadd.f32 %v14092_v0, %v2285_v31  ;;  %v6315_v45 = vpop.permute.xlu1 %6314  ;;  %v6180_v53 = vld [vmem:[%s13827_s3 + $0x2c0] sm:$0xff] }
 0x198   : > { %v2286_v28 = vmul.f32 0.5, %v14091_v39  ;;  %v10599_v30 = vpop.f32.mrf.mxu1  ;;  %8041 = vtanh.f32 %v10576_v6  ;;  %v14097_v39 = vld [vmem:[#allocation70_spill] sm:$0xff]  ;;  %v6320_v21 = vpop.permute.xlu0 %6319  ;;  %v4836_v44 = vmul.f32 %v4516_v7, %v10471_v60  ;;  %v14105_v7 = vld [vmem:[#allocation75_spill] sm:$0xff] }
 0x199   : > { %v10564_v20 = vpop.f32.mrf.mxu0  ;;  %v7391_v32 = vadd.f32 %v7390_v5, %v7072_v16  ;;  %v6177_v5 = vld [vmem:[%s13827_s3 + $0x2a8] sm:$0xff]  ;;  %14094 = vst [vmem:[#allocation66_spill] sm:$0xff] %v10599_v30  ;;  %v4834_v31 = vmul.f32 %v4514_v15, %v10449_v36  ;;  %v2288_v59 = vmul.f32 0.5, %v14097_v39  ;;  %v7076_v30 = vmul.f32 %v6315_v45, %v4833_v25  ;;  %v14098_v36 = vld [vmem:[#allocation71_spill] sm:$0xff] }
 0x19a   : > { %8043 = vtanh.f32 %v10591_v8  ;;  %v2289_v15 = vmul.f32 0.5, %v14098_v36  ;;  %v4835_v25 = vmul.f32 %v4515_v57, %v10460_v38  ;;  %v6182_v57 = vld [vmem:[%s13827_s3 + $0x2d0] sm:$0xff] }
 0x19b   : > { %v10579_v4 = vpop.f32.mrf.mxu0  ;;  %6674 = vperm.xlu1 %7969, %v6176_v49   ;;  %v7392_v35 = vadd.f32 %v7391_v32, %v7073_v26  ;;  %6669 = vperm.xlu0 %7968, %v6175_v48   ;;  %v8028_v49 = vpop.eup %8027  ;;  %v10609_v32 = vadd.f32 %v14092_v0, %v2286_v28  ;;  %v6179_v28 = vld [vmem:[%s13827_s3 + $0x2b8] sm:$0xff]  ;;  %v14101_v0 = vld [vmem:[#allocation5_spill] sm:$0xff] }
 0x19c   : > { %v8030_v26 = vpop.eup %8029  ;;  %v4517_v40 = vadd.f32 1.0, %v8028_v49  ;;  %v7077_v49 = vmul.f32 %v6315_v45, %v4834_v31  ;;  %v10634_v27 = vadd.f32 %v14101_v0, %v2288_v59  ;;  %v7078_v38 = vmul.f32 %v6320_v21, %v4835_v25  ;;  %v706_v45 = vld [vmem:[%s13825_s1 + $0x418] sm:$0xff]  ;;  %v6325_v59 = vpop.permute.xlu1 %6324 }
 0x19d   : > { %v10593_v16 = vpop.f32.mrf.mxu0  ;;  %v7393_v48 = vadd.f32 %v7392_v35, %v7074_v2  ;;  %v8032_v2 = vpop.eup %8031  ;;  %v4518_v36 = vadd.f32 1.0, %v8030_v26  ;;  %8045 = vtanh.f32 %v10609_v32  ;;  %v2291_v26 = vmul.f32 0.5, %v14105_v7  ;;  %7906 = vmatmul.mubr.msk.f32.gmra.mxu1 %vm738_vm1, %v706_v45 }
 0x19e   : > { %14093 = vst [vmem:[#allocation4_spill] sm:$0xff] %v10593_v16  ;;  %v8034_v60 = vpop.eup %8033  ;;  %v7079_v25 = vmul.f32 %v6320_v21, %v4836_v44  ;;  %2080 = vmatprep.mubr.f32.mxu1 %v13977_v10  ;;  %v6184_v44 = vld [vmem:[%s13827_s3 + $0x2e0] sm:$0xff] }
 0x19f   : > { %v10606_v37 = vpop.f32.mrf.mxu0  ;;  %6684 = vperm.xlu1 %7969, %v6178_v42   ;;  %v7394_v29 = vadd.f32 %v7393_v48, %v7075_v54  ;;  %6679 = vperm.xlu0 %7968, %v6177_v5   ;;  %v10622_v42 = vpop.f32.mrf.mxu1  ;;  %v10626_v5 = vadd.f32 %v14101_v0, %v2287_v17  ;;  %v14102_v48 = vld [vmem:[#allocation74_spill] sm:$0xff]  ;;  %v14104_v17 = vld [vmem:[#allocation8_spill] sm:$0xff]  ;;  %v4520_v7 = vadd.f32 1.0, %v8034_v60 }
 0x1a0   : > { %14096 = vst [vmem:[#allocation6_spill] sm:$0xff] %v10606_v37  ;;  %14100 = vst [vmem:[#allocation70_spill] sm:$0xff] %v10622_v42  ;;  %v2290_v39 = vmul.f32 0.5, %v14102_v48  ;;  %v10644_v31 = vadd.f32 %v14104_v17, %v2289_v15  ;;  %v14107_v15 = vld [vmem:[#allocation78_spill] sm:$0xff] }
 0x1a1   : > { %v10617_v35 = vpop.f32.mrf.mxu0  ;;  %v7395_v54 = vadd.f32 %v7394_v29, %v7076_v30  ;;  %v4837_v30 = vmul.f32 %v4517_v40, %v10485_v55  ;;  %v6181_v29 = vld [vmem:[%s13827_s3 + $0x2c8] sm:$0xff]  ;;  %8047 = vtanh.f32 %v10626_v5  ;;  %v8036_v55 = vpop.eup %8035 }
 0x1a2   : > { %14099 = vst [vmem:[#allocation67_spill] sm:$0xff] %v10617_v35  ;;  %v10656_v40 = vadd.f32 %v14104_v17, %v2290_v39  ;;  %8049 = vtanh.f32 %v10634_v27  ;;  %v8038_v21 = vpop.eup %8037  ;;  %v4521_v17 = vadd.f32 1.0, %v8036_v55  ;;  %v707_v55 = vld [vmem:[%s13825_s1 + $0x420] sm:$0xff] }
 0x1a3   : > { %v10630_v52 = vpop.f32.mrf.mxu0  ;;  %6694 = vperm.xlu1 %7969, %v6180_v53   ;;  %v7396_v42 = vadd.f32 %v7395_v54, %v7077_v49  ;;  %6689 = vperm.xlu0 %7968, %v6179_v28   ;;  %v10651_v53 = vpop.f32.mrf.mxu1  ;;  %v4519_v28 = vadd.f32 1.0, %v8032_v2  ;;  %v2292_v49 = vmul.f32 0.5, %v14107_v15  ;;  %v4838_v54 = vmul.f32 %v4518_v36, %v10500_v22  ;;  %v14110_v22 = vld [vmem:[#allocation79_spill] sm:$0xff]  ;;  %v14112_v15 = vld [vmem:[#allocation82_spill] sm:$0xff] }
 0x1a4   : > { %14103 = vst [vmem:[#allocation71_spill] sm:$0xff] %v10630_v52  ;;  %14106 = vst [vmem:[#allocation5_spill] sm:$0xff] %v10651_v53  ;;  %v7080_v2 = vmul.f32 %v6325_v59, %v4837_v30  ;;  %8051 = vtanh.f32 %v10644_v31  ;;  %v2293_v36 = vmul.f32 0.5, %v14110_v22  ;;  %v2294_v22 = vmul.f32 0.5, %v14112_v15  ;;  %v6335_v53 = vpop.permute.xlu1 %6334  ;;  %7907 = vmatmul.mubr.msk.f32.gmra.mxu1 %vm738_vm1, %v707_v55 }
 0x1a5   : > { %v7397_v0 = vadd.f32 %v7396_v42, %v7078_v38  ;;  %v10660_v48 = vpop.f32.mrf.mxu0  ;;  %v14109_v42 = vld [vmem:[#allocation7_spill] sm:$0xff]  ;;  %v6330_v38 = vpop.permute.xlu0 %6329  ;;  %v4839_v60 = vmul.f32 %v4519_v28, %v10511_v43  ;;  %8053 = vtanh.f32 %v10656_v40  ;;  %v4840_v43 = vmul.f32 %v4520_v7, %v10527_v13  ;;  %v6185_v13 = vld [vmem:[%s13827_s3 + $0x2e8] sm:$0xff]  ;;  %2086 = vmatprep.mubr.f32.mxu1 %v13977_v10 }
 0x1a6   : > { %14108 = vst [vmem:[#allocation74_spill] sm:$0xff] %v10660_v48  ;;  %v10668_v39 = vadd.f32 %v14109_v42, %v2291_v26  ;;  %v10674_v30 = vpop.f32.mrf.mxu1  ;;  %v10679_v26 = vadd.f32 %v14109_v42, %v2292_v49  ;;  %v14114_v49 = vld [vmem:[#allocation10_spill] sm:$0xff] }
 0x1a7   : > { %6704 = vperm.xlu1 %7969, %v6182_v57   ;;  %v7398_v45 = vadd.f32 %v7397_v0, %v7079_v25  ;;  %6699 = vperm.xlu0 %7968, %v6181_v29   ;;  %v6183_v57 = vld [vmem:[%s13827_s3 + $0x2d8] sm:$0xff]  ;;  %14111 = vst [vmem:[#allocation8_spill] sm:$0xff] %v10674_v30  ;;  %v7081_v29 = vmul.f32 %v6325_v59, %v4838_v54  ;;  %v8040_v0 = vpop.eup %8039  ;;  %v10682_v50 = vpop.f32.mrf.mxu0  ;;  %v4522_v30 = vadd.f32 1.0, %v8038_v21  ;;  %v6186_v59 = vld [vmem:[%s13827_s3 + $0x2f0] sm:$0xff] }
 0x1a8   : > { %14113 = vst [vmem:[#allocation75_spill] sm:$0xff] %v10682_v50  ;;  %v8042_v48 = vpop.eup %8041  ;;  %v7082_v28 = vmul.f32 %v6330_v38, %v4839_v60  ;;  %8055 = vtanh.f32 %v10668_v39  ;;  %v10693_v54 = vadd.f32 %v14114_v49, %v2293_v36  ;;  %v4841_v21 = vmul.f32 %v4521_v17, %v10547_v11 }
 0x1a9   : > { %v7399_v25 = vadd.f32 %v7398_v45, %v7080_v2  ;;  %v14115_v2 = vld [vmem:[#allocation83_spill] sm:$0xff]  ;;  %v8044_v7 = vpop.eup %8043  ;;  %v4523_v42 = vadd.f32 1.0, %v8040_v0  ;;  %8057 = vtanh.f32 %v10679_v26  ;;  %v10706_v36 = vadd.f32 %v14114_v49, %v2294_v22  ;;  %v10709_v15 = vpop.f32.mrf.mxu0  ;;  %v14119_v0 = vld [vmem:[#allocation9_spill] sm:$0xff] }
 0x1aa   : > { %v2295_v45 = vmul.f32 0.5, %v14115_v2  ;;  %14118 = vst [vmem:[#allocation7_spill] sm:$0xff] %v10709_v15  ;;  %v4842_v55 = vmul.f32 %v4522_v30, %v10557_v46  ;;  %v7084_v2 = vmul.f32 %v6335_v53, %v4841_v21  ;;  %v4524_v11 = vadd.f32 1.0, %v8042_v48  ;;  %v6340_v49 = vpop.permute.xlu0 %6339  ;;  %v6187_v46 = vld [vmem:[%s13827_s3 + $0x2f8] sm:$0xff] }
 0x1ab   : > { %6714 = vperm.xlu1 %7969, %v6184_v44   ;;  %v7400_v52 = vadd.f32 %v7399_v25, %v7081_v29  ;;  %6709 = vperm.xlu0 %7968, %v6183_v57   ;;  %v10700_v44 = vpop.f32.mrf.mxu1  ;;  %v7083_v57 = vmul.f32 %v6330_v38, %v4840_v43  ;;  %v14117_v29 = vld [vmem:[#allocation86_spill] sm:$0xff]  ;;  %v8046_v38 = vpop.eup %8045  ;;  %v4525_v17 = vadd.f32 1.0, %v8044_v7  ;;  %8059 = vtanh.f32 %v10693_v54  ;;  %v14120_v43 = vld [vmem:[#allocation87_spill] sm:$0xff] }
 0x1ac   : > { %14116 = vst [vmem:[#allocation78_spill] sm:$0xff] %v10700_v44  ;;  %v2296_v25 = vmul.f32 0.5, %v14117_v29  ;;  %v10717_v22 = vadd.f32 %v14119_v0, %v2295_v45  ;;  %v4843_v30 = vmul.f32 %v4523_v42, %v10573_v62  ;;  %8061 = vtanh.f32 %v10706_v36  ;;  %v10731_v29 = vpop.f32.mrf.mxu0  ;;  %v6190_v62 = vld [vmem:[%s13827_s3 + $0x310] sm:$0xff] }
 0x1ad   : > { %v7401_v60 = vadd.f32 %v7400_v52, %v7082_v28  ;;  %v6188_v52 = vld [vmem:[%s13827_s3 + $0x300] sm:$0xff]  ;;  %v2297_v28 = vmul.f32 0.5, %v14120_v43  ;;  %v10723_v48 = vpop.f32.mrf.mxu1  ;;  %14123 = vst [vmem:[#allocation82_spill] sm:$0xff] %v10731_v29  ;;  %v4526_v15 = vadd.f32 1.0, %v8046_v38  ;;  %v4844_v50 = vmul.f32 %v4524_v11, %v10576_v6  ;;  %v6189_v6 = vld [vmem:[%s13827_s3 + $0x308] sm:$0xff] }
 0x1ae   : > { %14121 = vst [vmem:[#allocation79_spill] sm:$0xff] %v10723_v48  ;;  %v8048_v7 = vpop.eup %8047  ;;  %v10728_v45 = vadd.f32 %v14119_v0, %v2296_v25  ;;  %v7086_v48 = vmul.f32 %v6340_v49, %v4843_v30  ;;  %v4845_v42 = vmul.f32 %v4525_v17, %v10591_v8  ;;  %8063 = vtanh.f32 %v10717_v22  ;;  %v14124_v25 = vld [vmem:[#allocation12_spill] sm:$0xff]  ;;  %v14126_v38 = vld [vmem:[#allocation91_spill] sm:$0xff]  ;;  %v14127_v17 = vld [vmem:[#allocation94_spill] sm:$0xff] }
 0x1af   : > { %6724 = vperm.xlu1 %7969, %v6186_v59   ;;  %v7402_v44 = vadd.f32 %v7401_v60, %v7083_v57  ;;  %6719 = vperm.xlu0 %7968, %v6185_v13   ;;  %v6345_v59 = vpop.permute.xlu1 %6344  ;;  %v7085_v13 = vmul.f32 %v6335_v53, %v4842_v55  ;;  %v14122_v57 = vld [vmem:[#allocation90_spill] sm:$0xff]  ;;  %v708_v53 = vld [vmem:[%s13825_s1 + $0x428] sm:$0xff]  ;;  %v10743_v55 = vadd.f32 %v14124_v25, %v2297_v28  ;;  %v10749_v11 = vpop.f32.mrf.mxu1  ;;  %v2299_v0 = vmul.f32 0.5, %v14126_v38 }
 0x1b0   : > { %v2298_v60 = vmul.f32 0.5, %v14122_v57  ;;  %7908 = vmatmul.mubr.msk.f32.gmra.mxu1 %vm738_vm1, %v708_v53  ;;  %14125 = vst [vmem:[#allocation10_spill] sm:$0xff] %v10749_v11  ;;  %8065 = vtanh.f32 %v10728_v45  ;;  %v2300_v28 = vmul.f32 0.5, %v14127_v17  ;;  %v7088_v53 = vmul.f32 %v6345_v59, %v4845_v42  ;;  %v6350_v38 = vpop.permute.xlu0 %6349 }
 0x1b1   : > { %v7403_v21 = vadd.f32 %v7402_v44, %v7084_v2  ;;  %v8050_v44 = vpop.eup %8049  ;;  %2092 = vmatprep.mubr.f32.mxu1 %v13977_v10  ;;  %8067 = vtanh.f32 %v10743_v55 }
 0x1b2   : > { %v8052_v2 = vpop.eup %8051  ;;  %v10755_v8 = vadd.f32 %v14124_v25, %v2298_v60 }
 0x1b3   : > { %6734 = vperm.xlu1 %7969, %v6188_v52   ;;  %v7404_v43 = vadd.f32 %v7403_v21, %v7085_v13  ;;  %6729 = vperm.xlu0 %7968, %v6187_v46   ;;  %v4527_v52 = vadd.f32 1.0, %v8048_v7  ;;  %v7087_v46 = vmul.f32 %v6340_v49, %v4844_v50  ;;  %v10758_v13 = vpop.permute.xlu1 %6354  ;;  %v10760_v21 = vpop.f32.mrf.mxu0  ;;  %v4846_v7 = vmul.f32 %v4526_v15, %v10609_v32  ;;  %v709_v32 = vld [vmem:[%s13825_s1 + $0x430] sm:$0xff] }
 0x1b4   : > { %14128 = vst [vmem:[#allocation83_spill] sm:$0xff] %v10760_v21  ;;  %v8054_v57 = vpop.eup %8053  ;;  %v4528_v49 = vadd.f32 1.0, %v8050_v44  ;;  %v4529_v60 = vadd.f32 1.0, %v8052_v2  ;;  %v10774_v44 = vpop.f32.mrf.mxu1  ;;  %7909 = vmatmul.mubr.msk.f32.gmra.mxu1 %vm738_vm1, %v709_v32  ;;  %8069 = vtanh.f32 %v10755_v8 }
 0x1b5   : > { %v7405_v30 = vadd.f32 %v7404_v43, %v7086_v48  ;;  %v6192_v48 = vld [vmem:[%s13827_s3 + $0x320] sm:$0xff]  ;;  %v8056_v15 = vpop.eup %8055  ;;  %14130 = vst [vmem:[#allocation86_spill] sm:$0xff] %v10774_v44  ;;  %v4847_v42 = vmul.f32 %v4527_v52, %v10626_v5  ;;  %v10786_v21 = vpop.f32.mrf.mxu0  ;;  %v4530_v5 = vadd.f32 1.0, %v8054_v57  ;;  %v6193_v57 = vld [vmem:[%s13827_s3 + $0x328] sm:$0xff]  ;;  %2098 = vmatprep.mubr.f32.mxu1 %v13977_v10 }
 0x1b6   : > { %v14129_v43 = vld [vmem:[#allocation95_spill] sm:$0xff]  ;;  %14133 = vst [vmem:[#allocation9_spill] sm:$0xff] %v10786_v21  ;;  %v8058_v44 = vpop.eup %8057  ;;  %v4848_v52 = vmul.f32 %v4528_v49, %v10634_v27 }
 0x1b7   : > { %6744 = vperm.xlu1 %7969, %v6190_v62   ;;  %v7406_v50 = vadd.f32 %v7405_v30, %v7087_v46  ;;  %6739 = vperm.xlu0 %7968, %v6189_v6   ;;  %v2301_v25 = vmul.f32 0.5, %v14129_v43  ;;  %v6191_v62 = vld [vmem:[%s13827_s3 + $0x318] sm:$0xff]  ;;  %v7089_v46 = vmul.f32 %v6345_v59, %v4846_v7  ;;  %v6194_v59 = vld [vmem:[%s13827_s3 + $0x330] sm:$0xff]  ;;  %v4849_v7 = vmul.f32 %v4529_v60, %v10644_v31  ;;  %v10796_v32 = vpop.permute.xlu1 %6364 }
 0x1b8   : > { %v14131_v6 = vld [vmem:[#allocation11_spill] sm:$0xff]  ;;  %v14132_v43 = vld [vmem:[#allocation98_spill] sm:$0xff]  ;;  %v8060_v49 = vpop.eup %8059 }
 0x1b9   : > { %v10778_v2 = vadd.f32 %v14131_v6, %v2299_v0  ;;  %v7407_v30 = vadd.f32 %v7406_v50, %v7088_v53  ;;  %v10783_v17 = vadd.f32 %v14131_v6, %v2300_v28  ;;  %v2302_v11 = vmul.f32 0.5, %v14132_v43  ;;  %v14134_v53 = vld [vmem:[#allocation14_spill] sm:$0xff]  ;;  %v14136_v31 = vld [vmem:[#allocation99_spill] sm:$0xff]  ;;  %v8062_v43 = vpop.eup %8061 }
 0x1ba   : > { %v7090_v0 = vmul.f32 %v6350_v38, %v4847_v42  ;;  %v4531_v28 = vadd.f32 1.0, %v8056_v15  ;;  %v10794_v50 = vadd.f32 %v14134_v53, %v2301_v25  ;;  %v710_v27 = vld [vmem:[%s13825_s1 + $0x438] sm:$0xff]  ;;  %v2303_v60 = vmul.f32 0.5, %v14136_v31 }
 0x1bb   : > { %6754 = vperm.xlu1 %7969, %v6192_v48   ;;  %v7408_v29 = vadd.f32 %v7407_v30, %v7089_v46  ;;  %6749 = vperm.xlu0 %7968, %v6191_v62   ;;  %v10805_v48 = vpop.f32.mrf.mxu1  ;;  %8071 = vtanh.f32 %v10778_v2  ;;  %v7091_v25 = vmul.f32 %v6350_v38, %v4848_v52  ;;  %v10812_v15 = vadd.f32 %v14134_v53, %v2302_v11  ;;  %v14137_v42 = vld [vmem:[#allocation102_spill] sm:$0xff]  ;;  %v6360_v46 = vpop.permute.xlu0 %6359  ;;  %v6196_v11 = vld [vmem:[%s13827_s3 + $0x340] sm:$0xff] }
 0x1bc   : > { %14135 = vst [vmem:[#allocation87_spill] sm:$0xff] %v10805_v48  ;;  %7910 = vmatmul.mubr.msk.f32.gmra.mxu1 %vm738_vm1, %v710_v27  ;;  %8073 = vtanh.f32 %v10783_v17  ;;  %v2304_v6 = vmul.f32 0.5, %v14137_v42  ;;  %v10815_v30 = vpop.f32.mrf.mxu0  ;;  %v4850_v31 = vmul.f32 %v4530_v5, %v10656_v40  ;;  %v4532_v52 = vadd.f32 1.0, %v8058_v44  ;;  %v14139_v53 = vld [vmem:[#allocation103_spill] sm:$0xff]  ;;  %v8064_v5 = vpop.eup %8063 }
 0x1bd   : > { %v7409_v62 = vadd.f32 %v7408_v29, %v7090_v0  ;;  %14138 = vst [vmem:[#allocation90_spill] sm:$0xff] %v10815_v30  ;;  %2104 = vmatprep.mubr.f32.mxu1 %v13977_v10  ;;  %v7092_v29 = vmul.f32 %v10758_v13, %v4849_v7  ;;  %v4533_v0 = vadd.f32 1.0, %v8060_v49  ;;  %8075 = vtanh.f32 %v10794_v50  ;;  %v711_v40 = vld [vmem:[%s13825_s1 + $0x440] sm:$0xff]  ;;  %v10831_v44 = vpop.f32.mrf.mxu1  ;;  %v10844_v30 = vpop.permute.xlu1 %6374 }
 0x1be   : > { %v2305_v27 = vmul.f32 0.5, %v14139_v53  ;;  %14140 = vst [vmem:[#allocation12_spill] sm:$0xff] %v10831_v44  ;;  %v4851_v7 = vmul.f32 %v4531_v28, %v10668_v39  ;;  %v7093_v49 = vmul.f32 %v10758_v13, %v4850_v31  ;;  %8077 = vtanh.f32 %v10812_v15  ;;  %v14142_v53 = vld [vmem:[#allocation106_spill] sm:$0xff]  ;;  %v10846_v44 = vpop.f32.mrf.mxu0  ;;  %v8066_v39 = vpop.eup %8065 }
 0x1bf   : > { %6764 = vperm.xlu1 %7969, %v6194_v59   ;;  %v7410_v38 = vadd.f32 %v7409_v62, %v7091_v25  ;;  %6759 = vperm.xlu0 %7968, %v6193_v57   ;;  %v6195_v59 = vld [vmem:[%s13827_s3 + $0x338] sm:$0xff]  ;;  %v14141_v57 = vld [vmem:[#allocation13_spill] sm:$0xff]  ;;  %v2306_v48 = vmul.f32 0.5, %v14142_v53  ;;  %14143 = vst [vmem:[#allocation91_spill] sm:$0xff] %v10846_v44  ;;  %v4534_v13 = vadd.f32 1.0, %v8062_v43  ;;  %v8068_v43 = vpop.eup %8067 }
 0x1c0   : > { %v10835_v25 = vadd.f32 %v14141_v57, %v2303_v60  ;;  %7911 = vmatmul.mubr.msk.f32.gmra.mxu1 %vm738_vm1, %v711_v40  ;;  %v10841_v42 = vadd.f32 %v14141_v57, %v2304_v6  ;;  %v4852_v60 = vmul.f32 %v4532_v52, %v10679_v26  ;;  %v7094_v31 = vmul.f32 %v6360_v46, %v4851_v7  ;;  %v6198_v6 = vld [vmem:[%s13827_s3 + $0x350] sm:$0xff]  ;;  %v14144_v40 = vld [vmem:[#allocation16_spill] sm:$0xff]  ;;  %v10863_v52 = vpop.f32.mrf.mxu1 }
 0x1c1   : > { %v7411_v62 = vadd.f32 %v7410_v38, %v7092_v29  ;;  %2110 = vmatprep.mubr.f32.mxu1 %v13977_v10  ;;  %v4853_v29 = vmul.f32 %v4533_v0, %v10693_v54  ;;  %v4535_v38 = vadd.f32 1.0, %v8064_v5  ;;  %v10855_v57 = vadd.f32 %v14144_v40, %v2305_v27  ;;  %v712_v26 = vld [vmem:[%s13825_s1 + $0x448] sm:$0xff]  ;;  %14145 = vst [vmem:[#allocation94_spill] sm:$0xff] %v10863_v52  ;;  %v8070_v53 = vpop.eup %8069 }
 0x1c2   : > { %8079 = vtanh.f32 %v10835_v25  ;;  %v7095_v0 = vmul.f32 %v6360_v46, %v4852_v60  ;;  %v10870_v27 = vadd.f32 %v14144_v40, %v2306_v48  ;;  %v2308_v7 = vmul.f32 0.5, %v10098_v47  ;;  %v6200_v48 = vld [vmem:[%s13827_s3 + $0x360] sm:$0xff]  ;;  %v14148_v47 = vld [vmem:[#allocation110_spill] sm:$0xff] }
 0x1c3   : > { %6774 = vperm.xlu1 %7969, %v6196_v11   ;;  %v7412_v28 = vadd.f32 %v7411_v62, %v7093_v49  ;;  %6769 = vperm.xlu0 %7968, %v6195_v59   ;;  %v6370_v11 = vpop.permute.xlu0 %6369  ;;  %v6197_v49 = vld [vmem:[%s13827_s3 + $0x348] sm:$0xff]  ;;  %v14146_v59 = vld [vmem:[#allocation107_spill] sm:$0xff]  ;;  %8081 = vtanh.f32 %v10841_v42  ;;  %v10873_v62 = vpop.f32.mrf.mxu0  ;;  %v4854_v52 = vmul.f32 %v4534_v13, %v10706_v36  ;;  %v7096_v46 = vmul.f32 %v10796_v32, %v4853_v29 }
 0x1c4   : > { %v2307_v54 = vmul.f32 0.5, %v14146_v59  ;;  %7912 = vmatmul.mubr.msk.f32.gmra.mxu1 %vm738_vm1, %v712_v26  ;;  %14147 = vst [vmem:[#allocation95_spill] sm:$0xff] %v10873_v62  ;;  %v4536_v60 = vadd.f32 1.0, %v8066_v39  ;;  %8083 = vtanh.f32 %v10855_v57  ;;  %v2309_v40 = vmul.f32 0.5, %v14148_v47  ;;  %v6199_v36 = vld [vmem:[%s13827_s3 + $0x358] sm:$0xff]  ;;  %v713_v39 = vld [vmem:[%s13825_s1 + $0x450] sm:$0xff]  ;;  %v10891_v13 = vpop.f32.mrf.mxu1 }
 0x1c5   : > { %v7413_v5 = vadd.f32 %v7412_v28, %v7094_v31  ;;  %2116 = vmatprep.mubr.f32.mxu1 %v13977_v10  ;;  %v4537_v31 = vadd.f32 1.0, %v8068_v43  ;;  %14149 = vst [vmem:[#allocation11_spill] sm:$0xff] %v10891_v13  ;;  %v4855_v29 = vmul.f32 %v4535_v38, %v10717_v22  ;;  %v7097_v43 = vmul.f32 %v10796_v32, %v4854_v52  ;;  %v14151_v62 = vld [vmem:[#allocation113_spill] sm:$0xff]  ;;  %v10905_v13 = vpop.f32.mrf.mxu0 }
 0x1c6   : > { %v2310_v44 = vmul.f32 0.5, %v14151_v62  ;;  %14152 = vst [vmem:[#allocation98_spill] sm:$0xff] %v10905_v13  ;;  %8085 = vtanh.f32 %v10870_v27  ;;  %v4856_v38 = vmul.f32 %v4536_v60, %v10728_v45  ;;  %v14153_v62 = vld [vmem:[#allocation18_spill] sm:$0xff] }
 0x1c7   : > { %6784 = vperm.xlu1 %7969, %v6198_v6   ;;  %v7414_v28 = vadd.f32 %v7413_v5, %v7095_v0  ;;  %6779 = vperm.xlu0 %7968, %v6197_v49   ;;  %v10883_v6 = vpop.permute.xlu1 %6384  ;;  %v14150_v49 = vld [vmem:[#allocation15_spill] sm:$0xff]  ;;  %v4538_v5 = vadd.f32 1.0, %v8070_v53  ;;  %v10903_v21 = vpop.permute.xlu0 %6379  ;;  %v7098_v52 = vmul.f32 %v6370_v11, %v4855_v29  ;;  %v10915_v53 = vadd.f32 %v14153_v62, %v2309_v40  ;;  %v14156_v29 = vld [vmem:[#allocation117_spill] sm:$0xff] }
 0x1c8   : > { %v10895_v26 = vadd.f32 %v14150_v49, %v2307_v54  ;;  %7913 = vmatmul.mubr.msk.f32.gmra.mxu1 %vm738_vm1, %v713_v39  ;;  %v8072_v0 = vpop.eup %8071  ;;  %v10900_v47 = vadd.f32 %v14150_v49, %v2308_v7  ;;  %v2684_v54 = vld [vmem:[%s13826_s2 + $0x398] sm:$0xff]  ;;  %v4857_v7 = vmul.f32 %v4537_v31, %v10743_v55  ;;  %v7099_v55 = vmul.f32 %v6370_v11, %v4856_v38  ;;  %v2685_v38 = vld [vmem:[%s13826_s2 + $0x3a0] sm:$0xff] }
 0x1c9   : > { %v7415_v59 = vadd.f32 %v7414_v28, %v7096_v46  ;;  %2122 = vmatprep.mubr.f32.mxu1 %v13977_v10  ;;  %v8074_v22 = vpop.eup %8073  ;;  %v14154_v46 = vld [vmem:[#allocation114_spill] sm:$0xff]  ;;  %v4539_v39 = vadd.f32 1.0, %v8072_v0  ;;  %v2312_v49 = vmul.f32 0.5, %v14156_v29  ;;  %v4858_v0 = vmul.f32 %v4538_v5, %v10755_v8 }
 0x1ca   : > { %v2311_v28 = vmul.f32 0.5, %v14154_v46  ;;  %v714_v45 = vld [vmem:[%s13825_s1 + $0x458] sm:$0xff]  ;;  %v8076_v60 = vpop.eup %8075  ;;  %8087 = vtanh.f32 %v10895_v26  ;;  %v4540_v40 = vadd.f32 1.0, %v8074_v22  ;;  %v10937_v11 = vadd.f32 %v14153_v62, %v2310_v44  ;;  %v6202_v8 = vld [vmem:[%s13827_s3 + $0x370] sm:$0xff]  ;;  %v715_v44 = vld [vmem:[%s13825_s1 + $0x460] sm:$0xff] }
 0x1cb   : > { %6794 = vperm.xlu1 %7969, %v6200_v48   ;;  %v7416_v32 = vadd.f32 %v7415_v59, %v7097_v43  ;;  %6789 = vperm.xlu0 %7968, %v6199_v36   ;;  %v6201_v48 = vld [vmem:[%s13827_s3 + $0x368] sm:$0xff]  ;;  %v10924_v36 = vpop.f32.mrf.mxu1  ;;  %8089 = vtanh.f32 %v10900_v47  ;;  %v10930_v43 = vpop.permute.xlu1 %6394 }
 0x1cc   : > { %14155 = vst [vmem:[#allocation14_spill] sm:$0xff] %v10924_v36  ;;  %7914 = vmatmul.mubr.msk.f32.gmra.mxu1 %vm738_vm1, %v714_v45  ;;  %v10932_v59 = vpop.f32.mrf.mxu0  ;;  %v8078_v46 = vpop.eup %8077  ;;  %8091 = vtanh.f32 %v10915_v53  ;;  %v14160_v62 = vld [vmem:[#allocation17_spill] sm:$0xff] }
 0x1cd   : > { %v7417_v31 = vadd.f32 %v7416_v32, %v7098_v52  ;;  %14157 = vst [vmem:[#allocation99_spill] sm:$0xff] %v10932_v59  ;;  %2128 = vmatprep.mubr.f32.mxu1 %v13977_v10  ;;  %v7100_v32 = vmul.f32 %v10844_v30, %v4857_v7  ;;  %v4541_v52 = vadd.f32 1.0, %v8076_v60  ;;  %v10945_v29 = vpop.permute.xlu0 %6389  ;;  %v10953_v5 = vpop.f32.mrf.mxu1  ;;  %v4859_v7 = vmul.f32 %v4539_v39, %v10778_v2  ;;  %v14161_v59 = vld [vmem:[#allocation121_spill] sm:$0xff] }
 0x1ce   : > { %14159 = vst [vmem:[#allocation102_spill] sm:$0xff] %v10953_v5  ;;  %v7101_v60 = vmul.f32 %v10844_v30, %v4858_v0  ;;  %v10963_v36 = vadd.f32 %v14160_v62, %v2312_v49  ;;  %v2314_v13 = vmul.f32 0.5, %v14161_v59  ;;  %v10966_v35 = vpop.f32.mrf.mxu0  ;;  %8093 = vtanh.f32 %v10937_v11  ;;  %v14163_v49 = vld [vmem:[#allocation20_spill] sm:$0xff]  ;;  %v14164_v0 = vld [vmem:[#allocation122_spill] sm:$0xff] }
 0x1cf   : > { %3306 = vperm.xlu1 %7969, %v2684_v54   ;;  %v7418_v22 = vadd.f32 %v7417_v31, %v7099_v55  ;;  %6799 = vperm.xlu0 %7968, %v6201_v48   ;;  %v14158_v54 = vld [vmem:[#allocation118_spill] sm:$0xff]  ;;  %v10957_v48 = vadd.f32 %v14160_v62, %v2311_v28  ;;  %v8080_v31 = vpop.eup %8079  ;;  %14162 = vst [vmem:[#allocation103_spill] sm:$0xff] %v10966_v35  ;;  %v4542_v28 = vadd.f32 1.0, %v8078_v46  ;;  %v14166_v62 = vld [vmem:[#allocation125_spill] sm:$0xff] }
 0x1d0   : > { %v2313_v45 = vmul.f32 0.5, %v14158_v54  ;;  %7915 = vmatmul.mubr.msk.f32.gmra.mxu1 %vm738_vm1, %v715_v44  ;;  %v4860_v54 = vmul.f32 %v4540_v40, %v10783_v17  ;;  %v8082_v2 = vpop.eup %8081  ;;  %v7102_v39 = vmul.f32 %v10903_v21, %v4859_v7  ;;  %v2686_v17 = vld [vmem:[%s13826_s2 + $0x3a8] sm:$0xff]  ;;  %v4861_v40 = vmul.f32 %v4541_v52, %v10794_v50  ;;  %v6203_v46 = vld [vmem:[%s13827_s3 + $0x378] sm:$0xff]  ;;  %v10987_v44 = vpop.f32.mrf.mxu1 }
 0x1d1   : > { %v7419_v55 = vadd.f32 %v7418_v22, %v7100_v32  ;;  %2134 = vmatprep.mubr.f32.mxu1 %v13977_v10  ;;  %v2315_v32 = vmul.f32 0.5, %v14164_v0  ;;  %v10979_v22 = vpop.permute.xlu1 %6404  ;;  %14165 = vst [vmem:[#allocation13_spill] sm:$0xff] %v10987_v44  ;;  %v4543_v7 = vadd.f32 1.0, %v8080_v31  ;;  %8095 = vtanh.f32 %v10957_v48  ;;  %v10996_v0 = vpop.f32.mrf.mxu0  ;;  %v14171_v44 = vld [vmem:[#allocation129_spill] sm:$0xff] }
 0x1d2   : > { %v10976_v59 = vadd.f32 %v14163_v49, %v2313_v45  ;;  %v7103_v50 = vmul.f32 %v10903_v21, %v4860_v54  ;;  %v4544_v45 = vadd.f32 1.0, %v8082_v2  ;;  %8097 = vtanh.f32 %v10963_v36  ;;  %14167 = vst [vmem:[#allocation106_spill] sm:$0xff] %v10996_v0  ;;  %v2687_v2 = vld [vmem:[%s13826_s2 + $0x3b0] sm:$0xff] }
 0x1d3   : > { %3311 = vperm.xlu1 %7969, %v2685_v38   ;;  %v7420_v30 = vadd.f32 %v7419_v55, %v7101_v60  ;;  %6804 = vperm.xlu0 %7968, %v6202_v8   ;;  %v716_v38 = vld [vmem:[%s13825_s1 + $0x468] sm:$0xff]  ;;  %v8084_v8 = vpop.eup %8083  ;;  %v2316_v60 = vmul.f32 0.5, %v14166_v62  ;;  %v10994_v55 = vpop.permute.xlu0 %6399  ;;  %v4862_v31 = vmul.f32 %v4542_v28, %v10812_v15  ;;  %v11001_v5 = vadd.f32 %v14163_v49, %v2314_v13  ;;  %v6204_v15 = vld [vmem:[%s13827_s3 + $0x380] sm:$0xff]  ;;  %v717_v13 = vld [vmem:[%s13825_s1 + $0x470] sm:$0xff] }
 0x1d4   : > { %7916 = vmatmul.mubr.msk.f32.gmra.mxu1 %vm738_vm1, %v716_v38  ;;  %v7104_v21 = vmul.f32 %v10883_v6, %v4861_v40  ;;  %8099 = vtanh.f32 %v10976_v59  ;;  %v11015_v28 = vpop.f32.mrf.mxu1  ;;  %v4863_v40 = vmul.f32 %v4543_v7, %v10835_v25  ;;  %v14170_v49 = vld [vmem:[#allocation19_spill] sm:$0xff]  ;;  %v4864_v62 = vmul.f32 %v4544_v45, %v10841_v42  ;;  %v14173_v45 = vld [vmem:[#allocation22_spill] sm:$0xff] }
 0x1d5   : > { %v7421_v52 = vadd.f32 %v7420_v30, %v7102_v39  ;;  %2140 = vmatprep.mubr.f32.mxu1 %v13977_v10  ;;  %v8086_v30 = vpop.eup %8085  ;;  %v4545_v39 = vadd.f32 1.0, %v8084_v8  ;;  %14169 = vst [vmem:[#allocation16_spill] sm:$0xff] %v11015_v28  ;;  %v7105_v8 = vmul.f32 %v10883_v6, %v4862_v31  ;;  %v2318_v0 = vmul.f32 0.5, %v14171_v44  ;;  %v11028_v35 = vpop.permute.xlu1 %6414  ;;  %v2688_v42 = vld [vmem:[%s13826_s2 + $0x3b8] sm:$0xff] }
 0x1d6   : > { %v11030_v28 = vpop.f32.mrf.mxu0  ;;  %v4546_v6 = vadd.f32 1.0, %v8086_v30  ;;  %8101 = vtanh.f32 %v11001_v5  ;;  %v7106_v7 = vmul.f32 %v10945_v29, %v4863_v40  ;;  %v14174_v31 = vld [vmem:[#allocation130_spill] sm:$0xff] }
 0x1d7   : > { %3316 = vperm.xlu1 %7969, %v2686_v17   ;;  %v7422_v54 = vadd.f32 %v7421_v52, %v7103_v50  ;;  %6809 = vperm.xlu0 %7968, %v6203_v46   ;;  %v14168_v17 = vld [vmem:[#allocation126_spill] sm:$0xff]  ;;  %v11019_v46 = vadd.f32 %v14170_v49, %v2315_v32  ;;  %v8088_v52 = vpop.eup %8087  ;;  %14172 = vst [vmem:[#allocation107_spill] sm:$0xff] %v11030_v28 }
 0x1d8   : > { %v2317_v38 = vmul.f32 0.5, %v14168_v17  ;;  %7917 = vmatmul.mubr.msk.f32.gmra.mxu1 %vm738_vm1, %v717_v13  ;;  %v11025_v17 = vadd.f32 %v14170_v49, %v2316_v60  ;;  %v8090_v25 = vpop.eup %8089  ;;  %v4865_v44 = vmul.f32 %v4545_v39, %v10855_v57  ;;  %v718_v30 = vld [vmem:[%s13825_s1 + $0x478] sm:$0xff]  ;;  %v11051_v13 = vpop.f32.mrf.mxu1  ;;  %v4547_v40 = vadd.f32 1.0, %v8088_v52  ;;  %v14176_v49 = vld [vmem:[#allocation133_spill] sm:$0xff] }
 0x1d9   : > { %v7423_v50 = vadd.f32 %v7422_v54, %v7104_v21  ;;  %2146 = vmatprep.mubr.f32.mxu1 %v13977_v10  ;;  %v2319_v21 = vmul.f32 0.5, %v14174_v31  ;;  %v11043_v54 = vpop.permute.xlu0 %6409  ;;  %14175 = vst [vmem:[#allocation110_spill] sm:$0xff] %v11051_v13  ;;  %8103 = vtanh.f32 %v11019_v46  ;;  %v7107_v57 = vmul.f32 %v10945_v29, %v4864_v62 }
 0x1da   : > { %v11040_v60 = vadd.f32 %v14173_v45, %v2317_v38  ;;  %v4548_v38 = vadd.f32 1.0, %v8090_v25  ;;  %8105 = vtanh.f32 %v11025_v17  ;;  %v4866_v31 = vmul.f32 %v4546_v6, %v10870_v27  ;;  %v2689_v25 = vld [vmem:[%s13826_s2 + $0x3c0] sm:$0xff]  ;;  %v6206_v27 = vld [vmem:[%s13827_s3 + $0x390] sm:$0xff]  ;;  %v11079_v6 = vpop.f32.mrf.mxu1 }
 0x1db   : > { %3321 = vperm.xlu1 %7969, %v2687_v2   ;;  %v7424_v32 = vadd.f32 %v7423_v50, %v7105_v8  ;;  %6814 = vperm.xlu0 %7968, %v6204_v15   ;;  %v6205_v2 = vld [vmem:[%s13827_s3 + $0x388] sm:$0xff]  ;;  %v8092_v15 = vpop.eup %8091  ;;  %v2320_v8 = vmul.f32 0.5, %v14176_v49  ;;  %v11058_v50 = vpop.f32.mrf.mxu0  ;;  %v11063_v52 = vadd.f32 %v14173_v45, %v2318_v0  ;;  %v7108_v29 = vmul.f32 %v10930_v43, %v4865_v44  ;;  %v719_v0 = vld [vmem:[%s13825_s1 + $0x480] sm:$0xff] }
 0x1dc   : > { %7918 = vmatmul.mubr.msk.f32.gmra.mxu1 %vm738_vm1, %v718_v30  ;;  %14177 = vst [vmem:[#allocation15_spill] sm:$0xff] %v11058_v50  ;;  %8107 = vtanh.f32 %v11040_v60  ;;  %v11071_v49 = vpop.permute.xlu1 %6424  ;;  %14179 = vst [vmem:[#allocation113_spill] sm:$0xff] %v11079_v6  ;;  %v4867_v44 = vmul.f32 %v4547_v40, %v10895_v26  ;;  %v14180_v45 = vld [vmem:[#allocation21_spill] sm:$0xff] }
 0x1dd   : > { %v7425_v39 = vadd.f32 %v7424_v32, %v7106_v7  ;;  %2152 = vmatprep.mubr.f32.mxu1 %v13977_v10  ;;  %v8094_v32 = vpop.eup %8093  ;;  %v4549_v7 = vadd.f32 1.0, %v8092_v15  ;;  %v7109_v15 = vmul.f32 %v10930_v43, %v4866_v31  ;;  %v11089_v13 = vadd.f32 %v14180_v45, %v2320_v8  ;;  %v14181_v50 = vld [vmem:[#allocation137_spill] sm:$0xff]  ;;  %v11092_v37 = vpop.permute.xlu0 %6419  ;;  %v14183_v8 = vld [vmem:[#allocation24_spill] sm:$0xff]  ;;  %v14184_v31 = vld [vmem:[#allocation138_spill] sm:$0xff] }
 0x1de   : > { %v2322_v28 = vmul.f32 0.5, %v14181_v50  ;;  %v11094_v6 = vpop.f32.mrf.mxu0  ;;  %v4550_v43 = vadd.f32 1.0, %v8094_v32  ;;  %8109 = vtanh.f32 %v11063_v52  ;;  %v7110_v40 = vmul.f32 %v10994_v55, %v4867_v44  ;;  %v14186_v44 = vld [vmem:[#allocation140_spill] sm:$0xff] }
 0x1df   : > { %3326 = vperm.xlu1 %7969, %v2688_v42   ;;  %v7426_v62 = vadd.f32 %v7425_v39, %v7107_v57  ;;  %6819 = vperm.xlu0 %7968, %v6205_v2   ;;  %v14178_v42 = vld [vmem:[#allocation134_spill] sm:$0xff]  ;;  %v11083_v2 = vadd.f32 %v14180_v45, %v2319_v21  ;;  %v8096_v39 = vpop.eup %8095  ;;  %14182 = vst [vmem:[#allocation18_spill] sm:$0xff] %v11094_v6  ;;  %v2324_v45 = vmul.f32 0.5, %v14186_v44 }
 0x1e0   : > { %v2321_v30 = vmul.f32 0.5, %v14178_v42  ;;  %7919 = vmatmul.mubr.msk.f32.gmra.mxu1 %vm738_vm1, %v719_v0  ;;  %v4868_v42 = vmul.f32 %v4548_v38, %v10900_v47  ;;  %v8098_v26 = vpop.eup %8097  ;;  %v2690_v47 = vld [vmem:[%s13826_s2 + $0x3c8] sm:$0xff]  ;;  %v4869_v38 = vmul.f32 %v4549_v7, %v10915_v53  ;;  %v4551_v0 = vadd.f32 1.0, %v8096_v39 }
 0x1e1   : > { %v7427_v57 = vadd.f32 %v7426_v62, %v7108_v29  ;;  %2158 = vmatprep.mubr.f32.mxu1 %v13977_v10  ;;  %v2323_v29 = vmul.f32 0.5, %v14184_v31  ;;  %v6207_v62 = vld [vmem:[%s13827_s3 + $0x398] sm:$0xff]  ;;  %v8100_v32 = vpop.eup %8099  ;;  %8111 = vtanh.f32 %v11083_v2  ;;  %v4870_v39 = vmul.f32 %v4550_v43, %v10937_v11  ;;  %v11135_v44 = vpop.permute.xlu0 %6429  ;;  %v6208_v11 = vld [vmem:[%s13827_s3 + $0x3a0] sm:$0xff] }
 0x1e2   : > { %v11104_v50 = vadd.f32 %v14183_v8, %v2321_v30  ;;  %v7111_v53 = vmul.f32 %v10994_v55, %v4868_v42  ;;  %v4552_v30 = vadd.f32 1.0, %v8098_v26  ;;  %8113 = vtanh.f32 %v11089_v13  ;;  %v2691_v26 = vld [vmem:[%s13826_s2 + $0x3d0] sm:$0xff] }
 0x1e3   : > { %3331 = vperm.xlu1 %7969, %v2689_v25   ;;  %v7428_v21 = vadd.f32 %v7427_v57, %v7109_v15  ;;  %6824 = vperm.xlu0 %7968, %v6206_v27   ;;  %v720_v25 = vld [vmem:[%s13825_s1 + $0x488] sm:$0xff]  ;;  %v11113_v27 = vpop.f32.mrf.mxu1  ;;  %v11120_v15 = vpop.permute.xlu1 %6434  ;;  %v11127_v31 = vadd.f32 %v14183_v8, %v2322_v28  ;;  %v7112_v55 = vmul.f32 %v10979_v22, %v4869_v38  ;;  %v721_v28 = vld [vmem:[%s13825_s1 + $0x490] sm:$0xff]  ;;  %v14190_v8 = vld [vmem:[#allocation23_spill] sm:$0xff] }
 0x1e4   : > { %14185 = vst [vmem:[#allocation114_spill] sm:$0xff] %v11113_v27  ;;  %7920 = vmatmul.mubr.msk.f32.gmra.mxu1 %vm738_vm1, %v720_v25  ;;  %v11122_v57 = vpop.f32.mrf.mxu0  ;;  %8115 = vtanh.f32 %v11104_v50  ;;  %v4871_v38 = vmul.f32 %v4551_v0, %v10957_v48  ;;  %v11153_v27 = vadd.f32 %v14190_v8, %v2324_v45  ;;  %v14192_v45 = vld [vmem:[#allocation26_spill] sm:$0xff] }
 0x1e5   : > { %v7429_v7 = vadd.f32 %v7428_v21, %v7110_v40  ;;  %14187 = vst [vmem:[#allocation117_spill] sm:$0xff] %v11122_v57  ;;  %2164 = vmatprep.mubr.f32.mxu1 %v13977_v10  ;;  %v8102_v21 = vpop.eup %8101  ;;  %v4553_v40 = vadd.f32 1.0, %v8100_v32  ;;  %v11143_v43 = vpop.f32.mrf.mxu1  ;;  %v7113_v32 = vmul.f32 %v10979_v22, %v4870_v39  ;;  %v14191_v57 = vld [vmem:[#allocation142_spill] sm:$0xff]  ;;  %8117 = vtanh.f32 %v11127_v31  ;;  %v14193_v39 = vld [vmem:[#allocation143_spill] sm:$0xff] }
 0x1e6   : > { %14189 = vst [vmem:[#allocation118_spill] sm:$0xff] %v11143_v43  ;;  %v2326_v6 = vmul.f32 0.5, %v14191_v57  ;;  %v11156_v16 = vpop.f32.mrf.mxu0  ;;  %v7114_v0 = vmul.f32 %v11043_v54, %v4871_v38 }
 0x1e7   : > { %3336 = vperm.xlu1 %7969, %v2690_v47   ;;  %v7430_v42 = vadd.f32 %v7429_v7, %v7111_v53  ;;  %6829 = vperm.xlu0 %7968, %v6207_v62   ;;  %v14188_v47 = vld [vmem:[#allocation141_spill] sm:$0xff]  ;;  %v11147_v62 = vadd.f32 %v14190_v8, %v2323_v29  ;;  %v8104_v7 = vpop.eup %8103  ;;  %v4554_v29 = vadd.f32 1.0, %v8102_v21  ;;  %v722_v21 = vld [vmem:[%s13825_s1 + $0x498] sm:$0xff] }
 0x1e8   : > { %v2325_v25 = vmul.f32 0.5, %v14188_v47  ;;  %7921 = vmatmul.mubr.msk.f32.gmra.mxu1 %vm738_vm1, %v721_v28  ;;  %v4872_v47 = vmul.f32 %v4552_v30, %v10963_v36  ;;  %v8106_v48 = vpop.eup %8105  ;;  %v2692_v36 = vld [vmem:[%s13826_s2 + $0x3d8] sm:$0xff]  ;;  %v4873_v30 = vmul.f32 %v4553_v40, %v10976_v59  ;;  %v11177_v28 = vpop.f32.mrf.mxu1  ;;  %v4555_v38 = vadd.f32 1.0, %v8104_v7 }
 0x1e9   : > { %v7431_v53 = vadd.f32 %v7430_v42, %v7112_v55  ;;  %2170 = vmatprep.mubr.f32.mxu1 %v13977_v10  ;;  %v2327_v55 = vmul.f32 0.5, %v14193_v39  ;;  %v11169_v42 = vpop.permute.xlu1 %6444  ;;  %14194 = vst [vmem:[#allocation17_spill] sm:$0xff] %v11177_v28  ;;  %8119 = vtanh.f32 %v11147_v62  ;;  %v11183_v8 = vadd.f32 %v14192_v45, %v2326_v6  ;;  %v11188_v39 = vpop.f32.mrf.mxu0  ;;  %v2693_v6 = vld [vmem:[%s13826_s2 + $0x3e0] sm:$0xff] }
 0x1ea   : > { %v11166_v57 = vadd.f32 %v14192_v45, %v2325_v25  ;;  %v7115_v59 = vmul.f32 %v11043_v54, %v4872_v47  ;;  %v4556_v25 = vadd.f32 1.0, %v8106_v48  ;;  %v4874_v7 = vmul.f32 %v4554_v29, %v11001_v5  ;;  %v6210_v5 = vld [vmem:[%s13827_s3 + $0x3b0] sm:$0xff]  ;;  %v723_v29 = vld [vmem:[%s13825_s1 + $0x4a0] sm:$0xff] }
 0x1eb   : > { %3341 = vperm.xlu1 %7969, %v2691_v26   ;;  %v7432_v22 = vadd.f32 %v7431_v53, %v7113_v32  ;;  %6834 = vperm.xlu0 %7968, %v6208_v11   ;;  %v6209_v26 = vld [vmem:[%s13827_s3 + $0x3a8] sm:$0xff]  ;;  %v8108_v11 = vpop.eup %8107  ;;  %v2328_v32 = vmul.f32 0.5, %v10351_v56  ;;  %v11186_v53 = vpop.permute.xlu0 %6439  ;;  %8121 = vtanh.f32 %v11153_v27  ;;  %v7116_v54 = vmul.f32 %v11028_v35, %v4873_v30 }
 0x1ec   : > { %7922 = vmatmul.mubr.msk.f32.gmra.mxu1 %vm738_vm1, %v722_v21  ;;  %v8110_v56 = vpop.eup %8109  ;;  %v4557_v48 = vadd.f32 1.0, %v8108_v11  ;;  %v11207_v30 = vpop.f32.mrf.mxu1  ;;  %v4875_v45 = vmul.f32 %v4555_v38, %v11019_v46  ;;  %8123 = vtanh.f32 %v11166_v57  ;;  %v4876_v21 = vmul.f32 %v4556_v25, %v11025_v17  ;;  %v2694_v17 = vld [vmem:[%s13826_s2 + $0x3e8] sm:$0xff] }
 0x1ed   : > { %v7433_v40 = vadd.f32 %v7432_v22, %v7114_v0  ;;  %2176 = vmatprep.mubr.f32.mxu1 %v13977_v10  ;;  %v14195_v22 = vld [vmem:[#allocation25_spill] sm:$0xff]  ;;  %14196 = vst [vmem:[#allocation121_spill] sm:$0xff] %v11207_v30  ;;  %v11220_v30 = vpop.f32.mrf.mxu0  ;;  %8125 = vtanh.f32 %v11183_v8  ;;  %v14197_v25 = vld [vmem:[#allocation28_spill] sm:$0xff] }
 0x1ee   : > { %v11198_v0 = vadd.f32 %v14195_v22, %v2327_v55  ;;  %v11215_v11 = vadd.f32 %v14195_v22, %v2328_v32  ;;  %v11238_v22 = vpop.f32.mrf.mxu1 }
 0x1ef   : > { %3346 = vperm.xlu1 %7969, %v2692_v36   ;;  %v7434_v47 = vadd.f32 %v7433_v40, %v7115_v59  ;;  %6839 = vperm.xlu0 %7968, %v6209_v26   ;;  %v2329_v36 = vmul.f32 0.5, %v10362_v63  ;;  %v7117_v26 = vmul.f32 %v11028_v35, %v4874_v7  ;;  %v8112_v63 = vpop.eup %8111  ;;  %v2330_v59 = vmul.f32 0.5, %v10376_v3  ;;  %v11218_v40 = vpop.permute.xlu1 %6454  ;;  %14198 = vst [vmem:[#allocation20_spill] sm:$0xff] %v11238_v22 }
 0x1f0   : > { %7923 = vmatmul.mubr.msk.f32.gmra.mxu1 %vm738_vm1, %v723_v29  ;;  %v8114_v46 = vpop.eup %8113  ;;  %v4558_v35 = vadd.f32 1.0, %v8110_v56  ;;  %v7118_v7 = vmul.f32 %v11092_v37, %v4875_v45  ;;  %v4877_v3 = vmul.f32 %v4557_v48, %v11040_v60  ;;  %8127 = vtanh.f32 %v11198_v0  ;;  %v11246_v45 = vpop.f32.mrf.mxu0 }
 0x1f1   : > { %v7435_v55 = vadd.f32 %v7434_v47, %v7116_v54  ;;  %2182 = vmatprep.mubr.f32.mxu1 %v13977_v10  ;;  %v11230_v32 = vadd.f32 %v14197_v25, %v2329_v36  ;;  %v2331_v54 = vmul.f32 0.5, %v10390_v23  ;;  %v11233_v47 = vpop.permute.xlu0 %6449  ;;  %v8116_v56 = vpop.eup %8115  ;;  %v7119_v29 = vmul.f32 %v11092_v37, %v4876_v21  ;;  %v2695_v37 = vld [vmem:[%s13826_s2 + $0x3f0] sm:$0xff] }
 0x1f2   : > { %v4560_v48 = vadd.f32 1.0, %v8114_v46  ;;  %v11243_v36 = vadd.f32 %v14197_v25, %v2330_v59  ;;  %v2332_v23 = vmul.f32 0.5, %v10403_v18  ;;  %8129 = vtanh.f32 %v11215_v11  ;;  %v8118_v21 = vpop.eup %8117  ;;  %v14199_v46 = vld [vmem:[#allocation27_spill] sm:$0xff] }
 0x1f3   : > { %3351 = vperm.xlu1 %7969, %v2693_v6   ;;  %v7436_v38 = vadd.f32 %v7435_v55, %v7117_v26  ;;  %6844 = vperm.xlu0 %7968, %v6210_v5   ;;  %v6211_v6 = vld [vmem:[%s13827_s3 + $0x3b8] sm:$0xff]  ;;  %v4559_v5 = vadd.f32 1.0, %v8112_v63  ;;  %v4878_v26 = vmul.f32 %v4558_v35, %v11063_v52  ;;  %v7120_v55 = vmul.f32 %v11071_v49, %v4877_v3  ;;  %v6212_v52 = vld [vmem:[%s13827_s3 + $0x3c0] sm:$0xff]  ;;  %v11263_v35 = vpop.f32.mrf.mxu1 }
 0x1f4   : > { %v4561_v59 = vadd.f32 1.0, %v8116_v56  ;;  %v2333_v18 = vmul.f32 0.5, %v10414_v61  ;;  %14200 = vst [vmem:[#allocation122_spill] sm:$0xff] %v11263_v35  ;;  %8131 = vtanh.f32 %v11230_v32  ;;  %v11270_v61 = vadd.f32 %v14199_v46, %v2332_v23 }
 0x1f5   : > { %v7437_v60 = vadd.f32 %v7436_v38, %v7118_v7  ;;  %v11255_v38 = vadd.f32 %v14199_v46, %v2331_v54  ;;  %v11258_v7 = vpop.permute.xlu1 %6464  ;;  %v7121_v3 = vmul.f32 %v11071_v49, %v4878_v26  ;;  %v4880_v54 = vmul.f32 %v4560_v48, %v11089_v13  ;;  %v2696_v13 = vld [vmem:[%s13826_s2 + $0x3f8] sm:$0xff] }
 0x1f6   : > { %v2334_v56 = vmul.f32 0.5, %v10425_v51  ;;  %v4562_v35 = vadd.f32 1.0, %v8118_v21  ;;  %8133 = vtanh.f32 %v11243_v36  ;;  %v4881_v48 = vmul.f32 %v4561_v59, %v11104_v50  ;;  %v14201_v51 = vld [vmem:[#allocation30_spill] sm:$0xff] }
 0x1f7   : > { %3356 = vperm.xlu1 %7969, %v2694_v17   ;;  %v7438_v63 = vadd.f32 %v7437_v60, %v7119_v29  ;;  %6849 = vperm.xlu0 %7968, %v6211_v6   ;;  %v4879_v17 = vmul.f32 %v4559_v5, %v11083_v2  ;;  %v8120_v6 = vpop.eup %8119  ;;  %v11273_v29 = vpop.permute.xlu0 %6459  ;;  %v11284_v23 = vadd.f32 %v14201_v51, %v2333_v18  ;;  %v2335_v26 = vmul.f32 0.5, %v10439_v1 }
 0x1f8   : > { %v11275_v60 = vpop.f32.mrf.mxu0  ;;  %v8122_v5 = vpop.eup %8121  ;;  %8135 = vtanh.f32 %v11255_v38  ;;  %v7123_v21 = vmul.f32 %v11135_v44, %v4880_v54  ;;  %v11296_v50 = vadd.f32 %v14201_v51, %v2334_v56  ;;  %v2336_v1 = vmul.f32 0.5, %v10452_v58  ;;  %v14203_v58 = vld [vmem:[#allocation29_spill] sm:$0xff] }
 0x1f9   : > { %v7439_v25 = vadd.f32 %v7438_v63, %v7120_v55  ;;  %v7122_v49 = vmul.f32 %v11135_v44, %v4879_v17  ;;  %v6213_v55 = vld [vmem:[%s13827_s3 + $0x3c8] sm:$0xff]  ;;  %v11290_v63 = vpop.f32.mrf.mxu1  ;;  %8137 = vtanh.f32 %v11270_v61  ;;  %v11299_v59 = vpop.permute.xlu1 %6474  ;;  %v4882_v17 = vmul.f32 %v4562_v35, %v11127_v31  ;;  %v6214_v31 = vld [vmem:[%s13827_s3 + $0x3d0] sm:$0xff] }
 0x1fa   : > { %14202 = vst [vmem:[#allocation125_spill] sm:$0xff] %v11290_v63  ;;  %v11301_v18 = vpop.f32.mrf.mxu0  ;;  %8139 = vtanh.f32 %v11284_v23  ;;  %v11310_v56 = vadd.f32 %v14203_v58, %v2335_v26  ;;  %v11324_v26 = vadd.f32 %v14203_v58, %v2336_v1 }
 0x1fb   : > { %3361 = vperm.xlu1 %7969, %v2695_v37   ;;  %v7440_v2 = vadd.f32 %v7439_v25, %v7121_v3  ;;  %6854 = vperm.xlu0 %7968, %v6212_v52   ;;  %v4563_v37 = vadd.f32 1.0, %v8120_v6  ;;  %v8124_v52 = vpop.eup %8123  ;;  %v4564_v3 = vadd.f32 1.0, %v8122_v5  ;;  %v7124_v25 = vmul.f32 %v11120_v15, %v4881_v48  ;;  %v2697_v6 = vld [vmem:[%s13826_s2 + $0x400] sm:$0xff]  ;;  %v11318_v35 = vpop.f32.mrf.mxu1 }
 0x1fc   : > { %v8126_v54 = vpop.eup %8125  ;;  %14204 = vst [vmem:[#allocation126_spill] sm:$0xff] %v11318_v35  ;;  %v4565_v5 = vadd.f32 1.0, %v8124_v52  ;;  %v7125_v48 = vmul.f32 %v11120_v15, %v4882_v17  ;;  %8141 = vtanh.f32 %v11296_v50  ;;  %v2698_v15 = vld [vmem:[%s13826_s2 + $0x408] sm:$0xff] }
 0x1fd   : > { %v7441_v46 = vadd.f32 %v7440_v2, %v7122_v49  ;;  %v2337_v2 = vmul.f32 0.5, %v10463_v9  ;;  %v11313_v49 = vpop.permute.xlu0 %6469  ;;  %v2338_v9 = vmul.f32 0.5, %v10474_v14  ;;  %v4566_v35 = vadd.f32 1.0, %v8126_v54  ;;  %v14205_v52 = vld [vmem:[#allocation32_spill] sm:$0xff]  ;;  %v11339_v17 = vpop.permute.xlu1 %6484 }
 0x1fe   : > { %8143 = vtanh.f32 %v11310_v56  ;;  %v2339_v14 = vmul.f32 0.5, %v10488_v24  ;;  %v2340_v24 = vmul.f32 0.5, %v10502_v33  ;;  %v14207_v33 = vld [vmem:[#allocation31_spill] sm:$0xff] }
 0x1ff   : > { %3366 = vperm.xlu1 %7969, %v2696_v13   ;;  %v7442_v44 = vadd.f32 %v7441_v46, %v7123_v21  ;;  %6859 = vperm.xlu0 %7968, %v6213_v55   ;;  %v4883_v13 = vmul.f32 %v4563_v37, %v11147_v62  ;;  %v8128_v55 = vpop.eup %8127  ;;  %v11327_v21 = vpop.f32.mrf.mxu0  ;;  %v4884_v46 = vmul.f32 %v4564_v3, %v11153_v27  ;;  %v6215_v27 = vld [vmem:[%s13827_s3 + $0x3d8] sm:$0xff]  ;;  %8145 = vtanh.f32 %v11324_v26 }
 0x200   : > { %v8130_v37 = vpop.eup %8129  ;;  %v11336_v1 = vadd.f32 %v14205_v52, %v2337_v2  ;;  %v11344_v3 = vpop.f32.mrf.mxu1  ;;  %v11350_v2 = vadd.f32 %v14205_v52, %v2338_v9  ;;  %v2341_v9 = vmul.f32 0.5, %v10513_v19  ;;  %v2342_v19 = vmul.f32 0.5, %v10524_v12 }
 0x201   : > { %v7443_v51 = vadd.f32 %v7442_v44, %v7124_v25  ;;  %v7126_v62 = vmul.f32 %v11186_v53, %v4883_v13  ;;  %14206 = vst [vmem:[#allocation19_spill] sm:$0xff] %v11344_v3  ;;  %v4885_v25 = vmul.f32 %v4565_v5, %v11166_v57  ;;  %v4567_v44 = vadd.f32 1.0, %v8128_v55  ;;  %v8132_v58 = vpop.eup %8131  ;;  %v11355_v13 = vpop.f32.mrf.mxu0 }
 0x202   : > { %v4568_v57 = vadd.f32 1.0, %v8130_v37  ;;  %8147 = vtanh.f32 %v11336_v1  ;;  %v11364_v55 = vadd.f32 %v14207_v33, %v2339_v14  ;;  %v11376_v14 = vadd.f32 %v14207_v33, %v2340_v24 }
 0x203   : > { %3371 = vperm.xlu1 %7969, %v2697_v6   ;;  %v7444_v63 = vadd.f32 %v7443_v51, %v7125_v48  ;;  %6864 = vperm.xlu0 %7968, %v6214_v31   ;;  %v7127_v6 = vmul.f32 %v11186_v53, %v4884_v46  ;;  %v11353_v31 = vpop.permute.xlu0 %6479  ;;  %v4886_v48 = vmul.f32 %v4566_v35, %v11183_v8  ;;  %v8134_v51 = vpop.eup %8133  ;;  %v6216_v8 = vld [vmem:[%s13827_s3 + $0x3e0] sm:$0xff]  ;;  %8149 = vtanh.f32 %v11350_v2 }
 0x204   : > { %v7128_v5 = vmul.f32 %v11169_v42, %v4885_v25  ;;  %v11370_v35 = vpop.f32.mrf.mxu1  ;;  %v4887_v46 = vmul.f32 %v4567_v44, %v11198_v0  ;;  %v11381_v25 = vpop.f32.mrf.mxu0  ;;  %v4888_v0 = vmul.f32 %v4568_v57, %v11215_v11  ;;  %v4570_v44 = vadd.f32 1.0, %v8134_v51 }
 0x205   : > { %v7445_v54 = vadd.f32 %v7444_v63, %v7126_v62  ;;  %v2699_v63 = vld [vmem:[%s13826_s2 + $0x410] sm:$0xff]  ;;  %14208 = vst [vmem:[#allocation129_spill] sm:$0xff] %v11370_v35  ;;  %v4569_v62 = vadd.f32 1.0, %v8132_v58  ;;  %v8136_v52 = vpop.eup %8135  ;;  %8151 = vtanh.f32 %v11364_v55  ;;  %v2343_v12 = vmul.f32 0.5, %v10538_v34 }
 0x206   : > { %v14209_v58 = vld [vmem:[#allocation34_spill] sm:$0xff]  ;;  %v4571_v11 = vadd.f32 1.0, %v8136_v52  ;;  %v7131_v57 = vmul.f32 %v11233_v47, %v4888_v0  ;;  %8153 = vtanh.f32 %v11376_v14  ;;  %v2345_v52 = vmul.f32 0.5, %v10564_v20 }
 0x207   : > { %3376 = vperm.xlu1 %7969, %v2698_v15   ;;  %v7446_v53 = vadd.f32 %v7445_v54, %v7127_v6  ;;  %6869 = vperm.xlu0 %7968, %v6215_v27   ;;  %v7129_v15 = vmul.f32 %v11169_v42, %v4886_v48  ;;  %v11379_v27 = vpop.permute.xlu1 %6494  ;;  %v8138_v6 = vpop.eup %8137  ;;  %v7130_v42 = vmul.f32 %v11233_v47, %v4887_v46  ;;  %v14211_v47 = vld [vmem:[#allocation33_spill] sm:$0xff] }
 0x208   : > { %v11387_v24 = vadd.f32 %v14209_v58, %v2341_v9  ;;  %v11390_v48 = vpop.permute.xlu0 %6489  ;;  %v11398_v33 = vadd.f32 %v14209_v58, %v2342_v19  ;;  %v2344_v9 = vmul.f32 0.5, %v10553_v41  ;;  %v4890_v46 = vmul.f32 %v4570_v44, %v11243_v36 }
 0x209   : > { %v7447_v37 = vadd.f32 %v7446_v53, %v7128_v5  ;;  %v8140_v5 = vpop.eup %8139  ;;  %v11392_v53 = vpop.f32.mrf.mxu1  ;;  %v2346_v58 = vmul.f32 0.5, %v10579_v4 }
 0x20a   : > { %14210 = vst [vmem:[#allocation22_spill] sm:$0xff] %v11392_v53  ;;  %v8142_v34 = vpop.eup %8141  ;;  %8155 = vtanh.f32 %v11387_v24  ;;  %v7133_v36 = vmul.f32 %v11218_v40, %v4890_v46  ;;  %v11418_v44 = vadd.f32 %v14211_v47, %v2344_v9  ;;  %v14214_v9 = vld [vmem:[#allocation4_spill] sm:$0xff] }
 0x20b   : > { %3381 = vperm.xlu1 %7969, %v2699_v63   ;;  %v7448_v54 = vadd.f32 %v7447_v37, %v7129_v15  ;;  %6874 = vperm.xlu0 %7968, %v6216_v8   ;;  %v4889_v63 = vmul.f32 %v4569_v62, %v11230_v32  ;;  %v11401_v8 = vpop.f32.mrf.mxu0  ;;  %v4572_v15 = vadd.f32 1.0, %v8138_v6  ;;  %v11407_v62 = vadd.f32 %v14211_v47, %v2343_v12  ;;  %v11410_v19 = vpop.permute.xlu1 %6504 }
 0x20c   : > { %v8144_v0 = vpop.eup %8143  ;;  %v11412_v41 = vpop.f32.mrf.mxu1  ;;  %8157 = vtanh.f32 %v11398_v33  ;;  %v2347_v46 = vmul.f32 0.5, %v14214_v9 }
 0x20d   : > { %v7449_v51 = vadd.f32 %v7448_v54, %v7130_v42  ;;  %v7132_v37 = vmul.f32 %v11218_v40, %v4889_v63  ;;  %14212 = vst [vmem:[#allocation130_spill] sm:$0xff] %v11412_v41  ;;  %v4891_v54 = vmul.f32 %v4571_v11, %v11255_v38  ;;  %v4573_v42 = vadd.f32 1.0, %v8140_v5  ;;  %v11421_v12 = vpop.permute.xlu0 %6499  ;;  %v11423_v20 = vpop.f32.mrf.mxu0  ;;  %v14213_v40 = vld [vmem:[#allocation36_spill] sm:$0xff] }
 0x20e   : > { %v8146_v63 = vpop.eup %8145  ;;  %8159 = vtanh.f32 %v11407_v62  ;;  %v11429_v11 = vadd.f32 %v14213_v40, %v2345_v52  ;;  %v11432_v4 = vpop.f32.mrf.mxu1  ;;  %v4575_v47 = vadd.f32 1.0, %v8144_v0 }
 0x20f   : > { %v7450_v32 = vadd.f32 %v7449_v51, %v7131_v57  ;;  %v4892_v57 = vmul.f32 %v4572_v15, %v11270_v61  ;;  %v4574_v51 = vadd.f32 1.0, %v8142_v34  ;;  %v7134_v5 = vmul.f32 %v11273_v29, %v4891_v54  ;;  %14215 = vst [vmem:[#allocation133_spill] sm:$0xff] %v11432_v4  ;;  %v14216_v54 = vld [vmem:[#allocation6_spill] sm:$0xff]  ;;  %v14220_v4 = vld [vmem:[#allocation71_spill] sm:$0xff] }
 0x210   : > { %v4576_v34 = vadd.f32 1.0, %v8146_v63  ;;  %8161 = vtanh.f32 %v11418_v44  ;;  %v11438_v15 = vadd.f32 %v14213_v40, %v2346_v58  ;;  %v2348_v52 = vmul.f32 0.5, %v14216_v54  ;;  %v14218_v63 = vld [vmem:[#allocation67_spill] sm:$0xff] }
 0x211   : > { %v7451_v6 = vadd.f32 %v7450_v32, %v7132_v37  ;;  %v8148_v37 = vpop.eup %8147  ;;  %v4893_v32 = vmul.f32 %v4573_v42, %v11284_v23  ;;  %v7135_v41 = vmul.f32 %v11273_v29, %v4892_v57  ;;  %v4894_v53 = vmul.f32 %v4574_v51, %v11296_v50  ;;  %v14217_v29 = vld [vmem:[#allocation35_spill] sm:$0xff]  ;;  %v11452_v57 = vpop.permute.xlu0 %6509 }
 0x212   : > { %v8150_v9 = vpop.eup %8149  ;;  %8163 = vtanh.f32 %v11429_v11  ;;  %v11449_v42 = vadd.f32 %v14217_v29, %v2347_v46  ;;  %v2349_v58 = vmul.f32 0.5, %v14218_v63  ;;  %v4895_v40 = vmul.f32 %v4575_v47, %v11310_v56 }
 0x213   : > { %v7452_v38 = vadd.f32 %v7451_v6, %v7133_v36  ;;  %v11441_v36 = vpop.permute.xlu1 %6514  ;;  %v11443_v6 = vpop.f32.mrf.mxu0  ;;  %v7136_v23 = vmul.f32 %v11258_v7, %v4893_v32  ;;  %v4577_v54 = vadd.f32 1.0, %v8148_v37  ;;  %v7137_v50 = vmul.f32 %v11258_v7, %v4894_v53  ;;  %v14221_v7 = vld [vmem:[#allocation38_spill] sm:$0xff] }
 0x214   : > { %8165 = vtanh.f32 %v11438_v15  ;;  %v11461_v46 = vadd.f32 %v14217_v29, %v2348_v52  ;;  %v4578_v63 = vadd.f32 1.0, %v8150_v9  ;;  %v2350_v35 = vmul.f32 0.5, %v14220_v4 }
 0x215   : > { %v7453_v61 = vadd.f32 %v7452_v38, %v7134_v5  ;;  %v8152_v38 = vpop.eup %8151  ;;  %v11454_v5 = vpop.f32.mrf.mxu1  ;;  %v7138_v56 = vmul.f32 %v11313_v49, %v4895_v40  ;;  %8167 = vtanh.f32 %v11449_v42  ;;  %v11469_v53 = vadd.f32 %v14221_v7, %v2349_v58  ;;  %v14224_v40 = vld [vmem:[#allocation75_spill] sm:$0xff] }
 0x216   : > { %14219 = vst [vmem:[#allocation134_spill] sm:$0xff] %v11454_v5  ;;  %v11463_v32 = vpop.f32.mrf.mxu0  ;;  %v4579_v9 = vadd.f32 1.0, %v8152_v38  ;;  %8169 = vtanh.f32 %v11461_v46  ;;  %v11480_v58 = vpop.permute.xlu0 %6519  ;;  %v4898_v3 = vmul.f32 %v4578_v63, %v11350_v2 }
 0x217   : > { %v7454_v0 = vadd.f32 %v7453_v61, %v7135_v41  ;;  %v4896_v41 = vmul.f32 %v4576_v34, %v11324_v26  ;;  %v8154_v61 = vpop.eup %8153  ;;  %v14222_v26 = vld [vmem:[#allocation74_spill] sm:$0xff]  ;;  %v11472_v47 = vpop.permute.xlu1 %6524  ;;  %8171 = vtanh.f32 %v11469_v53 }
 0x218   : > { %v2351_v37 = vmul.f32 0.5, %v14222_v26  ;;  %v8156_v34 = vpop.eup %8155  ;;  %v11474_v52 = vpop.f32.mrf.mxu1  ;;  %v4580_v29 = vadd.f32 1.0, %v8154_v61  ;;  %v7141_v2 = vmul.f32 %v11299_v59, %v4898_v3 }
 0x219   : > { %v7455_v51 = vadd.f32 %v7454_v0, %v7136_v23  ;;  %14223 = vst [vmem:[#allocation21_spill] sm:$0xff] %v11474_v52  ;;  %v4897_v23 = vmul.f32 %v4577_v54, %v11336_v1  ;;  %v7139_v4 = vmul.f32 %v11313_v49, %v4896_v41  ;;  %v8158_v26 = vpop.eup %8157  ;;  %v11486_v52 = vadd.f32 %v14221_v7, %v2350_v35 }
 0x21a   : > { %v4581_v49 = vadd.f32 1.0, %v8156_v34  ;;  %v11493_v61 = vpop.f32.mrf.mxu1  ;;  %v4900_v63 = vmul.f32 %v4580_v29, %v11376_v14  ;;  %v4582_v7 = vadd.f32 1.0, %v8158_v26  ;;  %v11511_v14 = vpop.permute.xlu0 %6529  ;;  %v14230_v26 = vld [vmem:[#allocation40_spill] sm:$0xff] }
 0x21b   : > { %v7456_v5 = vadd.f32 %v7455_v51, %v7137_v50  ;;  %v2352_v50 = vmul.f32 0.5, %v14224_v40  ;;  %v11482_v51 = vpop.f32.mrf.mxu0  ;;  %v7140_v1 = vmul.f32 %v11299_v59, %v4897_v23  ;;  %v8160_v41 = vpop.eup %8159  ;;  %14226 = vst [vmem:[#allocation137_spill] sm:$0xff] %v11493_v61  ;;  %v14227_v40 = vld [vmem:[#allocation7_spill] sm:$0xff]  ;;  %8173 = vtanh.f32 %v11486_v52 }
 0x21c   : > { %v2353_v28 = vmul.f32 0.5, %v14227_v40  ;;  %v11502_v23 = vpop.permute.xlu1 %6534  ;;  %v4901_v59 = vmul.f32 %v4581_v49, %v11387_v24  ;;  %v4583_v3 = vadd.f32 1.0, %v8160_v41  ;;  %v14232_v24 = vld [vmem:[#allocation9_spill] sm:$0xff]  ;;  %v4902_v61 = vmul.f32 %v4582_v7, %v11398_v33 }
 0x21d   : > { %v7457_v0 = vadd.f32 %v7456_v5, %v7138_v56  ;;  %v14225_v5 = vld [vmem:[#allocation37_spill] sm:$0xff]  ;;  %v4899_v56 = vmul.f32 %v4579_v9, %v11364_v55  ;;  %v2356_v49 = vmul.f32 0.5, %v14232_v24 }
 0x21e   : > { %v11491_v54 = vadd.f32 %v14225_v5, %v2351_v37  ;;  %v11500_v34 = vadd.f32 %v14225_v5, %v2352_v50  ;;  %v11504_v37 = vpop.f32.mrf.mxu0  ;;  %v11513_v50 = vpop.f32.mrf.mxu1  ;;  %v4903_v33 = vmul.f32 %v4583_v3, %v11407_v62 }
 0x21f   : > { %v7458_v38 = vadd.f32 %v7457_v0, %v7139_v4  ;;  %v8162_v4 = vpop.eup %8161  ;;  %v14228_v0 = vld [vmem:[#allocation82_spill] sm:$0xff]  ;;  %v7142_v40 = vmul.f32 %v11353_v31, %v4899_v56  ;;  %14229 = vst [vmem:[#allocation24_spill] sm:$0xff] %v11513_v50 }
 0x220   : > { %v2354_v55 = vmul.f32 0.5, %v14228_v0  ;;  %8175 = vtanh.f32 %v11491_v54  ;;  %v8164_v29 = vpop.eup %8163  ;;  %v7143_v0 = vmul.f32 %v11353_v31, %v4900_v63  ;;  %v11522_v41 = vpop.f32.mrf.mxu0  ;;  %v724_v31 = vld [vmem:[%s13825_s1 + $0x4a8] sm:$0xff]  ;;  %v2700_v63 = vld [vmem:[%s13826_s2 + $0x418] sm:$0xff] }
 0x221   : > { %v7459_v35 = vadd.f32 %v7458_v38, %v7140_v1  ;;  %v11516_v1 = vadd.f32 %v14230_v26, %v2353_v28  ;;  %v14231_v38 = vld [vmem:[#allocation83_spill] sm:$0xff]  ;;  %8177 = vtanh.f32 %v11500_v34  ;;  %v8166_v56 = vpop.eup %8165  ;;  %v7144_v28 = vmul.f32 %v11339_v17, %v4901_v59  ;;  %7924 = vmatmul.mubr.msk.f32.gmra.mxu1 %vm738_vm1, %v724_v31  ;;  %3386 = vperm.xlu1 %7969, %v2700_v63   ;;  %v11555_v31 = vpop.permute.xlu0 %6539 }
 0x222   : > { %v2355_v5 = vmul.f32 0.5, %v14231_v38  ;;  %v11526_v50 = vadd.f32 %v14230_v26, %v2354_v55  ;;  %v4585_v7 = vadd.f32 1.0, %v8164_v29  ;;  %v14233_v55 = vld [vmem:[#allocation90_spill] sm:$0xff]  ;;  %v8168_v59 = vpop.eup %8167  ;;  %v11543_v26 = vpop.f32.mrf.mxu1  ;;  %v14235_v38 = vld [vmem:[#allocation39_spill] sm:$0xff]  ;;  %2188 = vmatprep.mubr.f32.mxu1 %v13977_v10  ;;  %v4586_v3 = vadd.f32 1.0, %v8166_v56 }
 0x223   : > { %v7460_v9 = vadd.f32 %v7459_v35, %v7141_v2  ;;  %v4584_v35 = vadd.f32 1.0, %v8162_v4  ;;  %v6217_v4 = vld [vmem:[%s13827_s3 + $0x3e8] sm:$0xff]  ;;  %14234 = vst [vmem:[#allocation138_spill] sm:$0xff] %v11543_v26  ;;  %8179 = vtanh.f32 %v11516_v1  ;;  %v11553_v29 = vadd.f32 %v14235_v38, %v2356_v49  ;;  %v11557_v63 = vpop.f32.mrf.mxu0 }
 0x224   : > { %6879 = vperm.xlu0 %7968, %v6217_v4   ;;  %14236 = vst [vmem:[#allocation140_spill] sm:$0xff] %v11557_v63  ;;  %8181 = vtanh.f32 %v11526_v50  ;;  %v4905_v49 = vmul.f32 %v4585_v7, %v11429_v11  ;;  %v4587_v56 = vadd.f32 1.0, %v8168_v59  ;;  %v14241_v7 = vld [vmem:[#allocation98_spill] sm:$0xff] }
 0x225   : > { %v7461_v2 = vadd.f32 %v7460_v9, %v7142_v40  ;;  %v2357_v9 = vmul.f32 0.5, %v14233_v55  ;;  %v11540_v40 = vpop.permute.xlu1 %6544  ;;  %v4904_v62 = vmul.f32 %v4584_v35, %v11418_v44  ;;  %v8170_v55 = vpop.eup %8169  ;;  %v725_v44 = vld [vmem:[%s13825_s1 + $0x4b0] sm:$0xff] }
 0x226   : > { %v6218_v35 = vld [vmem:[%s13827_s3 + $0x3f0] sm:$0xff]  ;;  %7925 = vmatmul.mubr.msk.f32.gmra.mxu1 %vm738_vm1, %v725_v44  ;;  %v4588_v11 = vadd.f32 1.0, %v8170_v55  ;;  %v11586_v44 = vpop.f32.mrf.mxu0 }
 0x227   : > { %v7462_v22 = vadd.f32 %v7461_v2, %v7143_v0  ;;  %v11547_v0 = vadd.f32 %v14235_v38, %v2355_v5  ;;  %v7145_v2 = vmul.f32 %v11339_v17, %v4902_v61  ;;  %v14237_v5 = vld [vmem:[#allocation91_spill] sm:$0xff]  ;;  %v11576_v38 = vpop.f32.mrf.mxu1  ;;  %2194 = vmatprep.mubr.f32.mxu1 %v13977_v10  ;;  %14243 = vst [vmem:[#allocation142_spill] sm:$0xff] %v11586_v44 }
 0x228   : > { %v2358_v26 = vmul.f32 0.5, %v14237_v5  ;;  %v2701_v61 = vld [vmem:[%s13826_s2 + $0x420] sm:$0xff]  ;;  %14239 = vst [vmem:[#allocation141_spill] sm:$0xff] %v11576_v38  ;;  %v7147_v5 = vmul.f32 %v11390_v48, %v4904_v62  ;;  %6884 = vperm.xlu0 %7968, %v6218_v35   ;;  %v11595_v35 = vpop.permute.xlu0 %6549 }
 0x229   : > { %v7463_v24 = vadd.f32 %v7462_v22, %v7144_v28  ;;  %v7146_v22 = vmul.f32 %v11390_v48, %v4903_v33  ;;  %v14238_v28 = vld [vmem:[#allocation42_spill] sm:$0xff]  ;;  %3391 = vperm.xlu1 %7969, %v2701_v61   ;;  %v8172_v33 = vpop.eup %8171  ;;  %8183 = vtanh.f32 %v11547_v0  ;;  %v11584_v59 = vpop.permute.xlu1 %6554  ;;  %v4906_v61 = vmul.f32 %v4586_v3, %v11438_v15  ;;  %v14246_v15 = vld [vmem:[#allocation99_spill] sm:$0xff] }
 0x22a   : > { %v11573_v4 = vadd.f32 %v14238_v28, %v2357_v9  ;;  %8185 = vtanh.f32 %v11553_v29  ;;  %v2360_v9 = vmul.f32 0.5, %v14241_v7  ;;  %14242 = vst [vmem:[#allocation23_spill] sm:$0xff] %v11584_v59  ;;  %v11590_v38 = vadd.f32 %v14238_v28, %v2358_v26  ;;  %v11597_v7 = vpop.f32.mrf.mxu1  ;;  %v14245_v59 = vld [vmem:[#allocation41_spill] sm:$0xff] }
 0x22b   : > { %v7464_v17 = vadd.f32 %v7463_v24, %v7145_v2  ;;  %v14240_v2 = vld [vmem:[#allocation95_spill] sm:$0xff]  ;;  %v7148_v48 = vmul.f32 %v11379_v27, %v4905_v49  ;;  %v4589_v55 = vadd.f32 1.0, %v8172_v33  ;;  %14244 = vst [vmem:[#allocation26_spill] sm:$0xff] %v11597_v7  ;;  %v2361_v26 = vmul.f32 0.5, %v14246_v15  ;;  %v11609_v33 = vpop.f32.mrf.mxu0 }
 0x22c   : > { %v2359_v24 = vmul.f32 0.5, %v14240_v2  ;;  %8187 = vtanh.f32 %v11573_v4  ;;  %v7149_v3 = vmul.f32 %v11379_v27, %v4906_v61  ;;  %v14248_v61 = vld [vmem:[#allocation106_spill] sm:$0xff] }
 0x22d   : > { %v7465_v43 = vadd.f32 %v7464_v17, %v7146_v22  ;;  %v8174_v17 = vpop.eup %8173  ;;  %v4907_v22 = vmul.f32 %v4587_v56, %v11449_v42  ;;  %v11606_v42 = vadd.f32 %v14245_v59, %v2360_v9  ;;  %v14247_v56 = vld [vmem:[#allocation103_spill] sm:$0xff]  ;;  %8189 = vtanh.f32 %v11590_v38  ;;  %v14251_v9 = vld [vmem:[#allocation44_spill] sm:$0xff] }
 0x22e   : > { %v8176_v2 = vpop.eup %8175  ;;  %v11600_v44 = vadd.f32 %v14245_v59, %v2359_v24  ;;  %v2362_v28 = vmul.f32 0.5, %v14247_v56  ;;  %v4590_v63 = vadd.f32 1.0, %v8174_v17  ;;  %v4909_v15 = vmul.f32 %v4589_v55, %v11469_v53  ;;  %v11631_v56 = vpop.f32.mrf.mxu0 }
 0x22f   : > { %v7466_v62 = vadd.f32 %v7465_v43, %v7147_v5  ;;  %v4908_v43 = vmul.f32 %v4588_v11, %v11461_v46  ;;  %v8178_v5 = vpop.eup %8177  ;;  %v7150_v7 = vmul.f32 %v11421_v12, %v4907_v22  ;;  %v4591_v27 = vadd.f32 1.0, %v8176_v2  ;;  %v11615_v46 = vpop.permute.xlu1 %6564  ;;  %v14252_v22 = vld [vmem:[#allocation107_spill] sm:$0xff] }
 0x230   : > { %14249 = vst [vmem:[#allocation143_spill] sm:$0xff] %v11615_v46  ;;  %v11617_v11 = vpop.f32.mrf.mxu1  ;;  %8191 = vtanh.f32 %v11600_v44  ;;  %v11621_v59 = vadd.f32 %v14251_v9, %v2361_v26  ;;  %v11626_v53 = vadd.f32 %v14251_v9, %v2362_v28  ;;  %v2364_v55 = vmul.f32 0.5, %v14252_v22  ;;  %v11629_v2 = vpop.permute.xlu0 %6559 }
 0x231   : > { %v7467_v49 = vadd.f32 %v7466_v62, %v7148_v48  ;;  %v2363_v48 = vmul.f32 0.5, %v14248_v61  ;;  %14250 = vst [vmem:[#allocation25_spill] sm:$0xff] %v11617_v11  ;;  %v7151_v62 = vmul.f32 %v11421_v12, %v4908_v43  ;;  %8193 = vtanh.f32 %v11606_v42  ;;  %14253 = vst [vmem:[#allocation28_spill] sm:$0xff] %v11629_v2  ;;  %v14254_v43 = vld [vmem:[#allocation43_spill] sm:$0xff] }
 0x232   : > { %v4910_v61 = vmul.f32 %v4590_v63, %v11486_v52  ;;  %v7152_v26 = vmul.f32 %v11410_v19, %v4909_v15  ;;  %v11640_v9 = vpop.f32.mrf.mxu1  ;;  %8195 = vtanh.f32 %v11621_v59 }
 0x233   : > { %v7468_v24 = vadd.f32 %v7467_v49, %v7149_v3  ;;  %v8180_v3 = vpop.eup %8179  ;;  %v4592_v49 = vadd.f32 1.0, %v8178_v5  ;;  %v11637_v5 = vadd.f32 %v14254_v43, %v2363_v48  ;;  %14256 = vst [vmem:[#allocation27_spill] sm:$0xff] %v11640_v9  ;;  %8197 = vtanh.f32 %v11626_v53  ;;  %v11649_v15 = vpop.permute.xlu1 %6574 }
 0x234   : > { %v8182_v12 = vpop.eup %8181  ;;  %v4593_v22 = vadd.f32 1.0, %v8180_v3  ;;  %v7153_v46 = vmul.f32 %v11410_v19, %v4910_v61  ;;  %14257 = vst [vmem:[#allocation30_spill] sm:$0xff] %v11649_v15 }
 0x235   : > { %v7469_v17 = vadd.f32 %v7468_v24, %v7150_v7  ;;  %v4911_v7 = vmul.f32 %v4591_v27, %v11491_v54  ;;  %v14255_v24 = vld [vmem:[#allocation15_spill] sm:$0xff]  ;;  %v4912_v63 = vmul.f32 %v4592_v49, %v11500_v34  ;;  %v11647_v54 = vadd.f32 %v14254_v43, %v2364_v55  ;;  %v11651_v27 = vpop.f32.mrf.mxu0  ;;  %v14260_v49 = vld [vmem:[#allocation117_spill] sm:$0xff]  ;;  %v11660_v55 = vpop.permute.xlu0 %6569 }
 0x236   : > { %v2365_v28 = vmul.f32 0.5, %v14255_v24  ;;  %v8184_v52 = vpop.eup %8183  ;;  %8199 = vtanh.f32 %v11637_v5  ;;  %v2367_v61 = vmul.f32 0.5, %v14260_v49  ;;  %14261 = vst [vmem:[#allocation29_spill] sm:$0xff] %v11660_v55  ;;  %v11662_v43 = vpop.f32.mrf.mxu1  ;;  %v4913_v9 = vmul.f32 %v4593_v22, %v11516_v1 }
 0x237   : > { %v7470_v11 = vadd.f32 %v7469_v17, %v7151_v62  ;;  %v8186_v48 = vpop.eup %8185  ;;  %v4594_v62 = vadd.f32 1.0, %v8182_v12  ;;  %v14258_v17 = vld [vmem:[#allocation18_spill] sm:$0xff]  ;;  %v7154_v19 = vmul.f32 %v11452_v57, %v4911_v7  ;;  %14262 = vst [vmem:[#allocation32_spill] sm:$0xff] %v11662_v43  ;;  %v4595_v12 = vadd.f32 1.0, %v8184_v52 }
 0x238   : > { %v2366_v3 = vmul.f32 0.5, %v14258_v17  ;;  %v7155_v17 = vmul.f32 %v11452_v57, %v4912_v63  ;;  %8201 = vtanh.f32 %v11647_v54  ;;  %v2368_v7 = vmul.f32 0.5, %v11156_v16  ;;  %v14263_v57 = vld [vmem:[#allocation45_spill] sm:$0xff]  ;;  %v11680_v63 = vpop.permute.xlu1 %6584  ;;  %v11682_v16 = vpop.f32.mrf.mxu1 }
 0x239   : > { %v7471_v2 = vadd.f32 %v7470_v11, %v7152_v26  ;;  %v14259_v11 = vld [vmem:[#allocation46_spill] sm:$0xff]  ;;  %v8188_v26 = vpop.eup %8187  ;;  %v4914_v49 = vmul.f32 %v4594_v62, %v11526_v50  ;;  %v7156_v43 = vmul.f32 %v11441_v36, %v4913_v9  ;;  %v11677_v22 = vadd.f32 %v14263_v57, %v2367_v61  ;;  %14264 = vst [vmem:[#allocation31_spill] sm:$0xff] %v11682_v16  ;;  %v11691_v61 = vpop.permute.xlu0 %6579 }
 0x23a   : > { %v11657_v34 = vadd.f32 %v14259_v11, %v2365_v28  ;;  %v11668_v28 = vpop.f32.mrf.mxu0  ;;  %v11672_v15 = vadd.f32 %v14259_v11, %v2366_v3  ;;  %v8190_v1 = vpop.eup %8189  ;;  %v2369_v52 = vmul.f32 0.5, %v11188_v39  ;;  %v4915_v50 = vmul.f32 %v4595_v12, %v11547_v0 }
 0x23b   : > { %v7472_v24 = vadd.f32 %v7471_v2, %v7153_v46  ;;  %v4596_v2 = vadd.f32 1.0, %v8186_v48  ;;  %v4597_v48 = vadd.f32 1.0, %v8188_v26  ;;  %v7157_v62 = vmul.f32 %v11441_v36, %v4914_v49  ;;  %v14265_v26 = vld [vmem:[#allocation48_spill] sm:$0xff] }
 0x23c   : > { %8203 = vtanh.f32 %v11657_v34  ;;  %v2370_v11 = vmul.f32 0.5, %v11220_v30  ;;  %v11693_v39 = vpop.f32.mrf.mxu0  ;;  %v7158_v36 = vmul.f32 %v11480_v58, %v4915_v50  ;;  %v6219_v30 = vld [vmem:[%s13827_s3 + $0x3f8] sm:$0xff]  ;;  %v2371_v12 = vmul.f32 0.5, %v11246_v45 }
 0x23d   : > { %v7473_v46 = vadd.f32 %v7472_v24, %v7154_v19  ;;  %v8192_v9 = vpop.eup %8191  ;;  %v4916_v24 = vmul.f32 %v4596_v2, %v11553_v29  ;;  %v11688_v19 = vadd.f32 %v14263_v57, %v2368_v7  ;;  %8205 = vtanh.f32 %v11672_v15  ;;  %v726_v29 = vld [vmem:[%s13825_s1 + $0x4b8] sm:$0xff]  ;;  %v11712_v2 = vpop.f32.mrf.mxu1  ;;  %6889 = vperm.xlu0 %7968, %v6219_v30  }
 0x23e   : > { %8207 = vtanh.f32 %v11677_v22  ;;  %7926 = vmatmul.mubr.msk.f32.gmra.mxu1 %vm738_vm1, %v726_v29  ;;  %v4917_v7 = vmul.f32 %v4597_v48, %v11573_v4  ;;  %v4599_v49 = vadd.f32 1.0, %v8192_v9  ;;  %v11719_v45 = vadd.f32 %v14265_v26, %v2370_v11  ;;  %v11724_v29 = vpop.permute.xlu1 %6594 }
 0x23f   : > { %v7474_v55 = vadd.f32 %v7473_v46, %v7155_v17  ;;  %v8194_v17 = vpop.eup %8193  ;;  %v4598_v46 = vadd.f32 1.0, %v8190_v1  ;;  %v7159_v1 = vmul.f32 %v11480_v58, %v4916_v24  ;;  %2200 = vmatprep.mubr.f32.mxu1 %v13977_v10  ;;  %8209 = vtanh.f32 %v11688_v19  ;;  %v14266_v24 = vld [vmem:[#allocation47_spill] sm:$0xff] }
 0x240   : > { %v8196_v50 = vpop.eup %8195  ;;  %v7160_v48 = vmul.f32 %v11472_v47, %v4917_v7  ;;  %v2373_v11 = vmul.f32 0.5, %v11301_v18 }
 0x241   : > { %v7475_v3 = vadd.f32 %v7474_v55, %v7156_v43  ;;  %v2702_v55 = vld [vmem:[%s13826_s2 + $0x428] sm:$0xff]  ;;  %v11708_v43 = vadd.f32 %v14265_v26, %v2369_v52  ;;  %v2372_v52 = vmul.f32 0.5, %v11275_v60  ;;  %v8198_v4 = vpop.eup %8197  ;;  %v4918_v58 = vmul.f32 %v4598_v46, %v11590_v38 }
 0x242   : > { %3396 = vperm.xlu1 %7969, %v2702_v55   ;;  %v4919_v55 = vmul.f32 %v4599_v49, %v11600_v44  ;;  %v4601_v30 = vadd.f32 1.0, %v8196_v50  ;;  %v6220_v49 = vld [vmem:[%s13827_s3 + $0x400] sm:$0xff] }
 0x243   : > { %v7476_v0 = vadd.f32 %v7475_v3, %v7157_v62  ;;  %v4600_v62 = vadd.f32 1.0, %v8194_v17  ;;  %v11722_v3 = vpop.f32.mrf.mxu0  ;;  %8211 = vtanh.f32 %v11708_v43  ;;  %v11730_v17 = vadd.f32 %v14266_v24, %v2371_v12  ;;  %v8200_v60 = vpop.eup %8199  ;;  %6894 = vperm.xlu0 %7968, %v6220_v49  }
 0x244   : > { %v7161_v38 = vmul.f32 %v11472_v47, %v4918_v58  ;;  %8213 = vtanh.f32 %v11719_v45  ;;  %v11742_v12 = vadd.f32 %v14266_v24, %v2372_v52  ;;  %v7162_v44 = vmul.f32 %v11511_v14, %v4919_v55  ;;  %v727_v47 = vld [vmem:[%s13825_s1 + $0x4c0] sm:$0xff] }
 0x245   : > { %v7477_v57 = vadd.f32 %v7476_v0, %v7158_v36  ;;  %v11733_v0 = vpop.permute.xlu0 %6589  ;;  %v11735_v36 = vpop.f32.mrf.mxu1  ;;  %v4920_v26 = vmul.f32 %v4600_v62, %v11606_v42  ;;  %v2703_v42 = vld [vmem:[%s13826_s2 + $0x430] sm:$0xff]  ;;  %v4603_v50 = vadd.f32 1.0, %v8200_v60  ;;  %8215 = vtanh.f32 %v11730_v17  ;;  %7927 = vmatmul.mubr.msk.f32.gmra.mxu1 %vm738_vm1, %v727_v47 }
 0x246   : > { %14267 = vst [vmem:[#allocation34_spill] sm:$0xff] %v11735_v36  ;;  %v11744_v7 = vpop.f32.mrf.mxu0  ;;  %v8202_v18 = vpop.eup %8201  ;;  %v14268_v62 = vld [vmem:[#allocation50_spill] sm:$0xff]  ;;  %v2375_v52 = vmul.f32 0.5, %v11355_v13  ;;  %3401 = vperm.xlu1 %7969, %v2703_v42   ;;  %v2376_v24 = vmul.f32 0.5, %v11381_v25  ;;  %2206 = vmatprep.mubr.f32.mxu1 %v13977_v10  ;;  %8217 = vtanh.f32 %v11742_v12  ;;  %v2377_v13 = vmul.f32 0.5, %v11401_v8 }
 0x247   : > { %v7478_v9 = vadd.f32 %v7477_v57, %v7159_v1  ;;  %v4602_v1 = vadd.f32 1.0, %v8198_v4  ;;  %v2374_v57 = vmul.f32 0.5, %v11327_v21  ;;  %v11759_v21 = vadd.f32 %v14268_v62, %v2373_v11  ;;  %v11762_v4 = vpop.permute.xlu1 %6604 }
 0x248   : > { %v7163_v60 = vmul.f32 %v11511_v14, %v4920_v26  ;;  %v4604_v11 = vadd.f32 1.0, %v8202_v18  ;;  %v14270_v18 = vld [vmem:[#allocation49_spill] sm:$0xff] }
 0x249   : > { %v7479_v46 = vadd.f32 %v7478_v9, %v7160_v48  ;;  %v8204_v58 = vpop.eup %8203  ;;  %v11765_v48 = vpop.f32.mrf.mxu1  ;;  %v4921_v9 = vmul.f32 %v4601_v30, %v11621_v59  ;;  %v4922_v47 = vmul.f32 %v4602_v1, %v11626_v53  ;;  %v11779_v59 = vadd.f32 %v14268_v62, %v2374_v57 }
 0x24a   : > { %14269 = vst [vmem:[#allocation33_spill] sm:$0xff] %v11765_v48  ;;  %v4923_v30 = vmul.f32 %v4603_v50, %v11637_v5  ;;  %v4605_v26 = vadd.f32 1.0, %v8204_v58  ;;  %8219 = vtanh.f32 %v11759_v21  ;;  %v11785_v8 = vadd.f32 %v14270_v18, %v2375_v52  ;;  %v14272_v5 = vld [vmem:[#allocation52_spill] sm:$0xff] }
 0x24b   : > { %v7480_v36 = vadd.f32 %v7479_v46, %v7161_v38  ;;  %v11773_v38 = vpop.f32.mrf.mxu0  ;;  %v11775_v46 = vpop.permute.xlu0 %6599  ;;  %v7164_v25 = vmul.f32 %v11502_v23, %v4921_v9  ;;  %v11790_v53 = vadd.f32 %v14270_v18, %v2376_v24  ;;  %v2378_v1 = vmul.f32 0.5, %v11423_v20  ;;  %v14274_v18 = vld [vmem:[#allocation51_spill] sm:$0xff] }
 0x24c   : > { %v11787_v42 = vpop.f32.mrf.mxu1  ;;  %v7165_v57 = vmul.f32 %v11502_v23, %v4922_v47  ;;  %v4924_v62 = vmul.f32 %v4604_v11, %v11647_v54  ;;  %v11796_v50 = vadd.f32 %v14272_v5, %v2377_v13  ;;  %v2379_v58 = vmul.f32 0.5, %v11443_v6  ;;  %v11801_v9 = vpop.permute.xlu1 %6614  ;;  %v728_v23 = vld [vmem:[%s13825_s1 + $0x4c8] sm:$0xff]  ;;  %v2704_v54 = vld [vmem:[%s13826_s2 + $0x438] sm:$0xff] }
 0x24d   : > { %v7481_v55 = vadd.f32 %v7480_v36, %v7162_v44  ;;  %v8206_v36 = vpop.eup %8205  ;;  %14271 = vst [vmem:[#allocation36_spill] sm:$0xff] %v11787_v42  ;;  %v11799_v52 = vpop.f32.mrf.mxu0  ;;  %8221 = vtanh.f32 %v11779_v59  ;;  %v7166_v20 = vmul.f32 %v11555_v31, %v4923_v30  ;;  %v6221_v6 = vld [vmem:[%s13827_s3 + $0x408] sm:$0xff]  ;;  %v4925_v11 = vmul.f32 %v4605_v26, %v11657_v34  ;;  %7928 = vmatmul.mubr.msk.f32.gmra.mxu1 %vm738_vm1, %v728_v23 }
 0x24e   : > { %v8208_v44 = vpop.eup %8207  ;;  %8223 = vtanh.f32 %v11785_v8  ;;  %v2380_v47 = vmul.f32 0.5, %v11463_v32  ;;  %3406 = vperm.xlu1 %7969, %v2704_v54   ;;  %v11824_v30 = vadd.f32 %v14272_v5, %v2378_v1  ;;  %v7167_v34 = vmul.f32 %v11555_v31, %v4924_v62  ;;  %6899 = vperm.xlu0 %7968, %v6221_v6  }
 0x24f   : > { %v7482_v14 = vadd.f32 %v7481_v55, %v7163_v60  ;;  %v8210_v60 = vpop.eup %8209  ;;  %v4606_v55 = vadd.f32 1.0, %v8206_v36  ;;  %v4607_v13 = vadd.f32 1.0, %v8208_v44  ;;  %v11820_v36 = vpop.f32.mrf.mxu1  ;;  %8225 = vtanh.f32 %v11790_v53  ;;  %2212 = vmatprep.mubr.f32.mxu1 %v13977_v10 }
 0x250   : > { %14273 = vst [vmem:[#allocation4_spill] sm:$0xff] %v11820_v36  ;;  %v4608_v32 = vadd.f32 1.0, %v8210_v60  ;;  %8227 = vtanh.f32 %v11796_v50  ;;  %v11830_v44 = vadd.f32 %v14274_v18, %v2379_v58  ;;  %v2381_v1 = vmul.f32 0.5, %v11482_v51 }
 0x251   : > { %v7483_v49 = vadd.f32 %v7482_v14, %v7164_v25  ;;  %v11817_v25 = vpop.permute.xlu0 %6609  ;;  %v8212_v14 = vpop.eup %8211  ;;  %v4926_v23 = vmul.f32 %v4606_v55, %v11672_v15  ;;  %v7168_v5 = vmul.f32 %v11540_v40, %v4925_v11  ;;  %v4927_v62 = vmul.f32 %v4607_v13, %v11677_v22 }
 0x252   : > { %v11839_v60 = vadd.f32 %v14274_v18, %v2380_v47  ;;  %v11843_v54 = vpop.f32.mrf.mxu1  ;;  %8229 = vtanh.f32 %v11824_v30  ;;  %v2382_v51 = vmul.f32 0.5, %v11504_v37  ;;  %v4928_v6 = vmul.f32 %v4608_v32, %v11688_v19  ;;  %v729_v37 = vld [vmem:[%s13825_s1 + $0x4d0] sm:$0xff]  ;;  %v2705_v19 = vld [vmem:[%s13826_s2 + $0x440] sm:$0xff] }
 0x253   : > { %v7484_v24 = vadd.f32 %v7483_v49, %v7165_v57  ;;  %v11832_v57 = vpop.f32.mrf.mxu0  ;;  %v8214_v49 = vpop.eup %8213  ;;  %14275 = vst [vmem:[#allocation6_spill] sm:$0xff] %v11843_v54  ;;  %v7169_v15 = vmul.f32 %v11540_v40, %v4926_v23  ;;  %8231 = vtanh.f32 %v11830_v44  ;;  %v2383_v18 = vmul.f32 0.5, %v11522_v41  ;;  %v6222_v32 = vld [vmem:[%s13827_s3 + $0x410] sm:$0xff]  ;;  %7929 = vmatmul.mubr.msk.f32.gmra.mxu1 %vm738_vm1, %v729_v37  ;;  %3411 = vperm.xlu1 %7969, %v2705_v19  }
 0x254   : > { %v8216_v58 = vpop.eup %8215  ;;  %v4610_v11 = vadd.f32 1.0, %v8214_v49  ;;  %v7170_v40 = vmul.f32 %v11595_v35, %v4927_v62  ;;  %8233 = vtanh.f32 %v11839_v60  ;;  %6904 = vperm.xlu0 %7968, %v6222_v32   ;;  %2218 = vmatprep.mubr.f32.mxu1 %v13977_v10 }
 0x255   : > { %v7485_v26 = vadd.f32 %v7484_v24, %v7166_v20  ;;  %v4609_v24 = vadd.f32 1.0, %v8212_v14  ;;  %v11841_v20 = vpop.permute.xlu1 %6624  ;;  %v11850_v22 = vpop.f32.mrf.mxu0  ;;  %v14276_v14 = vld [vmem:[#allocation54_spill] sm:$0xff]  ;;  %v4611_v23 = vadd.f32 1.0, %v8216_v58 }
 0x256   : > { %v11852_v13 = vpop.permute.xlu0 %6619  ;;  %v8218_v47 = vpop.eup %8217  ;;  %v14279_v58 = vld [vmem:[#allocation142_spill] sm:$0xff] }
 0x257   : > { %v7486_v31 = vadd.f32 %v7485_v26, %v7167_v34  ;;  %v11855_v34 = vadd.f32 %v14276_v14, %v2381_v1  ;;  %v4929_v49 = vmul.f32 %v4609_v24, %v11708_v43  ;;  %v8220_v41 = vpop.eup %8219  ;;  %v11871_v1 = vpop.f32.mrf.mxu1  ;;  %v4930_v43 = vmul.f32 %v4610_v11, %v11719_v45 }
 0x258   : > { %14277 = vst [vmem:[#allocation35_spill] sm:$0xff] %v11871_v1  ;;  %v4612_v24 = vadd.f32 1.0, %v8218_v47  ;;  %v2385_v37 = vmul.f32 0.5, %v14279_v58  ;;  %v11881_v19 = vpop.f32.mrf.mxu0  ;;  %v4931_v32 = vmul.f32 %v4611_v23, %v11730_v17  ;;  %v2386_v45 = vmul.f32 0.5, %v11609_v33  ;;  %v14283_v17 = vld [vmem:[#allocation56_spill] sm:$0xff] }
 0x259   : > { %v7487_v55 = vadd.f32 %v7486_v31, %v7168_v5  ;;  %v11874_v5 = vadd.f32 %v14276_v14, %v2382_v51  ;;  %v7171_v31 = vmul.f32 %v11595_v35, %v4928_v6  ;;  %v11883_v54 = vpop.permute.xlu1 %6634  ;;  %8235 = vtanh.f32 %v11855_v34  ;;  %v14280_v51 = vld [vmem:[#allocation53_spill] sm:$0xff]  ;;  %v14281_v35 = vld [vmem:[#allocation23_spill] sm:$0xff]  ;;  %v11894_v58 = vpop.f32.mrf.mxu1 }
 0x25a   : > { %v11887_v14 = vadd.f32 %v14280_v51, %v2383_v18  ;;  %v7172_v6 = vmul.f32 %v14281_v35, %v4929_v49  ;;  %v11892_v11 = vpop.permute.xlu0 %6629  ;;  %14282 = vst [vmem:[#allocation67_spill] sm:$0xff] %v11894_v58  ;;  %v7173_v1 = vmul.f32 %v14281_v35, %v4930_v43  ;;  %v11903_v23 = vadd.f32 %v14283_v17, %v2385_v37  ;;  %v14284_v43 = vld [vmem:[#allocation28_spill] sm:$0xff] }
 0x25b   : > { %v7488_v26 = vadd.f32 %v7487_v55, %v7169_v15  ;;  %v14278_v15 = vld [vmem:[#allocation140_spill] sm:$0xff]  ;;  %8237 = vtanh.f32 %v11874_v5  ;;  %v2387_v33 = vmul.f32 0.5, %v11631_v56  ;;  %v7174_v35 = vmul.f32 %v14284_v43, %v4931_v32  ;;  %v6223_v56 = vld [vmem:[%s13827_s3 + $0x418] sm:$0xff] }
 0x25c   : > { %v2384_v55 = vmul.f32 0.5, %v14278_v15  ;;  %v4613_v15 = vadd.f32 1.0, %v8220_v41  ;;  %v11906_v41 = vpop.f32.mrf.mxu0  ;;  %8239 = vtanh.f32 %v11887_v14  ;;  %v2388_v32 = vmul.f32 0.5, %v11651_v27  ;;  %6909 = vperm.xlu0 %7968, %v6223_v56  }
 0x25d   : > { %v7489_v62 = vadd.f32 %v7488_v26, %v7170_v40  ;;  %v8222_v40 = vpop.eup %8221 }
 0x25e   : > { %v8224_v47 = vpop.eup %8223  ;;  %v11899_v42 = vadd.f32 %v14280_v51, %v2384_v55  ;;  %v4614_v58 = vadd.f32 1.0, %v8222_v40  ;;  %v730_v55 = vld [vmem:[%s13825_s1 + $0x4d8] sm:$0xff]  ;;  %v11921_v51 = vadd.f32 %v14283_v17, %v2386_v45  ;;  %v11936_v17 = vpop.f32.mrf.mxu0 }
 0x25f   : > { %v7490_v26 = vadd.f32 %v7489_v62, %v7171_v31  ;;  %v8226_v49 = vpop.eup %8225  ;;  %v4932_v31 = vmul.f32 %v4612_v24, %v11742_v12  ;;  %v2706_v12 = vld [vmem:[%s13826_s2 + $0x448] sm:$0xff]  ;;  %v4933_v24 = vmul.f32 %v4613_v15, %v11759_v21  ;;  %v4615_v37 = vadd.f32 1.0, %v8224_v47  ;;  %7930 = vmatmul.mubr.msk.f32.gmra.mxu1 %vm738_vm1, %v730_v55  ;;  %v14286_v47 = vld [vmem:[#allocation55_spill] sm:$0xff]  ;;  %v11938_v55 = vpop.permute.xlu0 %6639 }
 0x260   : > { %v8228_v62 = vpop.eup %8227  ;;  %3416 = vperm.xlu1 %7969, %v2706_v12   ;;  %8241 = vtanh.f32 %v11899_v42  ;;  %2224 = vmatprep.mubr.f32.mxu1 %v13977_v10  ;;  %v4616_v15 = vadd.f32 1.0, %v8226_v49 }
 0x261   : > { %v7491_v18 = vadd.f32 %v7490_v26, %v7172_v6  ;;  %v11926_v6 = vpop.f32.mrf.mxu1  ;;  %v7175_v26 = vmul.f32 %v14284_v43, %v4932_v31  ;;  %v8230_v21 = vpop.eup %8229  ;;  %v4617_v45 = vadd.f32 1.0, %v8228_v62  ;;  %8243 = vtanh.f32 %v11903_v23  ;;  %v14287_v31 = vld [vmem:[#allocation143_spill] sm:$0xff] }
 0x262   : > { %14285 = vst [vmem:[#allocation71_spill] sm:$0xff] %v11926_v6  ;;  %v8232_v12 = vpop.eup %8231  ;;  %v7176_v27 = vmul.f32 %v14287_v31, %v4933_v24  ;;  %v4935_v49 = vmul.f32 %v4615_v37, %v11785_v8  ;;  %8245 = vtanh.f32 %v11921_v51  ;;  %v2390_v62 = vmul.f32 0.5, %v11693_v39  ;;  %v11956_v24 = vpop.f32.mrf.mxu0 }
 0x263   : > { %v7492_v48 = vadd.f32 %v7491_v18, %v7173_v1  ;;  %v11923_v1 = vpop.permute.xlu1 %6644  ;;  %v11934_v18 = vadd.f32 %v14286_v47, %v2387_v33  ;;  %v8234_v33 = vpop.eup %8233  ;;  %v4618_v6 = vadd.f32 1.0, %v8230_v21  ;;  %v2391_v8 = vmul.f32 0.5, %v11722_v3  ;;  %v6224_v3 = vld [vmem:[%s13827_s3 + $0x420] sm:$0xff] }
 0x264   : > { %v11946_v56 = vpop.f32.mrf.mxu1  ;;  %v4619_v37 = vadd.f32 1.0, %v8232_v12  ;;  %6914 = vperm.xlu0 %7968, %v6224_v3  }
 0x265   : > { %v7493_v40 = vadd.f32 %v7492_v48, %v7174_v35  ;;  %v4934_v48 = vmul.f32 %v4614_v58, %v11779_v59  ;;  %v2389_v35 = vmul.f32 0.5, %v11668_v28  ;;  %v11950_v59 = vadd.f32 %v14286_v47, %v2388_v32 }
 0x266   : > { %v4936_v58 = vmul.f32 %v4616_v15, %v11790_v53  ;;  %v4937_v28 = vmul.f32 %v4617_v45, %v11796_v50  ;;  %8247 = vtanh.f32 %v11934_v18  ;;  %v731_v53 = vld [vmem:[%s13825_s1 + $0x4e0] sm:$0xff]  ;;  %v2707_v50 = vld [vmem:[%s13826_s2 + $0x450] sm:$0xff]  ;;  %v8236_v32 = vpop.eup %8235  ;;  %v2392_v15 = vmul.f32 0.5, %v11744_v7  ;;  %v11978_v45 = vpop.permute.xlu0 %6649 }
 0x267   : > { %v7494_v43 = vadd.f32 %v7493_v40, %v7175_v26  ;;  %v7177_v36 = vmul.f32 %v14287_v31, %v4934_v48  ;;  %v11958_v39 = vpop.permute.xlu1 %6654  ;;  %v14288_v40 = vld [vmem:[#allocation29_spill] sm:$0xff]  ;;  %v14289_v48 = vld [vmem:[#allocation58_spill] sm:$0xff]  ;;  %7931 = vmatmul.mubr.msk.f32.gmra.mxu1 %vm738_vm1, %v731_v53  ;;  %3421 = vperm.xlu1 %7969, %v2707_v50   ;;  %v11981_v47 = vpop.f32.mrf.mxu1  ;;  %v4938_v12 = vmul.f32 %v4618_v6, %v11824_v30  ;;  %8249 = vtanh.f32 %v11950_v59 }
 0x268   : > { %v7178_v21 = vmul.f32 %v14288_v40, %v4935_v49  ;;  %v11962_v31 = vadd.f32 %v14289_v48, %v2389_v35  ;;  %2230 = vmatprep.mubr.f32.mxu1 %v13977_v10  ;;  %v8238_v35 = vpop.eup %8237  ;;  %v14290_v49 = vld [vmem:[#allocation30_spill] sm:$0xff]  ;;  %v14291_v7 = vld [vmem:[#allocation57_spill] sm:$0xff]  ;;  %v4939_v53 = vmul.f32 %v4619_v37, %v11830_v44  ;;  %v4621_v30 = vadd.f32 1.0, %v8236_v32  ;;  %v14293_v32 = vld [vmem:[#allocation60_spill] sm:$0xff] }
 0x269   : > { %v7495_v16 = vadd.f32 %v7494_v43, %v7176_v27  ;;  %v4620_v27 = vadd.f32 1.0, %v8234_v33  ;;  %v8240_v33 = vpop.eup %8239  ;;  %v4622_v50 = vadd.f32 1.0, %v8238_v35  ;;  %v7181_v44 = vmul.f32 %v14290_v49, %v4938_v12  ;;  %v732_v35 = vld [vmem:[%s13825_s1 + $0x4e8] sm:$0xff] }
 0x26a   : > { %8251 = vtanh.f32 %v11962_v31  ;;  %v7182_v12 = vmul.f32 %v11691_v61, %v4939_v53 }
 0x26b   : > { %v7496_v26 = vadd.f32 %v7495_v16, %v7177_v36  ;;  %v7179_v16 = vmul.f32 %v14288_v40, %v4936_v58  ;;  %v11975_v36 = vadd.f32 %v14289_v48, %v2390_v62  ;;  %v7180_v62 = vmul.f32 %v14290_v49, %v4937_v28  ;;  %v11991_v48 = vpop.f32.mrf.mxu0  ;;  %v2708_v49 = vld [vmem:[%s13826_s2 + $0x458] sm:$0xff]  ;;  %7932 = vmatmul.mubr.msk.f32.gmra.mxu1 %vm738_vm1, %v732_v35 }
 0x26c   : > { %v11988_v58 = vadd.f32 %v14291_v7, %v2391_v8  ;;  %v2393_v40 = vmul.f32 0.5, %v11773_v38  ;;  %v2394_v28 = vmul.f32 0.5, %v11799_v52  ;;  %v12000_v8 = vpop.permute.xlu1 %6664  ;;  %v4940_v38 = vmul.f32 %v4620_v27, %v11839_v60  ;;  %v12013_v52 = vpop.permute.xlu0 %6659  ;;  %3426 = vperm.xlu1 %7969, %v2708_v49   ;;  %2236 = vmatprep.mubr.f32.mxu1 %v13977_v10 }
 0x26d   : > { %v7497_v43 = vadd.f32 %v7496_v26, %v7178_v21  ;;  %8253 = vtanh.f32 %v11975_v36  ;;  %v11997_v26 = vadd.f32 %v14291_v7, %v2392_v15  ;;  %v12002_v21 = vpop.f32.mrf.mxu1  ;;  %v8242_v3 = vpop.eup %8241  ;;  %v2395_v15 = vmul.f32 0.5, %v11832_v57  ;;  %v6225_v57 = vld [vmem:[%s13827_s3 + $0x428] sm:$0xff] }
 0x26e   : > { %14292 = vst [vmem:[#allocation38_spill] sm:$0xff] %v12002_v21  ;;  %8255 = vtanh.f32 %v11988_v58  ;;  %v8244_v7 = vpop.eup %8243  ;;  %v4941_v21 = vmul.f32 %v4621_v30, %v11855_v34  ;;  %v4623_v60 = vadd.f32 1.0, %v8240_v33  ;;  %v12028_v34 = vadd.f32 %v14293_v32, %v2394_v28  ;;  %6919 = vperm.xlu0 %7968, %v6225_v57   ;;  %v14294_v28 = vld [vmem:[#allocation59_spill] sm:$0xff] }
 0x26f   : > { %v7498_v6 = vadd.f32 %v7497_v43, %v7179_v16  ;;  %v12008_v16 = vadd.f32 %v14293_v32, %v2393_v40  ;;  %v12011_v43 = vpop.f32.mrf.mxu0  ;;  %8257 = vtanh.f32 %v11997_v26  ;;  %v8246_v40 = vpop.eup %8245  ;;  %v4942_v30 = vmul.f32 %v4622_v50, %v11874_v5 }
 0x270   : > { %v12032_v53 = vpop.f32.mrf.mxu1  ;;  %v7183_v33 = vmul.f32 %v11691_v61, %v4940_v38  ;;  %v12043_v35 = vpop.permute.xlu1 %6674  ;;  %v4943_v5 = vmul.f32 %v4623_v60, %v11887_v14  ;;  %v7184_v50 = vmul.f32 %v11680_v63, %v4941_v21  ;;  %v2397_v38 = vmul.f32 0.5, %v11881_v19 }
 0x271   : > { %v7499_v37 = vadd.f32 %v7498_v6, %v7180_v62  ;;  %v2396_v62 = vmul.f32 0.5, %v11850_v22  ;;  %v4624_v6 = vadd.f32 1.0, %v8242_v3  ;;  %8259 = vtanh.f32 %v12008_v16  ;;  %v12041_v32 = vpop.f32.mrf.mxu0 }
 0x272   : > { %v12039_v22 = vadd.f32 %v14294_v28, %v2395_v15  ;;  %v4626_v3 = vadd.f32 1.0, %v8246_v40  ;;  %8261 = vtanh.f32 %v12028_v34  ;;  %v12052_v15 = vpop.permute.xlu0 %6669  ;;  %v7185_v57 = vmul.f32 %v11680_v63, %v4942_v30  ;;  %v733_v63 = vld [vmem:[%s13825_s1 + $0x4f0] sm:$0xff] }
 0x273   : > { %v7500_v27 = vadd.f32 %v7499_v37, %v7181_v44  ;;  %v4625_v37 = vadd.f32 1.0, %v8244_v7  ;;  %v8248_v49 = vpop.eup %8247  ;;  %v12050_v7 = vadd.f32 %v14294_v28, %v2396_v62  ;;  %v2398_v21 = vmul.f32 0.5, %v11906_v41  ;;  %v14296_v28 = vld [vmem:[#allocation62_spill] sm:$0xff]  ;;  %7933 = vmatmul.mubr.msk.f32.gmra.mxu1 %vm738_vm1, %v733_v63 }
 0x274   : > { %v8250_v60 = vpop.eup %8249  ;;  %v4627_v40 = vadd.f32 1.0, %v8248_v49  ;;  %8263 = vtanh.f32 %v12039_v22  ;;  %v6226_v41 = vld [vmem:[%s13827_s3 + $0x430] sm:$0xff]  ;;  %2242 = vmatprep.mubr.f32.mxu1 %v13977_v10 }
 0x275   : > { %v7501_v44 = vadd.f32 %v7500_v27, %v7182_v12  ;;  %v12054_v27 = vpop.f32.mrf.mxu1  ;;  %v4944_v12 = vmul.f32 %v4624_v6, %v11899_v42  ;;  %v4945_v19 = vmul.f32 %v4625_v37, %v11903_v23  ;;  %v2399_v42 = vmul.f32 0.5, %v11936_v17  ;;  %v2709_v23 = vld [vmem:[%s13826_s2 + $0x460] sm:$0xff]  ;;  %v12080_v17 = vpop.permute.xlu1 %6684  ;;  %6924 = vperm.xlu0 %7968, %v6226_v41   ;;  %v14300_v41 = vld [vmem:[#allocation65_spill] sm:$0xff] }
 0x276   : > { %14295 = vst [vmem:[#allocation74_spill] sm:$0xff] %v12054_v27  ;;  %v12065_v27 = vadd.f32 %v14296_v28, %v2397_v38  ;;  %v4946_v6 = vmul.f32 %v4626_v3, %v11921_v51  ;;  %8265 = vtanh.f32 %v12050_v7  ;;  %v2400_v37 = vmul.f32 0.5, %v11956_v24  ;;  %3431 = vperm.xlu1 %7969, %v2709_v23   ;;  %v12093_v63 = vpop.permute.xlu0 %6679 }
 0x277   : > { %v7502_v61 = vadd.f32 %v7501_v44, %v7183_v33  ;;  %v12061_v33 = vpop.f32.mrf.mxu0  ;;  %v7186_v44 = vmul.f32 %v11733_v0, %v4943_v5  ;;  %v8252_v30 = vpop.eup %8251  ;;  %v4947_v51 = vmul.f32 %v4627_v40, %v11934_v18  ;;  %v7188_v24 = vmul.f32 %v11724_v29, %v4945_v19 }
 0x278   : > { %v12083_v5 = vpop.f32.mrf.mxu1  ;;  %v2401_v3 = vmul.f32 0.5, %v11991_v48  ;;  %8267 = vtanh.f32 %v12065_v27  ;;  %v7189_v10 = vmul.f32 %v11724_v29, %v4946_v6 }
 0x279   : > { %v7503_v14 = vadd.f32 %v7502_v61, %v7184_v50  ;;  %14297 = vst [vmem:[#allocation75_spill] sm:$0xff] %v12083_v5  ;;  %v4628_v50 = vadd.f32 1.0, %v8250_v60  ;;  %v7187_v61 = vmul.f32 %v11733_v0, %v4944_v12  ;;  %v4629_v60 = vadd.f32 1.0, %v8252_v30  ;;  %v14298_v0 = vld [vmem:[#allocation61_spill] sm:$0xff]  ;;  %v12112_v6 = vpop.permute.xlu1 %6694 }
 0x27a   : > { %v8254_v49 = vpop.eup %8253  ;;  %v12097_v12 = vadd.f32 %v14298_v0, %v2399_v42  ;;  %v12101_v18 = vadd.f32 %v14298_v0, %v2400_v37  ;;  %v12103_v40 = vpop.f32.mrf.mxu1  ;;  %v7190_v42 = vmul.f32 %v11775_v46, %v4947_v51  ;;  %v12110_v30 = vadd.f32 %v14300_v41, %v2401_v3 }
 0x27b   : > { %v7504_v62 = vadd.f32 %v7503_v14, %v7185_v57  ;;  %v12087_v57 = vadd.f32 %v14296_v28, %v2398_v21  ;;  %v1758_v14 = vpop.f32.mrf.mxu0  ;;  %v8256_v23 = vpop.eup %8255  ;;  %v4630_v21 = vadd.f32 1.0, %v8254_v49  ;;  %14299 = vst [vmem:[#allocation37_spill] sm:$0xff] %v12103_v40  ;;  %v4948_v48 = vmul.f32 %v4628_v50, %v11950_v59  ;;  %v6227_v50 = vld [vmem:[%s13827_s3 + $0x438] sm:$0xff] }
 0x27c   : > { %v8258_v19 = vpop.eup %8257  ;;  %v4631_v28 = vadd.f32 1.0, %v8256_v23  ;;  %v4949_v49 = vmul.f32 %v4629_v60, %v11962_v31  ;;  %v2403_v59 = vmul.f32 0.5, %v12041_v32  ;;  %v12128_v51 = vpop.permute.xlu0 %6689  ;;  %v2404_v0 = vmul.f32 0.5, %v12061_v33  ;;  %6929 = vperm.xlu0 %7968, %v6227_v50  }
 0x27d   : > { %v7505_v38 = vadd.f32 %v7504_v62, %v7186_v44  ;;  %8269 = vtanh.f32 %v12087_v57  ;;  %v2402_v44 = vmul.f32 0.5, %v12011_v43  ;;  %v1760_v29 = vpop.f32.mrf.mxu0  ;;  %v734_v43 = vld [vmem:[%s13825_s1 + $0x4f8] sm:$0xff]  ;;  %v4632_v31 = vadd.f32 1.0, %v8258_v19 }
 0x27e   : > { %v8260_v37 = vpop.eup %8259  ;;  %8271 = vtanh.f32 %v12097_v12  ;;  %7934 = vmatmul.mubr.msk.f32.gmra.mxu1 %vm738_vm1, %v734_v43  ;;  %v7191_v3 = vmul.f32 %v11775_v46, %v4948_v48  ;;  %v2405_v46 = vmul.f32 0.5, %v1758_v14 }
 0x27f   : > { %v7506_v5 = vadd.f32 %v7505_v38, %v7187_v61  ;;  %v4950_v38 = vmul.f32 %v4630_v21, %v11975_v36  ;;  %8273 = vtanh.f32 %v12101_v18  ;;  %v8262_v32 = vpop.eup %8261  ;;  %v12135_v60 = vadd.f32 %v14300_v41, %v2402_v44 }
 0x280   : > { %v4951_v36 = vmul.f32 %v4631_v28, %v11988_v58  ;;  %v4633_v21 = vadd.f32 1.0, %v8260_v37  ;;  %8275 = vtanh.f32 %v12110_v30  ;;  %v4952_v48 = vmul.f32 %v4632_v31, %v11997_v26 }
 0x281   : > { %v7507_v62 = vadd.f32 %v7506_v5, %v7188_v24  ;;  %v2710_v5 = vld [vmem:[%s13826_s2 + $0x468] sm:$0xff]  ;;  %v12131_v24 = vpop.f32.mrf.mxu1  ;;  %v8264_v19 = vpop.eup %8263  ;;  %v7193_v44 = vmul.f32 %v11762_v4, %v4950_v38  ;;  %v4634_v33 = vadd.f32 1.0, %v8262_v32  ;;  %8277 = vtanh.f32 %v12135_v60 }
 0x282   : > { %3436 = vperm.xlu1 %7969, %v2710_v5   ;;  %14301 = vst [vmem:[#allocation7_spill] sm:$0xff] %v12131_v24  ;;  %v14302_v5 = vld [vmem:[#allocation64_spill] sm:$0xff]  ;;  %v4635_v14 = vadd.f32 1.0, %v8264_v19  ;;  %v7194_v26 = vmul.f32 %v11817_v25, %v4951_v36  ;;  %v14304_v38 = vld [vmem:[#allocation69_spill] sm:$0xff] }
 0x283   : > { %v7508_v61 = vadd.f32 %v7507_v62, %v7189_v10  ;;  %v1764_v10 = vpop.f32.mrf.mxu0  ;;  %v7192_v62 = vmul.f32 %v11762_v4, %v4949_v49  ;;  %v12142_v40 = vadd.f32 %v14302_v5, %v2403_v59  ;;  %v8266_v58 = vpop.eup %8265  ;;  %v12152_v37 = vadd.f32 %v14302_v5, %v2404_v0 }
 0x284   : > { %v12148_v28 = vpop.f32.mrf.mxu1  ;;  %v2406_v49 = vmul.f32 0.5, %v1760_v29  ;;  %v12156_v4 = vpop.permute.xlu0 %6699  ;;  %v12160_v31 = vadd.f32 %v14304_v38, %v2405_v46  ;;  %v2407_v32 = vmul.f32 0.5, %v1764_v10  ;;  %v7195_v0 = vmul.f32 %v11817_v25, %v4952_v48 }
 0x285   : > { %v7509_v23 = vadd.f32 %v7508_v61, %v7190_v42  ;;  %v12146_v42 = vpop.permute.xlu1 %6704  ;;  %14303 = vst [vmem:[#allocation82_spill] sm:$0xff] %v12148_v28  ;;  %v4953_v61 = vmul.f32 %v4633_v21, %v12008_v16  ;;  %v1766_v59 = vpop.f32.mrf.mxu0  ;;  %8279 = vtanh.f32 %v12142_v40  ;;  %v6228_v16 = vld [vmem:[%s13827_s3 + $0x440] sm:$0xff]  ;;  %v4636_v36 = vadd.f32 1.0, %v8266_v58  ;;  %v14342_v28 = vld [vmem:[#allocation13_spill] sm:$0xff] }
 0x286   : > { %v8268_v29 = vpop.eup %8267  ;;  %6934 = vperm.xlu0 %7968, %v6228_v16   ;;  %v12170_v21 = vpop.f32.mrf.mxu1  ;;  %8281 = vtanh.f32 %v12152_v37  ;;  %v12174_v10 = vadd.f32 %v14304_v38, %v2406_v49  ;;  %v4955_v5 = vmul.f32 %v4635_v14, %v12039_v22 }
 0x287   : > { %v7510_v43 = vadd.f32 %v7509_v23, %v7191_v3  ;;  %v2711_v3 = vld [vmem:[%s13826_s2 + $0x470] sm:$0xff]  ;;  %v4954_v23 = vmul.f32 %v4634_v33, %v12028_v34  ;;  %14305 = vst [vmem:[#allocation40_spill] sm:$0xff] %v12170_v21  ;;  %v7196_v46 = vmul.f32 %v11801_v9, %v4953_v61  ;;  %v4637_v48 = vadd.f32 1.0, %v8268_v29 }
 0x288   : > { %3441 = vperm.xlu1 %7969, %v2711_v3   ;;  %8283 = vtanh.f32 %v12160_v31  ;;  %v12189_v61 = vpop.f32.mrf.mxu1  ;;  %v7198_v29 = vmul.f32 %v11852_v13, %v4955_v5 }
 0x289   : > { %v7511_v41 = vadd.f32 %v7510_v43, %v7192_v62  ;;  %v2408_v62 = vmul.f32 0.5, %v1766_v59  ;;  %v12178_v34 = vpop.permute.xlu1 %6714  ;;  %v7197_v49 = vmul.f32 %v11801_v9, %v4954_v23  ;;  %v4956_v59 = vmul.f32 %v4636_v36, %v12050_v7  ;;  %14308 = vst [vmem:[#allocation83_spill] sm:$0xff] %v12189_v61  ;;  %v2712_v36 = vld [vmem:[%s13826_s2 + $0x478] sm:$0xff] }
 0x28a   : > { %v8270_v43 = vpop.eup %8269  ;;  %8285 = vtanh.f32 %v12174_v10  ;;  %v4957_v7 = vmul.f32 %v4637_v48, %v12065_v27  ;;  %v12212_v27 = vpop.f32.mrf.mxu1 }
 0x28b   : > { %v7512_v50 = vadd.f32 %v7511_v41, %v7193_v44  ;;  %v14306_v44 = vld [vmem:[#allocation68_spill] sm:$0xff]  ;;  %v8272_v58 = vpop.eup %8271  ;;  %v4638_v38 = vadd.f32 1.0, %v8270_v43  ;;  %v7199_v5 = vmul.f32 %v11852_v13, %v4956_v59  ;;  %14312 = vst [vmem:[#allocation9_spill] sm:$0xff] %v12212_v27 }
 0x28c   : > { %v12182_v33 = vadd.f32 %v14306_v44, %v2407_v32  ;;  %v14307_v41 = vld [vmem:[#allocation144_spill] sm:$0xff]  ;;  %v8274_v22 = vpop.eup %8273  ;;  %v12193_v3 = vadd.f32 %v14306_v44, %v2408_v62  ;;  %v14309_v32 = vld [vmem:[#allocation145_spill] sm:$0xff]  ;;  %v4639_v23 = vadd.f32 1.0, %v8272_v58  ;;  %v14310_v62 = vld [vmem:[#allocation146_spill] sm:$0xff]  ;;  %3446 = vperm.xlu1 %7969, %v2712_v36   ;;  %v7200_v13 = vmul.f32 %v11841_v20, %v4957_v7 }
 0x28d   : > { %v7513_v19 = vadd.f32 %v7512_v50, %v7194_v26  ;;  %v2409_v26 = vmul.f32 0.5, %v14307_v41  ;;  %v12187_v50 = vpop.permute.xlu0 %6709  ;;  %v2410_v16 = vmul.f32 0.5, %v14309_v32  ;;  %v2411_v43 = vmul.f32 0.5, %v14310_v62  ;;  %v12210_v44 = vpop.permute.xlu1 %6724 }
 0x28e   : > { %8287 = vtanh.f32 %v12182_v33  ;;  %v4958_v58 = vmul.f32 %v4638_v38, %v12087_v57  ;;  %v4640_v41 = vadd.f32 1.0, %v8274_v22  ;;  %v4959_v36 = vmul.f32 %v4639_v23, %v12097_v12  ;;  %v14315_v22 = vld [vmem:[#allocation72_spill] sm:$0xff] }
 0x28f   : > { %v7514_v25 = vadd.f32 %v7513_v19, %v7195_v0  ;;  %v8276_v0 = vpop.eup %8275  ;;  %v6229_v19 = vld [vmem:[%s13827_s3 + $0x448] sm:$0xff]  ;;  %8289 = vtanh.f32 %v12193_v3  ;;  %v12226_v38 = vadd.f32 %v14315_v22, %v2411_v43 }
 0x290   : > { %6939 = vperm.xlu0 %7968, %v6229_v19   ;;  %v4641_v19 = vadd.f32 1.0, %v8276_v0  ;;  %v4960_v27 = vmul.f32 %v4640_v41, %v12101_v18  ;;  %v6230_v18 = vld [vmem:[%s13827_s3 + $0x450] sm:$0xff] }
 0x291   : > { %v7515_v14 = vadd.f32 %v7514_v25, %v7196_v46  ;;  %v14311_v46 = vld [vmem:[#allocation73_spill] sm:$0xff]  ;;  %v12220_v62 = vpop.permute.xlu0 %6719  ;;  %v12238_v23 = vpop.permute.xlu1 %6734 }
 0x292   : > { %v12207_v25 = vadd.f32 %v14311_v46, %v2409_v26  ;;  %v12218_v26 = vadd.f32 %v14311_v46, %v2410_v16  ;;  %v7201_v46 = vmul.f32 %v11841_v20, %v4958_v58  ;;  %v2713_v20 = vld [vmem:[%s13826_s2 + $0x480] sm:$0xff]  ;;  %v14318_v41 = vld [vmem:[#allocation5_spill] sm:$0xff] }
 0x293   : > { %v7516_v9 = vadd.f32 %v7515_v14, %v7197_v49  ;;  %v8278_v49 = vpop.eup %8277  ;;  %v14313_v14 = vld [vmem:[#allocation63_spill] sm:$0xff]  ;;  %3451 = vperm.xlu1 %7969, %v2713_v20  }
 0x294   : > { %v2412_v32 = vmul.f32 0.5, %v14313_v14  ;;  %8291 = vtanh.f32 %v12207_v25  ;;  %v12229_v14 = vpop.f32.mrf.mxu1  ;;  %v4642_v7 = vadd.f32 1.0, %v8278_v49  ;;  %v2415_v49 = vmul.f32 0.5, %v14318_v41  ;;  %6944 = vperm.xlu0 %7968, %v6230_v18  }
 0x295   : > { %v7517_v48 = vadd.f32 %v7516_v9, %v7198_v29  ;;  %v8280_v29 = vpop.eup %8279  ;;  %v14314_v9 = vld [vmem:[#allocation66_spill] sm:$0xff]  ;;  %14316 = vst [vmem:[#allocation90_spill] sm:$0xff] %v12229_v14  ;;  %8293 = vtanh.f32 %v12218_v26  ;;  %v14321_v14 = vld [vmem:[#allocation8_spill] sm:$0xff] }
 0x296   : > { %v2413_v57 = vmul.f32 0.5, %v14314_v9  ;;  %v12235_v0 = vadd.f32 %v14315_v22, %v2412_v32  ;;  %v7202_v9 = vmul.f32 %v11892_v11, %v4959_v36  ;;  %8295 = vtanh.f32 %v12226_v38  ;;  %v14319_v32 = vld [vmem:[#allocation77_spill] sm:$0xff]  ;;  %v12253_v36 = vpop.permute.xlu0 %6729 }
 0x297   : > { %v7518_v59 = vadd.f32 %v7517_v48, %v7199_v5  ;;  %v8282_v5 = vpop.eup %8281  ;;  %v14317_v48 = vld [vmem:[#allocation70_spill] sm:$0xff]  ;;  %v2416_v41 = vmul.f32 0.5, %v14321_v14  ;;  %v12271_v14 = vpop.permute.xlu1 %6744 }
 0x298   : > { %v2414_v12 = vmul.f32 0.5, %v14317_v48  ;;  %v8284_v58 = vpop.eup %8283  ;;  %v12251_v22 = vadd.f32 %v14319_v32, %v2413_v57  ;;  %8297 = vtanh.f32 %v12235_v0 }
 0x299   : > { %v7519_v16 = vadd.f32 %v7518_v59, %v7200_v13  ;;  %v4961_v13 = vmul.f32 %v4641_v19, %v12110_v30  ;;  %v4643_v59 = vadd.f32 1.0, %v8280_v29  ;;  %v12255_v30 = vpop.f32.mrf.mxu1  ;;  %v7203_v29 = vmul.f32 %v11892_v11, %v4960_v27  ;;  %v8286_v48 = vpop.eup %8285  ;;  %v14323_v27 = vld [vmem:[#allocation76_spill] sm:$0xff] }
 0x29a   : > { %14320 = vst [vmem:[#allocation39_spill] sm:$0xff] %v12255_v30  ;;  %v12262_v57 = vadd.f32 %v14319_v32, %v2414_v12  ;;  %v4645_v30 = vadd.f32 1.0, %v8284_v58  ;;  %8299 = vtanh.f32 %v12251_v22  ;;  %v4646_v32 = vadd.f32 1.0, %v8286_v48  ;;  %v6231_v48 = vld [vmem:[%s13827_s3 + $0x458] sm:$0xff] }
 0x29b   : > { %v7520_v43 = vadd.f32 %v7519_v16, %v7201_v46  ;;  %v4962_v16 = vmul.f32 %v4642_v7, %v12135_v60  ;;  %v4644_v46 = vadd.f32 1.0, %v8282_v5  ;;  %v7204_v20 = vmul.f32 %v11883_v54, %v4961_v13  ;;  %v12273_v7 = vpop.f32.mrf.mxu1  ;;  %6949 = vperm.xlu0 %7968, %v6231_v48  }
 0x29c   : > { %v4963_v18 = vmul.f32 %v4643_v59, %v12142_v40  ;;  %v12268_v60 = vadd.f32 %v14323_v27, %v2415_v49  ;;  %14324 = vst [vmem:[#allocation91_spill] sm:$0xff] %v12273_v7  ;;  %v14325_v59 = vld [vmem:[#allocation79_spill] sm:$0xff]  ;;  %v12280_v49 = vadd.f32 %v14323_v27, %v2416_v41  ;;  %8301 = vtanh.f32 %v12262_v57  ;;  %v14328_v41 = vld [vmem:[#allocation86_spill] sm:$0xff]  ;;  %v14329_v27 = vld [vmem:[#allocation81_spill] sm:$0xff] }
 0x29d   : > { %v7521_v19 = vadd.f32 %v7520_v43, %v7202_v9  ;;  %v8288_v43 = vpop.eup %8287  ;;  %v14322_v9 = vld [vmem:[#allocation78_spill] sm:$0xff]  ;;  %v7205_v12 = vmul.f32 %v11883_v54, %v4962_v16  ;;  %v4964_v13 = vmul.f32 %v4644_v46, %v12152_v37  ;;  %v2418_v58 = vmul.f32 0.5, %v14325_v59  ;;  %v12287_v37 = vpop.f32.mrf.mxu1  ;;  %v2714_v46 = vld [vmem:[%s13826_s2 + $0x488] sm:$0xff] }
 0x29e   : > { %v2417_v11 = vmul.f32 0.5, %v14322_v9  ;;  %v8290_v40 = vpop.eup %8289  ;;  %v12283_v9 = vpop.permute.xlu0 %6739  ;;  %v4965_v54 = vmul.f32 %v4645_v30, %v12160_v31  ;;  %v4647_v16 = vadd.f32 1.0, %v8288_v43  ;;  %14327 = vst [vmem:[#allocation42_spill] sm:$0xff] %v12287_v37  ;;  %8303 = vtanh.f32 %v12268_v60  ;;  %3456 = vperm.xlu1 %7969, %v2714_v46  }
 0x29f   : > { %v7522_v61 = vadd.f32 %v7521_v19, %v7203_v29  ;;  %v14326_v19 = vld [vmem:[#allocation10_spill] sm:$0xff]  ;;  %v4966_v43 = vmul.f32 %v4646_v32, %v12174_v10  ;;  %v12302_v59 = vpop.f32.mrf.mxu1  ;;  %8305 = vtanh.f32 %v12280_v49  ;;  %v12312_v48 = vadd.f32 %v14329_v27, %v2418_v58 }
 0x2a0   : > { %v2419_v29 = vmul.f32 0.5, %v14326_v19  ;;  %14330 = vst [vmem:[#allocation95_spill] sm:$0xff] %v12302_v59  ;;  %v14331_v19 = vld [vmem:[#allocation94_spill] sm:$0xff]  ;;  %v4967_v10 = vmul.f32 %v4647_v16, %v12182_v33 }
 0x2a1   : > { %v7523_v5 = vadd.f32 %v7522_v61, %v7204_v20  ;;  %v7206_v61 = vmul.f32 %v11938_v55, %v4963_v18  ;;  %v2420_v20 = vmul.f32 0.5, %v14328_v41  ;;  %v8292_v31 = vpop.eup %8291  ;;  %v7207_v18 = vmul.f32 %v11938_v55, %v4964_v13  ;;  %v14332_v41 = vld [vmem:[#allocation80_spill] sm:$0xff]  ;;  %v12316_v13 = vpop.f32.mrf.mxu1  ;;  %v2715_v32 = vld [vmem:[%s13826_s2 + $0x490] sm:$0xff] }
 0x2a2   : > { %v2423_v37 = vmul.f32 0.5, %v14331_v19  ;;  %v12307_v7 = vadd.f32 %v14332_v41, %v2419_v29  ;;  %v8294_v46 = vpop.eup %8293  ;;  %v7208_v55 = vmul.f32 %v11923_v1, %v4965_v54  ;;  %14333 = vst [vmem:[#allocation98_spill] sm:$0xff] %v12316_v13  ;;  %v14334_v29 = vld [vmem:[#allocation87_spill] sm:$0xff]  ;;  %v12329_v54 = vpop.permute.xlu0 %6749  ;;  %3461 = vperm.xlu1 %7969, %v2715_v32   ;;  %v4649_v16 = vadd.f32 1.0, %v8292_v31  ;;  %v14336_v13 = vld [vmem:[#allocation12_spill] sm:$0xff] }
 0x2a3   : > { %v7524_v21 = vadd.f32 %v7523_v5, %v7205_v12  ;;  %v12298_v5 = vadd.f32 %v14329_v27, %v2417_v11  ;;  %v4648_v12 = vadd.f32 1.0, %v8290_v40  ;;  %v12309_v11 = vpop.permute.xlu1 %6754  ;;  %v6232_v40 = vld [vmem:[%s13827_s3 + $0x460] sm:$0xff]  ;;  %v12326_v58 = vadd.f32 %v14332_v41, %v2420_v20  ;;  %v8296_v33 = vpop.eup %8295 }
 0x2a4   : > { %6954 = vperm.xlu0 %7968, %v6232_v40   ;;  %v12333_v19 = vpop.f32.mrf.mxu1  ;;  %v14337_v20 = vld [vmem:[#allocation84_spill] sm:$0xff]  ;;  %v4650_v32 = vadd.f32 1.0, %v8294_v46  ;;  %v7210_v31 = vmul.f32 %v11978_v45, %v4967_v10 }
 0x2a5   : > { %v7525_v30 = vadd.f32 %v7524_v21, %v7206_v61  ;;  %v2421_v61 = vmul.f32 0.5, %v14334_v29  ;;  %8307 = vtanh.f32 %v12298_v5  ;;  %14335 = vst [vmem:[#allocation41_spill] sm:$0xff] %v12333_v19  ;;  %v2422_v29 = vmul.f32 0.5, %v14336_v13  ;;  %v8298_v59 = vpop.eup %8297 }
 0x2a6   : > { %8309 = vtanh.f32 %v12307_v7  ;;  %v12338_v41 = vadd.f32 %v14337_v20, %v2423_v37  ;;  %v4969_v13 = vmul.f32 %v4649_v16, %v12207_v25  ;;  %v12366_v24 = vpop.permute.xlu0 %6759 }
 0x2a7   : > { %v7526_v21 = vadd.f32 %v7525_v30, %v7207_v18  ;;  %v7209_v30 = vmul.f32 %v11923_v1, %v4966_v43  ;;  %v4968_v18 = vmul.f32 %v4648_v12, %v12193_v3  ;;  %8311 = vtanh.f32 %v12312_v48  ;;  %v2716_v1 = vld [vmem:[%s13826_s2 + $0x498] sm:$0xff]  ;;  %v6233_v3 = vld [vmem:[%s13827_s3 + $0x468] sm:$0xff]  ;;  %v12355_v46 = vpop.permute.xlu1 %6764  ;;  %v8300_v10 = vpop.eup %8299 }
 0x2a8   : > { %v14339_v43 = vld [vmem:[#allocation11_spill] sm:$0xff]  ;;  %8313 = vtanh.f32 %v12326_v58  ;;  %v14340_v12 = vld [vmem:[#allocation85_spill] sm:$0xff]  ;;  %3466 = vperm.xlu1 %7969, %v2716_v1   ;;  %6959 = vperm.xlu0 %7968, %v6233_v3   ;;  %v4970_v3 = vmul.f32 %v4650_v32, %v12218_v26  ;;  %v7212_v25 = vmul.f32 %v11958_v39, %v4969_v13  ;;  %v4653_v32 = vadd.f32 1.0, %v8300_v10 }
 0x2a9   : > { %v7527_v27 = vadd.f32 %v7526_v21, %v7208_v55  ;;  %v12342_v21 = vpop.f32.mrf.mxu1  ;;  %v2424_v37 = vmul.f32 0.5, %v14339_v43  ;;  %v12353_v55 = vadd.f32 %v14340_v12, %v2421_v61  ;;  %v2427_v43 = vmul.f32 0.5, %v14342_v28  ;;  %v8302_v1 = vpop.eup %8301  ;;  %v6234_v28 = vld [vmem:[%s13827_s3 + $0x470] sm:$0xff] }
 0x2aa   : > { %14338 = vst [vmem:[#allocation99_spill] sm:$0xff] %v12342_v21  ;;  %v7211_v21 = vmul.f32 %v11978_v45, %v4968_v18  ;;  %8315 = vtanh.f32 %v12338_v41  ;;  %v12364_v61 = vadd.f32 %v14340_v12, %v2422_v29  ;;  %v2717_v45 = vld [vmem:[%s13826_s2 + $0x4a0] sm:$0xff]  ;;  %v14344_v18 = vld [vmem:[#allocation14_spill] sm:$0xff] }
 0x2ab   : > { %v7528_v40 = vadd.f32 %v7527_v27, %v7209_v30  ;;  %v4651_v27 = vadd.f32 1.0, %v8296_v33  ;;  %v12359_v19 = vpop.f32.mrf.mxu1  ;;  %v4652_v33 = vadd.f32 1.0, %v8298_v59  ;;  %v2425_v29 = vmul.f32 0.5, %v14344_v18  ;;  %v8304_v26 = vpop.eup %8303  ;;  %v14347_v18 = vld [vmem:[#allocation88_spill] sm:$0xff] }
 0x2ac   : > { %14341 = vst [vmem:[#allocation103_spill] sm:$0xff] %v12359_v19  ;;  %8317 = vtanh.f32 %v12353_v55  ;;  %3471 = vperm.xlu1 %7969, %v2717_v45   ;;  %6964 = vperm.xlu0 %7968, %v6234_v28   ;;  %v7213_v59 = vmul.f32 %v11958_v39, %v4970_v3  ;;  %v8306_v45 = vpop.eup %8305  ;;  %v4654_v28 = vadd.f32 1.0, %v8302_v1  ;;  %v14350_v3 = vld [vmem:[#allocation16_spill] sm:$0xff]  ;;  %v14351_v1 = vld [vmem:[#allocation89_spill] sm:$0xff] }
 0x2ad   : > { %v7529_v30 = vadd.f32 %v7528_v40, %v7210_v31  ;;  %v12370_v40 = vpop.f32.mrf.mxu1  ;;  %v12380_v31 = vadd.f32 %v14337_v20, %v2424_v37  ;;  %8319 = vtanh.f32 %v12364_v61  ;;  %v12390_v20 = vadd.f32 %v14347_v18, %v2427_v43  ;;  %v12392_v37 = vpop.permute.xlu1 %6774  ;;  %v6235_v43 = vld [vmem:[%s13827_s3 + $0x478] sm:$0xff] }
 0x2ae   : > { %14343 = vst [vmem:[#allocation106_spill] sm:$0xff] %v12370_v40  ;;  %14348 = vst [vmem:[#allocation107_spill] sm:$0xff] %v12392_v37  ;;  %v4972_v19 = vmul.f32 %v4652_v33, %v12235_v0  ;;  %v12409_v0 = vpop.permute.xlu0 %6769 }
 0x2af   : > { %v7530_v16 = vadd.f32 %v7529_v30, %v7211_v21  ;;  %v4971_v21 = vmul.f32 %v4651_v27, %v12226_v38  ;;  %v12385_v13 = vpop.f32.mrf.mxu1  ;;  %v14346_v30 = vld [vmem:[#allocation102_spill] sm:$0xff]  ;;  %v2718_v27 = vld [vmem:[%s13826_s2 + $0x4a8] sm:$0xff]  ;;  %8321 = vtanh.f32 %v12380_v31  ;;  %14352 = vst [vmem:[#allocation15_spill] sm:$0xff] %v12409_v0  ;;  %v4656_v0 = vadd.f32 1.0, %v8306_v45 }
 0x2b0   : > { %14345 = vst [vmem:[#allocation44_spill] sm:$0xff] %v12385_v13  ;;  %v2426_v40 = vmul.f32 0.5, %v14346_v30  ;;  %3476 = vperm.xlu1 %7969, %v2718_v27   ;;  %6969 = vperm.xlu0 %7968, %v6235_v43   ;;  %v14354_v13 = vld [vmem:[#allocation114_spill] sm:$0xff]  ;;  %8323 = vtanh.f32 %v12390_v20  ;;  %v4974_v27 = vmul.f32 %v4654_v28, %v12262_v57 }
 0x2b1   : > { %v7531_v12 = vadd.f32 %v7530_v16, %v7212_v25  ;;  %v7214_v39 = vmul.f32 %v12013_v52, %v4971_v21  ;;  %v12396_v38 = vpop.f32.mrf.mxu1  ;;  %v2428_v25 = vmul.f32 0.5, %v14350_v3  ;;  %v12407_v16 = vadd.f32 %v14351_v1, %v2425_v29  ;;  %v12435_v57 = vpop.permute.xlu1 %6784 }
 0x2b2   : > { %14349 = vst [vmem:[#allocation43_spill] sm:$0xff] %v12396_v38  ;;  %v8308_v33 = vpop.eup %8307  ;;  %v7215_v21 = vmul.f32 %v12013_v52, %v4972_v19  ;;  %v2431_v3 = vmul.f32 0.5, %v14354_v13  ;;  %v12418_v29 = vadd.f32 %v14351_v1, %v2426_v40  ;;  %v2719_v52 = vld [vmem:[%s13826_s2 + $0x4b0] sm:$0xff]  ;;  %v6236_v19 = vld [vmem:[%s13827_s3 + $0x480] sm:$0xff]  ;;  %v7217_v28 = vmul.f32 %v12000_v8, %v4974_v27  ;;  %v2720_v27 = vld [vmem:[%s13826_s2 + $0x4b8] sm:$0xff] }
 0x2b3   : > { %v7532_v10 = vadd.f32 %v7531_v12, %v7213_v59  ;;  %v4973_v59 = vmul.f32 %v4653_v32, %v12251_v22  ;;  %v4655_v12 = vadd.f32 1.0, %v8304_v26  ;;  %v12413_v38 = vpop.f32.mrf.mxu1  ;;  %v8310_v37 = vpop.eup %8309  ;;  %v14356_v40 = vld [vmem:[#allocation110_spill] sm:$0xff]  ;;  %8325 = vtanh.f32 %v12407_v16 }
 0x2b4   : > { %14353 = vst [vmem:[#allocation18_spill] sm:$0xff] %v12413_v38  ;;  %v8312_v26 = vpop.eup %8311  ;;  %v2429_v13 = vmul.f32 0.5, %v14356_v40  ;;  %3481 = vperm.xlu1 %7969, %v2719_v52   ;;  %6974 = vperm.xlu0 %7968, %v6236_v19   ;;  %8327 = vtanh.f32 %v12418_v29 }
 0x2b5   : > { %v7533_v30 = vadd.f32 %v7532_v10, %v7214_v39  ;;  %v7216_v43 = vmul.f32 %v12000_v8, %v4973_v59  ;;  %v12422_v32 = vpop.f32.mrf.mxu1  ;;  %v12432_v39 = vadd.f32 %v14347_v18, %v2428_v25  ;;  %v8314_v45 = vpop.eup %8313  ;;  %v4657_v10 = vadd.f32 1.0, %v8308_v33  ;;  %v14359_v18 = vld [vmem:[#allocation92_spill] sm:$0xff] }
 0x2b6   : > { %14355 = vst [vmem:[#allocation46_spill] sm:$0xff] %v12422_v32  ;;  %v4975_v1 = vmul.f32 %v4655_v12, %v12268_v60  ;;  %v12444_v25 = vadd.f32 %v14359_v18, %v2431_v3  ;;  %v12446_v32 = vpop.permute.xlu0 %6779  ;;  %v4658_v19 = vadd.f32 1.0, %v8312_v26  ;;  %v4976_v8 = vmul.f32 %v4656_v0, %v12280_v49  ;;  %v6237_v3 = vld [vmem:[%s13827_s3 + $0x488] sm:$0xff] }
 0x2b7   : > { %v7534_v22 = vadd.f32 %v7533_v30, %v7215_v21  ;;  %v12439_v21 = vpop.f32.mrf.mxu1  ;;  %v14358_v30 = vld [vmem:[#allocation113_spill] sm:$0xff]  ;;  %v12448_v52 = vpop.eup %8315  ;;  %8329 = vtanh.f32 %v12432_v39  ;;  %v4977_v0 = vmul.f32 %v4657_v10, %v12298_v5 }
 0x2b8   : > { %14357 = vst [vmem:[#allocation117_spill] sm:$0xff] %v12439_v21  ;;  %v2430_v40 = vmul.f32 0.5, %v14358_v30  ;;  %v7218_v33 = vmul.f32 %v12052_v15, %v4975_v1  ;;  %v14362_v26 = vld [vmem:[#allocation93_spill] sm:$0xff]  ;;  %3486 = vperm.xlu1 %7969, %v2720_v27   ;;  %6979 = vperm.xlu0 %7968, %v6237_v3   ;;  %v14364_v21 = vld [vmem:[#allocation20_spill] sm:$0xff]  ;;  %8331 = vtanh.f32 %v12444_v25  ;;  %v4978_v3 = vmul.f32 %v4658_v19, %v12312_v48 }
 0x2b9   : > { %v7535_v59 = vadd.f32 %v7534_v22, %v7216_v43  ;;  %v12452_v12 = vpop.f32.mrf.mxu1  ;;  %v14361_v43 = vld [vmem:[#allocation118_spill] sm:$0xff]  ;;  %v12463_v30 = vadd.f32 %v14362_v26, %v2429_v13  ;;  %v8318_v49 = vpop.eup %8317  ;;  %v2435_v38 = vmul.f32 0.5, %v14364_v21  ;;  %v7220_v5 = vmul.f32 %v12043_v35, %v4977_v0 }
 0x2ba   : > { %14360 = vst [vmem:[#allocation45_spill] sm:$0xff] %v12452_v12  ;;  %v2432_v22 = vmul.f32 0.5, %v14361_v43  ;;  %v12472_v43 = vadd.f32 %v14362_v26, %v2430_v40  ;;  %v12474_v13 = vpop.permute.xlu1 %6794  ;;  %v8320_v27 = vpop.eup %8319  ;;  %v6238_v21 = vld [vmem:[%s13827_s3 + $0x490] sm:$0xff]  ;;  %v7221_v19 = vmul.f32 %v12043_v35, %v4978_v3  ;;  %v4661_v0 = vadd.f32 1.0, %v8318_v49 }
 0x2bb   : > { %v7536_v60 = vadd.f32 %v7535_v59, %v7217_v28  ;;  %v7219_v28 = vmul.f32 %v12052_v15, %v4976_v8  ;;  %v4659_v59 = vadd.f32 1.0, %v8310_v37  ;;  %v12467_v12 = vpop.f32.mrf.mxu1  ;;  %14365 = vst [vmem:[#allocation47_spill] sm:$0xff] %v12474_v13  ;;  %v4660_v15 = vadd.f32 1.0, %v8314_v45  ;;  %v2721_v37 = vld [vmem:[%s13826_s2 + $0x4c0] sm:$0xff]  ;;  %v14367_v40 = vld [vmem:[#allocation17_spill] sm:$0xff]  ;;  %v12491_v48 = vpop.permute.xlu0 %6789 }
 0x2bc   : > { %14363 = vst [vmem:[#allocation48_spill] sm:$0xff] %v12467_v12  ;;  %8333 = vtanh.f32 %v12463_v30  ;;  %3491 = vperm.xlu1 %7969, %v2721_v37   ;;  %6984 = vperm.xlu0 %7968, %v6238_v21   ;;  %v8322_v45 = vpop.eup %8321  ;;  %v4662_v21 = vadd.f32 1.0, %v8320_v27 }
 0x2bd   : > { %v7537_v1 = vadd.f32 %v7536_v60, %v7218_v33  ;;  %v12478_v8 = vpop.f32.mrf.mxu1  ;;  %v2433_v33 = vmul.f32 0.5, %v14367_v40  ;;  %v12488_v60 = vadd.f32 %v14359_v18, %v2432_v22  ;;  %8335 = vtanh.f32 %v12472_v43  ;;  %v14370_v18 = vld [vmem:[#allocation96_spill] sm:$0xff]  ;;  %v12502_v12 = vpop.eup %8323 }
 0x2be   : > { %14366 = vst [vmem:[#allocation50_spill] sm:$0xff] %v12478_v8  ;;  %v14369_v8 = vld [vmem:[#allocation121_spill] sm:$0xff]  ;;  %v12500_v22 = vadd.f32 %v14370_v18, %v2435_v38  ;;  %v4980_v13 = vmul.f32 %v4660_v15, %v12326_v58  ;;  %v14372_v38 = vld [vmem:[#allocation122_spill] sm:$0xff]  ;;  %v12519_v58 = vpop.permute.xlu1 %3306  ;;  %v4981_v15 = vmul.f32 %v4661_v0, %v12353_v55 }
 0x2bf   : > { %v7538_v10 = vadd.f32 %v7537_v1, %v7219_v28  ;;  %v4979_v28 = vmul.f32 %v4659_v59, %v12307_v7  ;;  %v12495_v1 = vpop.f32.mrf.mxu1  ;;  %v2434_v40 = vmul.f32 0.5, %v14369_v8  ;;  %v2722_v7 = vld [vmem:[%s13826_s2 + $0x4c8] sm:$0xff]  ;;  %v6239_v59 = vld [vmem:[%s13827_s3 + $0x498] sm:$0xff]  ;;  %v2436_v3 = vmul.f32 0.5, %v14372_v38 }
 0x2c0   : > { %14368 = vst [vmem:[#allocation49_spill] sm:$0xff] %v12495_v1  ;;  %8337 = vtanh.f32 %v12488_v60  ;;  %3496 = vperm.xlu1 %7969, %v2722_v7   ;;  %6989 = vperm.xlu0 %7968, %v6239_v59   ;;  %v7223_v8 = vmul.f32 %v12093_v63, %v4980_v13  ;;  %v14375_v38 = vld [vmem:[#allocation19_spill] sm:$0xff]  ;;  %v12531_v1 = vpop.permute.xlu0 %6799  ;;  %v4982_v59 = vmul.f32 %v4662_v21, %v12364_v61  ;;  %v4664_v13 = vadd.f32 1.0, %v8322_v45 }
 0x2c1   : > { %v7539_v26 = vadd.f32 %v7538_v10, %v7220_v5  ;;  %v7222_v35 = vmul.f32 %v12093_v63, %v4979_v28  ;;  %v12506_v49 = vpop.f32.mrf.mxu1  ;;  %v14373_v5 = vld [vmem:[#allocation97_spill] sm:$0xff]  ;;  %v8326_v10 = vpop.eup %8325  ;;  %8339 = vtanh.f32 %v12500_v22  ;;  %v7224_v55 = vmul.f32 %v12080_v17, %v4981_v15 }
 0x2c2   : > { %14371 = vst [vmem:[#allocation52_spill] sm:$0xff] %v12506_v49  ;;  %v12517_v27 = vadd.f32 %v14373_v5, %v2433_v33  ;;  %v2439_v49 = vmul.f32 0.5, %v14375_v38  ;;  %v12529_v33 = vadd.f32 %v14373_v5, %v2434_v40  ;;  %v8328_v7 = vpop.eup %8327  ;;  %v6240_v40 = vld [vmem:[%s13827_s3 + $0x4a0] sm:$0xff]  ;;  %v12545_v5 = vadd.f32 %v14370_v18, %v2436_v3  ;;  %v14379_v38 = vld [vmem:[#allocation126_spill] sm:$0xff]  ;;  %v12557_v3 = vpop.permute.xlu1 %3311 }
 0x2c3   : > { %v7540_v37 = vadd.f32 %v7539_v26, %v7221_v19  ;;  %v4663_v26 = vadd.f32 1.0, %v12448_v52  ;;  %v12524_v28 = vpop.f32.mrf.mxu1  ;;  %v2723_v52 = vld [vmem:[%s13826_s2 + $0x4d0] sm:$0xff]  ;;  %v7225_v45 = vmul.f32 %v12080_v17, %v4982_v59  ;;  %v4665_v15 = vadd.f32 1.0, %v8326_v10 }
 0x2c4   : > { %14374 = vst [vmem:[#allocation51_spill] sm:$0xff] %v12524_v28  ;;  %8341 = vtanh.f32 %v12517_v27  ;;  %3501 = vperm.xlu1 %7969, %v2723_v52   ;;  %6994 = vperm.xlu0 %7968, %v6240_v40   ;;  %v8330_v61 = vpop.eup %8329  ;;  %v4666_v28 = vadd.f32 1.0, %v8328_v7  ;;  %v4984_v17 = vmul.f32 %v4664_v13, %v12380_v31  ;;  %v14382_v59 = vld [vmem:[#allocation129_spill] sm:$0xff]  ;;  %v12576_v31 = vpop.permute.xlu0 %6804 }
 0x2c5   : > { %v7541_v19 = vadd.f32 %v7540_v37, %v7222_v35  ;;  %v12535_v0 = vpop.f32.mrf.mxu1  ;;  %v14377_v37 = vld [vmem:[#allocation125_spill] sm:$0xff]  ;;  %8343 = vtanh.f32 %v12529_v33  ;;  %v12559_v52 = vpop.eup %8331  ;;  %14384 = vst [vmem:[#allocation53_spill] sm:$0xff] %v12576_v31 }
 0x2c6   : > { %14376 = vst [vmem:[#allocation54_spill] sm:$0xff] %v12535_v0  ;;  %v2437_v35 = vmul.f32 0.5, %v14377_v37  ;;  %v2438_v0 = vmul.f32 0.5, %v14379_v38  ;;  %v14380_v37 = vld [vmem:[#allocation100_spill] sm:$0xff]  ;;  %8345 = vtanh.f32 %v12545_v5  ;;  %v4667_v38 = vadd.f32 1.0, %v12502_v12 }
 0x2c7   : > { %v7542_v63 = vadd.f32 %v7541_v19, %v7223_v8  ;;  %v4983_v8 = vmul.f32 %v4663_v26, %v12338_v41  ;;  %v12550_v19 = vpop.f32.mrf.mxu1  ;;  %v12555_v18 = vadd.f32 %v14380_v37, %v2439_v49  ;;  %v2724_v26 = vld [vmem:[%s13826_s2 + $0x4d8] sm:$0xff]  ;;  %v6241_v49 = vld [vmem:[%s13827_s3 + $0x4a8] sm:$0xff]  ;;  %v2725_v12 = vld [vmem:[%s13826_s2 + $0x4e0] sm:$0xff] }
 0x2c8   : > { %14378 = vst [vmem:[#allocation140_spill] sm:$0xff] %v12550_v19  ;;  %3506 = vperm.xlu1 %7969, %v2724_v26   ;;  %6999 = vperm.xlu0 %7968, %v6241_v49   ;;  %v4986_v26 = vmul.f32 %v4666_v28, %v12418_v29  ;;  %v12603_v29 = vpop.permute.xlu1 %3316 }
 0x2c9   : > { %v7543_v21 = vadd.f32 %v7542_v63, %v7224_v55  ;;  %v7226_v10 = vmul.f32 %v12128_v51, %v4983_v8  ;;  %v12563_v41 = vpop.f32.mrf.mxu1  ;;  %v2440_v55 = vmul.f32 0.5, %v14382_v59  ;;  %v14383_v63 = vld [vmem:[#allocation101_spill] sm:$0xff]  ;;  %v8334_v13 = vpop.eup %8333  ;;  %8347 = vtanh.f32 %v12555_v18 }
 0x2ca   : > { %14381 = vst [vmem:[#allocation142_spill] sm:$0xff] %v12563_v41  ;;  %v12574_v7 = vadd.f32 %v14383_v63, %v2437_v35  ;;  %v14386_v59 = vld [vmem:[#allocation133_spill] sm:$0xff]  ;;  %v12586_v35 = vadd.f32 %v14383_v63, %v2438_v0  ;;  %v8336_v31 = vpop.eup %8335 }
 0x2cb   : > { %v7544_v40 = vadd.f32 %v7543_v21, %v7225_v45  ;;  %v4985_v45 = vmul.f32 %v4665_v15, %v12407_v16  ;;  %v7227_v21 = vmul.f32 %v12128_v51, %v4984_v17  ;;  %v12581_v41 = vpop.f32.mrf.mxu1  ;;  %v2443_v19 = vmul.f32 0.5, %v14386_v59  ;;  %v14388_v17 = vld [vmem:[#allocation22_spill] sm:$0xff] }
 0x2cc   : > { %14385 = vst [vmem:[#allocation23_spill] sm:$0xff] %v12581_v41  ;;  %v4668_v15 = vadd.f32 1.0, %v8330_v61  ;;  %v2441_v0 = vmul.f32 0.5, %v14388_v17  ;;  %8349 = vtanh.f32 %v12574_v7  ;;  %3511 = vperm.xlu1 %7969, %v2725_v12   ;;  %v7229_v61 = vmul.f32 %v12112_v6, %v4986_v26  ;;  %v14390_v59 = vld [vmem:[#allocation130_spill] sm:$0xff] }
 0x2cd   : > { %v7545_v8 = vadd.f32 %v7544_v40, %v7226_v10  ;;  %v7228_v49 = vmul.f32 %v12112_v6, %v4985_v45  ;;  %v12590_v51 = vpop.f32.mrf.mxu1  ;;  %v6242_v40 = vld [vmem:[%s13827_s3 + $0x4b0] sm:$0xff]  ;;  %v12600_v10 = vadd.f32 %v14380_v37, %v2440_v55  ;;  %v8338_v28 = vpop.eup %8337  ;;  %v4669_v45 = vadd.f32 1.0, %v8334_v13  ;;  %v14391_v37 = vld [vmem:[#allocation104_spill] sm:$0xff] }
 0x2ce   : > { %14387 = vst [vmem:[#allocation56_spill] sm:$0xff] %v12590_v51  ;;  %7004 = vperm.xlu0 %7968, %v6242_v40   ;;  %v2442_v17 = vmul.f32 0.5, %v14390_v59  ;;  %8351 = vtanh.f32 %v12586_v35  ;;  %v12612_v55 = vadd.f32 %v14391_v37, %v2443_v19  ;;  %v12614_v51 = vpop.permute.xlu0 %6809  ;;  %v12616_v12 = vpop.eup %8339  ;;  %v4670_v41 = vadd.f32 1.0, %v8336_v31  ;;  %v6243_v19 = vld [vmem:[%s13827_s3 + $0x4b8] sm:$0xff] }
 0x2cf   : > { %v7546_v16 = vadd.f32 %v7545_v8, %v7227_v21  ;;  %v4987_v21 = vmul.f32 %v4667_v38, %v12390_v20  ;;  %v12607_v8 = vpop.f32.mrf.mxu1  ;;  %v4988_v6 = vmul.f32 %v4668_v15, %v12432_v39  ;;  %v2726_v38 = vld [vmem:[%s13826_s2 + $0x4e8] sm:$0xff]  ;;  %v14393_v26 = vld [vmem:[#allocation134_spill] sm:$0xff]  ;;  %8353 = vtanh.f32 %v12600_v10 }
 0x2d0   : > { %14389 = vst [vmem:[#allocation28_spill] sm:$0xff] %v12607_v8  ;;  %3516 = vperm.xlu1 %7969, %v2726_v38   ;;  %v4989_v15 = vmul.f32 %v4669_v45, %v12463_v30  ;;  %8355 = vtanh.f32 %v12612_v55  ;;  %v4672_v45 = vadd.f32 1.0, %v8338_v28 }
 0x2d1   : > { %v7547_v63 = vadd.f32 %v7546_v16, %v7228_v49  ;;  %v7230_v13 = vmul.f32 %v12156_v4, %v4987_v21  ;;  %v12620_v20 = vpop.f32.mrf.mxu1  ;;  %v2444_v49 = vmul.f32 0.5, %v14393_v26  ;;  %v14394_v16 = vld [vmem:[#allocation105_spill] sm:$0xff]  ;;  %v8342_v39 = vpop.eup %8341  ;;  %v4671_v21 = vadd.f32 1.0, %v12559_v52 }
 0x2d2   : > { %14392 = vst [vmem:[#allocation55_spill] sm:$0xff] %v12620_v20  ;;  %v12631_v31 = vadd.f32 %v14394_v16, %v2441_v0  ;;  %7009 = vperm.xlu0 %7968, %v6243_v19   ;;  %v14396_v20 = vld [vmem:[#allocation24_spill] sm:$0xff]  ;;  %v12641_v26 = vadd.f32 %v14394_v16, %v2442_v17  ;;  %v12643_v0 = vpop.permute.xlu1 %3321  ;;  %v8344_v38 = vpop.eup %8343  ;;  %v4990_v19 = vmul.f32 %v4670_v41, %v12472_v43  ;;  %v2727_v52 = vld [vmem:[%s13826_s2 + $0x4f0] sm:$0xff] }
 0x2d3   : > { %v7548_v40 = vadd.f32 %v7547_v63, %v7229_v61  ;;  %v7231_v61 = vmul.f32 %v12156_v4, %v4988_v6  ;;  %v12636_v59 = vpop.f32.mrf.mxu1  ;;  %v2447_v8 = vmul.f32 0.5, %v14396_v20  ;;  %v7232_v30 = vmul.f32 %v12146_v42, %v4989_v15  ;;  %v6244_v17 = vld [vmem:[%s13827_s3 + $0x4c0] sm:$0xff]  ;;  %v14398_v6 = vld [vmem:[#allocation21_spill] sm:$0xff]  ;;  %v12660_v43 = vpop.permute.xlu0 %6814 }
 0x2d4   : > { %14395 = vst [vmem:[#allocation143_spill] sm:$0xff] %v12636_v59  ;;  %v12657_v20 = vadd.f32 %v14391_v37, %v2444_v49  ;;  %8357 = vtanh.f32 %v12631_v31  ;;  %14399 = vst [vmem:[#allocation58_spill] sm:$0xff] %v12660_v43  ;;  %3521 = vperm.xlu1 %7969, %v2727_v52   ;;  %v8346_v41 = vpop.eup %8345  ;;  %v7233_v28 = vmul.f32 %v12146_v42, %v4990_v19  ;;  %v4673_v15 = vadd.f32 1.0, %v8342_v39  ;;  %v14402_v37 = vld [vmem:[#allocation108_spill] sm:$0xff] }
 0x2d5   : > { %v7549_v63 = vadd.f32 %v7548_v40, %v7230_v13  ;;  %v12647_v40 = vpop.f32.mrf.mxu1  ;;  %v2445_v13 = vmul.f32 0.5, %v14398_v6  ;;  %8359 = vtanh.f32 %v12641_v26  ;;  %v12669_v49 = vadd.f32 %v14402_v37, %v2447_v8  ;;  %v14404_v8 = vld [vmem:[#allocation138_spill] sm:$0xff] }
 0x2d6   : > { %14397 = vst [vmem:[#allocation29_spill] sm:$0xff] %v12647_v40  ;;  %7014 = vperm.xlu0 %7968, %v6244_v17   ;;  %v14401_v40 = vld [vmem:[#allocation137_spill] sm:$0xff]  ;;  %v12671_v59 = vpop.eup %8347  ;;  %v4674_v17 = vadd.f32 1.0, %v8344_v38  ;;  %v4992_v43 = vmul.f32 %v4672_v45, %v12488_v60  ;;  %v2448_v19 = vmul.f32 0.5, %v14404_v8  ;;  %8361 = vtanh.f32 %v12657_v20  ;;  %v12688_v60 = vpop.permute.xlu1 %3326 }
 0x2d7   : > { %v7550_v4 = vadd.f32 %v7549_v63, %v7231_v61  ;;  %v4991_v61 = vmul.f32 %v4671_v21, %v12444_v25  ;;  %v12664_v63 = vpop.f32.mrf.mxu1  ;;  %v2446_v6 = vmul.f32 0.5, %v14401_v40  ;;  %v2728_v25 = vld [vmem:[%s13826_s2 + $0x4f8] sm:$0xff]  ;;  %v6245_v21 = vld [vmem:[%s13827_s3 + $0x4c8] sm:$0xff]  ;;  %v4993_v45 = vmul.f32 %v4673_v15, %v12517_v27 }
 0x2d8   : > { %14400 = vst [vmem:[#allocation30_spill] sm:$0xff] %v12664_v63  ;;  %3526 = vperm.xlu1 %7969, %v2728_v25   ;;  %v7235_v40 = vmul.f32 %v12187_v50, %v4992_v43  ;;  %v14407_v8 = vld [vmem:[#allocation25_spill] sm:$0xff]  ;;  %8363 = vtanh.f32 %v12669_v49  ;;  %v12700_v63 = vpop.permute.xlu0 %6819  ;;  %v4676_v43 = vadd.f32 1.0, %v8346_v41 }
 0x2d9   : > { %v7551_v16 = vadd.f32 %v7550_v4, %v7232_v30  ;;  %v7234_v42 = vmul.f32 %v12187_v50, %v4991_v61  ;;  %v12675_v39 = vpop.f32.mrf.mxu1  ;;  %v14405_v30 = vld [vmem:[#allocation109_spill] sm:$0xff]  ;;  %v8350_v4 = vpop.eup %8349  ;;  %v7236_v27 = vmul.f32 %v12178_v34, %v4993_v45 }
 0x2da   : > { %14403 = vst [vmem:[#allocation57_spill] sm:$0xff] %v12675_v39  ;;  %v12686_v38 = vadd.f32 %v14405_v30, %v2445_v13  ;;  %7019 = vperm.xlu0 %7968, %v6245_v21   ;;  %v2451_v39 = vmul.f32 0.5, %v14407_v8  ;;  %v12698_v13 = vadd.f32 %v14405_v30, %v2446_v6  ;;  %v4994_v21 = vmul.f32 %v4674_v17, %v12529_v33  ;;  %v6246_v6 = vld [vmem:[%s13827_s3 + $0x4d0] sm:$0xff] }
 0x2db   : > { %v7552_v52 = vadd.f32 %v7551_v16, %v7233_v28  ;;  %v4675_v16 = vadd.f32 1.0, %v12616_v12  ;;  %v12693_v61 = vpop.f32.mrf.mxu1  ;;  %v8352_v25 = vpop.eup %8351  ;;  %v6247_v12 = vld [vmem:[%s13827_s3 + $0x4d8] sm:$0xff]  ;;  %v12714_v30 = vadd.f32 %v14402_v37, %v2448_v19  ;;  %v4677_v45 = vadd.f32 1.0, %v8350_v4 }
 0x2dc   : > { %14406 = vst [vmem:[#allocation60_spill] sm:$0xff] %v12693_v61  ;;  %8365 = vtanh.f32 %v12686_v38  ;;  %7029 = vperm.xlu1 %7969, %v6247_v12   ;;  %v8354_v33 = vpop.eup %8353  ;;  %v7237_v41 = vmul.f32 %v12178_v34, %v4994_v21  ;;  %v12724_v37 = vpop.permute.xlu1 %3331  ;;  %v4678_v61 = vadd.f32 1.0, %v8352_v25  ;;  %v4996_v34 = vmul.f32 %v4676_v43, %v12545_v5 }
 0x2dd   : > { %v7553_v28 = vadd.f32 %v7552_v52, %v7234_v42  ;;  %v12704_v15 = vpop.f32.mrf.mxu1  ;;  %v14409_v52 = vld [vmem:[#allocation141_spill] sm:$0xff]  ;;  %8367 = vtanh.f32 %v12698_v13  ;;  %v8356_v12 = vpop.eup %8355  ;;  %v4997_v43 = vmul.f32 %v4677_v45, %v12574_v7  ;;  %v4680_v45 = vadd.f32 1.0, %v8354_v33 }
 0x2de   : > { %14408 = vst [vmem:[#allocation59_spill] sm:$0xff] %v12704_v15  ;;  %v2449_v42 = vmul.f32 0.5, %v14409_v52  ;;  %7024 = vperm.xlu0 %7968, %v6246_v6   ;;  %v14411_v15 = vld [vmem:[#allocation111_spill] sm:$0xff]  ;;  %8369 = vtanh.f32 %v12714_v30  ;;  %v12741_v25 = vpop.permute.xlu0 %6824 }
 0x2df   : > { %v7554_v50 = vadd.f32 %v7553_v28, %v7235_v40  ;;  %v4995_v40 = vmul.f32 %v4675_v16, %v12500_v22  ;;  %v14410_v28 = vld [vmem:[#allocation26_spill] sm:$0xff]  ;;  %v12722_v52 = vadd.f32 %v14411_v15, %v2451_v39  ;;  %v12726_v19 = vpop.f32.mrf.mxu1  ;;  %v6249_v22 = vld [vmem:[%s13827_s3 + $0x4e8] sm:$0xff]  ;;  %v6248_v39 = vld [vmem:[%s13827_s3 + $0x4e0] sm:$0xff] }
 0x2e0   : > { %v2450_v8 = vmul.f32 0.5, %v14410_v28  ;;  %14412 = vst [vmem:[#allocation62_spill] sm:$0xff] %v12726_v19  ;;  %v14413_v16 = vld [vmem:[#allocation27_spill] sm:$0xff]  ;;  %7039 = vperm.xlu1 %7969, %v6249_v22   ;;  %v2455_v28 = vmul.f32 0.5, %v11712_v2  ;;  %v4998_v22 = vmul.f32 %v4678_v61, %v12586_v35  ;;  %v6250_v2 = vld [vmem:[%s13827_s3 + $0x4f0] sm:$0xff]  ;;  %v12766_v35 = vpop.permute.xlu1 %3336 }
 0x2e1   : > { %v7555_v17 = vadd.f32 %v7554_v50, %v7236_v27  ;;  %v7238_v4 = vmul.f32 %v12220_v62, %v4995_v40  ;;  %v2452_v21 = vmul.f32 0.5, %v14413_v16  ;;  %v14414_v27 = vld [vmem:[#allocation112_spill] sm:$0xff]  ;;  %v8358_v5 = vpop.eup %8357  ;;  %v4679_v40 = vadd.f32 1.0, %v12671_v59 }
 0x2e2   : > { %v12739_v50 = vadd.f32 %v14414_v27, %v2449_v42  ;;  %7034 = vperm.xlu0 %7968, %v6248_v39   ;;  %8371 = vtanh.f32 %v12722_v52  ;;  %v12749_v16 = vadd.f32 %v14414_v27, %v2450_v8  ;;  %v12751_v42 = vpop.f32.mrf.mxu1  ;;  %v8360_v19 = vpop.eup %8359  ;;  %v7240_v39 = vmul.f32 %v12210_v44, %v4997_v43  ;;  %v14416_v59 = vld [vmem:[#allocation32_spill] sm:$0xff]  ;;  %v14417_v43 = vld [vmem:[#allocation31_spill] sm:$0xff] }
 0x2e3   : > { %v7556_v6 = vadd.f32 %v7555_v17, %v7237_v41  ;;  %v7239_v41 = vmul.f32 %v12220_v62, %v4996_v34  ;;  %14415 = vst [vmem:[#allocation61_spill] sm:$0xff] %v12751_v42  ;;  %v6251_v62 = vld [vmem:[%s13827_s3 + $0x4f8] sm:$0xff]  ;;  %v2453_v8 = vmul.f32 0.5, %v14416_v59  ;;  %v8362_v61 = vpop.eup %8361  ;;  %v7241_v33 = vmul.f32 %v12210_v44, %v4998_v22 }
 0x2e4   : > { %8373 = vtanh.f32 %v12739_v50  ;;  %7049 = vperm.xlu1 %7969, %v6251_v62   ;;  %v4999_v27 = vmul.f32 %v4679_v40, %v12555_v18  ;;  %v12777_v59 = vpop.f32.mrf.mxu1  ;;  %v4682_v42 = vadd.f32 1.0, %v8360_v19  ;;  %v5000_v44 = vmul.f32 %v4680_v45, %v12600_v10  ;;  %v14421_v22 = vld [vmem:[#allocation34_spill] sm:$0xff]  ;;  %v14422_v40 = vld [vmem:[#allocation116_spill] sm:$0xff]  ;;  %v12793_v45 = vpop.permute.xlu1 %3341 }
 0x2e5   : > { %v7557_v17 = vadd.f32 %v7556_v6, %v7238_v4  ;;  %v12763_v6 = vadd.f32 %v14411_v15, %v2452_v21  ;;  %v4681_v4 = vadd.f32 1.0, %v8358_v5  ;;  %8375 = vtanh.f32 %v12749_v16  ;;  %v12775_v21 = vpop.permute.xlu0 %6829  ;;  %14420 = vst [vmem:[#allocation64_spill] sm:$0xff] %v12777_v59  ;;  %v8364_v62 = vpop.eup %8363 }
 0x2e6   : > { %7044 = vperm.xlu0 %7968, %v6250_v2   ;;  %14419 = vst [vmem:[#allocation65_spill] sm:$0xff] %v12775_v21  ;;  %v7242_v5 = vmul.f32 %v12253_v36, %v4999_v27  ;;  %v2456_v18 = vmul.f32 0.5, %v14421_v22  ;;  %v4683_v21 = vadd.f32 1.0, %v8356_v12  ;;  %v5002_v27 = vmul.f32 %v4682_v42, %v12641_v26  ;;  %v14426_v42 = vld [vmem:[#allocation36_spill] sm:$0xff] }
 0x2e7   : > { %v7558_v7 = vadd.f32 %v7557_v17, %v7239_v41  ;;  %v2454_v41 = vmul.f32 0.5, %v14417_v43  ;;  %v14418_v17 = vld [vmem:[#allocation115_spill] sm:$0xff]  ;;  %8377 = vtanh.f32 %v12763_v6  ;;  %v7243_v43 = vmul.f32 %v12253_v36, %v5000_v44 }
 0x2e8   : > { %v12773_v15 = vadd.f32 %v14418_v17, %v2455_v28  ;;  %v4684_v36 = vadd.f32 1.0, %v8362_v61  ;;  %v12801_v44 = vadd.f32 %v14418_v17, %v2456_v18  ;;  %v7245_v22 = vmul.f32 %v12238_v23, %v5002_v27  ;;  %v14427_v61 = vld [vmem:[#allocation119_spill] sm:$0xff]  ;;  %v14429_v27 = vld [vmem:[#allocation6_spill] sm:$0xff] }
 0x2e9   : > { %v7559_v34 = vadd.f32 %v7558_v7, %v7240_v39  ;;  %v12784_v39 = vadd.f32 %v14422_v40, %v2453_v8  ;;  %v8366_v28 = vpop.eup %8365  ;;  %v5001_v7 = vmul.f32 %v4681_v4, %v12631_v31  ;;  %v12791_v10 = vadd.f32 %v14422_v40, %v2454_v41  ;;  %v12804_v41 = vpop.permute.xlu0 %6834 }
 0x2ea   : > { %8379 = vtanh.f32 %v12773_v15  ;;  %v8368_v8 = vpop.eup %8367  ;;  %v5003_v26 = vmul.f32 %v4683_v21, %v12612_v55  ;;  %v14430_v55 = vld [vmem:[#allocation120_spill] sm:$0xff] }
 0x2eb   : > { %v7560_v2 = vadd.f32 %v7559_v34, %v7241_v33  ;;  %v14423_v33 = vld [vmem:[#allocation4_spill] sm:$0xff]  ;;  %v12795_v34 = vpop.f32.mrf.mxu1  ;;  %v7244_v31 = vmul.f32 %v12238_v23, %v5001_v7  ;;  %8381 = vtanh.f32 %v12784_v39  ;;  %v2458_v7 = vmul.f32 0.5, %v14426_v42 }
 0x2ec   : > { %v2459_v19 = vmul.f32 0.5, %v14423_v33  ;;  %14424 = vst [vmem:[#allocation69_spill] sm:$0xff] %v12795_v34  ;;  %v4685_v33 = vadd.f32 1.0, %v8366_v28  ;;  %8383 = vtanh.f32 %v12791_v10  ;;  %v5004_v34 = vmul.f32 %v4684_v36, %v12657_v20 }
 0x2ed   : > { %v7561_v59 = vadd.f32 %v7560_v2, %v7242_v5  ;;  %v14425_v2 = vld [vmem:[#allocation33_spill] sm:$0xff]  ;;  %v8370_v5 = vpop.eup %8369  ;;  %v12813_v17 = vpop.f32.mrf.mxu1  ;;  %v7246_v23 = vmul.f32 %v12283_v9, %v5003_v26  ;;  %v2460_v28 = vmul.f32 0.5, %v14429_v27  ;;  %8385 = vtanh.f32 %v12801_v44 }
 0x2ee   : > { %v2457_v12 = vmul.f32 0.5, %v14425_v2  ;;  %14428 = vst [vmem:[#allocation68_spill] sm:$0xff] %v12813_v17  ;;  %v4686_v2 = vadd.f32 1.0, %v8368_v8  ;;  %v7247_v42 = vmul.f32 %v12283_v9, %v5004_v34  ;;  %v4687_v8 = vadd.f32 1.0, %v8364_v62  ;;  %v12831_v26 = vpop.permute.xlu0 %6839  ;;  %v14434_v34 = vld [vmem:[#allocation35_spill] sm:$0xff] }
 0x2ef   : > { %v7562_v4 = vadd.f32 %v7561_v59, %v7243_v43  ;;  %v12811_v59 = vadd.f32 %v14427_v61, %v2459_v19  ;;  %v8372_v18 = vpop.eup %8371  ;;  %v12829_v36 = vadd.f32 %v14430_v55, %v2458_v7  ;;  %14432 = vst [vmem:[#allocation144_spill] sm:$0xff] %v12831_v26  ;;  %v4688_v9 = vadd.f32 1.0, %v8370_v5  ;;  %v14435_v26 = vld [vmem:[#allocation67_spill] sm:$0xff] }
 0x2f0   : > { %v12820_v21 = vadd.f32 %v14430_v55, %v2457_v12  ;;  %v12833_v12 = vpop.f32.mrf.mxu1  ;;  %v5006_v17 = vmul.f32 %v4686_v2, %v12698_v13  ;;  %v2461_v62 = vmul.f32 0.5, %v14434_v34  ;;  %v2462_v13 = vmul.f32 0.5, %v14435_v26  ;;  %v14436_v2 = vld [vmem:[#allocation123_spill] sm:$0xff] }
 0x2f1   : > { %v7563_v40 = vadd.f32 %v7562_v4, %v7244_v31  ;;  %v12822_v31 = vpop.permute.xlu1 %3346  ;;  %v8374_v19 = vpop.eup %8373  ;;  %v5005_v4 = vmul.f32 %v4685_v33, %v12686_v38  ;;  %8387 = vtanh.f32 %v12811_v59  ;;  %14433 = vst [vmem:[#allocation145_spill] sm:$0xff] %v12833_v12  ;;  %v5007_v12 = vmul.f32 %v4687_v8, %v12669_v49 }
 0x2f2   : > { %v8376_v27 = vpop.eup %8375  ;;  %8389 = vtanh.f32 %v12820_v21  ;;  %v2464_v49 = vmul.f32 0.5, %v11946_v56 }
 0x2f3   : > { %v7564_v43 = vadd.f32 %v7563_v40, %v7245_v22  ;;  %v14431_v40 = vld [vmem:[#allocation71_spill] sm:$0xff]  ;;  %v7248_v38 = vmul.f32 %v12271_v14, %v5005_v4  ;;  %8391 = vtanh.f32 %v12829_v36 }
 0x2f4   : > { %v2463_v20 = vmul.f32 0.5, %v14431_v40  ;;  %v8378_v7 = vpop.eup %8377  ;;  %v4689_v40 = vadd.f32 1.0, %v8374_v19  ;;  %v14438_v19 = vld [vmem:[#allocation124_spill] sm:$0xff] }
 0x2f5   : > { %v7565_v22 = vadd.f32 %v7564_v43, %v7246_v23  ;;  %v12839_v43 = vadd.f32 %v14427_v61, %v2460_v28  ;;  %v7249_v23 = vmul.f32 %v12271_v14, %v5006_v17  ;;  %v12849_v4 = vpop.permute.xlu1 %3351  ;;  %v12851_v61 = vpop.f32.mrf.mxu1  ;;  %v5008_v14 = vmul.f32 %v4688_v9, %v12714_v30 }
 0x2f6   : > { %v12847_v5 = vadd.f32 %v14436_v2, %v2463_v20  ;;  %14437 = vst [vmem:[#allocation146_spill] sm:$0xff] %v12851_v61  ;;  %v7250_v17 = vmul.f32 %v12329_v54, %v5007_v12  ;;  %v12858_v8 = vadd.f32 %v14438_v19, %v2461_v62  ;;  %v12860_v20 = vpop.permute.xlu0 %6844  ;;  %v2467_v30 = vmul.f32 0.5, %v12032_v53  ;;  %v14457_v61 = vld [vmem:[#allocation107_spill] sm:$0xff] }
 0x2f7   : > { %v7566_v33 = vadd.f32 %v7565_v22, %v7247_v42  ;;  %v8380_v28 = vpop.eup %8379  ;;  %v4690_v22 = vadd.f32 1.0, %v8376_v27  ;;  %8393 = vtanh.f32 %v12839_v43  ;;  %v4691_v27 = vadd.f32 1.0, %v8372_v18  ;;  %v12869_v12 = vpop.f32.mrf.mxu1 }
 0x2f8   : > { %v8382_v26 = vpop.eup %8381  ;;  %8395 = vtanh.f32 %v12847_v5  ;;  %v12867_v56 = vadd.f32 %v14438_v19, %v2462_v13  ;;  %14439 = vst [vmem:[#allocation73_spill] sm:$0xff] %v12869_v12  ;;  %v12875_v18 = vadd.f32 %v14436_v2, %v2464_v49  ;;  %v14451_v12 = vld [vmem:[#allocation15_spill] sm:$0xff] }
 0x2f9   : > { %v7567_v55 = vadd.f32 %v7566_v33, %v7248_v38  ;;  %v5009_v38 = vmul.f32 %v4689_v40, %v12739_v50  ;;  %v7251_v33 = vmul.f32 %v12329_v54, %v5008_v14  ;;  %v8384_v9 = vpop.eup %8383  ;;  %v5010_v62 = vmul.f32 %v4690_v22, %v12749_v16  ;;  %v12878_v53 = vpop.permute.xlu1 %3356  ;;  %v14440_v22 = vld [vmem:[#allocation38_spill] sm:$0xff] }
 0x2fa   : > { %v4692_v50 = vadd.f32 1.0, %v8378_v7  ;;  %v2465_v54 = vmul.f32 0.5, %v11981_v47  ;;  %8397 = vtanh.f32 %v12858_v8  ;;  %v8386_v40 = vpop.eup %8385  ;;  %v4693_v14 = vadd.f32 1.0, %v8382_v26  ;;  %v14441_v7 = vld [vmem:[#allocation127_spill] sm:$0xff]  ;;  %v12887_v2 = vpop.permute.xlu0 %6849 }
 0x2fb   : > { %v7568_v42 = vadd.f32 %v7567_v55, %v7249_v23  ;;  %v7252_v23 = vmul.f32 %v12309_v11, %v5009_v38  ;;  %v7253_v13 = vmul.f32 %v12309_v11, %v5010_v62  ;;  %v5011_v16 = vmul.f32 %v4691_v27, %v12722_v52  ;;  %v12889_v49 = vpop.f32.mrf.mxu1  ;;  %v14444_v27 = vld [vmem:[#allocation128_spill] sm:$0xff] }
 0x2fc   : > { %8399 = vtanh.f32 %v12867_v56  ;;  %v12885_v47 = vadd.f32 %v14441_v7, %v2467_v30  ;;  %14442 = vst [vmem:[#allocation63_spill] sm:$0xff] %v12889_v49  ;;  %v5012_v11 = vmul.f32 %v4692_v50, %v12763_v6  ;;  %v12896_v62 = vadd.f32 %v14444_v27, %v2465_v54 }
 0x2fd   : > { %v7569_v34 = vadd.f32 %v7568_v42, %v7250_v17  ;;  %v2466_v17 = vmul.f32 0.5, %v14440_v22  ;;  %v7254_v26 = vmul.f32 %v12366_v24, %v5011_v16  ;;  %8401 = vtanh.f32 %v12875_v18  ;;  %v12905_v50 = vpop.permute.xlu1 %3361 }
 0x2fe   : > { %v8388_v19 = vpop.eup %8387  ;;  %v4695_v49 = vadd.f32 1.0, %v8380_v28  ;;  %8403 = vtanh.f32 %v12885_v47 }
 0x2ff   : > { %v7570_v55 = vadd.f32 %v7569_v34, %v7251_v33  ;;  %v4694_v33 = vadd.f32 1.0, %v8384_v9  ;;  %v14443_v34 = vld [vmem:[#allocation74_spill] sm:$0xff]  ;;  %v8390_v30 = vpop.eup %8389  ;;  %v12903_v6 = vadd.f32 %v14444_v27, %v2466_v17  ;;  %8405 = vtanh.f32 %v12896_v62  ;;  %v12916_v17 = vpop.permute.xlu0 %6854 }
 0x300   : > { %v2468_v52 = vmul.f32 0.5, %v14443_v34  ;;  %v8392_v54 = vpop.eup %8391 }
 0x301   : > { %v7571_v42 = vadd.f32 %v7570_v55, %v7252_v23  ;;  %v5013_v23 = vmul.f32 %v4693_v14, %v12784_v39  ;;  %v7255_v55 = vmul.f32 %v12366_v24, %v5012_v11  ;;  %v5014_v16 = vmul.f32 %v4694_v33, %v12791_v10  ;;  %v14448_v33 = vld [vmem:[#allocation37_spill] sm:$0xff] }
 0x302   : > { %v4696_v24 = vadd.f32 1.0, %v8386_v40  ;;  %v12913_v11 = vadd.f32 %v14441_v7, %v2468_v52  ;;  %v5015_v10 = vmul.f32 %v4695_v49, %v12773_v15  ;;  %8407 = vtanh.f32 %v12903_v6  ;;  %v14449_v40 = vld [vmem:[#allocation131_spill] sm:$0xff]  ;;  %v14453_v15 = vld [vmem:[#allocation132_spill] sm:$0xff] }
 0x303   : > { %v7572_v38 = vadd.f32 %v7571_v42, %v7253_v13  ;;  %v14445_v13 = vld [vmem:[#allocation7_spill] sm:$0xff]  ;;  %v12907_v42 = vpop.f32.mrf.mxu1  ;;  %v7256_v39 = vmul.f32 %v12355_v46, %v5013_v23  ;;  %v7257_v34 = vmul.f32 %v12355_v46, %v5014_v16  ;;  %v2470_v23 = vmul.f32 0.5, %v14448_v33  ;;  %v14452_v16 = vld [vmem:[#allocation82_spill] sm:$0xff] }
 0x304   : > { %v2471_v9 = vmul.f32 0.5, %v14445_v13  ;;  %14446 = vst [vmem:[#allocation66_spill] sm:$0xff] %v12907_v42  ;;  %v4697_v13 = vadd.f32 1.0, %v8390_v30  ;;  %v5016_v42 = vmul.f32 %v4696_v24, %v12801_v44  ;;  %v7258_v46 = vmul.f32 %v14451_v12, %v5015_v10  ;;  %v12943_v10 = vpop.permute.xlu0 %6859 }
 0x305   : > { %v7573_v22 = vadd.f32 %v7572_v38, %v7254_v26  ;;  %v14447_v38 = vld [vmem:[#allocation75_spill] sm:$0xff]  ;;  %v8394_v26 = vpop.eup %8393  ;;  %v12925_v7 = vpop.f32.mrf.mxu1  ;;  %v2472_v30 = vmul.f32 0.5, %v14452_v16  ;;  %8409 = vtanh.f32 %v12913_v11  ;;  %v12941_v24 = vadd.f32 %v14453_v15, %v2470_v23  ;;  %14455 = vst [vmem:[#allocation70_spill] sm:$0xff] %v12943_v10  ;;  %v14459_v23 = vld [vmem:[#allocation9_spill] sm:$0xff] }
 0x306   : > { %v2469_v28 = vmul.f32 0.5, %v14447_v38  ;;  %14450 = vst [vmem:[#allocation72_spill] sm:$0xff] %v12925_v7  ;;  %v8396_v52 = vpop.eup %8395  ;;  %v4698_v38 = vadd.f32 1.0, %v8392_v54  ;;  %v7259_v33 = vmul.f32 %v14451_v12, %v5016_v42  ;;  %v4699_v54 = vadd.f32 1.0, %v8388_v19  ;;  %v14458_v42 = vld [vmem:[#allocation83_spill] sm:$0xff] }
 0x307   : > { %v7574_v14 = vadd.f32 %v7573_v22, %v7255_v55  ;;  %v12923_v55 = vadd.f32 %v14449_v40, %v2471_v9  ;;  %v8398_v9 = vpop.eup %8397  ;;  %v4700_v12 = vadd.f32 1.0, %v8394_v26  ;;  %v2474_v19 = vmul.f32 0.5, %v14458_v42 }
 0x308   : > { %v12932_v49 = vadd.f32 %v14453_v15, %v2469_v28  ;;  %v12945_v28 = vpop.f32.mrf.mxu1  ;;  %v5018_v7 = vmul.f32 %v4698_v38, %v12829_v36  ;;  %v4701_v10 = vadd.f32 1.0, %v8398_v9  ;;  %v5019_v36 = vmul.f32 %v4699_v54, %v12811_v59  ;;  %v14460_v38 = vld [vmem:[#allocation90_spill] sm:$0xff]  ;;  %v14463_v59 = vld [vmem:[#allocation135_spill] sm:$0xff] }
 0x309   : > { %v7575_v27 = vadd.f32 %v7574_v14, %v7256_v39  ;;  %v12934_v39 = vpop.permute.xlu1 %3366  ;;  %v5017_v14 = vmul.f32 %v4697_v13, %v12820_v21  ;;  %8411 = vtanh.f32 %v12923_v55  ;;  %14456 = vst [vmem:[#allocation5_spill] sm:$0xff] %v12945_v28  ;;  %v8400_v16 = vpop.eup %8399  ;;  %v2476_v26 = vmul.f32 0.5, %v14460_v38 }
 0x30a   : > { %8413 = vtanh.f32 %v12932_v49  ;;  %v8402_v15 = vpop.eup %8401 }
 0x30b   : > { %v7576_v22 = vadd.f32 %v7575_v27, %v7257_v34  ;;  %v14454_v27 = vld [vmem:[#allocation40_spill] sm:$0xff]  ;;  %v7260_v21 = vmul.f32 %v14457_v61, %v5017_v14  ;;  %8415 = vtanh.f32 %v12941_v24 }
 0x30c   : > { %v2473_v44 = vmul.f32 0.5, %v14454_v27  ;;  %v7261_v27 = vmul.f32 %v14457_v61, %v5018_v7  ;;  %v14461_v14 = vld [vmem:[#allocation136_spill] sm:$0xff]  ;;  %v5020_v61 = vmul.f32 %v4700_v12, %v12839_v43  ;;  %v7262_v7 = vmul.f32 %v12446_v32, %v5019_v36 }
 0x30d   : > { %v7577_v34 = vadd.f32 %v7576_v22, %v7258_v46  ;;  %v12951_v22 = vadd.f32 %v14449_v40, %v2472_v30  ;;  %v2475_v46 = vmul.f32 0.5, %v14459_v23  ;;  %v12962_v40 = vpop.permute.xlu1 %3371  ;;  %v12964_v30 = vpop.f32.mrf.mxu1  ;;  %v4702_v23 = vadd.f32 1.0, %v8400_v16 }
 0x30e   : > { %14462 = vst [vmem:[#allocation77_spill] sm:$0xff] %v12964_v30  ;;  %v12973_v54 = vadd.f32 %v14461_v14, %v2474_v19  ;;  %v7263_v16 = vmul.f32 %v12446_v32, %v5020_v61  ;;  %v4703_v12 = vadd.f32 1.0, %v8396_v52  ;;  %v14468_v32 = vld [vmem:[#allocation139_spill] sm:$0xff] }
 0x30f   : > { %v7578_v13 = vadd.f32 %v7577_v34, %v7259_v33  ;;  %v12960_v33 = vadd.f32 %v14461_v14, %v2473_v44  ;;  %v8404_v34 = vpop.eup %8403  ;;  %8417 = vtanh.f32 %v12951_v22  ;;  %v12970_v9 = vadd.f32 %v14463_v59, %v2475_v46  ;;  %v14464_v44 = vld [vmem:[#allocation39_spill] sm:$0xff]  ;;  %v12985_v19 = vpop.f32.mrf.mxu1 }
 0x310   : > { %v8406_v38 = vpop.eup %8405  ;;  %v14466_v46 = vld [vmem:[#allocation91_spill] sm:$0xff]  ;;  %14467 = vst [vmem:[#allocation78_spill] sm:$0xff] %v12985_v19 }
 0x311   : > { %v7579_v28 = vadd.f32 %v7578_v13, %v7260_v21  ;;  %v2477_v21 = vmul.f32 0.5, %v14464_v44  ;;  %v12976_v13 = vpop.permute.xlu0 %6864  ;;  %8419 = vtanh.f32 %v12960_v33  ;;  %v2478_v36 = vmul.f32 0.5, %v14466_v46  ;;  %v8408_v14 = vpop.eup %8407 }
 0x312   : > { %14465 = vst [vmem:[#allocation8_spill] sm:$0xff] %v12976_v13  ;;  %v5022_v44 = vmul.f32 %v4702_v23, %v12867_v56  ;;  %8421 = vtanh.f32 %v12973_v54  ;;  %v5023_v56 = vmul.f32 %v4703_v12, %v12847_v5  ;;  %v14470_v5 = vld [vmem:[#allocation42_spill] sm:$0xff] }
 0x313   : > { %v7580_v42 = vadd.f32 %v7579_v28, %v7261_v27  ;;  %v5021_v28 = vmul.f32 %v4701_v10, %v12858_v8  ;;  %v12981_v27 = vadd.f32 %v14463_v59, %v2476_v26  ;;  %v4704_v8 = vadd.f32 1.0, %v8402_v15  ;;  %v12993_v26 = vpop.permute.xlu1 %3376  ;;  %v13004_v59 = vpop.f32.mrf.mxu1 }
 0x314   : > { %v12991_v52 = vadd.f32 %v14468_v32, %v2477_v21  ;;  %v4705_v10 = vadd.f32 1.0, %v8406_v38  ;;  %8423 = vtanh.f32 %v12970_v9  ;;  %v7265_v61 = vmul.f32 %v12435_v57, %v5022_v44  ;;  %14469 = vst [vmem:[#allocation76_spill] sm:$0xff] %v13004_v59 }
 0x315   : > { %v7581_v43 = vadd.f32 %v7580_v42, %v7262_v7  ;;  %v7264_v30 = vmul.f32 %v12435_v57, %v5021_v28  ;;  %v8410_v42 = vpop.eup %8409  ;;  %8425 = vtanh.f32 %v12981_v27  ;;  %v13000_v15 = vadd.f32 %v14468_v32, %v2478_v36  ;;  %v13002_v23 = vpop.permute.xlu0 %6869  ;;  %v14471_v36 = vld [vmem:[#allocation95_spill] sm:$0xff] }
 0x316   : > { %v8412_v21 = vpop.eup %8411  ;;  %v4706_v28 = vadd.f32 1.0, %v8408_v14  ;;  %8427 = vtanh.f32 %v12991_v52  ;;  %v5025_v57 = vmul.f32 %v4705_v10, %v12896_v62  ;;  %v2480_v44 = vmul.f32 0.5, %v14471_v36 }
 0x317   : > { %v7582_v13 = vadd.f32 %v7581_v43, %v7263_v16  ;;  %v5024_v16 = vmul.f32 %v4704_v8, %v12875_v18  ;;  %v7266_v43 = vmul.f32 %v12491_v48, %v5023_v56  ;;  %v4707_v32 = vadd.f32 1.0, %v8404_v34  ;;  %v13014_v14 = vpop.permute.xlu1 %3381  ;;  %v13016_v18 = vpop.f32.mrf.mxu1 }
 0x318   : > { %8429 = vtanh.f32 %v13000_v15  ;;  %14472 = vst [vmem:[#allocation79_spill] sm:$0xff] %v13016_v18  ;;  %v4708_v56 = vadd.f32 1.0, %v8410_v42  ;;  %v13028_v18 = vadd.f32 %v12519_v58, %v2480_v44  ;;  %v4711_v44 = vadd.f32 1.0, %v8412_v21 }
 0x319   : > { %v7583_v7 = vadd.f32 %v7582_v13, %v7264_v30  ;;  %v2479_v30 = vmul.f32 0.5, %v14470_v5  ;;  %v8414_v13 = vpop.eup %8413  ;;  %v7267_v12 = vmul.f32 %v12491_v48, %v5024_v16  ;;  %v14474_v48 = vld [vmem:[#allocation98_spill] sm:$0xff]  ;;  %v13024_v34 = vpop.permute.xlu0 %6874 }
 0x31a   : > { %v8416_v8 = vpop.eup %8415  ;;  %v4709_v16 = vadd.f32 1.0, %v8414_v13  ;;  %v13032_v42 = vpop.f32.mrf.mxu1 }
 0x31b   : > { %v7584_v38 = vadd.f32 %v7583_v7, %v7265_v61  ;;  %v5026_v61 = vmul.f32 %v4706_v28, %v12903_v6  ;;  %v14473_v7 = vld [vmem:[#allocation47_spill] sm:$0xff]  ;;  %v13021_v5 = vadd.f32 %v12519_v58, %v2479_v30  ;;  %v5027_v6 = vmul.f32 %v4707_v32, %v12885_v47  ;;  %v14475_v28 = vld [vmem:[#allocation41_spill] sm:$0xff]  ;;  %14476 = vst [vmem:[#allocation10_spill] sm:$0xff] %v13032_v42  ;;  %v13041_v47 = vpop.permute.xlu1 %3386 }
 0x31c   : > { %v7268_v62 = vmul.f32 %v14473_v7, %v5025_v57  ;;  %v2482_v57 = vmul.f32 0.5, %v14475_v28  ;;  %v5029_v58 = vmul.f32 %v4709_v16, %v12932_v49  ;;  %v13052_v49 = vpop.f32.mrf.mxu1  ;;  %v14479_v28 = vld [vmem:[#allocation53_spill] sm:$0xff] }
 0x31d   : > { %v7585_v46 = vadd.f32 %v7584_v38, %v7266_v43  ;;  %v2481_v38 = vmul.f32 0.5, %v14474_v48  ;;  %v8418_v43 = vpop.eup %8417  ;;  %v7269_v36 = vmul.f32 %v14473_v7, %v5026_v61  ;;  %v7270_v13 = vmul.f32 %v12531_v1, %v5027_v6 }
 0x31e   : > { %v8420_v30 = vpop.eup %8419  ;;  %v4710_v48 = vadd.f32 1.0, %v8416_v8  ;;  %8431 = vtanh.f32 %v13021_v5  ;;  %v13047_v8 = vadd.f32 %v12557_v3, %v2482_v57  ;;  %v7272_v42 = vmul.f32 %v14479_v28, %v5029_v58 }
 0x31f   : > { %v7586_v10 = vadd.f32 %v7585_v46, %v7267_v12  ;;  %v5028_v46 = vmul.f32 %v4708_v56, %v12913_v11  ;;  %v13038_v61 = vadd.f32 %v12557_v3, %v2481_v38  ;;  %v8422_v32 = vpop.eup %8421  ;;  %8433 = vtanh.f32 %v13028_v18  ;;  %v14477_v11 = vld [vmem:[#allocation99_spill] sm:$0xff]  ;;  %v13068_v58 = vpop.permute.xlu1 %3391 }
 0x320   : > { %v14478_v56 = vld [vmem:[#allocation103_spill] sm:$0xff]  ;;  %v5030_v6 = vmul.f32 %v4710_v48, %v12941_v24  ;;  %v4714_v3 = vadd.f32 1.0, %v8422_v32 }
 0x321   : > { %v7587_v59 = vadd.f32 %v7586_v10, %v7268_v62  ;;  %v2483_v62 = vmul.f32 0.5, %v14477_v11  ;;  %v8424_v10 = vpop.eup %8423  ;;  %v2484_v38 = vmul.f32 0.5, %v14478_v56  ;;  %8435 = vtanh.f32 %v13038_v61 }
 0x322   : > { %v8426_v21 = vpop.eup %8425  ;;  %v7273_v11 = vmul.f32 %v14479_v28, %v5030_v6  ;;  %8437 = vtanh.f32 %v13047_v8 }
 0x323   : > { %v7588_v12 = vadd.f32 %v7587_v59, %v7269_v36  ;;  %v7271_v59 = vmul.f32 %v12531_v1, %v5028_v46  ;;  %v13050_v36 = vpop.permute.xlu0 %6879  ;;  %v4712_v1 = vadd.f32 1.0, %v8418_v43  ;;  %v8428_v57 = vpop.eup %8427  ;;  %v13060_v19 = vadd.f32 %v12603_v29, %v2483_v62  ;;  %v14481_v43 = vld [vmem:[#allocation44_spill] sm:$0xff] }
 0x324   : > { %v13065_v24 = vadd.f32 %v12603_v29, %v2484_v38  ;;  %v2486_v48 = vmul.f32 0.5, %v14481_v43  ;;  %v4715_v38 = vadd.f32 1.0, %v8424_v10  ;;  %v4717_v43 = vadd.f32 1.0, %v8428_v57 }
 0x325   : > { %v7589_v7 = vadd.f32 %v7588_v12, %v7270_v13  ;;  %v14480_v12 = vld [vmem:[#allocation106_spill] sm:$0xff]  ;;  %v4713_v13 = vadd.f32 1.0, %v8420_v30  ;;  %v13070_v30 = vpop.f32.mrf.mxu1  ;;  %v8430_v32 = vpop.eup %8429  ;;  %8439 = vtanh.f32 %v13060_v19 }
 0x326   : > { %v2485_v46 = vmul.f32 0.5, %v14480_v12  ;;  %8441 = vtanh.f32 %v13065_v24 }
 0x327   : > { %v7590_v16 = vadd.f32 %v7589_v7, %v7271_v59  ;;  %v5031_v59 = vmul.f32 %v4711_v44, %v12923_v55  ;;  %v5033_v55 = vmul.f32 %v4713_v13, %v12960_v33  ;;  %v14482_v44 = vld [vmem:[#allocation43_spill] sm:$0xff]  ;;  %v13079_v6 = vpop.permute.xlu0 %6884  ;;  %v4716_v33 = vadd.f32 1.0, %v8426_v21  ;;  %v13089_v13 = vpop.f32.mrf.mxu1 }
 0x328   : > { %v2487_v29 = vmul.f32 0.5, %v14482_v44  ;;  %v4718_v44 = vadd.f32 1.0, %v8430_v32 }
 0x329   : > { %v7591_v56 = vadd.f32 %v7590_v16, %v7272_v42  ;;  %v5032_v42 = vmul.f32 %v4712_v1, %v12951_v22  ;;  %v7274_v62 = vmul.f32 %v12614_v51, %v5031_v59  ;;  %v13075_v16 = vadd.f32 %v12643_v0, %v2485_v46  ;;  %v14483_v1 = vld [vmem:[#allocation18_spill] sm:$0xff] }
 0x32a   : > { %v13086_v22 = vadd.f32 %v12643_v0, %v2486_v48  ;;  %v2488_v46 = vmul.f32 0.5, %v14483_v1  ;;  %v5036_v32 = vmul.f32 %v4716_v33, %v12981_v27  ;;  %v14487_v27 = vld [vmem:[#allocation45_spill] sm:$0xff] }
 0x32b   : > { %v7592_v7 = vadd.f32 %v7591_v56, %v7273_v11  ;;  %v7275_v28 = vmul.f32 %v12614_v51, %v5032_v42  ;;  %v5034_v11 = vmul.f32 %v4714_v3, %v12973_v54  ;;  %v14484_v56 = vld [vmem:[#allocation58_spill] sm:$0xff]  ;;  %8443 = vtanh.f32 %v13075_v16  ;;  %v8432_v0 = vpop.eup %8431 }
 0x32c   : > { %v7276_v59 = vmul.f32 %v14484_v56, %v5033_v55  ;;  %v13094_v51 = vadd.f32 %v12688_v60, %v2487_v29  ;;  %v14485_v54 = vld [vmem:[#allocation46_spill] sm:$0xff]  ;;  %v5035_v42 = vmul.f32 %v4715_v38, %v12970_v9  ;;  %8445 = vtanh.f32 %v13086_v22  ;;  %v14486_v55 = vld [vmem:[#allocation117_spill] sm:$0xff] }
 0x32d   : > { %v7593_v12 = vadd.f32 %v7592_v7, %v7274_v62  ;;  %v2489_v3 = vmul.f32 0.5, %v14485_v54  ;;  %v13097_v7 = vpop.permute.xlu1 %3396  ;;  %v7277_v48 = vmul.f32 %v14484_v56, %v5034_v11  ;;  %v8434_v62 = vpop.eup %8433  ;;  %v13103_v57 = vadd.f32 %v12688_v60, %v2488_v46 }
 0x32e   : > { %v2490_v29 = vmul.f32 0.5, %v14486_v55  ;;  %v7278_v11 = vmul.f32 %v12700_v63, %v5035_v42  ;;  %v5038_v9 = vmul.f32 %v4718_v44, %v13000_v15  ;;  %8447 = vtanh.f32 %v13094_v51  ;;  %v8436_v33 = vpop.eup %8435 }
 0x32f   : > { %v7594_v10 = vadd.f32 %v7593_v12, %v7275_v28  ;;  %v13107_v28 = vpop.permute.xlu0 %6889  ;;  %v13109_v12 = vpop.f32.mrf.mxu1  ;;  %v7279_v60 = vmul.f32 %v12700_v63, %v5036_v32  ;;  %v13117_v38 = vadd.f32 %v12724_v37, %v2489_v3  ;;  %v2491_v46 = vmul.f32 0.5, %v14487_v27 }
 0x330   : > { %8449 = vtanh.f32 %v13103_v57  ;;  %v8438_v63 = vpop.eup %8437  ;;  %v7281_v42 = vmul.f32 %v12741_v25, %v5038_v9  ;;  %v4721_v55 = vadd.f32 1.0, %v8436_v33 }
 0x331   : > { %v7595_v21 = vadd.f32 %v7594_v10, %v7276_v59  ;;  %v5037_v10 = vmul.f32 %v4717_v43, %v12991_v52  ;;  %v14488_v59 = vld [vmem:[#allocation48_spill] sm:$0xff]  ;;  %v13123_v52 = vadd.f32 %v12724_v37, %v2490_v29  ;;  %v13125_v15 = vpop.permute.xlu1 %3401  ;;  %v13127_v43 = vpop.f32.mrf.mxu1  ;;  %8451 = vtanh.f32 %v13117_v38 }
 0x332   : > { %v2492_v54 = vmul.f32 0.5, %v14488_v59  ;;  %v4722_v27 = vadd.f32 1.0, %v8438_v63  ;;  %v14491_v59 = vld [vmem:[#allocation65_spill] sm:$0xff] }
 0x333   : > { %v7596_v1 = vadd.f32 %v7595_v21, %v7277_v48  ;;  %v4719_v48 = vadd.f32 1.0, %v8432_v0  ;;  %v4720_v21 = vadd.f32 1.0, %v8434_v62  ;;  %v7280_v3 = vmul.f32 %v12741_v25, %v5037_v10  ;;  %v14489_v62 = vld [vmem:[#allocation50_spill] sm:$0xff]  ;;  %v13136_v37 = vpop.permute.xlu0 %6894  ;;  %v14490_v25 = vld [vmem:[#allocation49_spill] sm:$0xff] }
 0x334   : > { %v13133_v0 = vadd.f32 %v12766_v35, %v2491_v46  ;;  %v2493_v32 = vmul.f32 0.5, %v14489_v62  ;;  %8453 = vtanh.f32 %v13123_v52  ;;  %v2494_v9 = vmul.f32 0.5, %v14490_v25  ;;  %v13145_v46 = vpop.f32.mrf.mxu1 }
 0x335   : > { %v7597_v56 = vadd.f32 %v7596_v1, %v7278_v11  ;;  %v13139_v1 = vadd.f32 %v12766_v35, %v2492_v54  ;;  %v5039_v11 = vmul.f32 %v4719_v48, %v13021_v5  ;;  %v5040_v10 = vmul.f32 %v4720_v21, %v13028_v18  ;;  %v14492_v5 = vld [vmem:[#allocation52_spill] sm:$0xff]  ;;  %v13155_v48 = vpop.permute.xlu1 %3406 }
 0x336   : > { %8455 = vtanh.f32 %v13133_v0  ;;  %v13151_v35 = vadd.f32 %v12793_v45, %v2493_v32  ;;  %v5041_v18 = vmul.f32 %v4721_v55, %v13038_v61  ;;  %v2495_v54 = vmul.f32 0.5, %v14492_v5  ;;  %v13165_v61 = vpop.f32.mrf.mxu1 }
 0x337   : > { %v7598_v44 = vadd.f32 %v7597_v56, %v7279_v60  ;;  %v8440_v60 = vpop.eup %8439  ;;  %v7282_v62 = vmul.f32 %v14491_v59, %v5039_v11  ;;  %8457 = vtanh.f32 %v13139_v1  ;;  %v13160_v11 = vadd.f32 %v12793_v45, %v2494_v9  ;;  %v13163_v25 = vpop.permute.xlu0 %6899  ;;  %14494 = vst [vmem:[#allocation86_spill] sm:$0xff] %v13165_v61 }
 0x338   : > { %v8442_v56 = vpop.eup %8441  ;;  %v7284_v5 = vmul.f32 %v12804_v41, %v5041_v18  ;;  %8459 = vtanh.f32 %v13151_v35  ;;  %v14496_v18 = vld [vmem:[#allocation140_spill] sm:$0xff] }
 0x339   : > { %v7599_v29 = vadd.f32 %v7598_v44, %v7280_v3  ;;  %v7283_v44 = vmul.f32 %v14491_v59, %v5040_v10  ;;  %v8444_v21 = vpop.eup %8443  ;;  %v14493_v3 = vld [vmem:[#allocation51_spill] sm:$0xff]  ;;  %v5042_v10 = vmul.f32 %v4722_v27, %v13047_v8  ;;  %v4724_v32 = vadd.f32 1.0, %v8442_v56  ;;  %v14495_v56 = vld [vmem:[#allocation54_spill] sm:$0xff] }
 0x33a   : > { %v8446_v55 = vpop.eup %8445  ;;  %v4725_v45 = vadd.f32 1.0, %v8444_v21  ;;  %8461 = vtanh.f32 %v13160_v11 }
 0x33b   : > { %v7600_v33 = vadd.f32 %v7599_v29, %v7281_v42  ;;  %v2496_v42 = vmul.f32 0.5, %v14493_v3  ;;  %v4723_v29 = vadd.f32 1.0, %v8440_v60  ;;  %v13171_v60 = vadd.f32 %v12822_v31, %v2495_v54  ;;  %v8448_v9 = vpop.eup %8447  ;;  %v13183_v54 = vpop.f32.mrf.mxu1 }
 0x33c   : > { %v2497_v3 = vmul.f32 0.5, %v14495_v56  ;;  %14497 = vst [vmem:[#allocation81_spill] sm:$0xff] %v13183_v54  ;;  %v13191_v56 = vpop.permute.xlu0 %6904 }
 0x33d   : > { %v7601_v63 = vadd.f32 %v7600_v33, %v7282_v62  ;;  %v7285_v33 = vmul.f32 %v12804_v41, %v5042_v10  ;;  %v13174_v8 = vadd.f32 %v12822_v31, %v2496_v42  ;;  %v5043_v27 = vmul.f32 %v4723_v29, %v13060_v19  ;;  %v13181_v10 = vpop.permute.xlu1 %3411  ;;  %v8450_v21 = vpop.eup %8449  ;;  %v14499_v42 = vld [vmem:[#allocation142_spill] sm:$0xff] }
 0x33e   : > { %v4726_v41 = vadd.f32 1.0, %v8446_v55  ;;  %v2499_v61 = vmul.f32 0.5, %v14499_v42  ;;  %8463 = vtanh.f32 %v13171_v60  ;;  %v5045_v29 = vmul.f32 %v4725_v45, %v13075_v16  ;;  %v8452_v55 = vpop.eup %8451 }
 0x33f   : > { %v7602_v59 = vadd.f32 %v7601_v63, %v7283_v44  ;;  %v5044_v44 = vmul.f32 %v4724_v32, %v13065_v24  ;;  %v2498_v63 = vmul.f32 0.5, %v14496_v18  ;;  %v14500_v24 = vld [vmem:[#allocation23_spill] sm:$0xff]  ;;  %8465 = vtanh.f32 %v13174_v8 }
 0x340   : > { %v2500_v32 = vmul.f32 0.5, %v14500_v24  ;;  %v5046_v42 = vmul.f32 %v4726_v41, %v13086_v22  ;;  %v7288_v24 = vmul.f32 %v12860_v20, %v5045_v29  ;;  %v13205_v54 = vadd.f32 %v12878_v53, %v2499_v61  ;;  %v14503_v29 = vld [vmem:[#allocation28_spill] sm:$0xff] }
 0x341   : > { %v7603_v62 = vadd.f32 %v7602_v59, %v7284_v5  ;;  %v14498_v5 = vld [vmem:[#allocation144_spill] sm:$0xff]  ;;  %v8454_v16 = vpop.eup %8453 }
 0x342   : > { %v7286_v31 = vmul.f32 %v14498_v5, %v5043_v27  ;;  %v7287_v19 = vmul.f32 %v14498_v5, %v5044_v44  ;;  %v13198_v27 = vadd.f32 %v12849_v4, %v2498_v63  ;;  %v4728_v44 = vadd.f32 1.0, %v8450_v21  ;;  %v13201_v5 = vpop.f32.mrf.mxu1 }
 0x343   : > { %v7604_v59 = vadd.f32 %v7603_v62, %v7285_v33  ;;  %v13195_v33 = vadd.f32 %v12849_v4, %v2497_v3  ;;  %v4727_v62 = vadd.f32 1.0, %v8448_v9  ;;  %14501 = vst [vmem:[#allocation94_spill] sm:$0xff] %v13201_v5  ;;  %v13209_v3 = vadd.f32 %v12878_v53, %v2500_v32  ;;  %v13211_v4 = vpop.permute.xlu1 %3416  ;;  %v8456_v63 = vpop.eup %8455 }
 0x344   : > { %v4729_v9 = vadd.f32 1.0, %v8452_v55  ;;  %v7289_v22 = vmul.f32 %v12860_v20, %v5046_v42  ;;  %v5048_v61 = vmul.f32 %v4728_v44, %v13103_v57  ;;  %v4730_v53 = vadd.f32 1.0, %v8454_v16  ;;  %v13219_v32 = vpop.permute.xlu0 %6909  ;;  %v13221_v55 = vpop.f32.mrf.mxu1 }
 0x345   : > { %v7605_v18 = vadd.f32 %v7604_v59, %v7286_v31  ;;  %v14502_v59 = vld [vmem:[#allocation56_spill] sm:$0xff]  ;;  %8467 = vtanh.f32 %v13195_v33  ;;  %v5047_v21 = vmul.f32 %v4727_v62, %v13094_v51  ;;  %14504 = vst [vmem:[#allocation80_spill] sm:$0xff] %v13221_v55  ;;  %v14505_v62 = vld [vmem:[#allocation55_spill] sm:$0xff] }
 0x346   : > { %v2501_v31 = vmul.f32 0.5, %v14502_v59  ;;  %8469 = vtanh.f32 %v13198_v27  ;;  %v7291_v51 = vmul.f32 %v12887_v2, %v5048_v61  ;;  %v5049_v57 = vmul.f32 %v4729_v9, %v13117_v38  ;;  %v13239_v5 = vpop.f32.mrf.mxu1 }
 0x347   : > { %v7606_v45 = vadd.f32 %v7605_v18, %v7287_v19  ;;  %v8458_v19 = vpop.eup %8457  ;;  %v2502_v18 = vmul.f32 0.5, %v14503_v29  ;;  %8471 = vtanh.f32 %v13205_v54  ;;  %v7290_v20 = vmul.f32 %v12887_v2, %v5047_v21  ;;  %v13237_v21 = vpop.permute.xlu1 %3421  ;;  %14507 = vst [vmem:[#allocation87_spill] sm:$0xff] %v13239_v5 }
 0x348   : > { %v13226_v42 = vadd.f32 %v12905_v50, %v2501_v31  ;;  %8473 = vtanh.f32 %v13209_v3  ;;  %v2503_v44 = vmul.f32 0.5, %v14505_v62  ;;  %v8460_v16 = vpop.eup %8459  ;;  %v5050_v31 = vmul.f32 %v4730_v53, %v13123_v52 }
 0x349   : > { %v7607_v41 = vadd.f32 %v7606_v45, %v7288_v24  ;;  %v14506_v24 = vld [vmem:[#allocation143_spill] sm:$0xff]  ;;  %v13234_v55 = vadd.f32 %v12905_v50, %v2502_v18  ;;  %v8462_v2 = vpop.eup %8461  ;;  %v7292_v38 = vmul.f32 %v12916_v17, %v5049_v57  ;;  %v4733_v18 = vadd.f32 1.0, %v8460_v16 }
 0x34a   : > { %v2504_v29 = vmul.f32 0.5, %v14506_v24  ;;  %8475 = vtanh.f32 %v13226_v42  ;;  %v7293_v9 = vmul.f32 %v12916_v17, %v5050_v31  ;;  %v14509_v17 = vld [vmem:[#allocation30_spill] sm:$0xff]  ;;  %v13257_v24 = vpop.f32.mrf.mxu1 }
 0x34b   : > { %v7608_v59 = vadd.f32 %v7607_v41, %v7289_v22  ;;  %v4731_v22 = vadd.f32 1.0, %v8456_v63  ;;  %v4732_v41 = vadd.f32 1.0, %v8458_v19  ;;  %v13245_v63 = vadd.f32 %v12934_v39, %v2503_v44  ;;  %v14508_v19 = vld [vmem:[#allocation29_spill] sm:$0xff]  ;;  %v8464_v52 = vpop.eup %8463  ;;  %14510 = vst [vmem:[#allocation12_spill] sm:$0xff] %v13257_v24  ;;  %v14511_v31 = vld [vmem:[#allocation70_spill] sm:$0xff] }
 0x34c   : > { %v2505_v50 = vmul.f32 0.5, %v14508_v19  ;;  %v8466_v57 = vpop.eup %8465  ;;  %8477 = vtanh.f32 %v13234_v55  ;;  %v2506_v44 = vmul.f32 0.5, %v14509_v17 }
 0x34d   : > { %v7609_v45 = vadd.f32 %v7608_v59, %v7290_v20  ;;  %v13248_v59 = vpop.permute.xlu0 %6914  ;;  %v13251_v20 = vadd.f32 %v12934_v39, %v2504_v29  ;;  %v5052_v62 = vmul.f32 %v4732_v41, %v13139_v1  ;;  %8479 = vtanh.f32 %v13245_v63  ;;  %v14512_v1 = vld [vmem:[#allocation57_spill] sm:$0xff] }
 0x34e   : > { %v13263_v39 = vadd.f32 %v12962_v40, %v2505_v50  ;;  %v2507_v29 = vmul.f32 0.5, %v14512_v1  ;;  %v14514_v1 = vld [vmem:[#allocation8_spill] sm:$0xff] }
 0x34f   : > { %v7610_v61 = vadd.f32 %v7609_v45, %v7291_v51  ;;  %v5051_v51 = vmul.f32 %v4731_v22, %v13133_v0  ;;  %v4734_v45 = vadd.f32 1.0, %v8462_v2  ;;  %v5053_v0 = vmul.f32 %v4733_v18, %v13151_v35  ;;  %v13267_v22 = vpop.permute.xlu1 %3426  ;;  %v13277_v35 = vpop.f32.mrf.mxu1 }
 0x350   : > { %8481 = vtanh.f32 %v13251_v20  ;;  %v4735_v2 = vadd.f32 1.0, %v8464_v52 }
 0x351   : > { %v7611_v53 = vadd.f32 %v7610_v61, %v7292_v38  ;;  %v7294_v19 = vmul.f32 %v14511_v31, %v5051_v51  ;;  %v7295_v61 = vmul.f32 %v14511_v31, %v5052_v62  ;;  %v4736_v38 = vadd.f32 1.0, %v8466_v57  ;;  %v14513_v62 = vld [vmem:[#allocation60_spill] sm:$0xff]  ;;  %v13275_v17 = vpop.permute.xlu0 %6919  ;;  %v14515_v57 = vld [vmem:[#allocation59_spill] sm:$0xff] }
 0x352   : > { %v5054_v51 = vmul.f32 %v4734_v45, %v13160_v11  ;;  %v2508_v50 = vmul.f32 0.5, %v14513_v62  ;;  %v7296_v24 = vmul.f32 %v14514_v1, %v5053_v0  ;;  %8483 = vtanh.f32 %v13263_v39  ;;  %v14516_v0 = vld [vmem:[#allocation62_spill] sm:$0xff] }
 0x353   : > { %v7612_v16 = vadd.f32 %v7611_v53, %v7293_v9  ;;  %v8468_v9 = vpop.eup %8467  ;;  %v13271_v53 = vadd.f32 %v12962_v40, %v2506_v44  ;;  %v13283_v40 = vadd.f32 %v12993_v26, %v2507_v29  ;;  %v2509_v11 = vmul.f32 0.5, %v14515_v57  ;;  %v13295_v29 = vpop.f32.mrf.mxu1 }
 0x354   : > { %v8470_v18 = vpop.eup %8469  ;;  %v7297_v52 = vmul.f32 %v14514_v1, %v5054_v51  ;;  %v4737_v62 = vadd.f32 1.0, %v8468_v9  ;;  %v13293_v1 = vpop.permute.xlu1 %3431  ;;  %14517 = vst [vmem:[#allocation84_spill] sm:$0xff] %v13295_v29 }
 0x355   : > { %v7613_v41 = vadd.f32 %v7612_v16, %v7294_v19  ;;  %v8472_v5 = vpop.eup %8471  ;;  %v5055_v16 = vmul.f32 %v4735_v2, %v13171_v60  ;;  %v5056_v19 = vmul.f32 %v4736_v38, %v13174_v8  ;;  %8485 = vtanh.f32 %v13271_v53  ;;  %v13304_v38 = vpop.permute.xlu0 %6924 }
 0x356   : > { %v8474_v44 = vpop.eup %8473  ;;  %v4738_v51 = vadd.f32 1.0, %v8470_v18  ;;  %8487 = vtanh.f32 %v13283_v40  ;;  %v13301_v8 = vadd.f32 %v13014_v14, %v2509_v11  ;;  %v4739_v18 = vadd.f32 1.0, %v8472_v5  ;;  %v13313_v11 = vpop.f32.mrf.mxu1 }
 0x357   : > { %v7614_v31 = vadd.f32 %v7613_v41, %v7295_v61  ;;  %v13290_v61 = vadd.f32 %v12993_v26, %v2508_v50  ;;  %v2510_v41 = vmul.f32 0.5, %v14516_v0  ;;  %v7299_v60 = vmul.f32 %v13002_v23, %v5056_v19  ;;  %v14518_v26 = vld [vmem:[#allocation61_spill] sm:$0xff] }
 0x358   : > { %v2511_v2 = vmul.f32 0.5, %v14518_v26  ;;  %v5057_v50 = vmul.f32 %v4737_v62, %v13195_v33  ;;  %v4740_v0 = vadd.f32 1.0, %v8474_v44  ;;  %v5059_v62 = vmul.f32 %v4739_v18, %v13205_v54 }
 0x359   : > { %v7615_v45 = vadd.f32 %v7614_v31, %v7296_v24  ;;  %v7298_v24 = vmul.f32 %v13002_v23, %v5055_v16  ;;  %v8476_v31 = vpop.eup %8475  ;;  %8489 = vtanh.f32 %v13290_v61  ;;  %v14519_v23 = vld [vmem:[#allocation64_spill] sm:$0xff] }
 0x35a   : > { %v2512_v16 = vmul.f32 0.5, %v14519_v23  ;;  %v8478_v19 = vpop.eup %8477  ;;  %v7300_v29 = vmul.f32 %v13024_v34, %v5057_v50  ;;  %8491 = vtanh.f32 %v13301_v8  ;;  %v13320_v5 = vadd.f32 %v13041_v47, %v2511_v2  ;;  %v14521_v50 = vld [vmem:[#allocation68_spill] sm:$0xff]  ;;  %v13331_v2 = vpop.permute.xlu0 %6929 }
 0x35b   : > { %v7616_v57 = vadd.f32 %v7615_v45, %v7297_v52  ;;  %v13309_v52 = vadd.f32 %v13014_v14, %v2510_v41  ;;  %v5058_v45 = vmul.f32 %v4738_v51, %v13198_v27  ;;  %v13322_v14 = vpop.permute.xlu1 %3436  ;;  %v8480_v27 = vpop.eup %8479  ;;  %v5060_v41 = vmul.f32 %v4740_v0, %v13209_v3 }
 0x35c   : > { %v4741_v51 = vadd.f32 1.0, %v8476_v31  ;;  %v13333_v23 = vpop.f32.mrf.mxu1  ;;  %v14522_v31 = vld [vmem:[#allocation145_spill] sm:$0xff] }
 0x35d   : > { %v7617_v9 = vadd.f32 %v7616_v57, %v7298_v24  ;;  %v14520_v57 = vld [vmem:[#allocation69_spill] sm:$0xff]  ;;  %v7301_v33 = vmul.f32 %v13024_v34, %v5058_v45  ;;  %8493 = vtanh.f32 %v13309_v52  ;;  %v2514_v34 = vmul.f32 0.5, %v14521_v50 }
 0x35e   : > { %v2513_v24 = vmul.f32 0.5, %v14520_v57  ;;  %v4742_v45 = vadd.f32 1.0, %v8478_v19  ;;  %8495 = vtanh.f32 %v13320_v5  ;;  %v7303_v3 = vmul.f32 %v13050_v36, %v5060_v41 }
 0x35f   : > { %v7618_v26 = vadd.f32 %v7617_v9, %v7299_v60  ;;  %v8482_v60 = vpop.eup %8481  ;;  %v13328_v9 = vadd.f32 %v13041_v47, %v2512_v16  ;;  %v2515_v47 = vmul.f32 0.5, %v14522_v31  ;;  %v5061_v16 = vmul.f32 %v4741_v51, %v13226_v42  ;;  %v13349_v50 = vpop.permute.xlu1 %3441 }
 0x360   : > { %v13337_v54 = vadd.f32 %v13068_v58, %v2513_v24  ;;  %v8484_v18 = vpop.eup %8483  ;;  %v4743_v19 = vadd.f32 1.0, %v8480_v27  ;;  %v5062_v24 = vmul.f32 %v4742_v45, %v13234_v55 }
 0x361   : > { %v7619_v44 = vadd.f32 %v7618_v26, %v7300_v29  ;;  %v7302_v29 = vmul.f32 %v13050_v36, %v5059_v62  ;;  %v4744_v26 = vadd.f32 1.0, %v8482_v60  ;;  %8497 = vtanh.f32 %v13328_v9  ;;  %v13351_v36 = vpop.f32.mrf.mxu1 }
 0x362   : > { %v8486_v41 = vpop.eup %8485  ;;  %8499 = vtanh.f32 %v13337_v54  ;;  %v7304_v42 = vmul.f32 %v13079_v6, %v5061_v16  ;;  %v7305_v27 = vmul.f32 %v13079_v6, %v5062_v24  ;;  %v13357_v51 = vadd.f32 %v13097_v7, %v2515_v47 }
 0x363   : > { %v7620_v57 = vadd.f32 %v7619_v44, %v7301_v33  ;;  %v13345_v33 = vadd.f32 %v13068_v58, %v2514_v34  ;;  %v14523_v44 = vld [vmem:[#allocation146_spill] sm:$0xff]  ;;  %v14524_v58 = vld [vmem:[#allocation73_spill] sm:$0xff]  ;;  %v4745_v55 = vadd.f32 1.0, %v8484_v18  ;;  %v13360_v34 = vpop.permute.xlu0 %6934  ;;  %v8488_v45 = vpop.eup %8487  ;;  %v4746_v47 = vadd.f32 1.0, %v8486_v41 }
 0x364   : > { %v2516_v62 = vmul.f32 0.5, %v14523_v44  ;;  %v2517_v60 = vmul.f32 0.5, %v14524_v58  ;;  %v13369_v16 = vpop.f32.mrf.mxu1 }
 0x365   : > { %v7621_v0 = vadd.f32 %v7620_v57, %v7302_v29  ;;  %v5063_v29 = vmul.f32 %v4743_v19, %v13245_v63  ;;  %8501 = vtanh.f32 %v13345_v33  ;;  %v14526_v19 = vld [vmem:[#allocation66_spill] sm:$0xff] }
 0x366   : > { %v13367_v6 = vadd.f32 %v13097_v7, %v2516_v62  ;;  %v8490_v24 = vpop.eup %8489  ;;  %8503 = vtanh.f32 %v13357_v51  ;;  %v13375_v63 = vadd.f32 %v13125_v15, %v2517_v60  ;;  %v13379_v7 = vpop.permute.xlu1 %3446 }
 0x367   : > { %v7622_v31 = vadd.f32 %v7621_v0, %v7303_v3  ;;  %v5064_v3 = vmul.f32 %v4744_v26, %v13251_v20  ;;  %v14525_v0 = vld [vmem:[#allocation63_spill] sm:$0xff]  ;;  %v7306_v58 = vmul.f32 %v13107_v28, %v5063_v29  ;;  %v5065_v20 = vmul.f32 %v4745_v55, %v13263_v39  ;;  %v8492_v62 = vpop.eup %8491  ;;  %v13389_v39 = vpop.f32.mrf.mxu1 }
 0x368   : > { %v2518_v44 = vmul.f32 0.5, %v14525_v0  ;;  %v2519_v26 = vmul.f32 0.5, %v14526_v19  ;;  %v4747_v29 = vadd.f32 1.0, %v8488_v45  ;;  %8505 = vtanh.f32 %v13367_v6  ;;  %14528 = vst [vmem:[#allocation11_spill] sm:$0xff] %v13389_v39 }
 0x369   : > { %v7623_v57 = vadd.f32 %v7622_v31, %v7304_v42  ;;  %v7307_v31 = vmul.f32 %v13107_v28, %v5064_v3  ;;  %v5066_v28 = vmul.f32 %v4746_v47, %v13271_v53  ;;  %v4748_v60 = vadd.f32 1.0, %v8490_v24  ;;  %v13387_v3 = vpop.permute.xlu0 %6939 }
 0x36a   : > { %v13382_v42 = vadd.f32 %v13125_v15, %v2518_v44  ;;  %v8494_v55 = vpop.eup %8493  ;;  %v7308_v19 = vmul.f32 %v13136_v37, %v5065_v20  ;;  %8507 = vtanh.f32 %v13375_v63  ;;  %v13396_v45 = vadd.f32 %v13155_v48, %v2519_v26  ;;  %v13405_v39 = vpop.permute.xlu1 %3451 }
 0x36b   : > { %v7624_v18 = vadd.f32 %v7623_v57, %v7305_v27  ;;  %v14527_v27 = vld [vmem:[#allocation72_spill] sm:$0xff]  ;;  %v7309_v15 = vmul.f32 %v13136_v37, %v5066_v28  ;;  %v4749_v44 = vadd.f32 1.0, %v8492_v62  ;;  %v8496_v53 = vpop.eup %8495  ;;  %v5068_v20 = vmul.f32 %v4748_v60, %v13290_v61  ;;  %v13407_v37 = vpop.f32.mrf.mxu1 }
 0x36c   : > { %v2520_v57 = vmul.f32 0.5, %v14527_v27  ;;  %8509 = vtanh.f32 %v13382_v42  ;;  %14531 = vst [vmem:[#allocation85_spill] sm:$0xff] %v13407_v37  ;;  %v14533_v61 = vld [vmem:[#allocation76_spill] sm:$0xff]  ;;  %v4751_v60 = vadd.f32 1.0, %v8496_v53 }
 0x36d   : > { %v7625_v41 = vadd.f32 %v7624_v18, %v7306_v58  ;;  %v14529_v18 = vld [vmem:[#allocation5_spill] sm:$0xff]  ;;  %8511 = vtanh.f32 %v13396_v45  ;;  %v13426_v37 = vpop.f32.mrf.mxu1 }
 0x36e   : > { %v2521_v58 = vmul.f32 0.5, %v14529_v18  ;;  %v13400_v24 = vadd.f32 %v13155_v48, %v2520_v57  ;;  %v4750_v18 = vadd.f32 1.0, %v8494_v55  ;;  %v8498_v26 = vpop.eup %8497  ;;  %v14532_v48 = vld [vmem:[#allocation78_spill] sm:$0xff]  ;;  %v13417_v55 = vpop.permute.xlu0 %6944 }
 0x36f   : > { %v7626_v0 = vadd.f32 %v7625_v41, %v7307_v31  ;;  %v5067_v31 = vmul.f32 %v4747_v29, %v13283_v40  ;;  %v14530_v41 = vld [vmem:[#allocation77_spill] sm:$0xff]  ;;  %v2523_v57 = vmul.f32 0.5, %v14532_v48  ;;  %v5069_v40 = vmul.f32 %v4749_v44, %v13301_v8 }
 0x370   : > { %v2522_v27 = vmul.f32 0.5, %v14530_v41  ;;  %v2524_v29 = vmul.f32 0.5, %v14533_v61  ;;  %8513 = vtanh.f32 %v13400_v24  ;;  %v4752_v48 = vadd.f32 1.0, %v8498_v26  ;;  %v14534_v61 = vld [vmem:[#allocation79_spill] sm:$0xff] }
 0x371   : > { %v7627_v47 = vadd.f32 %v7626_v0, %v7308_v19  ;;  %v7310_v28 = vmul.f32 %v13163_v25, %v5067_v31  ;;  %v13411_v0 = vadd.f32 %v13181_v10, %v2521_v58  ;;  %v8500_v19 = vpop.eup %8499  ;;  %v5070_v31 = vmul.f32 %v4750_v18, %v13309_v52 }
 0x372   : > { %v13422_v58 = vadd.f32 %v13181_v10, %v2522_v27  ;;  %v7312_v41 = vmul.f32 %v13191_v56, %v5069_v40  ;;  %v8502_v8 = vpop.eup %8501  ;;  %v13430_v53 = vadd.f32 %v13211_v4, %v2523_v57  ;;  %v5071_v10 = vmul.f32 %v4751_v60, %v13320_v5  ;;  %v13437_v27 = vpop.permute.xlu1 %3456 }
 0x373   : > { %v7628_v62 = vadd.f32 %v7627_v47, %v7309_v15  ;;  %v7311_v15 = vmul.f32 %v13163_v25, %v5068_v20  ;;  %8515 = vtanh.f32 %v13411_v0  ;;  %v2525_v25 = vmul.f32 0.5, %v14534_v61  ;;  %v8504_v18 = vpop.eup %8503 }
 0x374   : > { %v13434_v20 = vadd.f32 %v13211_v4, %v2524_v29  ;;  %v4753_v52 = vadd.f32 1.0, %v8500_v19  ;;  %v7313_v26 = vmul.f32 %v13191_v56, %v5070_v31  ;;  %8517 = vtanh.f32 %v13422_v58  ;;  %v13444_v4 = vpop.permute.xlu0 %6949  ;;  %v13446_v29 = vpop.f32.mrf.mxu1 }
 0x375   : > { %v7629_v47 = vadd.f32 %v7628_v62, %v7310_v28  ;;  %v14535_v28 = vld [vmem:[#allocation10_spill] sm:$0xff]  ;;  %v5072_v57 = vmul.f32 %v4752_v48, %v13328_v9  ;;  %v8506_v5 = vpop.eup %8505  ;;  %8519 = vtanh.f32 %v13430_v53  ;;  %v13450_v56 = vadd.f32 %v13237_v21, %v2525_v25 }
 0x376   : > { %v2526_v40 = vmul.f32 0.5, %v14535_v28  ;;  %v2527_v60 = vmul.f32 0.5, %v13052_v49  ;;  %8521 = vtanh.f32 %v13434_v20  ;;  %v5073_v9 = vmul.f32 %v4753_v52, %v13337_v54  ;;  %v13463_v28 = vpop.permute.xlu1 %3461  ;;  %v13465_v54 = vpop.f32.mrf.mxu1 }
 0x377   : > { %v7630_v44 = vadd.f32 %v7629_v47, %v7311_v15  ;;  %v7314_v15 = vmul.f32 %v13219_v32, %v5071_v10  ;;  %v4754_v47 = vadd.f32 1.0, %v8502_v8  ;;  %v2528_v31 = vmul.f32 0.5, %v13070_v30 }
 0x378   : > { %v7315_v48 = vmul.f32 %v13219_v32, %v5072_v57  ;;  %v4755_v61 = vadd.f32 1.0, %v8504_v18  ;;  %v4756_v49 = vadd.f32 1.0, %v8506_v5  ;;  %8523 = vtanh.f32 %v13450_v56 }
 0x379   : > { %v7631_v62 = vadd.f32 %v7630_v44, %v7312_v41  ;;  %v8508_v41 = vpop.eup %8507  ;;  %v13458_v44 = vadd.f32 %v13237_v21, %v2526_v40  ;;  %v5074_v25 = vmul.f32 %v4754_v47, %v13345_v33  ;;  %v13469_v32 = vadd.f32 %v13267_v22, %v2527_v60  ;;  %v13476_v40 = vpop.permute.xlu0 %6954 }
 0x37a   : > { %v8510_v10 = vpop.eup %8509  ;;  %v2530_v21 = vmul.f32 0.5, %v13109_v12  ;;  %v13474_v33 = vadd.f32 %v13267_v22, %v2528_v31  ;;  %v4757_v18 = vadd.f32 1.0, %v8508_v41  ;;  %v13485_v22 = vpop.f32.mrf.mxu1  ;;  %v2532_v41 = vmul.f32 0.5, %v13145_v46 }
 0x37b   : > { %v7632_v19 = vadd.f32 %v7631_v62, %v7313_v26  ;;  %v7316_v26 = vmul.f32 %v13248_v59, %v5073_v9  ;;  %v2529_v62 = vmul.f32 0.5, %v13089_v13  ;;  %v7317_v52 = vmul.f32 %v13248_v59, %v5074_v25  ;;  %v8512_v13 = vpop.eup %8511 }
 0x37c   : > { %8525 = vtanh.f32 %v13458_v44  ;;  %v4758_v47 = vadd.f32 1.0, %v8510_v10  ;;  %v2531_v59 = vmul.f32 0.5, %v13127_v43  ;;  %v13490_v31 = vadd.f32 %v13293_v1, %v2530_v21 }
 0x37d   : > { %v7633_v8 = vadd.f32 %v7632_v19, %v7314_v15  ;;  %v5075_v15 = vmul.f32 %v4755_v61, %v13357_v51  ;;  %v8514_v5 = vpop.eup %8513  ;;  %v5076_v19 = vmul.f32 %v4756_v49, %v13367_v6  ;;  %v13482_v12 = vadd.f32 %v13293_v1, %v2529_v62  ;;  %v13504_v49 = vpop.permute.xlu0 %6959 }
 0x37e   : > { %8527 = vtanh.f32 %v13469_v32  ;;  %v5077_v6 = vmul.f32 %v4757_v18, %v13375_v63  ;;  %v5078_v10 = vmul.f32 %v4758_v47, %v13382_v42  ;;  %v13502_v25 = vadd.f32 %v13322_v14, %v2531_v59  ;;  %v13506_v63 = vpop.f32.mrf.mxu1  ;;  %v14537_v47 = vld [vmem:[#allocation81_spill] sm:$0xff] }
 0x37f   : > { %v7634_v30 = vadd.f32 %v7633_v8, %v7315_v48  ;;  %v7318_v9 = vmul.f32 %v13275_v17, %v5075_v15  ;;  %8529 = vtanh.f32 %v13474_v33  ;;  %v4759_v48 = vadd.f32 1.0, %v8512_v13  ;;  %v13495_v8 = vpop.permute.xlu1 %3466 }
 0x380   : > { %v8516_v51 = vpop.eup %8515  ;;  %v7319_v43 = vmul.f32 %v13275_v17, %v5076_v19  ;;  %8531 = vtanh.f32 %v13482_v12  ;;  %v7320_v1 = vmul.f32 %v13304_v38, %v5077_v6  ;;  %v14536_v17 = vld [vmem:[#allocation86_spill] sm:$0xff] }
 0x381   : > { %v7635_v57 = vadd.f32 %v7634_v30, %v7316_v26  ;;  %v4760_v26 = vadd.f32 1.0, %v8514_v5  ;;  %v8518_v46 = vpop.eup %8517  ;;  %8533 = vtanh.f32 %v13490_v31  ;;  %v2533_v30 = vmul.f32 0.5, %v14536_v17  ;;  %v14538_v6 = vld [vmem:[#allocation94_spill] sm:$0xff] }
 0x382   : > { %v4761_v21 = vadd.f32 1.0, %v8516_v51  ;;  %v8520_v42 = vpop.eup %8519  ;;  %v5079_v18 = vmul.f32 %v4759_v48, %v13396_v45  ;;  %v2534_v5 = vmul.f32 0.5, %v14537_v47  ;;  %8535 = vtanh.f32 %v13502_v25  ;;  %v13521_v51 = vpop.f32.mrf.mxu1 }
 0x383   : > { %v7636_v60 = vadd.f32 %v7635_v57, %v7317_v52  ;;  %v13511_v52 = vadd.f32 %v13322_v14, %v2532_v41  ;;  %v8522_v13 = vpop.eup %8521  ;;  %v7321_v57 = vmul.f32 %v13304_v38, %v5078_v10  ;;  %v5080_v19 = vmul.f32 %v4760_v26, %v13400_v24 }
 0x384   : > { %v7322_v59 = vmul.f32 %v13331_v2, %v5079_v18  ;;  %v13524_v45 = vadd.f32 %v13349_v50, %v2533_v30  ;;  %v5081_v38 = vmul.f32 %v4761_v21, %v13411_v0  ;;  %v2535_v41 = vmul.f32 0.5, %v14538_v6  ;;  %v14540_v21 = vld [vmem:[#allocation87_spill] sm:$0xff] }
 0x385   : > { %v7637_v61 = vadd.f32 %v7636_v60, %v7318_v9  ;;  %v4762_v60 = vadd.f32 1.0, %v8518_v46  ;;  %v13519_v9 = vpop.permute.xlu1 %3471  ;;  %v8524_v48 = vpop.eup %8523  ;;  %8537 = vtanh.f32 %v13511_v52  ;;  %v4764_v10 = vadd.f32 1.0, %v8522_v13 }
 0x386   : > { %v7323_v26 = vmul.f32 %v13331_v2, %v5080_v19  ;;  %v7324_v30 = vmul.f32 %v13360_v34, %v5081_v38  ;;  %v2537_v18 = vmul.f32 0.5, %v14540_v21  ;;  %8539 = vtanh.f32 %v13524_v45  ;;  %v14542_v21 = vld [vmem:[#allocation84_spill] sm:$0xff] }
 0x387   : > { %v7638_v62 = vadd.f32 %v7637_v61, %v7319_v43  ;;  %v14539_v43 = vld [vmem:[#allocation80_spill] sm:$0xff]  ;;  %v4763_v61 = vadd.f32 1.0, %v8520_v42  ;;  %v5082_v0 = vmul.f32 %v4762_v60, %v13422_v58  ;;  %v13543_v42 = vadd.f32 %v13379_v7, %v2535_v41 }
 0x388   : > { %v2536_v24 = vmul.f32 0.5, %v14539_v43  ;;  %v4765_v2 = vadd.f32 1.0, %v8524_v48 }
 0x389   : > { %v7639_v15 = vadd.f32 %v7638_v62, %v7320_v1  ;;  %v13530_v1 = vpop.permute.xlu0 %6964  ;;  %v13534_v62 = vadd.f32 %v13349_v50, %v2534_v5  ;;  %v8526_v17 = vpop.eup %8525  ;;  %v7325_v50 = vmul.f32 %v13360_v34, %v5082_v0  ;;  %v5083_v58 = vmul.f32 %v4763_v61, %v13430_v53 }
 0x38a   : > { %v13547_v47 = vadd.f32 %v13379_v7, %v2536_v24  ;;  %v5084_v5 = vmul.f32 %v4764_v10, %v13434_v20  ;;  %v13551_v19 = vpop.permute.xlu1 %3476  ;;  %v4766_v6 = vadd.f32 1.0, %v8526_v17  ;;  %v13557_v34 = vadd.f32 %v13405_v39, %v2537_v18 }
 0x38b   : > { %v7640_v14 = vadd.f32 %v7639_v15, %v7321_v57  ;;  %v13539_v57 = vpop.f32.mrf.mxu1  ;;  %v8528_v13 = vpop.eup %8527  ;;  %8541 = vtanh.f32 %v13534_v62  ;;  %v7326_v41 = vmul.f32 %v13387_v3, %v5083_v58  ;;  %v5085_v24 = vmul.f32 %v4765_v2, %v13450_v56 }
 0x38c   : > { %8543 = vtanh.f32 %v13543_v42  ;;  %v7327_v43 = vmul.f32 %v13387_v3, %v5084_v5  ;;  %v2539_v10 = vmul.f32 0.5, %v13277_v35  ;;  %v2540_v18 = vmul.f32 0.5, %v14542_v21 }
 0x38d   : > { %v7641_v46 = vadd.f32 %v7640_v14, %v7322_v59  ;;  %v8530_v59 = vpop.eup %8529  ;;  %v14541_v14 = vld [vmem:[#allocation12_spill] sm:$0xff]  ;;  %v13559_v7 = vpop.permute.xlu0 %6969  ;;  %8545 = vtanh.f32 %v13547_v47  ;;  %v7328_v3 = vmul.f32 %v13417_v55, %v5085_v24 }
 0x38e   : > { %v2538_v38 = vmul.f32 0.5, %v14541_v14  ;;  %v13561_v48 = vpop.f32.mrf.mxu1  ;;  %v8532_v53 = vpop.eup %8531  ;;  %8547 = vtanh.f32 %v13557_v34 }
 0x38f   : > { %v7642_v15 = vadd.f32 %v7641_v46, %v7323_v26  ;;  %v8534_v61 = vpop.eup %8533  ;;  %v4767_v26 = vadd.f32 1.0, %v8528_v13  ;;  %v4768_v46 = vadd.f32 1.0, %v8530_v59  ;;  %v13575_v56 = vpop.permute.xlu1 %3481  ;;  %v2541_v59 = vmul.f32 0.5, %v13313_v11 }
 0x390   : > { %v13569_v0 = vadd.f32 %v13405_v39, %v2538_v38  ;;  %v8536_v2 = vpop.eup %8535  ;;  %v4770_v58 = vadd.f32 1.0, %v8534_v61  ;;  %v13581_v39 = vadd.f32 %v13437_v27, %v2539_v10 }
 0x391   : > { %v7643_v60 = vadd.f32 %v7642_v15, %v7324_v30  ;;  %v5086_v30 = vmul.f32 %v4766_v6, %v13458_v44  ;;  %v13577_v15 = vpop.f32.mrf.mxu1  ;;  %v5087_v44 = vmul.f32 %v4767_v26, %v13469_v32  ;;  %v5088_v5 = vmul.f32 %v4768_v46, %v13474_v33 }
 0x392   : > { %v8538_v14 = vpop.eup %8537  ;;  %8549 = vtanh.f32 %v13569_v0  ;;  %v13590_v6 = vadd.f32 %v13437_v27, %v2540_v18  ;;  %v13601_v27 = vadd.f32 %v13463_v28, %v2541_v59 }
 0x393   : > { %v7644_v20 = vadd.f32 %v7643_v60, %v7325_v50  ;;  %v7329_v13 = vmul.f32 %v13417_v55, %v5086_v30  ;;  %v4769_v50 = vadd.f32 1.0, %v8532_v53  ;;  %v13586_v60 = vpop.permute.xlu0 %6974  ;;  %v2542_v55 = vmul.f32 0.5, %v13333_v23  ;;  %v13595_v32 = vpop.f32.mrf.mxu1 }
 0x394   : > { %v7331_v53 = vmul.f32 %v13444_v4, %v5088_v5  ;;  %v8540_v24 = vpop.eup %8539  ;;  %8551 = vtanh.f32 %v13581_v39  ;;  %v2543_v23 = vmul.f32 0.5, %v13351_v36  ;;  %v4772_v61 = vadd.f32 1.0, %v8538_v14  ;;  %v13604_v10 = vpop.permute.xlu1 %3486 }
 0x395   : > { %v7645_v17 = vadd.f32 %v7644_v20, %v7326_v41  ;;  %v7330_v41 = vmul.f32 %v13444_v4, %v5087_v44  ;;  %v5089_v11 = vmul.f32 %v4769_v50, %v13482_v12  ;;  %v5090_v20 = vmul.f32 %v4770_v58, %v13490_v31  ;;  %v13614_v30 = vpop.f32.mrf.mxu1 }
 0x396   : > { %8553 = vtanh.f32 %v13590_v6  ;;  %v13608_v26 = vadd.f32 %v13463_v28, %v2542_v55  ;;  %v2544_v12 = vmul.f32 0.5, %v13369_v16  ;;  %v13620_v28 = vadd.f32 %v13495_v8, %v2543_v23 }
 0x397   : > { %v7646_v35 = vadd.f32 %v7645_v17, %v7327_v43  ;;  %v4771_v43 = vadd.f32 1.0, %v8536_v2  ;;  %v7332_v46 = vmul.f32 %v13476_v40, %v5089_v11  ;;  %v13612_v17 = vpop.permute.xlu0 %6979  ;;  %v7333_v36 = vmul.f32 %v13476_v40, %v5090_v20  ;;  %v13631_v14 = vpop.f32.mrf.mxu1 }
 0x398   : > { %v8542_v31 = vpop.eup %8541  ;;  %8555 = vtanh.f32 %v13601_v27  ;;  %v5092_v16 = vmul.f32 %v4772_v61, %v13511_v52  ;;  %v13626_v44 = vadd.f32 %v13495_v8, %v2544_v12  ;;  %v13629_v59 = vpop.permute.xlu1 %3491 }
 0x399   : > { %v7647_v38 = vadd.f32 %v7646_v35, %v7328_v3  ;;  %v5091_v18 = vmul.f32 %v4771_v43, %v13502_v25  ;;  %v4773_v3 = vadd.f32 1.0, %v8540_v24  ;;  %v8544_v2 = vpop.eup %8543  ;;  %v14543_v35 = vld [vmem:[#allocation11_spill] sm:$0xff]  ;;  %8557 = vtanh.f32 %v13608_v26  ;;  %v14544_v25 = vld [vmem:[#allocation85_spill] sm:$0xff] }
 0x39a   : > { %v8546_v50 = vpop.eup %8545  ;;  %v4774_v40 = vadd.f32 1.0, %v8542_v31  ;;  %v2546_v5 = vmul.f32 0.5, %v14544_v25  ;;  %8559 = vtanh.f32 %v13620_v28  ;;  %v4775_v11 = vadd.f32 1.0, %v8544_v2 }
 0x39b   : > { %v7648_v33 = vadd.f32 %v7647_v38, %v7329_v13  ;;  %v2545_v13 = vmul.f32 0.5, %v14543_v35  ;;  %v8548_v38 = vpop.eup %8547  ;;  %v7334_v52 = vmul.f32 %v13504_v49, %v5091_v18  ;;  %v13641_v20 = vpop.permute.xlu0 %6984  ;;  %8561 = vtanh.f32 %v13626_v44 }
 0x39c   : > { %v5094_v24 = vmul.f32 %v4774_v40, %v13534_v62  ;;  %v4776_v23 = vadd.f32 1.0, %v8546_v50  ;;  %v5095_v62 = vmul.f32 %v4775_v11, %v13543_v42  ;;  %v2550_v35 = vmul.f32 0.5, %v13485_v22 }
 0x39d   : > { %v7649_v4 = vadd.f32 %v7648_v33, %v7330_v41  ;;  %v7335_v41 = vmul.f32 %v13504_v49, %v5092_v16  ;;  %v13638_v8 = vadd.f32 %v13519_v9, %v2545_v13  ;;  %v2547_v33 = vmul.f32 0.5, %v13426_v37 }
 0x39e   : > { %v13646_v49 = vadd.f32 %v13519_v9, %v2546_v5  ;;  %v7337_v31 = vmul.f32 %v13530_v1, %v5094_v24  ;;  %v13659_v9 = vpop.permute.xlu1 %3496  ;;  %v5096_v18 = vmul.f32 %v4776_v23, %v13547_v47  ;;  %v7338_v50 = vmul.f32 %v13559_v7, %v5095_v62 }
 0x39f   : > { %v7650_v21 = vadd.f32 %v7649_v4, %v7331_v53  ;;  %v5093_v53 = vmul.f32 %v4773_v3, %v13524_v45  ;;  %v8550_v61 = vpop.eup %8549  ;;  %v2548_v45 = vmul.f32 0.5, %v13446_v29  ;;  %v13649_v4 = vpop.f32.mrf.mxu1  ;;  %8563 = vtanh.f32 %v13638_v8 }
 0x3a0   : > { %v4777_v3 = vadd.f32 1.0, %v8548_v38  ;;  %v4778_v2 = vadd.f32 1.0, %v8550_v61  ;;  %8565 = vtanh.f32 %v13646_v49  ;;  %v13667_v13 = vpop.permute.xlu0 %6989  ;;  %v2551_v40 = vmul.f32 0.5, %v13506_v63 }
 0x3a1   : > { %v7651_v58 = vadd.f32 %v7650_v21, %v7332_v46  ;;  %v7336_v37 = vmul.f32 %v13530_v1, %v5093_v53  ;;  %v13655_v46 = vadd.f32 %v13551_v19, %v2547_v33  ;;  %v2549_v21 = vmul.f32 0.5, %v13465_v54  ;;  %v13669_v42 = vpop.f32.mrf.mxu1 }
 0x3a2   : > { %v13664_v1 = vadd.f32 %v13551_v19, %v2548_v45  ;;  %v5097_v22 = vmul.f32 %v4777_v3, %v13557_v34  ;;  %v5098_v38 = vmul.f32 %v4778_v2, %v13569_v0  ;;  %v13685_v53 = vpop.permute.xlu1 %3501  ;;  %v13693_v0 = vadd.f32 %v13604_v10, %v2551_v40 }
 0x3a3   : > { %v7652_v55 = vadd.f32 %v7651_v58, %v7333_v36  ;;  %v8552_v36 = vpop.eup %8551  ;;  %v7339_v58 = vmul.f32 %v13559_v7, %v5096_v18  ;;  %8567 = vtanh.f32 %v13655_v46  ;;  %v13675_v47 = vadd.f32 %v13575_v56, %v2549_v21  ;;  %v13687_v33 = vpop.f32.mrf.mxu1 }
 0x3a4   : > { %v8554_v16 = vpop.eup %8553  ;;  %v4779_v19 = vadd.f32 1.0, %v8552_v36  ;;  %8569 = vtanh.f32 %v13664_v1  ;;  %v13682_v7 = vadd.f32 %v13575_v56, %v2550_v35  ;;  %v7340_v11 = vmul.f32 %v13586_v60, %v5097_v22  ;;  %v13697_v24 = vpop.permute.xlu0 %6994 }
 0x3a5   : > { %v7653_v43 = vadd.f32 %v7652_v55, %v7334_v52  ;;  %v8556_v25 = vpop.eup %8555  ;;  %v4780_v55 = vadd.f32 1.0, %v8554_v16  ;;  %v7341_v34 = vmul.f32 %v13586_v60, %v5098_v38  ;;  %8571 = vtanh.f32 %v13675_v47  ;;  %v13705_v62 = vpop.f32.mrf.mxu1 }
 0x3a6   : > { %v8558_v52 = vpop.eup %8557  ;;  %v2553_v56 = vmul.f32 0.5, %v13539_v57  ;;  %v4781_v45 = vadd.f32 1.0, %v8556_v25  ;;  %8573 = vtanh.f32 %v13682_v7  ;;  %v2555_v36 = vmul.f32 0.5, %v13577_v15  ;;  %v3507_v18 = vpop.permute.xlu1 %3506 }
 0x3a7   : > { %v7654_v12 = vadd.f32 %v7653_v43, %v7335_v41  ;;  %v2552_v41 = vmul.f32 0.5, %v13521_v51  ;;  %v5099_v43 = vmul.f32 %v4779_v19, %v13581_v39  ;;  %v8560_v51 = vpop.eup %8559  ;;  %v5100_v61 = vmul.f32 %v4780_v55, %v13590_v6 }
 0x3a8   : > { %8575 = vtanh.f32 %v13693_v0  ;;  %v13711_v6 = vadd.f32 %v13629_v59, %v2553_v56  ;;  %v2556_v35 = vmul.f32 0.5, %v13595_v32  ;;  %v2558_v22 = vmul.f32 0.5, %v13631_v14 }
 0x3a9   : > { %v7655_v29 = vadd.f32 %v7654_v12, %v7336_v37  ;;  %v4782_v12 = vadd.f32 1.0, %v8558_v52  ;;  %v8562_v37 = vpop.eup %8561  ;;  %v13702_v60 = vadd.f32 %v13604_v10, %v2552_v41  ;;  %v7342_v57 = vmul.f32 %v13612_v17, %v5099_v43 }
 0x3aa   : > { %v7343_v21 = vmul.f32 %v13612_v17, %v5100_v61  ;;  %v4784_v16 = vadd.f32 1.0, %v8562_v37  ;;  %v2559_v52 = vmul.f32 0.5, %v13649_v4  ;;  %v3512_v41 = vpop.permute.xlu1 %3511 }
 0x3ab   : > { %v7656_v54 = vadd.f32 %v7655_v29, %v7337_v31  ;;  %v2554_v31 = vmul.f32 0.5, %v13561_v48  ;;  %v4783_v29 = vadd.f32 1.0, %v8560_v51  ;;  %v5101_v48 = vmul.f32 %v4781_v45, %v13601_v27 }
 0x3ac   : > { %v8564_v10 = vpop.eup %8563  ;;  %v5102_v2 = vmul.f32 %v4782_v12, %v13608_v26  ;;  %8577 = vtanh.f32 %v13702_v60  ;;  %v13727_v27 = vadd.f32 %v13659_v9, %v2555_v36  ;;  %v13745_v51 = vadd.f32 %v13685_v53, %v2558_v22 }
 0x3ad   : > { %v7657_v5 = vadd.f32 %v7656_v54, %v7338_v50  ;;  %v13718_v17 = vadd.f32 %v13629_v59, %v2554_v31  ;;  %v13721_v54 = vpop.permute.xlu0 %6999  ;;  %v2232_v50 = vpop.f32.mrf.mxu1  ;;  %v7344_v40 = vmul.f32 %v13641_v20, %v5101_v48  ;;  %8579 = vtanh.f32 %v13711_v6 }
 0x3ae   : > { %v8566_v15 = vpop.eup %8565  ;;  %v7345_v19 = vmul.f32 %v13641_v20, %v5102_v2  ;;  %v5103_v26 = vmul.f32 %v4783_v29, %v13620_v28  ;;  %v2557_v59 = vmul.f32 0.5, %v13614_v30  ;;  %v4785_v38 = vadd.f32 1.0, %v8564_v10 }
 0x3af   : > { %v7658_v63 = vadd.f32 %v7657_v5, %v7339_v58  ;;  %v5104_v5 = vmul.f32 %v4784_v16, %v13626_v44  ;;  %8581 = vtanh.f32 %v13718_v17  ;;  %v13735_v20 = vadd.f32 %v13659_v9, %v2556_v35 }
 0x3b0   : > { %v8568_v25 = vpop.eup %8567  ;;  %v4786_v55 = vadd.f32 1.0, %v8566_v15  ;;  %v7346_v30 = vmul.f32 %v13667_v13, %v5103_v26  ;;  %8583 = vtanh.f32 %v13727_v27  ;;  %v13742_v14 = vadd.f32 %v13685_v53, %v2557_v59 }
 0x3b1   : > { %v7659_v23 = vadd.f32 %v7658_v63, %v7340_v11  ;;  %v2234_v63 = vpop.f32.mrf.mxu1  ;;  %v8570_v28 = vpop.eup %8569  ;;  %v7347_v44 = vmul.f32 %v13667_v13, %v5104_v5  ;;  %v5105_v4 = vmul.f32 %v4785_v38, %v13638_v8  ;;  %8585 = vtanh.f32 %v13735_v20 }
 0x3b2   : > { %v7005_v43 = vpop.permute.xlu0 %7004  ;;  %v8572_v9 = vpop.eup %8571  ;;  %v5106_v61 = vmul.f32 %v4786_v55, %v13646_v49  ;;  %v13751_v45 = vadd.f32 %v3507_v18, %v2559_v52  ;;  %v4788_v13 = vadd.f32 1.0, %v8570_v28  ;;  %8587 = vtanh.f32 %v13742_v14 }
 0x3b3   : > { %v7660_v39 = vadd.f32 %v7659_v23, %v7341_v34  ;;  %v4787_v34 = vadd.f32 1.0, %v8568_v25  ;;  %v2560_v23 = vmul.f32 0.5, %v13669_v42  ;;  %v2238_v12 = vpop.f32.mrf.mxu1  ;;  %v8574_v37 = vpop.eup %8573  ;;  %v4789_v53 = vadd.f32 1.0, %v8572_v9 }
 0x3b4   : > { %v7349_v8 = vmul.f32 %v13697_v24, %v5106_v61  ;;  %8589 = vtanh.f32 %v13745_v51  ;;  %v2562_v10 = vmul.f32 0.5, %v13705_v62  ;;  %v2563_v15 = vmul.f32 0.5, %v2232_v50 }
 0x3b5   : > { %v7661_v3 = vadd.f32 %v7660_v39, %v7342_v57  ;;  %v7348_v39 = vmul.f32 %v13697_v24, %v5105_v4  ;;  %v2561_v57 = vmul.f32 0.5, %v13687_v33  ;;  %v5107_v42 = vmul.f32 %v4787_v34, %v13655_v46  ;;  %v8576_v36 = vpop.eup %8575  ;;  %v2240_v2 = vpop.f32.mrf.mxu1 }
 0x3b6   : > { %v13759_v29 = vadd.f32 %v3507_v18, %v2560_v23  ;;  %8591 = vtanh.f32 %v13751_v45  ;;  %v5108_v33 = vmul.f32 %v4788_v13, %v13664_v1  ;;  %v7010_v48 = vpop.permute.xlu0 %7009  ;;  %v5109_v18 = vmul.f32 %v4789_v53, %v13675_v47 }
 0x3b7   : > { %v7662_v58 = vadd.f32 %v7661_v3, %v7343_v21  ;;  %v3517_v21 = vpop.permute.xlu1 %3516  ;;  %v4790_v3 = vadd.f32 1.0, %v8574_v37  ;;  %v7350_v46 = vmul.f32 %v13721_v54, %v5107_v42  ;;  %v13765_v35 = vadd.f32 %v3512_v41, %v2561_v57  ;;  %v2244_v22 = vpop.f32.mrf.mxu1 }
 0x3b8   : > { %8593 = vtanh.f32 %v13759_v29  ;;  %v13770_v1 = vadd.f32 %v3512_v41, %v2562_v10  ;;  %v2564_v26 = vmul.f32 0.5, %v2234_v63  ;;  %v7352_v25 = vmul.f32 %v7005_v43, %v5109_v18 }
 0x3b9   : > { %v7663_v32 = vadd.f32 %v7662_v58, %v7344_v40  ;;  %v8578_v24 = vpop.eup %8577  ;;  %v7351_v58 = vmul.f32 %v13721_v54, %v5108_v33  ;;  %v4791_v40 = vadd.f32 1.0, %v8576_v36  ;;  %v5110_v59 = vmul.f32 %v4790_v3, %v13682_v7 }
 0x3ba   : > { %v8580_v62 = vpop.eup %8579  ;;  %8595 = vtanh.f32 %v13765_v35  ;;  %v13774_v54 = vadd.f32 %v3517_v21, %v2563_v15  ;;  %v2565_v47 = vmul.f32 0.5, %v2238_v12  ;;  %v7015_v28 = vpop.permute.xlu0 %7014  ;;  %v13778_v63 = vadd.f32 %v3517_v21, %v2564_v26 }
 0x3bb   : > { %v7664_v11 = vadd.f32 %v7663_v32, %v7345_v19  ;;  %v4792_v32 = vadd.f32 1.0, %v8578_v24  ;;  %v3522_v5 = vpop.permute.xlu1 %3521  ;;  %v7353_v55 = vmul.f32 %v7005_v43, %v5110_v59  ;;  %v5111_v52 = vmul.f32 %v4791_v40, %v13693_v0 }
 0x3bc   : > { %v8582_v38 = vpop.eup %8581  ;;  %v4793_v41 = vadd.f32 1.0, %v8580_v62  ;;  %8597 = vtanh.f32 %v13770_v1  ;;  %v13782_v43 = vadd.f32 %v3522_v5, %v2565_v47  ;;  %v2567_v0 = vmul.f32 0.5, %v2244_v22 }
 0x3bd   : > { %v7665_v56 = vadd.f32 %v7664_v11, %v7346_v30  ;;  %v8584_v11 = vpop.eup %8583  ;;  %v2566_v30 = vmul.f32 0.5, %v2240_v2  ;;  %v7354_v34 = vmul.f32 %v7010_v48, %v5111_v52  ;;  %v4794_v9 = vadd.f32 1.0, %v8582_v38 }
 0x3be   : > { %v8586_v4 = vpop.eup %8585  ;;  %8599 = vtanh.f32 %v13774_v54  ;;  %v5113_v13 = vmul.f32 %v4793_v41, %v13711_v6  ;;  %v4795_v37 = vadd.f32 1.0, %v8584_v11  ;;  %v7020_v53 = vpop.permute.xlu0 %7019 }
 0x3bf   : > { %v7666_v31 = vadd.f32 %v7665_v56, %v7347_v44  ;;  %v5112_v44 = vmul.f32 %v4792_v32, %v13702_v60  ;;  %v2246_v56 = vpop.f32.mrf.mxu1  ;;  %v3527_v12 = vpop.permute.xlu1 %3526  ;;  %8601 = vtanh.f32 %v13778_v63  ;;  %v13786_v60 = vadd.f32 %v3522_v5, %v2566_v30 }
 0x3c0   : > { %v2568_v57 = vmul.f32 0.5, %v2246_v56  ;;  %v5114_v42 = vmul.f32 %v4794_v9, %v13718_v17  ;;  %v4796_v21 = vadd.f32 1.0, %v8586_v4  ;;  %8603 = vtanh.f32 %v13782_v43 }
 0x3c1   : > { %v7667_v49 = vadd.f32 %v7666_v31, %v7348_v39  ;;  %v7355_v61 = vmul.f32 %v7010_v48, %v5112_v44  ;;  %v8588_v31 = vpop.eup %8587  ;;  %v7356_v10 = vmul.f32 %v7015_v28, %v5113_v13  ;;  %v13790_v6 = vadd.f32 %v3527_v12, %v2567_v0 }
 0x3c2   : > { %v7357_v33 = vmul.f32 %v7015_v28, %v5114_v42  ;;  %v5115_v3 = vmul.f32 %v4795_v37, %v13727_v27  ;;  %8605 = vtanh.f32 %v13786_v60  ;;  %v13794_v2 = vadd.f32 %v3527_v12, %v2568_v57 }
 0x3c3   : > { %v7668_v16 = vadd.f32 %v7667_v49, %v7349_v8  ;;  %v8590_v8 = vpop.eup %8589  ;;  %v4797_v24 = vadd.f32 1.0, %v8588_v31  ;;  %v5116_v17 = vmul.f32 %v4796_v21, %v13735_v20  ;;  %8607 = vtanh.f32 %v13790_v6  ;;  %v7030_v47 = vpop.permute.xlu1 %7029 }
 0x3c4   : > { %v8592_v36 = vpop.eup %8591  ;;  %v4798_v18 = vadd.f32 1.0, %v8590_v8  ;;  %8609 = vtanh.f32 %v13794_v2 }
 0x3c5   : > { %v7669_v19 = vadd.f32 %v7668_v16, %v7350_v46  ;;  %v8594_v16 = vpop.eup %8593  ;;  %v4799_v46 = vadd.f32 1.0, %v8592_v36  ;;  %v7359_v62 = vmul.f32 %v7020_v53, %v5116_v17  ;;  %v5117_v59 = vmul.f32 %v4797_v24, %v13742_v14 }
 0x3c6   : > { %v4800_v26 = vadd.f32 1.0, %v8594_v16  ;;  %v5118_v20 = vmul.f32 %v4798_v18, %v13745_v51 }
 0x3c7   : > { %v7670_v50 = vadd.f32 %v7669_v19, %v7351_v58  ;;  %v7358_v58 = vmul.f32 %v7020_v53, %v5115_v3  ;;  %v8596_v40 = vpop.eup %8595  ;;  %v7025_v19 = vpop.permute.xlu0 %7024  ;;  %v5119_v32 = vmul.f32 %v4799_v46, %v13751_v45 }
 0x3c8   : > { %v7360_v22 = vmul.f32 %v7025_v19, %v5117_v59  ;;  %v4801_v38 = vadd.f32 1.0, %v8596_v40  ;;  %v7361_v52 = vmul.f32 %v7025_v19, %v5118_v20  ;;  %v7040_v8 = vpop.permute.xlu1 %7039 }
 0x3c9   : > { %v7671_v7 = vadd.f32 %v7670_v50, %v7352_v25  ;;  %v8598_v25 = vpop.eup %8597 }
 0x3ca   : > { %v4802_v41 = vadd.f32 1.0, %v8598_v25  ;;  %v5121_v14 = vmul.f32 %v4801_v38, %v13765_v35  ;;  %v7700_v25 = vld [vmem:[#allocation3] sm:$0x1] }
 0x3cb   : > { %v7672_v23 = vadd.f32 %v7671_v7, %v7353_v55  ;;  %v8600_v50 = vpop.eup %8599  ;;  %v5120_v55 = vmul.f32 %v4800_v26, %v13759_v29  ;;  %v7362_v7 = vmul.f32 %v7030_v47, %v5119_v32  ;;  %v7035_v45 = vpop.permute.xlu0 %7034 }
 0x3cc   : > { %v8602_v11 = vpop.eup %8601  ;;  %v4803_v44 = vadd.f32 1.0, %v8600_v50  ;;  %v5122_v4 = vmul.f32 %v4802_v41, %v13770_v1  ;;  %v7364_v29 = vmul.f32 %v7035_v45, %v5121_v14  ;;  %v7050_v46 = vpop.permute.xlu1 %7049 }
 0x3cd   : > { %v7673_v39 = vadd.f32 %v7672_v23, %v7354_v34  ;;  %v8604_v34 = vpop.eup %8603  ;;  %v7363_v9 = vmul.f32 %v7030_v47, %v5120_v55  ;;  %v4804_v51 = vadd.f32 1.0, %v8602_v11 }
 0x3ce   : > { %v5123_v0 = vmul.f32 %v4803_v44, %v13774_v54  ;;  %v4805_v13 = vadd.f32 1.0, %v8604_v34  ;;  %v7365_v31 = vmul.f32 %v7035_v45, %v5122_v4 }
 0x3cf   : > { %v7674_v49 = vadd.f32 %v7673_v39, %v7355_v61  ;;  %v8606_v23 = vpop.eup %8605  ;;  %v5124_v37 = vmul.f32 %v4804_v51, %v13778_v63 }
 0x3d0   : > { %v8608_v12 = vpop.eup %8607  ;;  %v4806_v57 = vadd.f32 1.0, %v8606_v23  ;;  %v7366_v42 = vmul.f32 %v7040_v8, %v5123_v0  ;;  %v5125_v36 = vmul.f32 %v4805_v13, %v13782_v43 }
 0x3d1   : > { %v7675_v48 = vadd.f32 %v7674_v49, %v7356_v10  ;;  %v8610_v35 = vpop.eup %8609  ;;  %v4807_v21 = vadd.f32 1.0, %v8608_v12  ;;  %v7367_v1 = vmul.f32 %v7040_v8, %v5124_v37 }
 0x3d2   : > { %v4808_v10 = vadd.f32 1.0, %v8610_v35  ;;  %v5126_v54 = vmul.f32 %v4806_v57, %v13786_v60 }
 0x3d3   : > { %v7676_v15 = vadd.f32 %v7675_v48, %v7357_v33  ;;  %v7045_v33 = vpop.permute.xlu0 %7044  ;;  %v5127_v3 = vmul.f32 %v4807_v21, %v13790_v6 }
 0x3d4   : > { %v7368_v48 = vmul.f32 %v7045_v33, %v5125_v36  ;;  %v5128_v24 = vmul.f32 %v4808_v10, %v13794_v2  ;;  %v7369_v16 = vmul.f32 %v7045_v33, %v5126_v54 }
 0x3d5   : > { %v7677_v27 = vadd.f32 %v7676_v15, %v7358_v58  ;;  %v7370_v15 = vmul.f32 %v7050_v46, %v5127_v3 }
 0x3d6   : > { %v7371_v18 = vmul.f32 %v7050_v46, %v5128_v24 }
 0x3d7   : > { %v7678_v5 = vadd.f32 %v7677_v27, %v7359_v62 }
 0x3d9   : > { %v7679_v28 = vadd.f32 %v7678_v5, %v7360_v22 }
 0x3db   : > { %v7680_v30 = vadd.f32 %v7679_v28, %v7361_v52 }
 0x3dd   : > { %v7681_v56 = vadd.f32 %v7680_v30, %v7362_v7 }
 0x3df   : > { %v7682_v61 = vadd.f32 %v7681_v56, %v7363_v9 }
 0x3e1   : > { %v7683_v39 = vadd.f32 %v7682_v61, %v7364_v29 }
 0x3e3   : > { %v7684_v53 = vadd.f32 %v7683_v39, %v7365_v31 }
 0x3e5   : > { %v7685_v49 = vadd.f32 %v7684_v53, %v7366_v42 }
 0x3e7   : > { %v7686_v63 = vadd.f32 %v7685_v49, %v7367_v1 }
 0x3e9   : > { %v7687_v17 = vadd.f32 %v7686_v63, %v7368_v48 }
 0x3eb   : > { %v7688_v58 = vadd.f32 %v7687_v17, %v7369_v16 }
 0x3ed   : > { %v7689_v43 = vadd.f32 %v7688_v58, %v7370_v15 }
 0x3ef   : > { %v7690_v40 = vadd.f32 %v7689_v43, %v7371_v18 }
 0x3f1   : > { %7691 = vadd.xlane.f32.xlu0 %v7690_v40 }
 0x47a   : > { %v7692_v62 = vpop.xlane.xlu0 %7691 }
 0x47b   : > { %v7693_v19 = vrot.slane %v7692_v62, 4 }
 0x47d   : > { %v7694_v60 = vadd.f32 %v7693_v19, %v7692_v62 }
 0x47f   : > { %v7695_v27 = vrot.slane %v7694_v60, 2 }
 0x481   : > { %v7696_v26 = vadd.f32 %v7695_v27, %v7694_v60 }
 0x483   : > { %v7697_v6 = vrot.slane %v7696_v26, 1 }
 0x485   : > { %v7698_v59 = vadd.f32 %v7697_v6, %v7696_v26 }
 0x487   : > { %7940 = vpush %v7698_v59 }
 0x4b8   : > { %s7941_s16 = spop %7940 }
 0x4b9   : > { %v7701_v2 = vstv %s7941_s16 }
 0x4ba   : > { %v7702_v32 = vadd.f32 %v7701_v2, %v7700_v25 }
 0x4bc   : > { %7704 = vst.msk [vmem:[%s250_s19] sm:$0x1] %vm7703_vm2, %v7702_v32 }
 0x4bd PF: > { %s17_s22 = sadd.s32 1, %s8633_s22   ;;  %s14545_s20 = smov %s8629_s21 }
 0x4be   : > { %p14_p5 = scmp.ge.s32.totalorder %s17_s22, 4   ;;  %s14546_s21 = smov %s14548_s4 }
 0x4c0   :  { %16 = sbr.rel (!%p14_p5) target bundleno = 3 (0x3), region = 78 }

</bundles_post_ra>
